<compile_context>
chip_gen: v5e
topology: v5e:2x2
jax: 0.10.0
libtpu: 0.0.40
codegen_flags: <defaults>
</compile_context>

<pallas_src>
import functools

import jax
import jax.numpy as jnp
from jax import lax
from jax.experimental import pallas as pl
from jax.experimental.pallas import tpu as pltpu

LN_EPS = 1e-5

PARAM_ORDER = [
    "ln1_w", "ln1_b",
    "qkv_w", "qkv_b",
    "proj_w", "proj_b",
    "ln2_w", "ln2_b",
    "fc1_w", "fc1_b",
    "fc2_w", "fc2_b",
    "lnf_w", "lnf_b",
]

# Weights that feed the MXU are cast to bf16 in the wrapper (f32 accumulate).
BF16_PARAMS = {"qkv_w", "proj_w", "fc1_w", "fc2_w"}


def _layer_norm(x, w, b, eps=LN_EPS):
    """Numerically-stable two-pass LayerNorm."""
    mu = jnp.mean(x, axis=-1, keepdims=True)
    xc = x - mu
    var = jnp.mean(xc * xc, axis=-1, keepdims=True)
    return xc * lax.rsqrt(var + eps) * w + b


def _gcl_kernel(num_heads, batch_tile, seq_len,
                x_ref,
                ln1w_ref, ln1b_ref,
                qkvw_ref, qkvb_ref,
                projw_ref, projb_ref,
                ln2w_ref, ln2b_ref,
                fc1w_ref, fc1b_ref,
                fc2w_ref, fc2b_ref,
                lnfw_ref, lnfb_ref,
                o_ref):
    M, C = x_ref.shape                    # M = batch_tile * seq_len
    N = seq_len
    nh = num_heads
    hd = C // nh

    # Hoist all small (1, dim) params once.
    ln1w, ln1b = ln1w_ref[...], ln1b_ref[...]
    ln2w, ln2b = ln2w_ref[...], ln2b_ref[...]
    lnfw, lnfb = lnfw_ref[...], lnfb_ref[...]
    qkvb = qkvb_ref[...]
    projb = projb_ref[...]
    fc1b = fc1b_ref[...]
    fc2b = fc2b_ref[...]

    x = x_ref[...]                        # (M, C) f32 token slab

    # -------- attention branch: norm1 -> MHSA -> merged proj -> residual ----
    xn = _layer_norm(x, ln1w, ln1b)
    # 1/sqrt(hd) scale is already folded into the q columns of qkv_w / qkv_b.
    qkv = jnp.dot(xn.astype(jnp.bfloat16), qkvw_ref[...],
                  preferred_element_type=jnp.float32) + qkvb     # (M, 3C) f32

    batch_rows = []
    for b in range(batch_tile):           # static, small by construction
        r0 = b * N
        head_outs = []
        for h in range(nh):               # static, small
            c0 = h * hd
            q = qkv[r0:r0 + N, c0:c0 + hd]
            k = qkv[r0:r0 + N, C + c0:C + c0 + hd]
            v = qkv[r0:r0 + N, 2 * C + c0:2 * C + c0 + hd]
            # Contract last dims: MXU consumes the transposed operand directly
            # (no explicit k.T relayout).
            logits = lax.dot_general(q, k, (((1,), (1,)), ((), ())),
                                     preferred_element_type=jnp.float32)  # (N,N)
            logits = logits - jnp.max(logits, axis=-1, keepdims=True)
            p = jnp.exp(logits)
            p = p * pl.reciprocal(jnp.sum(p, axis=-1, keepdims=True), approx=True)
            head = jnp.dot(p, v, preferred_element_type=jnp.float32)      # (N, hd)
            head_outs.append(head.astype(jnp.bfloat16))
        # Heads along lanes -> (N, C); lane concat is XLU work (MXU is busy).
        batch_rows.append(head_outs[0] if nh == 1
                          else jnp.concatenate(head_outs, axis=-1))
    attn_in = (batch_rows[0] if batch_tile == 1
               else jnp.concatenate(batch_rows, axis=0))                  # (M, C) bf16
    # Single merged projection GEMM (K = C) instead of per-head K = hd dots.
    attn = jnp.dot(attn_in, projw_ref[...],
                   preferred_element_type=jnp.float32) + projb
    x = x + attn                          # shortcut + drop_path(attn); DropPath=Identity

    # -------- MLP branch: norm2 -> fc1 -> GELU -> fc2 -> residual -----------
    xn2 = _layer_norm(x, ln2w, ln2b)
    h1 = jnp.dot(xn2.astype(jnp.bfloat16), fc1w_ref[...],
                 preferred_element_type=jnp.float32) + fc1b
    # tanh-approx GELU (EUP slot); PyTorch nn.GELU default is exact erf.
    h1 = jax.nn.gelu(h1, approximate=True)
    mlp = jnp.dot(h1.astype(jnp.bfloat16), fc2w_ref[...],
                  preferred_element_type=jnp.float32) + fc2b
    x = x + mlp

    # -------- final GCL LayerNorm --------------------------------------------
    o_ref[...] = _layer_norm(x, lnfw, lnfb)


def _vmem_bytes(bt, N, C, hidden):
    """Rough per-grid-step VMEM estimate (bytes)."""
    rows = bt * N
    io = 2 * (2 * rows * C * 4)                       # x + out blocks, double-buffered f32
    live = rows * 4 * (3 * C + hidden + 3 * C)        # qkv + h1 + attn/x f32 temporaries
    weights = 2 * (3 * C * C + C * C + 2 * C * hidden)  # bf16 GEMM weights (single-buffered)
    weights += 4 * (8 * C + 2 * hidden)                  # f32 LN params + biases
    return io + live + weights


def _pick_batch_tile(B, N, C, hidden, vmem_budget=48 << 20):
    """Largest batch fold that (a) keeps >= 2 grid steps when B allows it
    (so both v7x TensorCores get work) and (b) fits a conservative VMEM
    budget (v7x has 64 MiB physical VMEM)."""
    cap = B if B < 2 else B // 2
    best = 1
    for cand in range(1, cap + 1):
        if B % cand:
            continue
        if _vmem_bytes(cand, N, C, hidden) > vmem_budget:
            break
        best = cand
        if cand * N >= 256:               # enough rows to amortize per-step overhead
            break
    return best


def gcl_forward(x_nchw, params, num_heads, batch_tile=None):
    """x_nchw: (B, C, H, W) -> (B, C, H, W), matching GCL.forward."""
    B, C, H, W = x_nchw.shape
    N = H * W
    hidden = params["fc1_w"].shape[1]
    assert C % num_heads == 0
    if batch_tile is None:
        batch_tile = _pick_batch_tile(B, N, C, hidden)
    assert B % batch_tile == 0
    rows = batch_tile * N

    # NCHW -> token-major (B*N, C)  (matches inputs.permute(0,2,3,1).view(B,H*W,C)).
    # NOTE: interface glue only — callers holding NHWC activations can skip it.
    x_tok = jnp.transpose(x_nchw, (0, 2, 3, 1)).reshape(B * N, C)

    # Fold the 1/sqrt(hd) q-scale into qkv weight/bias (free, outside kernel).
    hd = C // num_heads
    scale = hd ** -0.5
    pdict = dict(params)
    pdict["qkv_w"] = params["qkv_w"].at[:, :C].multiply(scale)
    pdict["qkv_b"] = params["qkv_b"].at[:, :C].multiply(scale)
    param_list = [pdict[k].astype(jnp.bfloat16) if k in BF16_PARAMS else pdict[k]
                  for k in PARAM_ORDER]

    est = _vmem_bytes(batch_tile, N, C, hidden)
    vmem_limit = int(min(max(2 * est, 16 << 20), 64 << 20))

    def run(single_buffer_weights):
        if single_buffer_weights and hasattr(pl, "Buffered"):
            def wspec(shp):
                return pl.BlockSpec(shp, lambda g: (0, 0),
                                    pipeline_mode=pl.Buffered(1))
        else:
            def wspec(shp):
                return pl.BlockSpec(shp, lambda g: (0, 0))
        in_specs = [pl.BlockSpec((rows, C), lambda g: (g, 0))]
        in_specs += [wspec(w.shape) for w in param_list]
        out = pl.pallas_call(
            functools.partial(_gcl_kernel, num_heads, batch_tile, N),
            out_shape=jax.ShapeDtypeStruct((B * N, C), jnp.float32),
            grid=(B // batch_tile,),
            in_specs=in_specs,
            out_specs=pl.BlockSpec((rows, C), lambda g: (g, 0)),
            compiler_params=pltpu.CompilerParams(
                dimension_semantics=("parallel",),
                vmem_limit_bytes=vmem_limit),
        )(x_tok, *param_list)
        return jax.block_until_ready(out)

    try:
        out = run(True)
    except Exception:
        # pipeline_mode=pl.Buffered(1) unsupported on this jax — plain specs.
        out = run(False)

    # (B*N, C) -> (B, H, W, C) -> (B, C, H, W)
    return jnp.transpose(out.reshape(B, H, W, C), (0, 3, 1, 2))


def init_params(key, dim, mlp_ratio=4.0):
    """Deterministic synthetic init mirroring GCL._init_weights:
    Linear: trunc_normal(std=0.02) weights, zero bias; LayerNorm: w=1, b=0."""
    hidden = int(dim * mlp_ratio)
    ks = jax.random.split(key, 4)

    def trunc(k, shape):
        return (0.02 * jax.random.truncated_normal(k, -2.0, 2.0, shape)).astype(jnp.float32)

    return {
        "ln1_w": jnp.ones((1, dim), jnp.float32),
        "ln1_b": jnp.zeros((1, dim), jnp.float32),
        "qkv_w": trunc(ks[0], (dim, 3 * dim)),        # stored (in, out)
        "qkv_b": jnp.zeros((1, 3 * dim), jnp.float32),
        "proj_w": trunc(ks[1], (dim, dim)),
        "proj_b": jnp.zeros((1, dim), jnp.float32),
        "ln2_w": jnp.ones((1, dim), jnp.float32),
        "ln2_b": jnp.zeros((1, dim), jnp.float32),
        "fc1_w": trunc(ks[2], (dim, hidden)),
        "fc1_b": jnp.zeros((1, hidden), jnp.float32),
        "fc2_w": trunc(ks[3], (hidden, dim)),
        "fc2_b": jnp.zeros((1, dim), jnp.float32),
        "lnf_w": jnp.ones((1, dim), jnp.float32),
        "lnf_b": jnp.zeros((1, dim), jnp.float32),
    }


def gcl_reference(x_nchw, params, num_heads):
    """Pure-JAX f32 reference of the same forward pass (exact-erf GELU)."""
    B, C, H, W = x_nchw.shape
    N = H * W
    x = jnp.transpose(x_nchw, (0, 2, 3, 1)).reshape(B, N, C)

    def ln(v, w, b):
        mu = jnp.mean(v, -1, keepdims=True)
        var = jnp.mean((v - mu) ** 2, -1, keepdims=True)
        return (v - mu) * lax.rsqrt(var + LN_EPS) * w + b

    hd = C // num_heads
    scale = hd ** -0.5
    shortcut = x
    xn = ln(x, params["ln1_w"], params["ln1_b"])
    qkv = xn @ params["qkv_w"] + params["qkv_b"]
    q, k, v = qkv[..., :C], qkv[..., C:2 * C], qkv[..., 2 * C:]
    outs = []
    for h in range(num_heads):
        qh = q[..., h * hd:(h + 1) * hd] * scale
        kh = k[..., h * hd:(h + 1) * hd]
        vh = v[..., h * hd:(h + 1) * hd]
        a = jax.nn.softmax(jnp.einsum("bnd,bmd->bnm", qh, kh), axis=-1)
        outs.append(jnp.einsum("bnm,bmd->bnd", a, vh))
    attn = jnp.concatenate(outs, -1) @ params["proj_w"] + params["proj_b"]
    x = shortcut + attn
    xn2 = ln(x, params["ln2_w"], params["ln2_b"])
    h1 = jax.nn.gelu(xn2 @ params["fc1_w"] + params["fc1_b"], approximate=False)
    x = x + (h1 @ params["fc2_w"] + params["fc2_b"])
    x = ln(x, params["lnf_w"], params["lnf_b"])
    return jnp.transpose(x.reshape(B, H, W, C), (0, 3, 1, 2))


if __name__ == "__main__":
    B, C, H, W = 2, 128, 8, 8     # small shapes; embed_dim=128, num_head=2
    num_heads = 2

    key = jax.random.PRNGKey(0)
    kx, kp = jax.random.split(key)
    x = jax.random.normal(kx, (B, C, H, W), jnp.float32)
    params = init_params(kp, C)

    out = gcl_forward(x, params, num_heads)
    out = jax.block_until_ready(out)

    ref = gcl_reference(x, params, num_heads)
    assert out.shape == (B, C, H, W)
    # Tolerance relaxed vs. pure-f32: kernel uses bf16 GEMM operands
    # (f32 accumulate), tanh-GELU and approx reciprocal in softmax.
    assert jnp.allclose(out, ref, rtol=2e-2, atol=2e-2), "mismatch vs JAX reference"

    print("KERNEL_OK")
</pallas_src>

<mosaic_0001>
module attributes {stable_mosaic.version = 11 : i64} {
  func.func @_gcl_kernel(%arg0: i32, %arg1: memref<64x128xf32, #tpu.memory_space<vmem>>, %arg2: memref<1x128xf32, #tpu.memory_space<vmem>>, %arg3: memref<1x128xf32, #tpu.memory_space<vmem>>, %arg4: memref<128x384xbf16, #tpu.memory_space<vmem>>, %arg5: memref<1x384xf32, #tpu.memory_space<vmem>>, %arg6: memref<128x128xbf16, #tpu.memory_space<vmem>>, %arg7: memref<1x128xf32, #tpu.memory_space<vmem>>, %arg8: memref<1x128xf32, #tpu.memory_space<vmem>>, %arg9: memref<1x128xf32, #tpu.memory_space<vmem>>, %arg10: memref<128x512xbf16, #tpu.memory_space<vmem>>, %arg11: memref<1x512xf32, #tpu.memory_space<vmem>>, %arg12: memref<512x128xbf16, #tpu.memory_space<vmem>>, %arg13: memref<1x128xf32, #tpu.memory_space<vmem>>, %arg14: memref<1x128xf32, #tpu.memory_space<vmem>>, %arg15: memref<1x128xf32, #tpu.memory_space<vmem>>, %arg16: memref<64x128xf32, #tpu.memory_space<vmem>>) attributes {dimension_semantics = [#tpu.dimension_semantics<parallel>], iteration_bounds = array<i64: 2>, scalar_prefetch = 0 : i64, scratch_operands = 0 : i64, tpu.core_type = #tpu.core_type<tc>, window_params = [{transform_indices = @transform_0, window_bounds = array<i64: 64, 128>}, {pipeline_mode = #tpu.pipeline_mode<synchronous>, transform_indices = @transform_1, window_bounds = array<i64: 1, 128>}, {pipeline_mode = #tpu.pipeline_mode<synchronous>, transform_indices = @transform_2, window_bounds = array<i64: 1, 128>}, {pipeline_mode = #tpu.pipeline_mode<synchronous>, transform_indices = @transform_3, window_bounds = array<i64: 128, 384>}, {pipeline_mode = #tpu.pipeline_mode<synchronous>, transform_indices = @transform_4, window_bounds = array<i64: 1, 384>}, {pipeline_mode = #tpu.pipeline_mode<synchronous>, transform_indices = @transform_5, window_bounds = array<i64: 128, 128>}, {pipeline_mode = #tpu.pipeline_mode<synchronous>, transform_indices = @transform_6, window_bounds = array<i64: 1, 128>}, {pipeline_mode = #tpu.pipeline_mode<synchronous>, transform_indices = @transform_7, window_bounds = array<i64: 1, 128>}, {pipeline_mode = #tpu.pipeline_mode<synchronous>, transform_indices = @transform_8, window_bounds = array<i64: 1, 128>}, {pipeline_mode = #tpu.pipeline_mode<synchronous>, transform_indices = @transform_9, window_bounds = array<i64: 128, 512>}, {pipeline_mode = #tpu.pipeline_mode<synchronous>, transform_indices = @transform_10, window_bounds = array<i64: 1, 512>}, {pipeline_mode = #tpu.pipeline_mode<synchronous>, transform_indices = @transform_11, window_bounds = array<i64: 512, 128>}, {pipeline_mode = #tpu.pipeline_mode<synchronous>, transform_indices = @transform_12, window_bounds = array<i64: 1, 128>}, {pipeline_mode = #tpu.pipeline_mode<synchronous>, transform_indices = @transform_13, window_bounds = array<i64: 1, 128>}, {pipeline_mode = #tpu.pipeline_mode<synchronous>, transform_indices = @transform_14, window_bounds = array<i64: 1, 128>}, {transform_indices = @transform_15, window_bounds = array<i64: 64, 128>}]} {
    %c0 = arith.constant 0 : index
    %c0_0 = arith.constant 0 : index
    %0 = vector.load %arg2[%c0, %c0_0] : memref<1x128xf32, #tpu.memory_space<vmem>>, vector<1x128xf32>
    %c0_1 = arith.constant 0 : index
    %c0_2 = arith.constant 0 : index
    %1 = vector.load %arg3[%c0_1, %c0_2] : memref<1x128xf32, #tpu.memory_space<vmem>>, vector<1x128xf32>
    %c0_3 = arith.constant 0 : index
    %c0_4 = arith.constant 0 : index
    %2 = vector.load %arg8[%c0_3, %c0_4] : memref<1x128xf32, #tpu.memory_space<vmem>>, vector<1x128xf32>
    %c0_5 = arith.constant 0 : index
    %c0_6 = arith.constant 0 : index
    %3 = vector.load %arg9[%c0_5, %c0_6] : memref<1x128xf32, #tpu.memory_space<vmem>>, vector<1x128xf32>
    %c0_7 = arith.constant 0 : index
    %c0_8 = arith.constant 0 : index
    %4 = vector.load %arg14[%c0_7, %c0_8] : memref<1x128xf32, #tpu.memory_space<vmem>>, vector<1x128xf32>
    %c0_9 = arith.constant 0 : index
    %c0_10 = arith.constant 0 : index
    %5 = vector.load %arg15[%c0_9, %c0_10] : memref<1x128xf32, #tpu.memory_space<vmem>>, vector<1x128xf32>
    %c0_11 = arith.constant 0 : index
    %c0_12 = arith.constant 0 : index
    %6 = vector.load %arg5[%c0_11, %c0_12] : memref<1x384xf32, #tpu.memory_space<vmem>>, vector<1x384xf32>
    %c0_13 = arith.constant 0 : index
    %c0_14 = arith.constant 0 : index
    %7 = vector.load %arg7[%c0_13, %c0_14] : memref<1x128xf32, #tpu.memory_space<vmem>>, vector<1x128xf32>
    %c0_15 = arith.constant 0 : index
    %c0_16 = arith.constant 0 : index
    %8 = vector.load %arg11[%c0_15, %c0_16] : memref<1x512xf32, #tpu.memory_space<vmem>>, vector<1x512xf32>
    %c0_17 = arith.constant 0 : index
    %c0_18 = arith.constant 0 : index
    %9 = vector.load %arg13[%c0_17, %c0_18] : memref<1x128xf32, #tpu.memory_space<vmem>>, vector<1x128xf32>
    %c0_19 = arith.constant 0 : index
    %c0_20 = arith.constant 0 : index
    %10 = vector.load %arg1[%c0_19, %c0_20] : memref<64x128xf32, #tpu.memory_space<vmem>>, vector<64x128xf32>
    %cst = arith.constant dense<0.000000e+00> : vector<64xf32>
    %11 = vector.multi_reduction <add>, %10, %cst [1] : vector<64x128xf32> to vector<64xf32>
    %12 = vector.shape_cast %11 : vector<64xf32> to vector<64x1xf32>
    %cst_21 = arith.constant 1.280000e+02 : f32
    %13 = vector.broadcast %cst_21 : f32 to vector<64x1xf32>
    %14 = arith.divf %12, %13 : vector<64x1xf32>
    %15 = vector.broadcast %14 : vector<64x1xf32> to vector<64x128xf32>
    %16 = arith.subf %10, %15 : vector<64x128xf32>
    %17 = arith.mulf %16, %16 : vector<64x128xf32>
    %cst_22 = arith.constant dense<0.000000e+00> : vector<64xf32>
    %18 = vector.multi_reduction <add>, %17, %cst_22 [1] : vector<64x128xf32> to vector<64xf32>
    %19 = vector.shape_cast %18 : vector<64xf32> to vector<64x1xf32>
    %cst_23 = arith.constant 1.280000e+02 : f32
    %20 = vector.broadcast %cst_23 : f32 to vector<64x1xf32>
    %21 = arith.divf %19, %20 : vector<64x1xf32>
    %cst_24 = arith.constant 9.99999974E-6 : f32
    %22 = vector.broadcast %cst_24 : f32 to vector<64x1xf32>
    %23 = arith.addf %21, %22 : vector<64x1xf32>
    %24 = math.rsqrt %23 : vector<64x1xf32>
    %25 = vector.broadcast %24 : vector<64x1xf32> to vector<64x128xf32>
    %26 = arith.mulf %16, %25 : vector<64x128xf32>
    %27 = vector.broadcast %0 : vector<1x128xf32> to vector<64x128xf32>
    %28 = arith.mulf %26, %27 : vector<64x128xf32>
    %29 = vector.broadcast %1 : vector<1x128xf32> to vector<64x128xf32>
    %30 = arith.addf %28, %29 : vector<64x128xf32>
    %31 = arith.truncf %30 : vector<64x128xf32> to vector<64x128xbf16>
    %c0_25 = arith.constant 0 : index
    %c0_26 = arith.constant 0 : index
    %32 = vector.load %arg4[%c0_25, %c0_26] : memref<128x384xbf16, #tpu.memory_space<vmem>>, vector<128x384xbf16>
    %cst_27 = arith.constant dense<0.000000e+00> : vector<64x384xf32>
    %33 = tpu.matmul %31, %32, %cst_27 {dimension_numbers = #tpu.dot_dimension_numbers<[1], [0], [0], [1], [0, 0, 1, 1], [], []>} : vector<64x128xbf16>, vector<128x384xbf16>, vector<64x384xf32> -> vector<64x384xf32>
    %34 = vector.broadcast %6 : vector<1x384xf32> to vector<64x384xf32>
    %35 = arith.addf %33, %34 : vector<64x384xf32>
    %36 = vector.extract_strided_slice %35 {offsets = [0, 0], sizes = [64, 64], strides = [1, 1]} : vector<64x384xf32> to vector<64x64xf32>
    %37 = vector.extract_strided_slice %35 {offsets = [0, 128], sizes = [64, 64], strides = [1, 1]} : vector<64x384xf32> to vector<64x64xf32>
    %38 = vector.extract_strided_slice %35 {offsets = [0, 256], sizes = [64, 64], strides = [1, 1]} : vector<64x384xf32> to vector<64x64xf32>
    %cst_28 = arith.constant dense<0.000000e+00> : vector<64x64xf32>
    %39 = tpu.matmul %36, %37, %cst_28 {dimension_numbers = #tpu.dot_dimension_numbers<[1], [1], [0], [0], [0, 0, 1, 0], [], []>} : vector<64x64xf32>, vector<64x64xf32>, vector<64x64xf32> -> vector<64x64xf32>
    %cst_29 = arith.constant dense<0xFF800000> : vector<64xf32>
    %40 = vector.multi_reduction <maximumf>, %39, %cst_29 [1] : vector<64x64xf32> to vector<64xf32>
    %41 = vector.shape_cast %40 : vector<64xf32> to vector<64x1xf32>
    %42 = vector.broadcast %41 : vector<64x1xf32> to vector<64x64xf32>
    %43 = arith.subf %39, %42 : vector<64x64xf32>
    %44 = math.exp %43 : vector<64x64xf32>
    %cst_30 = arith.constant dense<0.000000e+00> : vector<64xf32>
    %45 = vector.multi_reduction <add>, %44, %cst_30 [1] : vector<64x64xf32> to vector<64xf32>
    %46 = vector.shape_cast %45 : vector<64xf32> to vector<64x1xf32>
    %47 = tpu.reciprocal %46 {approx = true} : vector<64x1xf32> -> vector<64x1xf32>
    %48 = vector.broadcast %47 : vector<64x1xf32> to vector<64x64xf32>
    %49 = arith.mulf %44, %48 : vector<64x64xf32>
    %cst_31 = arith.constant dense<0.000000e+00> : vector<64x64xf32>
    %50 = tpu.matmul %49, %38, %cst_31 {dimension_numbers = #tpu.dot_dimension_numbers<[1], [0], [0], [1], [0, 0, 1, 1], [], []>} : vector<64x64xf32>, vector<64x64xf32>, vector<64x64xf32> -> vector<64x64xf32>
    %51 = arith.truncf %50 : vector<64x64xf32> to vector<64x64xbf16>
    %52 = vector.extract_strided_slice %35 {offsets = [0, 64], sizes = [64, 64], strides = [1, 1]} : vector<64x384xf32> to vector<64x64xf32>
    %53 = vector.extract_strided_slice %35 {offsets = [0, 192], sizes = [64, 64], strides = [1, 1]} : vector<64x384xf32> to vector<64x64xf32>
    %54 = vector.extract_strided_slice %35 {offsets = [0, 320], sizes = [64, 64], strides = [1, 1]} : vector<64x384xf32> to vector<64x64xf32>
    %cst_32 = arith.constant dense<0.000000e+00> : vector<64x64xf32>
    %55 = tpu.matmul %52, %53, %cst_32 {dimension_numbers = #tpu.dot_dimension_numbers<[1], [1], [0], [0], [0, 0, 1, 0], [], []>} : vector<64x64xf32>, vector<64x64xf32>, vector<64x64xf32> -> vector<64x64xf32>
    %cst_33 = arith.constant dense<0xFF800000> : vector<64xf32>
    %56 = vector.multi_reduction <maximumf>, %55, %cst_33 [1] : vector<64x64xf32> to vector<64xf32>
    %57 = vector.shape_cast %56 : vector<64xf32> to vector<64x1xf32>
    %58 = vector.broadcast %57 : vector<64x1xf32> to vector<64x64xf32>
    %59 = arith.subf %55, %58 : vector<64x64xf32>
    %60 = math.exp %59 : vector<64x64xf32>
    %cst_34 = arith.constant dense<0.000000e+00> : vector<64xf32>
    %61 = vector.multi_reduction <add>, %60, %cst_34 [1] : vector<64x64xf32> to vector<64xf32>
    %62 = vector.shape_cast %61 : vector<64xf32> to vector<64x1xf32>
    %63 = tpu.reciprocal %62 {approx = true} : vector<64x1xf32> -> vector<64x1xf32>
    %64 = vector.broadcast %63 : vector<64x1xf32> to vector<64x64xf32>
    %65 = arith.mulf %60, %64 : vector<64x64xf32>
    %cst_35 = arith.constant dense<0.000000e+00> : vector<64x64xf32>
    %66 = tpu.matmul %65, %54, %cst_35 {dimension_numbers = #tpu.dot_dimension_numbers<[1], [0], [0], [1], [0, 0, 1, 1], [], []>} : vector<64x64xf32>, vector<64x64xf32>, vector<64x64xf32> -> vector<64x64xf32>
    %67 = arith.truncf %66 : vector<64x64xf32> to vector<64x64xbf16>
    %68 = tpu.concatenate %51, %67 in 1 : vector<64x64xbf16>, vector<64x64xbf16> -> vector<64x128xbf16>
    %c0_36 = arith.constant 0 : index
    %c0_37 = arith.constant 0 : index
    %69 = vector.load %arg6[%c0_36, %c0_37] : memref<128x128xbf16, #tpu.memory_space<vmem>>, vector<128x128xbf16>
    %cst_38 = arith.constant dense<0.000000e+00> : vector<64x128xf32>
    %70 = tpu.matmul %68, %69, %cst_38 {dimension_numbers = #tpu.dot_dimension_numbers<[1], [0], [0], [1], [0, 0, 1, 1], [], []>} : vector<64x128xbf16>, vector<128x128xbf16>, vector<64x128xf32> -> vector<64x128xf32>
    %71 = vector.broadcast %7 : vector<1x128xf32> to vector<64x128xf32>
    %72 = arith.addf %70, %71 : vector<64x128xf32>
    %73 = arith.addf %10, %72 : vector<64x128xf32>
    %cst_39 = arith.constant dense<0.000000e+00> : vector<64xf32>
    %74 = vector.multi_reduction <add>, %73, %cst_39 [1] : vector<64x128xf32> to vector<64xf32>
    %75 = vector.shape_cast %74 : vector<64xf32> to vector<64x1xf32>
    %cst_40 = arith.constant 1.280000e+02 : f32
    %76 = vector.broadcast %cst_40 : f32 to vector<64x1xf32>
    %77 = arith.divf %75, %76 : vector<64x1xf32>
    %78 = vector.broadcast %77 : vector<64x1xf32> to vector<64x128xf32>
    %79 = arith.subf %73, %78 : vector<64x128xf32>
    %80 = arith.mulf %79, %79 : vector<64x128xf32>
    %cst_41 = arith.constant dense<0.000000e+00> : vector<64xf32>
    %81 = vector.multi_reduction <add>, %80, %cst_41 [1] : vector<64x128xf32> to vector<64xf32>
    %82 = vector.shape_cast %81 : vector<64xf32> to vector<64x1xf32>
    %cst_42 = arith.constant 1.280000e+02 : f32
    %83 = vector.broadcast %cst_42 : f32 to vector<64x1xf32>
    %84 = arith.divf %82, %83 : vector<64x1xf32>
    %cst_43 = arith.constant 9.99999974E-6 : f32
    %85 = vector.broadcast %cst_43 : f32 to vector<64x1xf32>
    %86 = arith.addf %84, %85 : vector<64x1xf32>
    %87 = math.rsqrt %86 : vector<64x1xf32>
    %88 = vector.broadcast %87 : vector<64x1xf32> to vector<64x128xf32>
    %89 = arith.mulf %79, %88 : vector<64x128xf32>
    %90 = vector.broadcast %2 : vector<1x128xf32> to vector<64x128xf32>
    %91 = arith.mulf %89, %90 : vector<64x128xf32>
    %92 = vector.broadcast %3 : vector<1x128xf32> to vector<64x128xf32>
    %93 = arith.addf %91, %92 : vector<64x128xf32>
    %94 = arith.truncf %93 : vector<64x128xf32> to vector<64x128xbf16>
    %c0_44 = arith.constant 0 : index
    %c0_45 = arith.constant 0 : index
    %95 = vector.load %arg10[%c0_44, %c0_45] : memref<128x512xbf16, #tpu.memory_space<vmem>>, vector<128x512xbf16>
    %cst_46 = arith.constant dense<0.000000e+00> : vector<64x512xf32>
    %96 = tpu.matmul %94, %95, %cst_46 {dimension_numbers = #tpu.dot_dimension_numbers<[1], [0], [0], [1], [0, 0, 1, 1], [], []>} : vector<64x128xbf16>, vector<128x512xbf16>, vector<64x512xf32> -> vector<64x512xf32>
    %97 = vector.broadcast %8 : vector<1x512xf32> to vector<64x512xf32>
    %98 = arith.addf %96, %97 : vector<64x512xf32>
    %99 = arith.mulf %98, %98 : vector<64x512xf32>
    %100 = arith.mulf %98, %99 : vector<64x512xf32>
    %cst_47 = arith.constant 4.471500e-02 : f32
    %101 = vector.broadcast %cst_47 : f32 to vector<64x512xf32>
    %102 = arith.mulf %101, %100 : vector<64x512xf32>
    %103 = arith.addf %98, %102 : vector<64x512xf32>
    %cst_48 = arith.constant 0.797884583 : f32
    %104 = vector.broadcast %cst_48 : f32 to vector<64x512xf32>
    %105 = arith.mulf %104, %103 : vector<64x512xf32>
    %106 = math.tanh %105 : vector<64x512xf32>
    %cst_49 = arith.constant 1.000000e+00 : f32
    %107 = vector.broadcast %cst_49 : f32 to vector<64x512xf32>
    %108 = arith.addf %107, %106 : vector<64x512xf32>
    %cst_50 = arith.constant 5.000000e-01 : f32
    %109 = vector.broadcast %cst_50 : f32 to vector<64x512xf32>
    %110 = arith.mulf %109, %108 : vector<64x512xf32>
    %111 = arith.mulf %98, %110 : vector<64x512xf32>
    %112 = arith.truncf %111 : vector<64x512xf32> to vector<64x512xbf16>
    %c0_51 = arith.constant 0 : index
    %c0_52 = arith.constant 0 : index
    %113 = vector.load %arg12[%c0_51, %c0_52] : memref<512x128xbf16, #tpu.memory_space<vmem>>, vector<512x128xbf16>
    %cst_53 = arith.constant dense<0.000000e+00> : vector<64x128xf32>
    %114 = tpu.matmul %112, %113, %cst_53 {dimension_numbers = #tpu.dot_dimension_numbers<[1], [0], [0], [1], [0, 0, 1, 1], [], []>} : vector<64x512xbf16>, vector<512x128xbf16>, vector<64x128xf32> -> vector<64x128xf32>
    %115 = vector.broadcast %9 : vector<1x128xf32> to vector<64x128xf32>
    %116 = arith.addf %114, %115 : vector<64x128xf32>
    %117 = arith.addf %73, %116 : vector<64x128xf32>
    %cst_54 = arith.constant dense<0.000000e+00> : vector<64xf32>
    %118 = vector.multi_reduction <add>, %117, %cst_54 [1] : vector<64x128xf32> to vector<64xf32>
    %119 = vector.shape_cast %118 : vector<64xf32> to vector<64x1xf32>
    %cst_55 = arith.constant 1.280000e+02 : f32
    %120 = vector.broadcast %cst_55 : f32 to vector<64x1xf32>
    %121 = arith.divf %119, %120 : vector<64x1xf32>
    %122 = vector.broadcast %121 : vector<64x1xf32> to vector<64x128xf32>
    %123 = arith.subf %117, %122 : vector<64x128xf32>
    %124 = arith.mulf %123, %123 : vector<64x128xf32>
    %cst_56 = arith.constant dense<0.000000e+00> : vector<64xf32>
    %125 = vector.multi_reduction <add>, %124, %cst_56 [1] : vector<64x128xf32> to vector<64xf32>
    %126 = vector.shape_cast %125 : vector<64xf32> to vector<64x1xf32>
    %cst_57 = arith.constant 1.280000e+02 : f32
    %127 = vector.broadcast %cst_57 : f32 to vector<64x1xf32>
    %128 = arith.divf %126, %127 : vector<64x1xf32>
    %cst_58 = arith.constant 9.99999974E-6 : f32
    %129 = vector.broadcast %cst_58 : f32 to vector<64x1xf32>
    %130 = arith.addf %128, %129 : vector<64x1xf32>
    %131 = math.rsqrt %130 : vector<64x1xf32>
    %132 = vector.broadcast %131 : vector<64x1xf32> to vector<64x128xf32>
    %133 = arith.mulf %123, %132 : vector<64x128xf32>
    %134 = vector.broadcast %4 : vector<1x128xf32> to vector<64x128xf32>
    %135 = arith.mulf %133, %134 : vector<64x128xf32>
    %136 = vector.broadcast %5 : vector<1x128xf32> to vector<64x128xf32>
    %137 = arith.addf %135, %136 : vector<64x128xf32>
    %c0_59 = arith.constant 0 : index
    %c0_60 = arith.constant 0 : index
    %138 = vector.load %arg16[%c0_59, %c0_60] : memref<64x128xf32, #tpu.memory_space<vmem>>, vector<64x128xf32>
    tpu.vector_store %arg16[%c0_59, %c0_60], %137 {strides = array<i32>} : memref<64x128xf32, #tpu.memory_space<vmem>>, vector<64x128xf32>,
    return
  }
  func.func @transform_0(%arg0: i32) -> (i32, i32) {
    %c0_i32 = arith.constant 0 : i32
    %c0_i32_0 = arith.constant 0 : i32
    return %arg0, %c0_i32 : i32, i32
  }
  func.func @transform_1(%arg0: i32) -> (i32, i32) {
    %c0_i32 = arith.constant 0 : i32
    %c0_i32_0 = arith.constant 0 : i32
    %c0_i32_1 = arith.constant 0 : i32
    return %c0_i32, %c0_i32_0 : i32, i32
  }
  func.func @transform_2(%arg0: i32) -> (i32, i32) {
    %c0_i32 = arith.constant 0 : i32
    %c0_i32_0 = arith.constant 0 : i32
    %c0_i32_1 = arith.constant 0 : i32
    return %c0_i32, %c0_i32_0 : i32, i32
  }
  func.func @transform_3(%arg0: i32) -> (i32, i32) {
    %c0_i32 = arith.constant 0 : i32
    %c0_i32_0 = arith.constant 0 : i32
    %c0_i32_1 = arith.constant 0 : i32
    return %c0_i32, %c0_i32_0 : i32, i32
  }
  func.func @transform_4(%arg0: i32) -> (i32, i32) {
    %c0_i32 = arith.constant 0 : i32
    %c0_i32_0 = arith.constant 0 : i32
    %c0_i32_1 = arith.constant 0 : i32
    return %c0_i32, %c0_i32_0 : i32, i32
  }
  func.func @transform_5(%arg0: i32) -> (i32, i32) {
    %c0_i32 = arith.constant 0 : i32
    %c0_i32_0 = arith.constant 0 : i32
    %c0_i32_1 = arith.constant 0 : i32
    return %c0_i32, %c0_i32_0 : i32, i32
  }
  func.func @transform_6(%arg0: i32) -> (i32, i32) {
    %c0_i32 = arith.constant 0 : i32
    %c0_i32_0 = arith.constant 0 : i32
    %c0_i32_1 = arith.constant 0 : i32
    return %c0_i32, %c0_i32_0 : i32, i32
  }
  func.func @transform_7(%arg0: i32) -> (i32, i32) {
    %c0_i32 = arith.constant 0 : i32
    %c0_i32_0 = arith.constant 0 : i32
    %c0_i32_1 = arith.constant 0 : i32
    return %c0_i32, %c0_i32_0 : i32, i32
  }
  func.func @transform_8(%arg0: i32) -> (i32, i32) {
    %c0_i32 = arith.constant 0 : i32
    %c0_i32_0 = arith.constant 0 : i32
    %c0_i32_1 = arith.constant 0 : i32
    return %c0_i32, %c0_i32_0 : i32, i32
  }
  func.func @transform_9(%arg0: i32) -> (i32, i32) {
    %c0_i32 = arith.constant 0 : i32
    %c0_i32_0 = arith.constant 0 : i32
    %c0_i32_1 = arith.constant 0 : i32
    return %c0_i32, %c0_i32_0 : i32, i32
  }
  func.func @transform_10(%arg0: i32) -> (i32, i32) {
    %c0_i32 = arith.constant 0 : i32
    %c0_i32_0 = arith.constant 0 : i32
    %c0_i32_1 = arith.constant 0 : i32
    return %c0_i32, %c0_i32_0 : i32, i32
  }
  func.func @transform_11(%arg0: i32) -> (i32, i32) {
    %c0_i32 = arith.constant 0 : i32
    %c0_i32_0 = arith.constant 0 : i32
    %c0_i32_1 = arith.constant 0 : i32
    return %c0_i32, %c0_i32_0 : i32, i32
  }
  func.func @transform_12(%arg0: i32) -> (i32, i32) {
    %c0_i32 = arith.constant 0 : i32
    %c0_i32_0 = arith.constant 0 : i32
    %c0_i32_1 = arith.constant 0 : i32
    return %c0_i32, %c0_i32_0 : i32, i32
  }
  func.func @transform_13(%arg0: i32) -> (i32, i32) {
    %c0_i32 = arith.constant 0 : i32
    %c0_i32_0 = arith.constant 0 : i32
    %c0_i32_1 = arith.constant 0 : i32
    return %c0_i32, %c0_i32_0 : i32, i32
  }
  func.func @transform_14(%arg0: i32) -> (i32, i32) {
    %c0_i32 = arith.constant 0 : i32
    %c0_i32_0 = arith.constant 0 : i32
    %c0_i32_1 = arith.constant 0 : i32
    return %c0_i32, %c0_i32_0 : i32, i32
  }
  func.func @transform_15(%arg0: i32) -> (i32, i32) {
    %c0_i32 = arith.constant 0 : i32
    %c0_i32_0 = arith.constant 0 : i32
    return %arg0, %c0_i32 : i32, i32
  }
}

module attributes {stable_mosaic.version = 11 : i64} {
  func.func @_gcl_kernel(%arg0: i32, %arg1: memref<64x128xf32, #tpu.memory_space<vmem>>, %arg2: memref<1x128xf32, #tpu.memory_space<vmem>>, %arg3: memref<1x128xf32, #tpu.memory_space<vmem>>, %arg4: memref<128x384xbf16, #tpu.memory_space<vmem>>, %arg5: memref<1x384xf32, #tpu.memory_space<vmem>>, %arg6: memref<128x128xbf16, #tpu.memory_space<vmem>>, %arg7: memref<1x128xf32, #tpu.memory_space<vmem>>, %arg8: memref<1x128xf32, #tpu.memory_space<vmem>>, %arg9: memref<1x128xf32, #tpu.memory_space<vmem>>, %arg10: memref<128x512xbf16, #tpu.memory_space<vmem>>, %arg11: memref<1x512xf32, #tpu.memory_space<vmem>>, %arg12: memref<512x128xbf16, #tpu.memory_space<vmem>>, %arg13: memref<1x128xf32, #tpu.memory_space<vmem>>, %arg14: memref<1x128xf32, #tpu.memory_space<vmem>>, %arg15: memref<1x128xf32, #tpu.memory_space<vmem>>, %arg16: memref<64x128xf32, #tpu.memory_space<vmem>>) attributes {dimension_semantics = [#tpu.dimension_semantics<parallel>], iteration_bounds = array<i64: 2>, scalar_prefetch = 0 : i64, scratch_operands = 0 : i64, tpu.core_type = #tpu.core_type<tc>, window_params = [{transform_indices = @transform_0, window_bounds = array<i64: 64, 128>}, {pipeline_mode = #tpu.pipeline_mode<synchronous>, transform_indices = @transform_1, window_bounds = array<i64: 1, 128>}, {pipeline_mode = #tpu.pipeline_mode<synchronous>, transform_indices = @transform_2, window_bounds = array<i64: 1, 128>}, {pipeline_mode = #tpu.pipeline_mode<synchronous>, transform_indices = @transform_3, window_bounds = array<i64: 128, 384>}, {pipeline_mode = #tpu.pipeline_mode<synchronous>, transform_indices = @transform_4, window_bounds = array<i64: 1, 384>}, {pipeline_mode = #tpu.pipeline_mode<synchronous>, transform_indices = @transform_5, window_bounds = array<i64: 128, 128>}, {pipeline_mode = #tpu.pipeline_mode<synchronous>, transform_indices = @transform_6, window_bounds = array<i64: 1, 128>}, {pipeline_mode = #tpu.pipeline_mode<synchronous>, transform_indices = @transform_7, window_bounds = array<i64: 1, 128>}, {pipeline_mode = #tpu.pipeline_mode<synchronous>, transform_indices = @transform_8, window_bounds = array<i64: 1, 128>}, {pipeline_mode = #tpu.pipeline_mode<synchronous>, transform_indices = @transform_9, window_bounds = array<i64: 128, 512>}, {pipeline_mode = #tpu.pipeline_mode<synchronous>, transform_indices = @transform_10, window_bounds = array<i64: 1, 512>}, {pipeline_mode = #tpu.pipeline_mode<synchronous>, transform_indices = @transform_11, window_bounds = array<i64: 512, 128>}, {pipeline_mode = #tpu.pipeline_mode<synchronous>, transform_indices = @transform_12, window_bounds = array<i64: 1, 128>}, {pipeline_mode = #tpu.pipeline_mode<synchronous>, transform_indices = @transform_13, window_bounds = array<i64: 1, 128>}, {pipeline_mode = #tpu.pipeline_mode<synchronous>, transform_indices = @transform_14, window_bounds = array<i64: 1, 128>}, {transform_indices = @transform_15, window_bounds = array<i64: 64, 128>}]} {
    %c0 = arith.constant 0 : index
    %c0_0 = arith.constant 0 : index
    %0 = vector.load %arg2[%c0, %c0_0] : memref<1x128xf32, #tpu.memory_space<vmem>>, vector<1x128xf32>
    %c0_1 = arith.constant 0 : index
    %c0_2 = arith.constant 0 : index
    %1 = vector.load %arg3[%c0_1, %c0_2] : memref<1x128xf32, #tpu.memory_space<vmem>>, vector<1x128xf32>
    %c0_3 = arith.constant 0 : index
    %c0_4 = arith.constant 0 : index
    %2 = vector.load %arg8[%c0_3, %c0_4] : memref<1x128xf32, #tpu.memory_space<vmem>>, vector<1x128xf32>
    %c0_5 = arith.constant 0 : index
    %c0_6 = arith.constant 0 : index
    %3 = vector.load %arg9[%c0_5, %c0_6] : memref<1x128xf32, #tpu.memory_space<vmem>>, vector<1x128xf32>
    %c0_7 = arith.constant 0 : index
    %c0_8 = arith.constant 0 : index
    %4 = vector.load %arg14[%c0_7, %c0_8] : memref<1x128xf32, #tpu.memory_space<vmem>>, vector<1x128xf32>
    %c0_9 = arith.constant 0 : index
    %c0_10 = arith.constant 0 : index
    %5 = vector.load %arg15[%c0_9, %c0_10] : memref<1x128xf32, #tpu.memory_space<vmem>>, vector<1x128xf32>
    %c0_11 = arith.constant 0 : index
    %c0_12 = arith.constant 0 : index
    %6 = vector.load %arg5[%c0_11, %c0_12] : memref<1x384xf32, #tpu.memory_space<vmem>>, vector<1x384xf32>
    %c0_13 = arith.constant 0 : index
    %c0_14 = arith.constant 0 : index
    %7 = vector.load %arg7[%c0_13, %c0_14] : memref<1x128xf32, #tpu.memory_space<vmem>>, vector<1x128xf32>
    %c0_15 = arith.constant 0 : index
    %c0_16 = arith.constant 0 : index
    %8 = vector.load %arg11[%c0_15, %c0_16] : memref<1x512xf32, #tpu.memory_space<vmem>>, vector<1x512xf32>
    %c0_17 = arith.constant 0 : index
    %c0_18 = arith.constant 0 : index
    %9 = vector.load %arg13[%c0_17, %c0_18] : memref<1x128xf32, #tpu.memory_space<vmem>>, vector<1x128xf32>
    %c0_19 = arith.constant 0 : index
    %c0_20 = arith.constant 0 : index
    %10 = vector.load %arg1[%c0_19, %c0_20] : memref<64x128xf32, #tpu.memory_space<vmem>>, vector<64x128xf32>
    %cst = arith.constant dense<0.000000e+00> : vector<64xf32>
    %11 = vector.multi_reduction <add>, %10, %cst [1] : vector<64x128xf32> to vector<64xf32>
    %12 = vector.shape_cast %11 : vector<64xf32> to vector<64x1xf32>
    %cst_21 = arith.constant 1.280000e+02 : f32
    %13 = vector.broadcast %cst_21 : f32 to vector<64x1xf32>
    %14 = arith.divf %12, %13 : vector<64x1xf32>
    %15 = vector.broadcast %14 : vector<64x1xf32> to vector<64x128xf32>
    %16 = arith.subf %10, %15 : vector<64x128xf32>
    %17 = arith.mulf %16, %16 : vector<64x128xf32>
    %cst_22 = arith.constant dense<0.000000e+00> : vector<64xf32>
    %18 = vector.multi_reduction <add>, %17, %cst_22 [1] : vector<64x128xf32> to vector<64xf32>
    %19 = vector.shape_cast %18 : vector<64xf32> to vector<64x1xf32>
    %cst_23 = arith.constant 1.280000e+02 : f32
    %20 = vector.broadcast %cst_23 : f32 to vector<64x1xf32>
    %21 = arith.divf %19, %20 : vector<64x1xf32>
    %cst_24 = arith.constant 9.99999974E-6 : f32
    %22 = vector.broadcast %cst_24 : f32 to vector<64x1xf32>
    %23 = arith.addf %21, %22 : vector<64x1xf32>
    %24 = math.rsqrt %23 : vector<64x1xf32>
    %25 = vector.broadcast %24 : vector<64x1xf32> to vector<64x128xf32>
    %26 = arith.mulf %16, %25 : vector<64x128xf32>
    %27 = vector.broadcast %0 : vector<1x128xf32> to vector<64x128xf32>
    %28 = arith.mulf %26, %27 : vector<64x128xf32>
    %29 = vector.broadcast %1 : vector<1x128xf32> to vector<64x128xf32>
    %30 = arith.addf %28, %29 : vector<64x128xf32>
    %31 = arith.truncf %30 : vector<64x128xf32> to vector<64x128xbf16>
    %c0_25 = arith.constant 0 : index
    %c0_26 = arith.constant 0 : index
    %32 = vector.load %arg4[%c0_25, %c0_26] : memref<128x384xbf16, #tpu.memory_space<vmem>>, vector<128x384xbf16>
    %cst_27 = arith.constant dense<0.000000e+00> : vector<64x384xf32>
    %33 = tpu.matmul %31, %32, %cst_27 {dimension_numbers = #tpu.dot_dimension_numbers<[1], [0], [0], [1], [0, 0, 1, 1], [], []>} : vector<64x128xbf16>, vector<128x384xbf16>, vector<64x384xf32> -> vector<64x384xf32>
    %34 = vector.broadcast %6 : vector<1x384xf32> to vector<64x384xf32>
    %35 = arith.addf %33, %34 : vector<64x384xf32>
    %36 = vector.extract_strided_slice %35 {offsets = [0, 0], sizes = [64, 64], strides = [1, 1]} : vector<64x384xf32> to vector<64x64xf32>
    %37 = vector.extract_strided_slice %35 {offsets = [0, 128], sizes = [64, 64], strides = [1, 1]} : vector<64x384xf32> to vector<64x64xf32>
    %38 = vector.extract_strided_slice %35 {offsets = [0, 256], sizes = [64, 64], strides = [1, 1]} : vector<64x384xf32> to vector<64x64xf32>
    %cst_28 = arith.constant dense<0.000000e+00> : vector<64x64xf32>
    %39 = tpu.matmul %36, %37, %cst_28 {dimension_numbers = #tpu.dot_dimension_numbers<[1], [1], [0], [0], [0, 0, 1, 0], [], []>} : vector<64x64xf32>, vector<64x64xf32>, vector<64x64xf32> -> vector<64x64xf32>
    %cst_29 = arith.constant dense<0xFF800000> : vector<64xf32>
    %40 = vector.multi_reduction <maximumf>, %39, %cst_29 [1] : vector<64x64xf32> to vector<64xf32>
    %41 = vector.shape_cast %40 : vector<64xf32> to vector<64x1xf32>
    %42 = vector.broadcast %41 : vector<64x1xf32> to vector<64x64xf32>
    %43 = arith.subf %39, %42 : vector<64x64xf32>
    %44 = math.exp %43 : vector<64x64xf32>
    %cst_30 = arith.constant dense<0.000000e+00> : vector<64xf32>
    %45 = vector.multi_reduction <add>, %44, %cst_30 [1] : vector<64x64xf32> to vector<64xf32>
    %46 = vector.shape_cast %45 : vector<64xf32> to vector<64x1xf32>
    %47 = tpu.reciprocal %46 {approx = true} : vector<64x1xf32> -> vector<64x1xf32>
    %48 = vector.broadcast %47 : vector<64x1xf32> to vector<64x64xf32>
    %49 = arith.mulf %44, %48 : vector<64x64xf32>
    %cst_31 = arith.constant dense<0.000000e+00> : vector<64x64xf32>
    %50 = tpu.matmul %49, %38, %cst_31 {dimension_numbers = #tpu.dot_dimension_numbers<[1], [0], [0], [1], [0, 0, 1, 1], [], []>} : vector<64x64xf32>, vector<64x64xf32>, vector<64x64xf32> -> vector<64x64xf32>
    %51 = arith.truncf %50 : vector<64x64xf32> to vector<64x64xbf16>
    %52 = vector.extract_strided_slice %35 {offsets = [0, 64], sizes = [64, 64], strides = [1, 1]} : vector<64x384xf32> to vector<64x64xf32>
    %53 = vector.extract_strided_slice %35 {offsets = [0, 192], sizes = [64, 64], strides = [1, 1]} : vector<64x384xf32> to vector<64x64xf32>
    %54 = vector.extract_strided_slice %35 {offsets = [0, 320], sizes = [64, 64], strides = [1, 1]} : vector<64x384xf32> to vector<64x64xf32>
    %cst_32 = arith.constant dense<0.000000e+00> : vector<64x64xf32>
    %55 = tpu.matmul %52, %53, %cst_32 {dimension_numbers = #tpu.dot_dimension_numbers<[1], [1], [0], [0], [0, 0, 1, 0], [], []>} : vector<64x64xf32>, vector<64x64xf32>, vector<64x64xf32> -> vector<64x64xf32>
    %cst_33 = arith.constant dense<0xFF800000> : vector<64xf32>
    %56 = vector.multi_reduction <maximumf>, %55, %cst_33 [1] : vector<64x64xf32> to vector<64xf32>
    %57 = vector.shape_cast %56 : vector<64xf32> to vector<64x1xf32>
    %58 = vector.broadcast %57 : vector<64x1xf32> to vector<64x64xf32>
    %59 = arith.subf %55, %58 : vector<64x64xf32>
    %60 = math.exp %59 : vector<64x64xf32>
    %cst_34 = arith.constant dense<0.000000e+00> : vector<64xf32>
    %61 = vector.multi_reduction <add>, %60, %cst_34 [1] : vector<64x64xf32> to vector<64xf32>
    %62 = vector.shape_cast %61 : vector<64xf32> to vector<64x1xf32>
    %63 = tpu.reciprocal %62 {approx = true} : vector<64x1xf32> -> vector<64x1xf32>
    %64 = vector.broadcast %63 : vector<64x1xf32> to vector<64x64xf32>
    %65 = arith.mulf %60, %64 : vector<64x64xf32>
    %cst_35 = arith.constant dense<0.000000e+00> : vector<64x64xf32>
    %66 = tpu.matmul %65, %54, %cst_35 {dimension_numbers = #tpu.dot_dimension_numbers<[1], [0], [0], [1], [0, 0, 1, 1], [], []>} : vector<64x64xf32>, vector<64x64xf32>, vector<64x64xf32> -> vector<64x64xf32>
    %67 = arith.truncf %66 : vector<64x64xf32> to vector<64x64xbf16>
    %68 = tpu.concatenate %51, %67 in 1 : vector<64x64xbf16>, vector<64x64xbf16> -> vector<64x128xbf16>
    %c0_36 = arith.constant 0 : index
    %c0_37 = arith.constant 0 : index
    %69 = vector.load %arg6[%c0_36, %c0_37] : memref<128x128xbf16, #tpu.memory_space<vmem>>, vector<128x128xbf16>
    %cst_38 = arith.constant dense<0.000000e+00> : vector<64x128xf32>
    %70 = tpu.matmul %68, %69, %cst_38 {dimension_numbers = #tpu.dot_dimension_numbers<[1], [0], [0], [1], [0, 0, 1, 1], [], []>} : vector<64x128xbf16>, vector<128x128xbf16>, vector<64x128xf32> -> vector<64x128xf32>
    %71 = vector.broadcast %7 : vector<1x128xf32> to vector<64x128xf32>
    %72 = arith.addf %70, %71 : vector<64x128xf32>
    %73 = arith.addf %10, %72 : vector<64x128xf32>
    %cst_39 = arith.constant dense<0.000000e+00> : vector<64xf32>
    %74 = vector.multi_reduction <add>, %73, %cst_39 [1] : vector<64x128xf32> to vector<64xf32>
    %75 = vector.shape_cast %74 : vector<64xf32> to vector<64x1xf32>
    %cst_40 = arith.constant 1.280000e+02 : f32
    %76 = vector.broadcast %cst_40 : f32 to vector<64x1xf32>
    %77 = arith.divf %75, %76 : vector<64x1xf32>
    %78 = vector.broadcast %77 : vector<64x1xf32> to vector<64x128xf32>
    %79 = arith.subf %73, %78 : vector<64x128xf32>
    %80 = arith.mulf %79, %79 : vector<64x128xf32>
    %cst_41 = arith.constant dense<0.000000e+00> : vector<64xf32>
    %81 = vector.multi_reduction <add>, %80, %cst_41 [1] : vector<64x128xf32> to vector<64xf32>
    %82 = vector.shape_cast %81 : vector<64xf32> to vector<64x1xf32>
    %cst_42 = arith.constant 1.280000e+02 : f32
    %83 = vector.broadcast %cst_42 : f32 to vector<64x1xf32>
    %84 = arith.divf %82, %83 : vector<64x1xf32>
    %cst_43 = arith.constant 9.99999974E-6 : f32
    %85 = vector.broadcast %cst_43 : f32 to vector<64x1xf32>
    %86 = arith.addf %84, %85 : vector<64x1xf32>
    %87 = math.rsqrt %86 : vector<64x1xf32>
    %88 = vector.broadcast %87 : vector<64x1xf32> to vector<64x128xf32>
    %89 = arith.mulf %79, %88 : vector<64x128xf32>
    %90 = vector.broadcast %2 : vector<1x128xf32> to vector<64x128xf32>
    %91 = arith.mulf %89, %90 : vector<64x128xf32>
    %92 = vector.broadcast %3 : vector<1x128xf32> to vector<64x128xf32>
    %93 = arith.addf %91, %92 : vector<64x128xf32>
    %94 = arith.truncf %93 : vector<64x128xf32> to vector<64x128xbf16>
    %c0_44 = arith.constant 0 : index
    %c0_45 = arith.constant 0 : index
    %95 = vector.load %arg10[%c0_44, %c0_45] : memref<128x512xbf16, #tpu.memory_space<vmem>>, vector<128x512xbf16>
    %cst_46 = arith.constant dense<0.000000e+00> : vector<64x512xf32>
    %96 = tpu.matmul %94, %95, %cst_46 {dimension_numbers = #tpu.dot_dimension_numbers<[1], [0], [0], [1], [0, 0, 1, 1], [], []>} : vector<64x128xbf16>, vector<128x512xbf16>, vector<64x512xf32> -> vector<64x512xf32>
    %97 = vector.broadcast %8 : vector<1x512xf32> to vector<64x512xf32>
    %98 = arith.addf %96, %97 : vector<64x512xf32>
    %99 = arith.mulf %98, %98 : vector<64x512xf32>
    %100 = arith.mulf %98, %99 : vector<64x512xf32>
    %cst_47 = arith.constant 4.471500e-02 : f32
    %101 = vector.broadcast %cst_47 : f32 to vector<64x512xf32>
    %102 = arith.mulf %101, %100 : vector<64x512xf32>
    %103 = arith.addf %98, %102 : vector<64x512xf32>
    %cst_48 = arith.constant 0.797884583 : f32
    %104 = vector.broadcast %cst_48 : f32 to vector<64x512xf32>
    %105 = arith.mulf %104, %103 : vector<64x512xf32>
    %106 = math.tanh %105 : vector<64x512xf32>
    %cst_49 = arith.constant 1.000000e+00 : f32
    %107 = vector.broadcast %cst_49 : f32 to vector<64x512xf32>
    %108 = arith.addf %107, %106 : vector<64x512xf32>
    %cst_50 = arith.constant 5.000000e-01 : f32
    %109 = vector.broadcast %cst_50 : f32 to vector<64x512xf32>
    %110 = arith.mulf %109, %108 : vector<64x512xf32>
    %111 = arith.mulf %98, %110 : vector<64x512xf32>
    %112 = arith.truncf %111 : vector<64x512xf32> to vector<64x512xbf16>
    %c0_51 = arith.constant 0 : index
    %c0_52 = arith.constant 0 : index
    %113 = vector.load %arg12[%c0_51, %c0_52] : memref<512x128xbf16, #tpu.memory_space<vmem>>, vector<512x128xbf16>
    %cst_53 = arith.constant dense<0.000000e+00> : vector<64x128xf32>
    %114 = tpu.matmul %112, %113, %cst_53 {dimension_numbers = #tpu.dot_dimension_numbers<[1], [0], [0], [1], [0, 0, 1, 1], [], []>} : vector<64x512xbf16>, vector<512x128xbf16>, vector<64x128xf32> -> vector<64x128xf32>
    %115 = vector.broadcast %9 : vector<1x128xf32> to vector<64x128xf32>
    %116 = arith.addf %114, %115 : vector<64x128xf32>
    %117 = arith.addf %73, %116 : vector<64x128xf32>
    %cst_54 = arith.constant dense<0.000000e+00> : vector<64xf32>
    %118 = vector.multi_reduction <add>, %117, %cst_54 [1] : vector<64x128xf32> to vector<64xf32>
    %119 = vector.shape_cast %118 : vector<64xf32> to vector<64x1xf32>
    %cst_55 = arith.constant 1.280000e+02 : f32
    %120 = vector.broadcast %cst_55 : f32 to vector<64x1xf32>
    %121 = arith.divf %119, %120 : vector<64x1xf32>
    %122 = vector.broadcast %121 : vector<64x1xf32> to vector<64x128xf32>
    %123 = arith.subf %117, %122 : vector<64x128xf32>
    %124 = arith.mulf %123, %123 : vector<64x128xf32>
    %cst_56 = arith.constant dense<0.000000e+00> : vector<64xf32>
    %125 = vector.multi_reduction <add>, %124, %cst_56 [1] : vector<64x128xf32> to vector<64xf32>
    %126 = vector.shape_cast %125 : vector<64xf32> to vector<64x1xf32>
    %cst_57 = arith.constant 1.280000e+02 : f32
    %127 = vector.broadcast %cst_57 : f32 to vector<64x1xf32>
    %128 = arith.divf %126, %127 : vector<64x1xf32>
    %cst_58 = arith.constant 9.99999974E-6 : f32
    %129 = vector.broadcast %cst_58 : f32 to vector<64x1xf32>
    %130 = arith.addf %128, %129 : vector<64x1xf32>
    %131 = math.rsqrt %130 : vector<64x1xf32>
    %132 = vector.broadcast %131 : vector<64x1xf32> to vector<64x128xf32>
    %133 = arith.mulf %123, %132 : vector<64x128xf32>
    %134 = vector.broadcast %4 : vector<1x128xf32> to vector<64x128xf32>
    %135 = arith.mulf %133, %134 : vector<64x128xf32>
    %136 = vector.broadcast %5 : vector<1x128xf32> to vector<64x128xf32>
    %137 = arith.addf %135, %136 : vector<64x128xf32>
    %c0_59 = arith.constant 0 : index
    %c0_60 = arith.constant 0 : index
    %138 = vector.load %arg16[%c0_59, %c0_60] : memref<64x128xf32, #tpu.memory_space<vmem>>, vector<64x128xf32>
    tpu.vector_store %arg16[%c0_59, %c0_60], %137 {strides = array<i32>} : memref<64x128xf32, #tpu.memory_space<vmem>>, vector<64x128xf32>,
    return
  }
  func.func @transform_0(%arg0: i32) -> (i32, i32) {
    %c0_i32 = arith.constant 0 : i32
    %c0_i32_0 = arith.constant 0 : i32
    return %arg0, %c0_i32 : i32, i32
  }
  func.func @transform_1(%arg0: i32) -> (i32, i32) {
    %c0_i32 = arith.constant 0 : i32
    %c0_i32_0 = arith.constant 0 : i32
    %c0_i32_1 = arith.constant 0 : i32
    return %c0_i32, %c0_i32_0 : i32, i32
  }
  func.func @transform_2(%arg0: i32) -> (i32, i32) {
    %c0_i32 = arith.constant 0 : i32
    %c0_i32_0 = arith.constant 0 : i32
    %c0_i32_1 = arith.constant 0 : i32
    return %c0_i32, %c0_i32_0 : i32, i32
  }
  func.func @transform_3(%arg0: i32) -> (i32, i32) {
    %c0_i32 = arith.constant 0 : i32
    %c0_i32_0 = arith.constant 0 : i32
    %c0_i32_1 = arith.constant 0 : i32
    return %c0_i32, %c0_i32_0 : i32, i32
  }
  func.func @transform_4(%arg0: i32) -> (i32, i32) {
    %c0_i32 = arith.constant 0 : i32
    %c0_i32_0 = arith.constant 0 : i32
    %c0_i32_1 = arith.constant 0 : i32
    return %c0_i32, %c0_i32_0 : i32, i32
  }
  func.func @transform_5(%arg0: i32) -> (i32, i32) {
    %c0_i32 = arith.constant 0 : i32
    %c0_i32_0 = arith.constant 0 : i32
    %c0_i32_1 = arith.constant 0 : i32
    return %c0_i32, %c0_i32_0 : i32, i32
  }
  func.func @transform_6(%arg0: i32) -> (i32, i32) {
    %c0_i32 = arith.constant 0 : i32
    %c0_i32_0 = arith.constant 0 : i32
    %c0_i32_1 = arith.constant 0 : i32
    return %c0_i32, %c0_i32_0 : i32, i32
  }
  func.func @transform_7(%arg0: i32) -> (i32, i32) {
    %c0_i32 = arith.constant 0 : i32
    %c0_i32_0 = arith.constant 0 : i32
    %c0_i32_1 = arith.constant 0 : i32
    return %c0_i32, %c0_i32_0 : i32, i32
  }
  func.func @transform_8(%arg0: i32) -> (i32, i32) {
    %c0_i32 = arith.constant 0 : i32
    %c0_i32_0 = arith.constant 0 : i32
    %c0_i32_1 = arith.constant 0 : i32
    return %c0_i32, %c0_i32_0 : i32, i32
  }
  func.func @transform_9(%arg0: i32) -> (i32, i32) {
    %c0_i32 = arith.constant 0 : i32
    %c0_i32_0 = arith.constant 0 : i32
    %c0_i32_1 = arith.constant 0 : i32
    return %c0_i32, %c0_i32_0 : i32, i32
  }
  func.func @transform_10(%arg0: i32) -> (i32, i32) {
    %c0_i32 = arith.constant 0 : i32
    %c0_i32_0 = arith.constant 0 : i32
    %c0_i32_1 = arith.constant 0 : i32
    return %c0_i32, %c0_i32_0 : i32, i32
  }
  func.func @transform_11(%arg0: i32) -> (i32, i32) {
    %c0_i32 = arith.constant 0 : i32
    %c0_i32_0 = arith.constant 0 : i32
    %c0_i32_1 = arith.constant 0 : i32
    return %c0_i32, %c0_i32_0 : i32, i32
  }
  func.func @transform_12(%arg0: i32) -> (i32, i32) {
    %c0_i32 = arith.constant 0 : i32
    %c0_i32_0 = arith.constant 0 : i32
    %c0_i32_1 = arith.constant 0 : i32
    return %c0_i32, %c0_i32_0 : i32, i32
  }
  func.func @transform_13(%arg0: i32) -> (i32, i32) {
    %c0_i32 = arith.constant 0 : i32
    %c0_i32_0 = arith.constant 0 : i32
    %c0_i32_1 = arith.constant 0 : i32
    return %c0_i32, %c0_i32_0 : i32, i32
  }
  func.func @transform_14(%arg0: i32) -> (i32, i32) {
    %c0_i32 = arith.constant 0 : i32
    %c0_i32_0 = arith.constant 0 : i32
    %c0_i32_1 = arith.constant 0 : i32
    return %c0_i32, %c0_i32_0 : i32, i32
  }
  func.func @transform_15(%arg0: i32) -> (i32, i32) {
    %c0_i32 = arith.constant 0 : i32
    %c0_i32_0 = arith.constant 0 : i32
    return %arg0, %c0_i32 : i32, i32
  }
}

</mosaic_0001>

<bundles_post_ra>
// kernel: tpu_custom_call.1
= control target key start
LH: loop header
LB: loop body
LE: loop exit
PB: predicated region body
PF: predicated region fallthrough
CT: control target
= control target key end

     0   :  { %s5895_s0 = inlined_call_operand.hbm [shape: f32[128,128], index: 0, kind: input, shape index: {}]   ;;  %s5896_s1 = inlined_call_operand.hbm [shape: f32[1,128], index: 1, kind: input, shape index: {}]   ;;  %s5897_s2 = inlined_call_operand.hbm [shape: f32[1,128], index: 2, kind: input, shape index: {}]   ;;  %s5898_s3 = inlined_call_operand.hbm [shape: bf16[128,384], index: 3, kind: input, shape index: {}]   ;;  %s5899_s4 = inlined_call_operand.vmem [shape: f32[1,384], index: 4, kind: input, shape index: {}]   ;;  %s5900_s5 = inlined_call_operand.hbm [shape: bf16[128,128], index: 5, kind: input, shape index: {}]   ;;  %s5901_s6 = inlined_call_operand.hbm [shape: f32[1,128], index: 6, kind: input, shape index: {}]   ;;  %s5902_s7 = inlined_call_operand.hbm [shape: f32[1,128], index: 7, kind: input, shape index: {}]   ;;  %s5903_s8 = inlined_call_operand.hbm [shape: f32[1,128], index: 8, kind: input, shape index: {}]   ;;  %s5904_s9 = inlined_call_operand.hbm [shape: bf16[128,512], index: 9, kind: input, shape index: {}]   ;;  %s5905_s10 = inlined_call_operand.vmem [shape: f32[1,512], index: 10, kind: input, shape index: {}]   ;;  %s5906_s11 = inlined_call_operand.hbm [shape: bf16[512,128], index: 11, kind: input, shape index: {}]   ;;  %s5907_s12 = inlined_call_operand.vmem [shape: f32[1,128], index: 12, kind: input, shape index: {}]   ;;  %s5908_s13 = inlined_call_operand.vmem [shape: f32[1,128], index: 13, kind: input, shape index: {}]   ;;  %s5909_s14 = inlined_call_operand.vmem [shape: f32[1,128], index: 14, kind: input, shape index: {}]   ;;  %s5910_s15 = inlined_call_operand.hbm [shape: f32[128,128], index: 15, kind: output, shape index: {}]  }
   0x1   :  { %5912 = sst [smem:[#allocation27_spill]] %s5896_s1 }
   0x2   :  { %5913 = sst [smem:[#allocation28_spill]] %s5897_s2 }
   0x3   :  { %5914 = sst [smem:[#allocation29_spill]] %s5898_s3 }
   0x4   :  { %5915 = sst [smem:[#allocation30_spill]] %s5900_s5 }
   0x5   :  { %5916 = sst [smem:[#allocation31_spill]] %s5901_s6 }
   0x6   :  { %5917 = sst [smem:[#allocation32_spill]] %s5905_s10 }
   0x7   :  { %5918 = sst [smem:[#allocation33_spill]] %s5907_s12 }
   0x8   :  { %5919 = sst [smem:[#allocation34_spill]] %s5908_s13 }
   0x9   :  { %5920 = sst [smem:[#allocation35_spill]] %s5909_s14 }
   0xa   :  { %5921 = sst [smem:[#allocation36_spill]] %s5910_s15 }
   0xb   :  { %20 = vsyncpa [#allocation3], 0 }
   0xc   :  { %22 = vsyncpa [#allocation3 + $0x1], 0 }
   0xd   :  { %23 = vsyncpa [#allocation6], 0 }
   0xe   :  { %24 = vsyncpa [#allocation9], 0 }
   0xf   :  { %25 = vsyncpa [#allocation12], 0 }
  0x10   :  { %26 = vsyncpa [#allocation15], 0 }
  0x11   :  { %27 = vsyncpa [#allocation18], 0 }
  0x12   :  { %28 = vsyncpa [#allocation4], 0 }
  0x13   :  { %30 = vsyncpa [#allocation4 + $0x1], 0  ;;  %s4807_s18 = smov 0   ;;  %s4809_s19 = smov 0  }
  0x14   :  { %s4811_s20 = smov 0   ;;  %s4813_s21 = smov 0  }
  0x15 LB: > { %s5922_s1 = sld [smem:[#allocation27_spill]]  ;;  %s4831_s25 = sadd.s32 4294967295, %s4704_s21   ;;  %s4704_s21 = sphi %s4813_s21, %s5943_s21   ;;  %s4700_s20 = sphi %s4811_s20, %s5942_s20   ;;  %s4696_s19 = sphi %s4809_s19, %s5941_s19   ;;  %s4692_s18 = sphi %s4807_s18, %s5940_s18  }
  0x16   : > { %p3394_p0 = scmp.ge.s32.totalorder %s4704_s21, 1  ;;  %p57_p1 = scmp.eq.s32.totalorder %s4831_s25, 0 }
  0x17   : > { %p387_p2 = scmp.lt.s32.totalorder %s4704_s21, 3  ;;  %s4706_s27 = smov [#allocation5]  }
  0x18   : > { %s401_s28 = sshll.u32 %s4706_s27, 4  ;;  %s5924_s3 = sld [smem:[#allocation29_spill]]  ;;  %s402_s28 = int_to_ptr.vmem [resolvable:$true] %s401_s28 }
  0x19   : > { %p4836_p3 = pnand %p3394_p0, %p387_p2  ;;  %s4707_s22 = smov [#allocation8]  }
  0x1a   : > { %s424_s23 = sshll.u32 %s4707_s22, 4  ;;  %s4708_s27 = smov 192   ;;  %s425_s23 = int_to_ptr.vmem [resolvable:$true] %s424_s23 }
  0x1b   : > { %s399_s24 = sshll.u32 %s5922_s1, 4  ;;  %p3995_p5 = pneg %p4836_p3  ;;  %s400_s24 = int_to_ptr.hbm [resolvable:$true] %s399_s24 }
  0x1c   : > { %s4709_s1 = smov 12   ;;  %s5926_s6 = sld [smem:[#allocation31_spill]] }
  0x1d   : > { %p4848_p6 = pnand %p3995_p5, %p57_p1  ;;  %s4710_s15 = smov [#allocation11]  }
  0x1e   : > { %s422_s16 = sshll.u32 %s5924_s3, 4  ;;  %s456_s14 = sshll.u32 %s4710_s15, 4  ;;  %s423_s16 = int_to_ptr.hbm [resolvable:$true] %s422_s16  ;;  %s457_s14 = int_to_ptr.vmem [resolvable:$true] %s456_s14 }
  0x1f   : > { %3998 = dma.hbm_to_vmem [thread:$0]  (!%p4848_p6), %s400_s24, 16, %s402_s28, [#allocation6]  }
  0x20   : > { %4004 = dma.hbm_to_vmem [thread:$0]  (!%p4848_p6), %s423_s16, 3072, %s425_s23, [#allocation9], %s4708_s27, %s4708_s27, %s4709_s1  }
  0x21   : > { %s478_s22 = sshll.u32 %s5903_s8, 4  ;;  %s4711_s24 = smov [#allocation14]   ;;  %s479_s22 = int_to_ptr.hbm [resolvable:$true] %s478_s22 }
  0x22   : > { %s454_s3 = sshll.u32 %s5926_s6, 4  ;;  %s480_s28 = sshll.u32 %s4711_s24, 4  ;;  %s455_s3 = int_to_ptr.hbm [resolvable:$true] %s454_s3  ;;  %s481_s28 = int_to_ptr.vmem [resolvable:$true] %s480_s28 }
  0x23   : > { %4010 = dma.hbm_to_vmem [thread:$0]  (!%p4848_p6), %s455_s3, 16, %s457_s14, [#allocation12]  }
  0x24   : > { %s5927_s2 = sld [smem:[#allocation28_spill]]  ;;  %s4712_s12 = smov [#allocation7]  }
  0x25   : > { %4016 = dma.hbm_to_vmem [thread:$0]  (!%p4848_p6), %s479_s22, 16, %s481_s28, [#allocation15]  }
  0x26   : > { %s5928_s5 = sld [smem:[#allocation30_spill]]  ;;  %s413_s13 = sshll.u32 %s4712_s12, 4  ;;  %s414_s13 = int_to_ptr.vmem [resolvable:$true] %s413_s13 }
  0x27   : > { %s4713_s3 = smov [#allocation10]   ;;  %s4714_s10 = smov 64  }
  0x28   : > { %s441_s14 = sshll.u32 %s4713_s3, 4  ;;  %s4715_s29 = smov 4   ;;  %s442_s14 = int_to_ptr.vmem [resolvable:$true] %s441_s14 }
  0x29   : > { %s466_s24 = sshll.u32 %s5902_s7, 4  ;;  %s4716_s28 = smov [#allocation13]   ;;  %s467_s24 = int_to_ptr.hbm [resolvable:$true] %s466_s24 }
  0x2a   : > { %s411_s16 = sshll.u32 %s5927_s2, 4  ;;  %s468_s1 = sshll.u32 %s4716_s28, 4  ;;  %s412_s16 = int_to_ptr.hbm [resolvable:$true] %s411_s16  ;;  %s469_s1 = int_to_ptr.vmem [resolvable:$true] %s468_s1 }
  0x2b   : > { %4001 = dma.hbm_to_vmem [thread:$0]  (!%p4848_p6), %s412_s16, 16, %s414_s13, [#allocation6]  }
  0x2c   : > { %s439_s27 = sshll.u32 %s5928_s5, 4  ;;  %s489_s16 = sshll.u32 %s5904_s9, 4  ;;  %s440_s27 = int_to_ptr.hbm [resolvable:$true] %s439_s27  ;;  %s490_s16 = int_to_ptr.hbm [resolvable:$true] %s489_s16 }
  0x2d   : > { %4007 = dma.hbm_to_vmem [thread:$0]  (!%p4848_p6), %s440_s27, 1024, %s442_s14, [#allocation9], %s4714_s10, %s4714_s10, %s4715_s29  }
  0x2e   : > { %4013 = dma.hbm_to_vmem [thread:$0]  (!%p4848_p6), %s467_s24, 16, %s469_s1, [#allocation12]  }
  0x2f   : > { %s4717_s27 = smov [#allocation16]   ;;  %s4718_s13 = smov 256  }
  0x30   : > { %s491_s12 = sshll.u32 %s4717_s27, 4  ;;  %s4719_s3 = smov 16   ;;  %s492_s12 = int_to_ptr.vmem [resolvable:$true] %s491_s12 }
  0x31   : > { %4019 = dma.hbm_to_vmem [thread:$0]  (!%p4848_p6), %s490_s16, 4096, %s492_s12, [#allocation15], %s4718_s13, %s4718_s13, %s4719_s3  }
  0x32   : > { %s506_s22 = sshll.u32 %s5906_s11, 4  ;;  %s4720_s24 = smov [#allocation17]   ;;  %s507_s22 = int_to_ptr.hbm [resolvable:$true] %s506_s22 }
  0x33   : > { %s508_s28 = sshll.u32 %s4720_s24, 4  ;;  %s3393_s1 = sadd.s32 4294967294, %s4704_s21   ;;  %s509_s28 = int_to_ptr.vmem [resolvable:$true] %s508_s28 }
  0x34   : > { %4022 = dma.hbm_to_vmem [thread:$0]  (!%p4848_p6), %s507_s22, 4096, %s509_s28, [#allocation18], %s4714_s10, %s4714_s10, %s4715_s29  }
  0x35   : > { %s4893_s15 = sadd.s32 1, %s4704_s21   ;;  %s43_s23 = sadd.s32 1, %s4700_s20 }
  0x36   : > { %s40_s16 = ssub.s32 %s4704_s21, %s4893_s15  ;;  %p50_p7 = scmp.ne.s32.totalorder %s4700_s20, %s4696_s19 }
  0x37   : > { %p41_p8 = scmp.eq.s32.totalorder %s40_s16, 0  ;;  %p51_p9 = scmp.eq.s32.totalorder %s4704_s21, 0 }
  0x38   : > { %p56_p10 = scmp.ne.s32.totalorder %s4696_s19, %s4692_s18  ;;  %p374_p11 = scmp.eq.s32.totalorder %s4831_s25, 1 }
  0x39   : > { %s4905_s27 = scalar_select %p41_p8, %s4700_s20, %s43_s23  }
  0x3a   : > { %p4907_p12 = por %p51_p9, %p50_p7  ;;  %p4913_p13 = por %p57_p1, %p56_p10 }
  0x3b   : > { %p4917_p0 = por %p374_p11, %p50_p7  ;;  %p380_p2 = scmp.eq.s32.totalorder %s3393_s1, 1 }
  0x3c   : > { %p4040_p5 = scmp.lt.s32.totalorder %s4704_s21, 2  ;;  %s531_s29 = sand.u32 1, %s4700_s20  }
  0x3d   : > { %p4923_p6 = por %p380_p2, %p56_p10  ;;  %s3405_s3 = sshll.u32 %s531_s29, 6 }
  0x3e   : > { %s3857_s14 = sshll.u32 %s4704_s21, 6  ;;  %s535_s23 = scalar_lea.vmem [#allocation2], %s3405_s3 }
  0x3f   : > { %s540_s24 = scalar_lea.hbm %s5895_s0, %s3857_s14  ;;  %s543_s16 = sshll.u32 %s535_s23, 4  ;;  %s544_s16 = int_to_ptr.vmem [resolvable:$true] %s543_s16 }
  0x40   : > { %s541_s28 = sshll.u32 %s540_s24, 4  ;;  %p4933_p7 = pnand %p4040_p5, %p4907_p12  ;;  %s542_s28 = int_to_ptr.hbm [resolvable:$true] %s541_s28 }
  0x41   : > { %s532_s2 = scalar_lea.sflag [#allocation3], %s531_s29  ;;  %s4588_s5 = sshra.s32 %s542_s28, 4  ;;  %s4589_s5 = int_to_ptr.hbm [resolvable:$true] %s4588_s5 }
  0x42   : > { %s4590_s6 = scalar_lea.hbm %s4589_s5, 64  ;;  %p4592_p9 = pneg %p4933_p7 }
  0x43   : > { %p4591_p8 = scmp.ne.s32.totalorder %s4589_s5, %s4590_s6  ;;  %s4595_s30 = scalar_lea.hbm %s5895_s0, 128 }
  0x44   : > { %p4596_p12 = scmp.lt.s32.totalorder %s4589_s5, %s5895_s0  ;;  %p4597_p2 = scmp.lt.s32.totalorder %s4595_s30, %s4590_s6 }
  0x45   : > { %p4593_p10 = pnand %p4592_p9, %p4591_p8 }
  0x46   : > { %p4598_p5 = por %p4597_p2, %p4596_p12 }
  0x47   : > { %p4594_p11 = pneg %p4593_p10 }
  0x49   : > { %p4599_p4 = pnand %p4598_p5, %p4594_p11 }
  0x4b   : > { %4602 = shalt.err (!%p4599_p4)
}
  0x4c   : > { %s4721_s29 = smov 128   ;;  %s4722_s24 = smov 8  }
  0x4d   : > { %4026 = dma.hbm_to_vmem [thread:$0]  (!%p4933_p7), %s542_s28, 1024, %s544_s16, %s532_s2, %s4721_s29, %s4721_s29, %s4722_s24  }
  0x4e   : > { %555 = sbr.rel (%p4836_p3) target bundleno = 2536 (0x9e8), region = 80  ;;  %s4950_s23 = sand.u32 (!%p4836_p3), 1, %s4696_s19  }
  0x4f   : > { %s3409_s5 = sshll.u32 (!%p4836_p3), %s4950_s23, 6  ;;  %s558_s6 = scalar_lea.sflag (!%p4836_p3), [#allocation3], %s4950_s23 }
  0x50   : > { %s4956_s14 = scalar_lea.vmem (!%p4836_p3), [#allocation2], %s3409_s5 }
  0x53   : > { %4663 = dma.done.wait (%p4913_p13), %s558_s6, 1024  }
  0x54   : > { %4665 = vsyncadd (%p4913_p13), %s558_s6, 4294966272 }
  0x55   : > { %4667 = dma.done.wait (%p57_p1), [#allocation6], 32  }
  0x56   : > { %4669 = vsyncadd (%p57_p1), [#allocation6], 4294967264 }
  0x57   : > { %4671 = dma.done.wait (%p57_p1), [#allocation9], 4096  }
  0x58   : > { %4673 = vsyncadd (%p57_p1), [#allocation9], 4294963200 }
  0x59   : > { %4675 = dma.done.wait (%p57_p1), [#allocation12], 32  }
  0x5a   : > { %4677 = vsyncadd (%p57_p1), [#allocation12], 4294967264 }
  0x5b   : > { %4679 = dma.done.wait (%p57_p1), [#allocation15], 4112  }
  0x5c   : > { %4681 = vsyncadd (%p57_p1), [#allocation15], 4294963184 }
  0x5d   : > { %4683 = dma.done.wait (%p57_p1), [#allocation18], 4096  }
  0x5e   : > { %4685 = vsyncadd (%p57_p1), [#allocation18], 4294963200  ;;  %v670_v0 = vld [vmem:[%s4956_s14 + $0x20] sm:$0xff]  ;;  %v668_v1 = vld [vmem:[%s4956_s14 + $0x10] sm:$0xff]  ;;  %v4723_v7 = vmov 128.0   ;;  %s4724_s17 = smov 64  }
  0x5f   : > { %v666_v2 = vld [vmem:[%s4956_s14] sm:$0xff]  ;;  %682 = vadd.xlane.f32.xlu2 %v670_v0  ;;  %678 = vadd.xlane.f32.xlu1 %v668_v1  ;;  %v671_v3 = vld [vmem:[%s4956_s14 + $0x28] sm:$0xff]  ;;  %v669_v4 = vld [vmem:[%s4956_s14 + $0x18] sm:$0xff]  ;;  %4132 = vrcp.f32 %v4723_v7  ;;  %s5934_s1 = sld [smem:[#allocation32_spill]]  ;;  %s5824_s26 = scalar_lea.vmem [#allocation19], %s3409_s5 }
  0x60   : > { %674 = vadd.xlane.f32.xlu0 %v666_v2  ;;  %v667_v5 = vld [vmem:[%s4956_s14 + $0x8] sm:$0xff]  ;;  %v672_v6 = vld [vmem:[%s4956_s14 + $0x30] sm:$0xff]  ;;  %v5007_v30 = vld [vmem:[%s4956_s14 + $0x38] sm:$0xff]  ;;  %s5935_s22 = sld [smem:[#allocation33_spill]]  ;;  %s3954_s5 = sshll.u32 %s4831_s25, 6 }
  0x61   : > { %v3506_v43 = vld [vmem:[#allocation8 + $0xa8] sm:$0xf]  ;;  %v3880_v44 = vld [vmem:[#allocation8 + $0xb0] sm:$0xf0]  ;;  %v3879_v45 = vld [vmem:[#allocation8 + $0xac] sm:$0xf] }
  0x62   : > { %v3507_v46 = vor.u32 %v3880_v44, %v3506_v43  ;;  %v3508_v47 = vld [vmem:[#allocation8 + $0xb4] sm:$0xf0]  ;;  %v3514_v48 = vld [vmem:[#allocation8 + $0xb0] sm:$0xf]  ;;  %v3881_v49 = vld [vmem:[#allocation8 + $0xb8] sm:$0xf0] }
  0x63   : > { %v3511_v50 = vor.u32 %v3879_v45, %v3508_v47  ;;  %v3515_v51 = vor.u32 %v3881_v49, %v3514_v48  ;;  %v3494_v52 = vld [vmem:[#allocation8 + $0x90] sm:$0xf]  ;;  %v3877_v53 = vld [vmem:[#allocation8 + $0x98] sm:$0xf0]  ;;  %v3876_v54 = vld [vmem:[#allocation8 + $0x94] sm:$0xf] }
  0x64   : > { %1034 = vmatpush.bf16.msra.mxu0 %v3507_v46  ;;  %v3495_v55 = vor.u32 %v3877_v53, %v3494_v52  ;;  %v3496_v56 = vld [vmem:[#allocation8 + $0x9c] sm:$0xf0]  ;;  %v3502_v57 = vld [vmem:[#allocation8 + $0x98] sm:$0xf]  ;;  %v3878_v58 = vld [vmem:[#allocation8 + $0xa0] sm:$0xf0] }
  0x65   : > { %v4133_v8 = vpop.eup %4132  ;;  %1063 = vmatpush.bf16.msra.mxu1 %v3511_v50  ;;  %1092 = vmatpush.bf16.msra.mxu2 %v3515_v51  ;;  %v3499_v59 = vor.u32 %v3876_v54, %v3496_v56  ;;  %v3503_v60 = vor.u32 %v3878_v58, %v3502_v57  ;;  %v3482_v61 = vld [vmem:[#allocation8 + $0x78] sm:$0xf]  ;;  %v3874_v62 = vld [vmem:[#allocation8 + $0x80] sm:$0xf0]  ;;  %v3873_v63 = vld [vmem:[#allocation8 + $0x7c] sm:$0xf] }
  0x66   : > { %v691_v9 = vmul.f32 128.0, %v4133_v8  ;;  %vm695_vm0 = vweird.f32 %v4133_v8  ;;  %v3871_v7 = vld [vmem:[#allocation8 + $0x68] sm:$0xf0]  ;;  %v3862_v43 = vld [vmem:[#allocation8 + $0x20] sm:$0xf0]  ;;  %s5936_s24 = sld [smem:[#allocation34_spill]] }
  0x67   : > { %684 = vadd.xlane.f32.xlu2 %v671_v3  ;;  %680 = vadd.xlane.f32.xlu1 %v669_v4  ;;  %v3861_v44 = vld [vmem:[#allocation8 + $0x1c] sm:$0xf]  ;;  %v3436_v46 = vld [vmem:[#allocation8 + $0x24] sm:$0xf0]  ;;  %v3442_v47 = vld [vmem:[#allocation8 + $0x20] sm:$0xf] }
  0x68   : > { %676 = vadd.xlane.f32.xlu0 %v667_v5  ;;  %v692_v10 = vsub.f32 1.0, %v691_v9  ;;  %1035 = vmatpush.bf16.msra.mxu0 %v3495_v55  ;;  %v3863_v48 = vld [vmem:[#allocation8 + $0x28] sm:$0xf0]  ;;  %v3439_v50 = vor.u32 %v3861_v44, %v3436_v46  ;;  %v3422_v53 = vld [vmem:[#allocation8] sm:$0xf]  ;;  %s5937_s2 = sld [smem:[#allocation35_spill]] }
  0x69   : > { %1064 = vmatpush.bf16.msra.mxu1 %v3499_v59  ;;  %1093 = vmatpush.bf16.msra.mxu2 %v3503_v60  ;;  %v3443_v51 = vor.u32 %v3863_v48, %v3442_v47  ;;  %v3859_v54 = vld [vmem:[#allocation8 + $0x8] sm:$0xf0]  ;;  %v3858_v55 = vld [vmem:[#allocation8 + $0x4] sm:$0xf]  ;;  %v3424_v58 = vld [vmem:[#allocation8 + $0xc] sm:$0xf0] }
  0x6a   : > { %v693_v11 = vmul.f32 %v4133_v8, %v692_v10  ;;  %v3472_v10 = vld [vmem:[#allocation8 + $0x6c] sm:$0xf0]  ;;  %v3423_v57 = vor.u32 %v3859_v54, %v3422_v53  ;;  %v3430_v59 = vld [vmem:[#allocation8 + $0x8] sm:$0xf]  ;;  %v3427_v60 = vor.u32 %v3858_v55, %v3424_v58  ;;  %s5938_s16 = sld [smem:[#allocation36_spill]]  ;;  %s3231_s3 = sshll.u32 %s5824_s26, 4  ;;  %s3232_s3 = int_to_ptr.vmem [resolvable:$true] %s3231_s3 }
  0x6b   : > { %s3219_s30 = scalar_lea.sflag [#allocation4], %s4950_s23 }
  0x6c   : > { %v694_v12 = vadd.f32 %v4133_v8, %v693_v11  ;;  %v3478_v11 = vld [vmem:[#allocation8 + $0x68] sm:$0xf] }
  0x6e   : > { %v4989_v13 = vsel %vm695_vm0, %v4133_v8, %v694_v12  ;;  %v3870_v8 = vld [vmem:[#allocation8 + $0x64] sm:$0xf]  ;;  %v3872_v12 = vld [vmem:[#allocation8 + $0x70] sm:$0xf0] }
  0x6f   : > { %686 = vadd.xlane.f32.xlu2 %v672_v6 }
  0x70   : > { %s4638_s6 = scalar_lea.hbm %s5938_s16, 128 }
  0xd2   : > { %v683_v14 = vpop.xlane.xlu2 %682  ;;  %v679_v15 = vpop.xlane.xlu1 %678 }
  0xd3   : > { %v675_v16 = vpop.xlane.xlu0 %674  ;;  %v701_v26 = vmul.f32 %v4989_v13, %v683_v14  ;;  %v699_v27 = vmul.f32 %v4989_v13, %v679_v15  ;;  %v3475_v14 = vor.u32 %v3870_v8, %v3472_v10  ;;  %v3479_v15 = vor.u32 %v3872_v12, %v3478_v11 }
  0xd4   : > { %v697_v17 = vmul.f32 %v4989_v13, %v675_v16  ;;  %v3458_v16 = vld [vmem:[#allocation8 + $0x48] sm:$0xf] }
  0xd5   : > { %v5011_v32 = vsub.f32 %v670_v0, %v701_v26  ;;  %v5013_v33 = vsub.f32 %v668_v1, %v699_v27  ;;  %v3483_v0 = vor.u32 %v3874_v62, %v3482_v61  ;;  %v3484_v1 = vld [vmem:[#allocation8 + $0x84] sm:$0xf0]  ;;  %v3446_v27 = vld [vmem:[#allocation8 + $0x30] sm:$0xf]  ;;  %v3860_v61 = vld [vmem:[#allocation8 + $0x10] sm:$0xf0] }
  0xd6   : > { %v4992_v18 = vsub.f32 %v666_v2, %v697_v17  ;;  %v3490_v2 = vld [vmem:[#allocation8 + $0x80] sm:$0xf]  ;;  %v3868_v17 = vld [vmem:[#allocation8 + $0x50] sm:$0xf0]  ;;  %v3431_v62 = vor.u32 %v3860_v61, %v3430_v59 }
  0xd7   : > { %v717_v38 = vmul.f32 %v5011_v32, %v5011_v32  ;;  %v715_v39 = vmul.f32 %v5013_v33, %v5013_v33  ;;  %1036 = vmatpush.bf16.msra.mxu0 %v3483_v0 }
  0xd8   : > { %v713_v19 = vmul.f32 %v4992_v18, %v4992_v18 }
  0xda   : > { %721 = vadd.xlane.f32.xlu0 %v713_v19  ;;  %v685_v20 = vpop.xlane.xlu2 %684  ;;  %v681_v21 = vpop.xlane.xlu1 %680  ;;  %v3867_v19 = vld [vmem:[#allocation8 + $0x4c] sm:$0xf] }
  0xdb   : > { %v700_v22 = vmul.f32 %v4989_v13, %v681_v21  ;;  %v677_v23 = vpop.xlane.xlu0 %676  ;;  %v702_v37 = vmul.f32 %v4989_v13, %v685_v20  ;;  %v3459_v20 = vor.u32 %v3868_v17, %v3458_v16  ;;  %v3460_v21 = vld [vmem:[#allocation8 + $0x54] sm:$0xf0] }
  0xdc   : > { %v698_v24 = vmul.f32 %v4989_v13, %v677_v23  ;;  %v3869_v23 = vld [vmem:[#allocation8 + $0x58] sm:$0xf0] }
  0xdd   : > { %v4998_v25 = vsub.f32 %v669_v4, %v700_v22  ;;  %v5026_v41 = vsub.f32 %v671_v3, %v702_v37  ;;  %v3875_v3 = vld [vmem:[#allocation8 + $0x88] sm:$0xf0]  ;;  %v3487_v4 = vor.u32 %v3873_v63, %v3484_v1  ;;  %v3466_v22 = vld [vmem:[#allocation8 + $0x50] sm:$0xf]  ;;  %v3454_v37 = vld [vmem:[#allocation8 + $0x38] sm:$0xf] }
  0xde   : > { %v5002_v28 = vsub.f32 %v667_v5, %v698_v24  ;;  %v3491_v5 = vor.u32 %v3875_v3, %v3490_v2  ;;  %v3463_v24 = vor.u32 %v3867_v19, %v3460_v21  ;;  %v3467_v26 = vor.u32 %v3869_v23, %v3466_v22 }
  0xdf   : > { %v716_v29 = vmul.f32 %v4998_v25, %v4998_v25  ;;  %v718_v42 = vmul.f32 %v5026_v41, %v5026_v41  ;;  %1065 = vmatpush.bf16.msra.mxu1 %v3487_v4 }
  0xe0   : > { %v714_v31 = vmul.f32 %v5002_v28, %v5002_v28  ;;  %1094 = vmatpush.bf16.msra.mxu2 %v3491_v5 }
  0xe1   : > { %727 = vadd.xlane.f32.xlu2 %v716_v29  ;;  %v3865_v29 = vld [vmem:[#allocation8 + $0x38] sm:$0xf0] }
  0xe2   : > { %688 = vadd.xlane.f32.xlu0 %v5007_v30  ;;  %723 = vadd.xlane.f32.xlu1 %v714_v31  ;;  %v687_v34 = vpop.xlane.xlu2 %686  ;;  %v3864_v31 = vld [vmem:[#allocation8 + $0x34] sm:$0xf] }
  0xe3   : > { %v703_v35 = vmul.f32 %v4989_v13, %v687_v34  ;;  %1066 = vmatpush.bf16.msra.mxu1 %v3475_v14  ;;  %v3447_v34 = vor.u32 %v3865_v29, %v3446_v27 }
  0xe4   : > { %1095 = vmatpush.bf16.msra.mxu2 %v3479_v15 }
  0xe5   : > { %v5017_v36 = vsub.f32 %v672_v6, %v703_v35  ;;  %v3470_v6 = vld [vmem:[#allocation8 + $0x60] sm:$0xf] }
  0xe6   : > { %v3471_v9 = vor.u32 %v3871_v7, %v3470_v6  ;;  %v3448_v35 = vld [vmem:[#allocation8 + $0x3c] sm:$0xf0] }
  0xe7   : > { %v719_v40 = vmul.f32 %v5017_v36, %v5017_v36  ;;  %1067 = vmatpush.bf16.msra.mxu1 %v3463_v24 }
  0xe8   : > { %1037 = vmatpush.bf16.msra.mxu0 %v3471_v9  ;;  %1096 = vmatpush.bf16.msra.mxu2 %v3467_v26 }
  0xe9   : > { %733 = vadd.xlane.f32.xlu2 %v719_v40 }
  0xea   : > { %729 = vadd.xlane.f32.xlu0 %v717_v38  ;;  %725 = vadd.xlane.f32.xlu1 %v715_v39  ;;  %v3866_v38 = vld [vmem:[#allocation8 + $0x40] sm:$0xf0]  ;;  %v3451_v39 = vor.u32 %v3864_v31, %v3448_v35 }
  0xeb   : > { %v3455_v40 = vor.u32 %v3866_v38, %v3454_v37 }
  0xec   : > { %1038 = vmatpush.bf16.msra.mxu0 %v3459_v20  ;;  %1068 = vmatpush.bf16.msra.mxu1 %v3451_v39 }
  0xed   : > { %1097 = vmatpush.bf16.msra.mxu2 %v3455_v40 }
  0xf0   : > { %1039 = vmatpush.bf16.msra.mxu0 %v3447_v34  ;;  %1069 = vmatpush.bf16.msra.mxu1 %v3439_v50 }
  0xf1   : > { %1098 = vmatpush.bf16.msra.mxu2 %v3443_v51 }
  0xf2   : > { %731 = vadd.xlane.f32.xlu1 %v718_v42  ;;  %v3434_v42 = vld [vmem:[#allocation8 + $0x18] sm:$0xf] }
  0xf3   : > { %v3435_v45 = vor.u32 %v3862_v43, %v3434_v42 }
  0xf4   : > { %1070 = vmatpush.bf16.msra.mxu1 %v3427_v60 }
  0xf5   : > { %1040 = vmatpush.bf16.msra.mxu0 %v3435_v45  ;;  %1099 = vmatpush.bf16.msra.mxu2 %v3431_v62  ;;  %v5054_v45 = vld [vmem:[#allocation5] ss:$0 sm:$0xff] }
  0xf9   : > { %1041 = vmatpush.bf16.msra.mxu0 %v3423_v57 }
 0x14d   : > { %v722_v49 = vpop.xlane.xlu0 %721 }
 0x14e   : > { %v737_v52 = vmul.f32 %v722_v49, %v4989_v13 }
 0x150   : > { %v745_v56 = vadd.f32 1e-05, %v737_v52  ;;  %v5058_v52 = vld [vmem:[#allocation7] ss:$0 sm:$0xff] }
 0x152   : > { %4134 = vrsqrt.f32 %v745_v56  ;;  %vm759_vm2 = vweird.f32 %v745_v56 }
 0x154   : > { %v728_v63 = vpop.xlane.xlu2 %727 }
 0x155   : > { %v740_v0 = vmul.f32 %v728_v63, %v4989_v13  ;;  %v724_v1 = vpop.xlane.xlu1 %723  ;;  %v689_v2 = vpop.xlane.xlu0 %688 }
 0x156   : > { %v738_v3 = vmul.f32 %v724_v1, %v4989_v13  ;;  %v704_v4 = vmul.f32 %v4989_v13, %v689_v2 }
 0x157   : > { %v5034_v5 = vadd.f32 1e-05, %v740_v0 }
 0x158   : > { %v4135_v6 = vpop.eup %4134  ;;  %v746_v7 = vadd.f32 1e-05, %v738_v3  ;;  %v5037_v8 = vsub.f32 %v5007_v30, %v704_v4 }
 0x159   : > { %v754_v9 = vmul.f32 %v4135_v6, %v745_v56  ;;  %4136 = vrsqrt.f32 %v5034_v5  ;;  %vm760_vm1 = vweird.f32 %v4135_v6  ;;  %vm789_vm9 = vweird.f32 %v5034_v5 }
 0x15a   : > { %4138 = vrsqrt.f32 %v746_v7  ;;  %v720_v10 = vmul.f32 %v5037_v8, %v5037_v8  ;;  %vm761_vm3 = vmor %vm759_vm2, %vm760_vm1  ;;  %vm769_vm4 = vweird.f32 %v746_v7 }
 0x15b   : > { %v755_v11 = vmul.f32 %v4135_v6, %v754_v9 }
 0x15c   : > { %735 = vadd.xlane.f32.xlu0 %v720_v10 }
 0x15d   : > { %v756_v12 = vmul.f32 0.5, %v755_v11  ;;  %v726_v14 = vpop.xlane.xlu1 %725  ;;  %v730_v16 = vpop.xlane.xlu0 %729 }
 0x15e   : > { %v739_v15 = vmul.f32 %v726_v14, %v4989_v13  ;;  %v741_v22 = vmul.f32 %v730_v16, %v4989_v13 }
 0x15f   : > { %v5043_v17 = vpop.eup %4136  ;;  %v757_v19 = vsub.f32 1.5, %v756_v12 }
 0x160   : > { %v4139_v20 = vpop.eup %4138  ;;  %v747_v30 = vadd.f32 1e-05, %v739_v15  ;;  %v784_v24 = vmul.f32 %v5043_v17, %v5034_v5  ;;  %v5048_v29 = vadd.f32 1e-05, %v741_v22  ;;  %vm790_vm10 = vweird.f32 %v5043_v17 }
 0x161   : > { %v764_v21 = vmul.f32 %v4139_v20, %v746_v7  ;;  %v758_v23 = vmul.f32 %v4135_v6, %v757_v19  ;;  %vm770_vm5 = vweird.f32 %v4139_v20  ;;  %vm791_vm12 = vmor %vm789_vm9, %vm790_vm10  ;;  %vm1121_vm9 = vcmask 523264  }
 0x162   : > { %4140 = vrsqrt.f32 %v747_v30  ;;  %v785_v35 = vmul.f32 %v5043_v17, %v784_v24  ;;  %vm771_vm6 = vmor %vm769_vm4, %vm770_vm5  ;;  %vm779_vm7 = vweird.f32 %v747_v30  ;;  %vm799_vm15 = vweird.f32 %v5048_v29 }
 0x163   : > { %v765_v26 = vmul.f32 %v4139_v20, %v764_v21  ;;  %v762_v34 = vsel %vm761_vm3, %v4135_v6, %v758_v23  ;;  %4142 = vrsqrt.f32 %v5048_v29 }
 0x164   : > { %v833_v42 = vmul.f32 %v762_v34, %v4992_v18  ;;  %v786_v46 = vmul.f32 0.5, %v785_v35 }
 0x165   : > { %v766_v27 = vmul.f32 0.5, %v765_v26  ;;  %v732_v31 = vpop.xlane.xlu1 %731  ;;  %v734_v26 = vpop.xlane.xlu2 %733 }
 0x166   : > { %v742_v37 = vmul.f32 %v732_v31, %v4989_v13  ;;  %v844_v51 = vmul.f32 %v5054_v45, %v833_v42  ;;  %v787_v53 = vsub.f32 1.5, %v786_v46 }
 0x167   : > { %v767_v38 = vsub.f32 1.5, %v766_v27  ;;  %v743_v27 = vmul.f32 %v734_v26, %v4989_v13 }
 0x168   : > { %v4141_v39 = vpop.eup %4140  ;;  %v750_v40 = vadd.f32 1e-05, %v742_v37  ;;  %v855_v58 = vadd.f32 %v5058_v52, %v844_v51  ;;  %v788_v59 = vmul.f32 %v5043_v17, %v787_v53 }
 0x169   : > { %v768_v43 = vmul.f32 %v4139_v20, %v767_v38  ;;  %v774_v44 = vmul.f32 %v4141_v39, %v747_v30  ;;  %vm780_vm8 = vweird.f32 %v4141_v39  ;;  %v4143_v54 = vpop.eup %4142 }
 0x16a   : > { %4144 = vrsqrt.f32 %v750_v40  ;;  %vm781_vm11 = vmor %vm779_vm7, %vm780_vm8  ;;  %v794_v60 = vmul.f32 %v4143_v54, %v5048_v29  ;;  %v792_v1 = vsel %vm791_vm12, %v5043_v17, %v788_v59  ;;  %vm809_vm13 = vweird.f32 %v750_v40 }
 0x16b   : > { %v772_v47 = vsel %vm771_vm6, %v4139_v20, %v768_v43  ;;  %v775_v48 = vmul.f32 %v4141_v39, %v774_v44  ;;  %v836_v5 = vmul.f32 %v792_v1, %v4998_v25  ;;  %vm800_vm0 = vweird.f32 %v4143_v54 }
 0x16c   : > { %v834_v49 = vmul.f32 %v772_v47, %v5002_v28  ;;  %v795_v2 = vmul.f32 %v4143_v54, %v794_v60  ;;  %vm801_vm2 = vmor %vm799_vm15, %vm800_vm0  ;;  %v751_v29 = vadd.f32 1e-05, %v743_v27 }
 0x16d   : > { %v776_v50 = vmul.f32 0.5, %v775_v48  ;;  %v847_v10 = vmul.f32 %v5054_v45, %v836_v5 }
 0x16e   : > { %v845_v18 = vmul.f32 %v5054_v45, %v834_v49  ;;  %v796_v6 = vmul.f32 0.5, %v795_v2  ;;  %4146 = vrsqrt.f32 %v751_v29  ;;  %vm819_vm3 = vweird.f32 %v751_v29 }
 0x16f   : > { %v777_v55 = vsub.f32 1.5, %v776_v50 }
 0x170   : > { %v856_v56 = vadd.f32 %v5058_v52, %v845_v18  ;;  %v4145_v57 = vpop.eup %4144  ;;  %v797_v11 = vsub.f32 1.5, %v796_v6 }
 0x171   : > { %v778_v28 = vmul.f32 %v4141_v39, %v777_v55  ;;  %v804_v61 = vmul.f32 %v4145_v57, %v750_v40  ;;  %vm810_vm14 = vweird.f32 %v4145_v57 }
 0x172   : > { %v863_v62 = vpack.c.bf16 %v856_v56, %v855_v58  ;;  %vm811_vm1 = vmor %vm809_vm13, %vm810_vm14  ;;  %v798_v15 = vmul.f32 %v4143_v54, %v797_v11 }
 0x173   : > { %v782_v63 = vsel %vm781_vm11, %v4141_v39, %v778_v28  ;;  %v805_v0 = vmul.f32 %v4145_v57, %v804_v61 }
 0x174   : > { %1042 = vmatmul.bf16.vlgmr.msra.gmra.mxu0 %v863_v62  ;;  %1071 = vmatmul.bf16.vlgmr.msra.gmra.mxu1 %v863_v62  ;;  %v835_v3 = vmul.f32 %v782_v63, %v5013_v33  ;;  %v858_v33 = vadd.f32 %v5058_v52, %v847_v10  ;;  %v802_v17 = vsel %vm801_vm2, %v4143_v54, %v798_v15 }
 0x175   : > { %1100 = vmatmul.bf16.vlgmr.msra.gmra.mxu2 %v863_v62  ;;  %v806_v4 = vmul.f32 0.5, %v805_v0  ;;  %v837_v20 = vmul.f32 %v802_v17, %v5011_v32 }
 0x176   : > { %v846_v7 = vmul.f32 %v5054_v45, %v835_v3 }
 0x177   : > { %v807_v9 = vsub.f32 1.5, %v806_v4  ;;  %v848_v21 = vmul.f32 %v5054_v45, %v837_v20 }
 0x178   : > { %v857_v12 = vadd.f32 %v5058_v52, %v846_v7 }
 0x179   : > { %v808_v14 = vmul.f32 %v4145_v57, %v807_v9  ;;  %v859_v23 = vadd.f32 %v5058_v52, %v848_v21 }
 0x17a   : > { %v864_v25 = vpack.c.bf16 %v858_v33, %v857_v12 }
 0x17b   : > { %v812_v16 = vsel %vm811_vm1, %v4145_v57, %v808_v14 }
 0x17c   : > { %v838_v19 = vmul.f32 %v812_v16, %v5026_v41  ;;  %v4147_v41 = vpop.eup %4146 }
 0x17d   : > { %v814_v31 = vmul.f32 %v4147_v41, %v751_v29  ;;  %vm820_vm4 = vweird.f32 %v4147_v41 }
 0x17e   : > { %v849_v30 = vmul.f32 %v5054_v45, %v838_v19  ;;  %vm821_vm5 = vmor %vm819_vm3, %vm820_vm4 }
 0x17f   : > { %v815_v32 = vmul.f32 %v4147_v41, %v814_v31 }
 0x180   : > { %v860_v22 = vadd.f32 %v5058_v52, %v849_v30 }
 0x181   : > { %v816_v38 = vmul.f32 0.5, %v815_v32 }
 0x182   : > { %v865_v24 = vpack.c.bf16 %v860_v22, %v859_v23 }
 0x183   : > { %v817_v39 = vsub.f32 1.5, %v816_v38 }
 0x184   : > { %1047 = vmatmul.bf16.gmra.mxu0 %v864_v25  ;;  %1076 = vmatmul.bf16.gmra.mxu1 %v864_v25 }
 0x185   : > { %1105 = vmatmul.bf16.gmra.mxu2 %v864_v25  ;;  %v818_v42 = vmul.f32 %v4147_v41, %v817_v39 }
 0x187   : > { %v822_v46 = vsel %vm821_vm5, %v4147_v41, %v818_v42 }
 0x188   : > { %v839_v49 = vmul.f32 %v822_v46, %v5017_v36  ;;  %v662_v36 = vld [vmem:[%s5899_s4] sm:$0x7] }
 0x189   : > { %v5094_v58 = vperm.slane %v662_v36, 2  ;;  %v901_v63 = vperm.slane %v662_v36, 1  ;;  %v5101_v5 = vperm.slane %v662_v36, 0 }
 0x18a   : > { %v850_v18 = vmul.f32 %v5054_v45, %v839_v49 }
 0x18c   : > { %v861_v55 = vadd.f32 %v5058_v52, %v850_v18 }
 0x194   : > { %1052 = vmatmul.bf16.gmra.mxu0 %v865_v24  ;;  %1081 = vmatmul.bf16.gmra.mxu1 %v865_v24 }
 0x195   : > { %1110 = vmatmul.bf16.gmra.mxu2 %v865_v24 }
 0x1cf   : > { %v736_v34 = vpop.xlane.xlu0 %735 }
 0x1d0   : > { %v744_v35 = vmul.f32 %v736_v34, %v4989_v13 }
 0x1d2   : > { %v752_v37 = vadd.f32 1e-05, %v744_v35 }
 0x1d4   : > { %4148 = vrsqrt.f32 %v752_v37  ;;  %vm829_vm7 = vweird.f32 %v752_v37 }
 0x1da   : > { %v4149_v40 = vpop.eup %4148 }
 0x1db   : > { %v824_v43 = vmul.f32 %v4149_v40, %v752_v37  ;;  %vm830_vm6 = vweird.f32 %v4149_v40 }
 0x1dc   : > { %vm831_vm8 = vmor %vm829_vm7, %vm830_vm6 }
 0x1dd   : > { %v825_v44 = vmul.f32 %v4149_v40, %v824_v43 }
 0x1df   : > { %v826_v47 = vmul.f32 0.5, %v825_v44 }
 0x1e1   : > { %v827_v48 = vsub.f32 1.5, %v826_v47 }
 0x1e3   : > { %v828_v50 = vmul.f32 %v4149_v40, %v827_v48 }
 0x1e5   : > { %v832_v51 = vsel %vm831_vm8, %v4149_v40, %v828_v50 }
 0x1e6   : > { %v840_v53 = vmul.f32 %v832_v51, %v5037_v8 }
 0x1e8   : > { %v851_v54 = vmul.f32 %v5054_v45, %v840_v53 }
 0x1ea   : > { %v862_v56 = vadd.f32 %v5058_v52, %v851_v54 }
 0x1ec   : > { %v866_v57 = vpack.c.bf16 %v862_v56, %v861_v55 }
 0x1ee   : > { %1057 = vmatmul.bf16.gmra.mxu0 %v866_v57  ;;  %1086 = vmatmul.bf16.gmra.mxu1 %v866_v57 }
 0x1ef   : > { %1115 = vmatmul.bf16.gmra.mxu2 %v866_v57 }
 0x1f1   : > { %v5089_v28 = vpop.f32.mrf.mxu1  ;;  %v1043_v52 = vpop.f32.mrf.mxu0 }
 0x1f2   : > { %v5104_v6 = vadd.f32 %v1043_v52, %v5101_v5  ;;  %v1073_v37 = vadd.f32 %v5089_v28, %v901_v63 }
 0x1f8   : > { %v1101_v8 = vpop.f32.mrf.mxu2 }
 0x1f9   : > { %v5097_v59 = vadd.f32 %v1101_v8, %v5094_v58  ;;  %v1074_v45 = vpop.f32.mrf.mxu1  ;;  %v1045_v2 = vpop.f32.mrf.mxu0 }
 0x1fa   : > { %v1075_v41 = vadd.f32 %v1074_v45, %v901_v63  ;;  %v1046_v38 = vadd.f32 %v1045_v2, %v5101_v5 }
 0x200   : > { %v1103_v10 = vpop.f32.mrf.mxu2 }
 0x201   : > { %v1077_v60 = vpop.f32.mrf.mxu1  ;;  %v1048_v4 = vpop.f32.mrf.mxu0  ;;  %v5149_v40 = vadd.f32 %v1103_v10, %v5094_v58 }
 0x202   : > { %v1078_v3 = vadd.f32 %v1077_v60, %v901_v63  ;;  %v1049_v42 = vadd.f32 %v1048_v4, %v5101_v5 }
 0x208   : > { %v1106_v11 = vpop.f32.mrf.mxu2 }
 0x209   : > { %v1079_v61 = vpop.f32.mrf.mxu1  ;;  %v1050_v7 = vpop.f32.mrf.mxu0  ;;  %v5141_v39 = vadd.f32 %v1106_v11, %v5094_v58 }
 0x20a   : > { %v5109_v9 = vadd.f32 %v1050_v7, %v5101_v5  ;;  %v1080_v29 = vadd.f32 %v1079_v61, %v901_v63 }
 0x210   : > { %v1108_v12 = vpop.f32.mrf.mxu2 }
 0x211   : > { %v1082_v62 = vpop.f32.mrf.mxu1  ;;  %v1053_v14 = vpop.f32.mrf.mxu0  ;;  %v5136_v35 = vadd.f32 %v1108_v12, %v5094_v58 }
 0x212   : > { %v1083_v23 = vadd.f32 %v1082_v62, %v901_v63  ;;  %v1054_v43 = vadd.f32 %v1053_v14, %v5101_v5 }
 0x213   : > { %v4114_v12 = vpack.i.bf16 %v5141_v39, %v5136_v35 }
 0x218   : > { %v1111_v33 = vpop.f32.mrf.mxu2 }
 0x219   : > { %v1084_v0 = vpop.f32.mrf.mxu1  ;;  %v1055_v15 = vpop.f32.mrf.mxu0  ;;  %v5130_v34 = vadd.f32 %v1111_v33, %v5094_v58 }
 0x21a   : > { %v1085_v1 = vadd.f32 %v1084_v0, %v901_v63  ;;  %v1056_v46 = vadd.f32 %v1055_v15, %v5101_v5 }
 0x21c   : > { %1398 = vrot.lane.b32.xlu0 %v1085_v1, %s4724_s17 }
 0x220   : > { %v1113_v25 = vpop.f32.mrf.mxu2 }
 0x221   : > { %v5126_v32 = vadd.f32 %v1113_v25, %v5094_v58 }
 0x224   : > { %1392 = vrot.lane.b32.xlu0 %v1078_v3, %s4724_s17 }
 0x22c   : > { %1372 = vrot.lane.b32.xlu0 %v5104_v6, %s4724_s17 }
 0x234   : > { %1378 = vrot.lane.b32.xlu0 %v5109_v9, %s4724_s17 }
 0x26b   : > { %v1058_v16 = vpop.f32.mrf.mxu0  ;;  %v1087_v17 = vpop.f32.mrf.mxu1 }
 0x26c   : > { %v1059_v19 = vadd.f32 %v1058_v16, %v5101_v5  ;;  %v1088_v20 = vadd.f32 %v1087_v17, %v901_v63  ;;  %v4109_v16 = vpack.i.bf16 %v5130_v34, %v5126_v32 }
 0x26e   : > { %1400 = vrot.lane.b32.xlu2 %v1088_v20, %s4724_s17  ;;  %1384 = vrot.lane.b32.xlu0 %v1059_v19, %s4724_s17 }
 0x272   : > { %v1116_v30 = vpop.f32.mrf.mxu2 }
 0x273   : > { %v1089_v21 = vpop.f32.mrf.mxu1  ;;  %v1117_v26 = vadd.f32 %v1116_v30, %v5094_v58  ;;  %v1060_v44 = vpop.f32.mrf.mxu0 }
 0x274   : > { %v1090_v22 = vadd.f32 %v1089_v21, %v901_v63  ;;  %v1061_v47 = vadd.f32 %v1060_v44, %v5101_v5  ;;  %v4119_v21 = vpack.i.bf16 %v5097_v59, %v5149_v40 }
 0x276   : > { %1402 = vrot.lane.b32.xlu1 %v1090_v22, %s4724_s17  ;;  %3516 = vmatpush.xpose.msk.msra.mxu3 %vm1121_vm9, %v1090_v22 }
 0x277   : > { %1396 = vrot.lane.b32.xlu2 %v1083_v23, %s4724_s17 }
 0x27a   : > { %v1118_v24 = vpop.f32.mrf.mxu2  ;;  %3517 = vmatpush.xpose.msk.msra.mxu3 %vm1121_vm9, %v1088_v20 }
 0x27b   : > { %v1119_v27 = vadd.f32 %v1118_v24, %v5094_v58 }
 0x27d   : > { %1331 = vmatpush.msrb.mxu0 %v1119_v27  ;;  %v4104_v31 = vpack.i.bf16 %v1117_v26, %v1119_v27 }
 0x27e   : > { %3518 = vmatpush.xpose.msk.msra.mxu3 %vm1121_vm9, %v1085_v1  ;;  %1394 = vrot.lane.b32.xlu1 %v1080_v29, %s4724_s17 }
 0x27f   : > { %1332 = vmatpush.msrb.mxu0 %v1117_v26  ;;  %1390 = vrot.lane.b32.xlu2 %v1075_v41, %s4724_s17 }
 0x280   : > { %4105 = vrot.lane.b32.xlu0 %v4104_v31, %s4724_s17 }
 0x281   : > { %1333 = vmatpush.msrb.mxu0 %v5126_v32 }
 0x282   : > { %3519 = vmatpush.xpose.msk.msra.mxu3 %vm1121_vm9, %v1083_v23 }
 0x283   : > { %1334 = vmatpush.msrb.mxu0 %v5130_v34 }
 0x285   : > { %1335 = vmatpush.msrb.mxu0 %v5136_v35 }
 0x286   : > { %3520 = vmatpush.xpose.msk.msra.mxu3 %vm1121_vm9, %v1080_v29  ;;  %1388 = vrot.lane.b32.xlu1 %v1073_v37, %s4724_s17 }
 0x287   : > { %1336 = vmatpush.msrb.mxu0 %v5141_v39  ;;  %1374 = vrot.lane.b32.xlu2 %v1046_v38, %s4724_s17 }
 0x289   : > { %1337 = vmatpush.msrb.mxu0 %v5149_v40 }
 0x28a   : > { %3521 = vmatpush.xpose.msk.msra.mxu3 %vm1121_vm9, %v1078_v3 }
 0x28b   : > { %1338 = vmatpush.msrb.mxu0 %v5097_v59 }
 0x28e   : > { %3522 = vmatpush.xpose.msk.msra.mxu3 %vm1121_vm9, %v1075_v41  ;;  %1376 = vrot.lane.b32.xlu1 %v1049_v42, %s4724_s17  ;;  %v1399_v48 = vpop.permute.xlu0 %1398 }
 0x28f   : > { %1380 = vrot.lane.b32.xlu2 %v1054_v43, %s4724_s17 }
 0x292   : > { %3523 = vmatpush.xpose.msk.msra.mxu3 %vm1121_vm9, %v1073_v37 }
 0x295   : > { %3524 = vmatmul.msk.f32.vlgmr.msra.gmra.mxu3 %vm1121_vm9, %v5104_v6 }
 0x296   : > { %1382 = vrot.lane.b32.xlu1 %v1056_v46, %s4724_s17  ;;  %v1393_v49 = vpop.permute.xlu0 %1392 }
 0x297   : > { %1386 = vrot.lane.b32.xlu2 %v1061_v47, %s4724_s17 }
 0x29d   : > { %3525 = vmatmul.msk.f32.gmra.mxu3 %vm1121_vm9, %v1046_v38 }
 0x29e   : > { %v1373_v50 = vpop.permute.xlu0 %1372 }
 0x2a5   : > { %3526 = vmatmul.msk.f32.gmra.mxu3 %vm1121_vm9, %v1049_v42 }
 0x2a6   : > { %v1379_v51 = vpop.permute.xlu0 %1378 }
 0x2ad   : > { %3527 = vmatmul.msk.f32.gmra.mxu3 %vm1121_vm9, %v5109_v9 }
 0x2b5   : > { %3528 = vmatmul.msk.f32.gmra.mxu3 %vm1121_vm9, %v1054_v43 }
 0x2bd   : > { %3529 = vmatmul.msk.f32.gmra.mxu3 %vm1121_vm9, %v1056_v46 }
 0x2c5   : > { %3530 = vmatmul.msk.f32.gmra.mxu3 %vm1121_vm9, %v1059_v19 }
 0x2c8   : > { %v1401_v18 = vpop.permute.xlu2 %1400 }
 0x2cd   : > { %3531 = vmatmul.msk.f32.gmra.mxu3 %vm1121_vm9, %v1061_v47 }
 0x2d1   : > { %v1397_v57 = vpop.permute.xlu2 %1396 }
 0x2d9   : > { %v1391_v58 = vpop.permute.xlu2 %1390 }
 0x2e0   : > { %v1385_v54 = vpop.permute.xlu0 %1384 }
 0x2e1   : > { %v1375_v45 = vpop.permute.xlu2 %1374 }
 0x2e8   : > { %v1403_v53 = vpop.permute.xlu1 %1402 }
 0x2e9   : > { %3540 = vmatpush.xpose.msk.msrb.mxu1 %vm1121_vm9, %v1403_v53  ;;  %v1381_v62 = vpop.permute.xlu2 %1380 }
 0x2ed   : > { %3541 = vmatpush.xpose.msk.msrb.mxu1 %vm1121_vm9, %v1401_v18 }
 0x2f0   : > { %v1395_v36 = vpop.permute.xlu1 %1394 }
 0x2f1   : > { %3542 = vmatpush.xpose.msk.msrb.mxu1 %vm1121_vm9, %v1399_v48  ;;  %v1387_v0 = vpop.permute.xlu2 %1386 }
 0x2f2   : > { %v4106_v55 = vpop.permute.xlu0 %4105 }
 0x2f3   : > { %v4107_v56 = vunpack.i.l.bf16 %v4106_v55  ;;  %v4108_v28 = vunpack.i.h.bf16 %v4106_v55 }
 0x2f5   : > { %1629 = vmatpush.msrb.mxu2 %v4107_v56  ;;  %3543 = vmatpush.xpose.msk.msrb.mxu1 %vm1121_vm9, %v1397_v57 }
 0x2f7   : > { %1630 = vmatpush.msrb.mxu2 %v4108_v28 }
 0x2f8   : > { %v1389_v8 = vpop.permute.xlu1 %1388 }
 0x2f9   : > { %3544 = vmatpush.xpose.msk.msrb.mxu1 %vm1121_vm9, %v1395_v36 }
 0x2fd   : > { %3545 = vmatpush.xpose.msk.msrb.mxu1 %vm1121_vm9, %v1393_v49 }
 0x300   : > { %v1377_v60 = vpop.permute.xlu1 %1376 }
 0x301   : > { %3546 = vmatpush.xpose.msk.msrb.mxu1 %vm1121_vm9, %v1391_v58 }
 0x305   : > { %3547 = vmatpush.xpose.msk.msrb.mxu1 %vm1121_vm9, %v1389_v8 }
 0x308   : > { %3548 = vmatmul.msk.f32.vlgmr.msrb.gmra.mxu1 %vm1121_vm9, %v1373_v50  ;;  %v1383_v63 = vpop.permute.xlu1 %1382 }
 0x310   : > { %3549 = vmatmul.msk.f32.gmra.mxu1 %vm1121_vm9, %v1375_v45 }
 0x318   : > { %v5184_v61 = vpop.f32.mrf.mxu3  ;;  %3550 = vmatmul.msk.f32.gmra.mxu1 %vm1121_vm9, %v1377_v60 }
 0x319   : > { %v1211_v52 = vsel %vm1121_vm9, %v5184_v61, -inf }
 0x31a   : > { %1212 = vmax.xlane.f32.xlu1 %v1211_v52 }
 0x320   : > { %3551 = vmatmul.msk.f32.gmra.mxu1 %vm1121_vm9, %v1379_v51  ;;  %v5197_v7 = vpop.f32.mrf.mxu3 }
 0x321   : > { %v1214_v11 = vsel %vm1121_vm9, %v5197_v7, -inf }
 0x328   : > { %3552 = vmatmul.msk.f32.gmra.mxu1 %vm1121_vm9, %v1381_v62  ;;  %v5230_v22 = vpop.f32.mrf.mxu3 }
 0x329   : > { %v1217_v44 = vsel %vm1121_vm9, %v5230_v22, -inf }
 0x330   : > { %3553 = vmatmul.msk.f32.gmra.mxu1 %vm1121_vm9, %v1383_v63  ;;  %v5232_v26 = vpop.f32.mrf.mxu3 }
 0x338   : > { %3554 = vmatmul.msk.f32.gmra.mxu1 %vm1121_vm9, %v1385_v54  ;;  %v5236_v34 = vpop.f32.mrf.mxu3  ;;  %v1220_v54 = vsel %vm1121_vm9, %v5232_v26, -inf }
 0x339   : > { %v1223_v58 = vsel %vm1121_vm9, %v5236_v34, -inf }
 0x340   : > { %3555 = vmatmul.msk.f32.gmra.mxu1 %vm1121_vm9, %v1387_v0  ;;  %v5247_v46 = vpop.f32.mrf.mxu3 }
 0x341   : > { %v1226_v55 = vsel %vm1121_vm9, %v5247_v46, -inf }
 0x348   : > { %v5259_v56 = vpop.f32.mrf.mxu3 }
 0x349   : > { %v1229_v8 = vsel %vm1121_vm9, %v5259_v56, -inf }
 0x385   : > { %v1453_v1 = vpop.f32.mrf.mxu1 }
 0x386   : > { %v1477_v2 = vsel %vm1121_vm9, %v1453_v1, -inf }
 0x387   : > { %1478 = vmax.xlane.f32.xlu1 %v1477_v2 }
 0x38d   : > { %v1456_v3 = vpop.f32.mrf.mxu1  ;;  %v1213_v23 = vpop.xlane.xlu1 %1212 }
 0x38e   : > { %v1480_v4 = vsel %vm1121_vm9, %v1456_v3, -inf  ;;  %v1235_v42 = vsub.f32 %v5184_v61, %v1213_v23  ;;  %v5271_v61 = vpop.f32.mrf.mxu3 }
 0x38f   : > { %1481 = vmax.xlane.f32.xlu0 %v1480_v4  ;;  %v1232_v63 = vsel %vm1121_vm9, %v5271_v61, -inf }
 0x390   : > { %v1243_v47 = vmul.f32 1.442695, %v1235_v42 }
 0x395   : > { %v1459_v5 = vpop.f32.mrf.mxu1 }
 0x396   : > { %v1483_v6 = vsel %vm1121_vm9, %v1459_v5, -inf }
 0x397   : > { %1484 = vmax.xlane.f32.xlu2 %v1483_v6 }
 0x39d   : > { %v5199_v9 = vpop.f32.mrf.mxu1 }
 0x39e   : > { %v1486_v10 = vsel %vm1121_vm9, %v5199_v9, -inf }
 0x39f   : > { %1487 = vmax.xlane.f32.xlu1 %v1486_v10  ;;  %1215 = vmax.xlane.f32.xlu2 %v1214_v11 }
 0x3a3   : > { %4115 = vrot.lane.b32.xlu0 %v4114_v12, %s4724_s17 }
 0x3a5   : > { %v5208_v14 = vpop.f32.mrf.mxu1 }
 0x3a6   : > { %v1489_v30 = vsel %vm1121_vm9, %v5208_v14, -inf }
 0x3ad   : > { %v5210_v33 = vpop.f32.mrf.mxu1 }
 0x3ae   : > { %v1492_v15 = vsel %vm1121_vm9, %v5210_v33, -inf }
 0x3af   : > { %1493 = vmax.xlane.f32.xlu2 %v1492_v15 }
 0x3b5   : > { %v5214_v25 = vpop.f32.mrf.mxu1 }
 0x3b6   : > { %v1495_v17 = vsel %vm1121_vm9, %v5214_v25, -inf }
 0x3b7   : > { %1496 = vmax.xlane.f32.xlu2 %v1495_v17 }
 0x3b8   : > { %4110 = vrot.lane.b32.xlu1 %v4109_v16, %s4724_s17 }
 0x3bd   : > { %v5221_v19 = vpop.f32.mrf.mxu1 }
 0x3be   : > { %v1498_v20 = vsel %vm1121_vm9, %v5221_v19, -inf }
 0x3bf   : > { %1499 = vmax.xlane.f32.xlu2 %v1498_v20 }
 0x3cd   : > { %1490 = vmax.xlane.f32.xlu0 %v1489_v30 }
 0x3e1   : > { %4120 = vrot.lane.b32.xlu0 %v4119_v21, %s4724_s17 }
 0x3fa   : > { %v1479_v24 = vpop.xlane.xlu1 %1478 }
 0x3fb   : > { %v1501_v27 = vsub.f32 %v1453_v1, %v1479_v24 }
 0x3fd   : > { %v1509_v29 = vmul.f32 1.442695, %v1501_v27 }
 0x3ff   : > { %4150 = vpow2.f32 %v1509_v29 }
 0x402   : > { %v1482_v41 = vpop.xlane.xlu0 %1481 }
 0x403   : > { %v1502_v31 = vsub.f32 %v1456_v3, %v1482_v41 }
 0x405   : > { %v5234_v32 = vpop.eup %4150  ;;  %v1511_v35 = vmul.f32 1.442695, %v1502_v31 }
 0x406   : > { %v1525_v59 = vsel %vm1121_vm9, %v5234_v32, 0.0 }
 0x407   : > { %4152 = vpow2.f32 %v1511_v35  ;;  %1526 = vadd.xlane.f32.xlu2 %v1525_v59 }
 0x40a   : > { %v1485_v37 = vpop.xlane.xlu2 %1484 }
 0x40b   : > { %v1503_v38 = vsub.f32 %v1459_v5, %v1485_v37 }
 0x40d   : > { %v5240_v39 = vpop.eup %4152  ;;  %v1513_v40 = vmul.f32 1.442695, %v1503_v38 }
 0x40e   : > { %v1528_v43 = vsel %vm1121_vm9, %v5240_v39, 0.0 }
 0x40f   : > { %4154 = vpow2.f32 %v1513_v40  ;;  %1529 = vadd.xlane.f32.xlu1 %v1528_v43  ;;  %1218 = vmax.xlane.f32.xlu2 %v1217_v44 }
 0x410   : > { %4156 = vpow2.f32 %v1243_v47 }
 0x412   : > { %v1488_v48 = vpop.xlane.xlu1 %1487  ;;  %v1216_v49 = vpop.xlane.xlu2 %1215 }
 0x413   : > { %v1504_v51 = vsub.f32 %v5199_v9, %v1488_v48  ;;  %v1236_v53 = vsub.f32 %v5197_v7, %v1216_v49 }
 0x415   : > { %v5249_v50 = vpop.eup %4154  ;;  %v1515_v57 = vmul.f32 1.442695, %v1504_v51  ;;  %v1245_v28 = vmul.f32 1.442695, %v1236_v53  ;;  %v4116_v3 = vpop.permute.xlu0 %4115 }
 0x416   : > { %v1531_v18 = vsel %vm1121_vm9, %v5249_v50, 0.0  ;;  %v5261_v36 = vpop.eup %4156  ;;  %v4117_v5 = vunpack.i.l.bf16 %v4116_v3  ;;  %v4118_v6 = vunpack.i.h.bf16 %v4116_v3 }
 0x417   : > { %1532 = vadd.xlane.f32.xlu0 %v1531_v18  ;;  %1221 = vmax.xlane.f32.xlu2 %v1220_v54  ;;  %4158 = vpow2.f32 %v1515_v57  ;;  %v1259_v45 = vsel %vm1121_vm9, %v5261_v36, 0.0 }
 0x418   : > { %1227 = vmax.xlane.f32.xlu1 %v1226_v55  ;;  %4160 = vpow2.f32 %v1245_v28 }
 0x41d   : > { %v5269_v60 = vpop.eup %4158 }
 0x41e   : > { %v5273_v52 = vpop.eup %4160  ;;  %v1534_v62 = vsel %vm1121_vm9, %v5269_v60, 0.0 }
 0x41f   : > { %1224 = vmax.xlane.f32.xlu2 %v1223_v58  ;;  %1230 = vmax.xlane.f32.xlu0 %v1229_v8  ;;  %v1262_v0 = vsel %vm1121_vm9, %v5273_v52, 0.0 }
 0x420   : > { %1260 = vadd.xlane.f32.xlu1 %v1259_v45 }
 0x422   : > { %v1494_v7 = vpop.xlane.xlu2 %1493 }
 0x423   : > { %v1506_v11 = vsub.f32 %v5210_v33, %v1494_v7 }
 0x425   : > { %v1519_v16 = vmul.f32 1.442695, %v1506_v11 }
 0x427   : > { %1535 = vadd.xlane.f32.xlu2 %v1534_v62  ;;  %1233 = vmax.xlane.f32.xlu0 %v1232_v63 }
 0x428   : > { %1263 = vadd.xlane.f32.xlu1 %v1262_v0 }
 0x42a   : > { %v4111_v1 = vpop.permute.xlu1 %4110  ;;  %v1497_v15 = vpop.xlane.xlu2 %1496 }
 0x42b   : > { %v4112_v2 = vunpack.i.l.bf16 %v4111_v1  ;;  %v4113_v4 = vunpack.i.h.bf16 %v4111_v1  ;;  %v1507_v20 = vsub.f32 %v5214_v25, %v1497_v15 }
 0x42d   : > { %1631 = vmatpush.msrb.mxu2 %v4112_v2  ;;  %v1521_v21 = vmul.f32 1.442695, %v1507_v20 }
 0x42f   : > { %1632 = vmatpush.msrb.mxu2 %v4113_v4 }
 0x431   : > { %1633 = vmatpush.msrb.mxu2 %v4117_v5 }
 0x432   : > { %v1500_v23 = vpop.xlane.xlu2 %1499 }
 0x433   : > { %1634 = vmatpush.msrb.mxu2 %v4118_v6 }
 0x440   : > { %v1491_v9 = vpop.xlane.xlu0 %1490 }
 0x441   : > { %v1505_v10 = vsub.f32 %v5208_v14, %v1491_v9  ;;  %v1508_v14 = vsub.f32 %v5221_v19, %v1500_v23 }
 0x443   : > { %v1517_v12 = vmul.f32 1.442695, %v1505_v10  ;;  %v1523_v25 = vmul.f32 1.442695, %v1508_v14 }
 0x445   : > { %4162 = vpow2.f32 %v1517_v12 }
 0x446   : > { %4164 = vpow2.f32 %v1519_v16 }
 0x447   : > { %4166 = vpow2.f32 %v1521_v21 }
 0x448   : > { %4168 = vpow2.f32 %v1523_v25 }
 0x44b   : > { %v5283_v17 = vpop.eup %4162 }
 0x44c   : > { %v1537_v30 = vsel %vm1121_vm9, %v5283_v17, 0.0  ;;  %v5288_v24 = vpop.eup %4164 }
 0x44d   : > { %1538 = vadd.xlane.f32.xlu2 %v1537_v30  ;;  %v1540_v27 = vsel %vm1121_vm9, %v5288_v24, 0.0  ;;  %v5293_v31 = vpop.eup %4166 }
 0x44e   : > { %v1543_v35 = vsel %vm1121_vm9, %v5293_v31, 0.0  ;;  %v5297_v59 = vpop.eup %4168 }
 0x44f   : > { %v1546_v19 = vsel %vm1121_vm9, %v5297_v59, 0.0 }
 0x453   : > { %v4121_v33 = vpop.permute.xlu0 %4120 }
 0x454   : > { %v4122_v29 = vunpack.i.l.bf16 %v4121_v33  ;;  %v4123_v41 = vunpack.i.h.bf16 %v4121_v33 }
 0x455   : > { %1541 = vadd.xlane.f32.xlu2 %v1540_v27 }
 0x456   : > { %1635 = vmatpush.msrb.mxu2 %v4122_v29 }
 0x458   : > { %1636 = vmatpush.msrb.mxu2 %v4123_v41 }
 0x45d   : > { %1544 = vadd.xlane.f32.xlu2 %v1543_v35 }
 0x465   : > { %1547 = vadd.xlane.f32.xlu2 %v1546_v19 }
 0x47a   : > { %v1527_v37 = vpop.xlane.xlu2 %1526 }
 0x47b   : > { %4170 = vrcp.f32 %v1527_v37 }
 0x481   : > { %v4171_v38 = vpop.eup %4170 }
 0x482   : > { %v1530_v40 = vpop.xlane.xlu1 %1529  ;;  %v1219_v42 = vpop.xlane.xlu2 %1218  ;;  %v1557_v43 = vmul.f32 %v4171_v38, %v5234_v32 }
 0x483   : > { %4172 = vrcp.f32 %v1530_v40  ;;  %v1237_v44 = vsub.f32 %v5230_v22, %v1219_v42 }
 0x484   : > { %3556 = vmatmul.msk.f32.vlgmr.msrb.gmra.mxu2 %vm1121_vm9, %v1557_v43 }
 0x485   : > { %v1247_v47 = vmul.f32 1.442695, %v1237_v44 }
 0x487   : > { %4174 = vpow2.f32 %v1247_v47 }
 0x489   : > { %v4173_v48 = vpop.eup %4172 }
 0x48a   : > { %v1533_v49 = vpop.xlane.xlu0 %1532  ;;  %v1222_v51 = vpop.xlane.xlu2 %1221  ;;  %v1558_v53 = vmul.f32 %v4173_v48, %v5240_v39 }
 0x48b   : > { %4176 = vrcp.f32 %v1533_v49  ;;  %v1238_v18 = vsub.f32 %v5232_v26, %v1222_v51  ;;  %v1228_v54 = vpop.xlane.xlu1 %1227 }
 0x48c   : > { %v1240_v55 = vsub.f32 %v5247_v46, %v1228_v54  ;;  %3557 = vmatmul.msk.f32.gmra.mxu2 %vm1121_vm9, %v1558_v53 }
 0x48d   : > { %v5308_v32 = vpop.eup %4174  ;;  %v1249_v22 = vmul.f32 1.442695, %v1238_v18 }
 0x48e   : > { %v1253_v57 = vmul.f32 1.442695, %v1240_v55  ;;  %v1265_v28 = vsel %vm1121_vm9, %v5308_v32, 0.0 }
 0x48f   : > { %4178 = vpow2.f32 %v1249_v22  ;;  %1266 = vadd.xlane.f32.xlu0 %v1265_v28 }
 0x490   : > { %4180 = vpow2.f32 %v1253_v57 }
 0x491   : > { %v4177_v58 = vpop.eup %4176 }
 0x492   : > { %v1225_v39 = vpop.xlane.xlu2 %1224  ;;  %v1231_v8 = vpop.xlane.xlu0 %1230  ;;  %v1559_v26 = vmul.f32 %v4177_v58, %v5249_v50 }
 0x493   : > { %v1239_v45 = vsub.f32 %v5236_v34, %v1225_v39  ;;  %v1261_v46 = vpop.xlane.xlu1 %1260  ;;  %v1241_v62 = vsub.f32 %v5259_v56, %v1231_v8 }
 0x494   : > { %4182 = vrcp.f32 %v1261_v46  ;;  %3558 = vmatmul.msk.f32.gmra.mxu2 %vm1121_vm9, %v1559_v26 }
 0x495   : > { %v5316_v63 = vpop.eup %4178  ;;  %v1251_v0 = vmul.f32 1.442695, %v1239_v45  ;;  %v1255_v1 = vmul.f32 1.442695, %v1241_v62 }
 0x496   : > { %v5318_v2 = vpop.eup %4180  ;;  %v1268_v3 = vsel %vm1121_vm9, %v5316_v63, 0.0 }
 0x497   : > { %4184 = vpow2.f32 %v1251_v0  ;;  %1269 = vadd.xlane.f32.xlu1 %v1268_v3  ;;  %v1274_v34 = vsel %vm1121_vm9, %v5318_v2, 0.0  ;;  %v3889_v3 = vld [vmem:[#allocation10 + $0x38] sm:$0xff] }
 0x498   : > { %4186 = vpow2.f32 %v1255_v1  ;;  %1275 = vadd.xlane.f32.xlu0 %v1274_v34  ;;  %1801 = vmatpush.bf16.msrb.mxu3 %v3889_v3  ;;  %v3888_v34 = vld [vmem:[#allocation10 + $0x30] sm:$0xff] }
 0x49a   : > { %v4183_v50 = vpop.eup %4182  ;;  %v1536_v56 = vpop.xlane.xlu2 %1535 }
 0x49b   : > { %v1234_v4 = vpop.xlane.xlu0 %1233  ;;  %4188 = vrcp.f32 %v1536_v56  ;;  %v1264_v5 = vpop.xlane.xlu1 %1263  ;;  %v1291_v7 = vmul.f32 %v4183_v50, %v5261_v36  ;;  %v3887_v56 = vld [vmem:[#allocation10 + $0x28] sm:$0xff] }
 0x49c   : > { %v1242_v6 = vsub.f32 %v5271_v61, %v1234_v4  ;;  %4190 = vrcp.f32 %v1264_v5  ;;  %1802 = vmatpush.bf16.msrb.mxu3 %v3888_v34  ;;  %v3886_v5 = vld [vmem:[#allocation10 + $0x20] sm:$0xff] }
 0x49d   : > { %v4185_v9 = vpop.eup %4184  ;;  %3532 = vmatmul.msk.f32.vlgmr.msrb.gmra.mxu0 %vm1121_vm9, %v1291_v7 }
 0x49e   : > { %v1257_v10 = vmul.f32 1.442695, %v1242_v6  ;;  %v5327_v11 = vpop.eup %4186  ;;  %v1271_v12 = vsel %vm1121_vm9, %v4185_v9, 0.0 }
 0x49f   : > { %1272 = vadd.xlane.f32.xlu2 %v1271_v12  ;;  %v1277_v15 = vsel %vm1121_vm9, %v5327_v11, 0.0 }
 0x4a0   : > { %4192 = vpow2.f32 %v1257_v10  ;;  %1278 = vadd.xlane.f32.xlu1 %v1277_v15  ;;  %1803 = vmatpush.bf16.msrb.mxu3 %v3887_v56  ;;  %v3884_v15 = vld [vmem:[#allocation10 + $0x10] sm:$0xff] }
 0x4a1   : > { %v4189_v16 = vpop.eup %4188 }
 0x4a2   : > { %v4191_v20 = vpop.eup %4190  ;;  %v1560_v61 = vmul.f32 %v4189_v16, %v5269_v60 }
 0x4a3   : > { %v1292_v36 = vmul.f32 %v4191_v20, %v5273_v52  ;;  %v3883_v20 = vld [vmem:[#allocation10 + $0x8] sm:$0xff] }
 0x4a4   : > { %3559 = vmatmul.msk.f32.gmra.mxu2 %vm1121_vm9, %v1560_v61  ;;  %1804 = vmatpush.bf16.msrb.mxu3 %v3886_v5 }
 0x4a5   : > { %3533 = vmatmul.msk.f32.gmra.mxu0 %vm1121_vm9, %v1292_v36  ;;  %v3882_v36 = vld [vmem:[#allocation10] sm:$0xff] }
 0x4a6   : > { %v5335_v30 = vpop.eup %4192 }
 0x4a7   : > { %v1280_v21 = vsel %vm1121_vm9, %v5335_v30, 0.0 }
 0x4a8   : > { %1281 = vadd.xlane.f32.xlu2 %v1280_v21 }
 0x4c0   : > { %v1539_v23 = vpop.xlane.xlu2 %1538 }
 0x4c1   : > { %4194 = vrcp.f32 %v1539_v23 }
 0x4c7   : > { %v4195_v14 = vpop.eup %4194 }
 0x4c8   : > { %v1542_v33 = vpop.xlane.xlu2 %1541  ;;  %v1561_v27 = vmul.f32 %v4195_v14, %v5283_v17 }
 0x4c9   : > { %4196 = vrcp.f32 %v1542_v33 }
 0x4ca   : > { %3560 = vmatmul.msk.f32.gmra.mxu2 %vm1121_vm9, %v1561_v27 }
 0x4cf   : > { %v4197_v60 = vpop.eup %4196 }
 0x4d0   : > { %v1545_v52 = vpop.xlane.xlu2 %1544  ;;  %v1562_v29 = vmul.f32 %v4197_v60, %v5288_v24 }
 0x4d1   : > { %4198 = vrcp.f32 %v1545_v52 }
 0x4d2   : > { %3561 = vmatmul.msk.f32.gmra.mxu2 %vm1121_vm9, %v1562_v29 }
 0x4d7   : > { %v4199_v41 = vpop.eup %4198 }
 0x4d8   : > { %v1548_v25 = vpop.xlane.xlu2 %1547  ;;  %v1563_v35 = vmul.f32 %v4199_v41, %v5293_v31 }
 0x4d9   : > { %4200 = vrcp.f32 %v1548_v25 }
 0x4da   : > { %3562 = vmatmul.msk.f32.gmra.mxu2 %vm1121_vm9, %v1563_v35 }
 0x4df   : > { %v4201_v19 = vpop.eup %4200 }
 0x4e0   : > { %v1564_v17 = vmul.f32 %v4201_v19, %v5297_v59 }
 0x4e2   : > { %3563 = vmatmul.msk.f32.gmra.mxu2 %vm1121_vm9, %v1564_v17 }
 0x502   : > { %v1267_v37 = vpop.xlane.xlu0 %1266 }
 0x503   : > { %4202 = vrcp.f32 %v1267_v37 }
 0x507   : > { %v1638_v38 = vpop.f32.mrf.mxu2 }
 0x508   : > { %v1662_v43 = vpack.c.bf16 %v1638_v38, %v1638_v38 }
 0x509   : > { %v4203_v40 = vpop.eup %4202 }
 0x50a   : > { %v1270_v24 = vpop.xlane.xlu1 %1269  ;;  %v1293_v42 = vmul.f32 %v4203_v40, %v5308_v32  ;;  %v1698_v48 = vunpack.c.l.b16 %v1662_v43 }
 0x50b   : > { %4204 = vrcp.f32 %v1270_v24  ;;  %v1276_v18 = vpop.xlane.xlu0 %1275 }
 0x50c   : > { %3534 = vmatmul.msk.f32.gmra.mxu0 %vm1121_vm9, %v1293_v42 }
 0x50f   : > { %v1641_v31 = vpop.f32.mrf.mxu2 }
 0x510   : > { %v1663_v44 = vpack.c.bf16 %v1641_v31, %v1641_v31 }
 0x511   : > { %v4205_v47 = vpop.eup %4204 }
 0x512   : > { %v1699_v49 = vunpack.c.l.b16 %v1663_v44  ;;  %v1273_v51 = vpop.xlane.xlu2 %1272  ;;  %v1294_v59 = vmul.f32 %v4205_v47, %v5316_v63 }
 0x513   : > { %4206 = vrcp.f32 %v1273_v51  ;;  %v1279_v32 = vpop.xlane.xlu1 %1278 }
 0x514   : > { %v1706_v53 = vpack.c.b16 %v1699_v49, %v1698_v48  ;;  %3535 = vmatmul.msk.f32.gmra.mxu0 %vm1121_vm9, %v1294_v59  ;;  %4208 = vrcp.f32 %v1276_v18 }
 0x515   : > { %4210 = vrcp.f32 %v1279_v32 }
 0x516   : > { %1710 = vrot.lane.b32.xlu0 %v1706_v53, %s4724_s17 }
 0x517   : > { %v1644_v57 = vpop.f32.mrf.mxu2 }
 0x518   : > { %v1664_v58 = vpack.c.bf16 %v1644_v57, %v1644_v57 }
 0x519   : > { %v4207_v54 = vpop.eup %4206 }
 0x51a   : > { %v1295_v55 = vmul.f32 %v4207_v54, %v4185_v9  ;;  %v4209_v22 = vpop.eup %4208  ;;  %v1700_v46 = vunpack.c.l.b16 %v1664_v58  ;;  %v1340_v27 = vpop.f32.mrf.mxu0 }
 0x51b   : > { %v1296_v28 = vmul.f32 %v4209_v22, %v5318_v2  ;;  %v1282_v39 = vpop.xlane.xlu2 %1281  ;;  %v4211_v8 = vpop.eup %4210  ;;  %v1364_v29 = vpack.c.bf16 %v1340_v27, %v1340_v27  ;;  %v4316_v27 = vld [vmem:[%s4956_s14 + $0x30] sm:$0xff] }
 0x51c   : > { %3536 = vmatmul.msk.f32.gmra.mxu0 %vm1121_vm9, %v1295_v55  ;;  %4212 = vrcp.f32 %v1282_v39  ;;  %v1297_v63 = vmul.f32 %v4211_v8, %v5327_v11  ;;  %v3885_v11 = vld [vmem:[#allocation10 + $0x18] sm:$0xff] }
 0x51d   : > { %1805 = vmatpush.bf16.msrb.mxu3 %v3885_v11  ;;  %v1678_v25 = vunpack.c.l.b16 %v1364_v29  ;;  %v4313_v11 = vld [vmem:[%s4956_s14 + $0x18] sm:$0xff] }
 0x521   : > { %1806 = vmatpush.bf16.msrb.mxu3 %v3884_v15 }
 0x522   : > { %v4213_v1 = vpop.eup %4212  ;;  %v1343_v60 = vpop.f32.mrf.mxu0 }
 0x523   : > { %v1298_v2 = vmul.f32 %v4213_v1, %v5335_v30  ;;  %v1365_v52 = vpack.c.bf16 %v1343_v60, %v1343_v60  ;;  %v4310_v1 = vld [vmem:[%s4956_s14] sm:$0xff] }
 0x524   : > { %3537 = vmatmul.msk.f32.gmra.mxu0 %vm1121_vm9, %v1296_v28 }
 0x525   : > { %1807 = vmatpush.bf16.msrb.mxu3 %v3883_v20  ;;  %v1679_v41 = vunpack.c.l.b16 %v1365_v52  ;;  %v4314_v20 = vld [vmem:[%s4956_s14 + $0x20] sm:$0xff] }
 0x527   : > { %v1647_v26 = vpop.f32.mrf.mxu2  ;;  %v1686_v35 = vpack.c.b16 %v1679_v41, %v1678_v25 }
 0x528   : > { %v1665_v45 = vpack.c.bf16 %v1647_v26, %v1647_v26 }
 0x529   : > { %1808 = vmatpush.bf16.msrb.mxu3 %v3882_v36 }
 0x52a   : > { %v1701_v62 = vunpack.c.l.b16 %v1665_v45 }
 0x52c   : > { %v1707_v0 = vpack.c.b16 %v1701_v62, %v1700_v46  ;;  %3538 = vmatmul.msk.f32.gmra.mxu0 %vm1121_vm9, %v1297_v63  ;;  %v4126_v62 = vld [vmem:[#allocation11] ss:$0 sm:$0xff] }
 0x52e   : > { %1712 = vrot.lane.b32.xlu1 %v1707_v0, %s4724_s17 }
 0x534   : > { %3539 = vmatmul.msk.f32.gmra.mxu0 %vm1121_vm9, %v1298_v2 }
 0x54d   : > { %v1650_v50 = vpop.f32.mrf.mxu2 }
 0x54e   : > { %v1666_v4 = vpack.c.bf16 %v1650_v50, %v1650_v50  ;;  %v4311_v50 = vld [vmem:[%s4956_s14 + $0x8] sm:$0xff] }
 0x550   : > { %v1702_v9 = vunpack.c.l.b16 %v1666_v4 }
 0x555   : > { %v1653_v6 = vpop.f32.mrf.mxu2 }
 0x556   : > { %v1667_v7 = vpack.c.bf16 %v1653_v6, %v1653_v6  ;;  %v4312_v6 = vld [vmem:[%s4956_s14 + $0x10] sm:$0xff] }
 0x558   : > { %v1703_v10 = vunpack.c.l.b16 %v1667_v7 }
 0x55a   : > { %v1708_v12 = vpack.c.b16 %v1703_v10, %v1702_v9 }
 0x55c   : > { %1714 = vrot.lane.b32.xlu2 %v1708_v12, %s4724_s17 }
 0x55d   : > { %v1656_v16 = vpop.f32.mrf.mxu2 }
 0x55e   : > { %v1668_v61 = vpack.c.bf16 %v1656_v16, %v1656_v16 }
 0x560   : > { %v1704_v23 = vunpack.c.l.b16 %v1668_v61 }
 0x565   : > { %v1659_v30 = vpop.f32.mrf.mxu2 }
 0x566   : > { %v1669_v21 = vpack.c.bf16 %v1659_v30, %v1659_v30 }
 0x568   : > { %v1705_v14 = vunpack.c.l.b16 %v1669_v21  ;;  %v4315_v21 = vld [vmem:[%s4956_s14 + $0x28] sm:$0xff] }
 0x56a   : > { %v1709_v33 = vpack.c.b16 %v1705_v14, %v1704_v23 }
 0x56c   : > { %1716 = vrot.lane.b32.xlu0 %v1709_v33, %s4724_s17 }
 0x588   : > { %v1711_v19 = vpop.permute.xlu0 %1710 }
 0x589   : > { %v1720_v17 = vsel %vm1121_vm9, %v1686_v35, %v1711_v19  ;;  %v1346_v37 = vpop.f32.mrf.mxu0 }
 0x58a   : > { %1809 = vmatmul.bf16.vlgmr.msrb.gmra.mxu3 %v1720_v17  ;;  %v1366_v24 = vpack.c.bf16 %v1346_v37, %v1346_v37 }
 0x58c   : > { %v1680_v43 = vunpack.c.l.b16 %v1366_v24 }
 0x591   : > { %v1349_v38 = vpop.f32.mrf.mxu0 }
 0x592   : > { %v1367_v40 = vpack.c.bf16 %v1349_v38, %v1349_v38 }
 0x594   : > { %v1681_v42 = vunpack.c.l.b16 %v1367_v40  ;;  %v4317_v40 = vld [vmem:[%s4956_s14 + $0x38] sm:$0xff] }
 0x596   : > { %v1687_v31 = vpack.c.b16 %v1681_v42, %v1680_v43 }
 0x599   : > { %v1352_v44 = vpop.f32.mrf.mxu0 }
 0x59a   : > { %v1368_v59 = vpack.c.bf16 %v1352_v44, %v1352_v44 }
 0x59c   : > { %v1682_v18 = vunpack.c.l.b16 %v1368_v59 }
 0x5a0   : > { %v1713_v47 = vpop.permute.xlu1 %1712 }
 0x5a1   : > { %v1724_v48 = vsel %vm1121_vm9, %v1687_v31, %v1713_v47  ;;  %v1355_v49 = vpop.f32.mrf.mxu0 }
 0x5a2   : > { %1814 = vmatmul.bf16.gmra.mxu3 %v1724_v48  ;;  %v1369_v51 = vpack.c.bf16 %v1355_v49, %v1355_v49 }
 0x5a4   : > { %v1683_v53 = vunpack.c.l.b16 %v1369_v51 }
 0x5a6   : > { %v1688_v54 = vpack.c.b16 %v1683_v53, %v1682_v18 }
 0x5a9   : > { %v1358_v22 = vpop.f32.mrf.mxu0 }
 0x5aa   : > { %v1370_v58 = vpack.c.bf16 %v1358_v22, %v1358_v22 }
 0x5ac   : > { %v1684_v8 = vunpack.c.l.b16 %v1370_v58 }
 0x5b1   : > { %v1361_v57 = vpop.f32.mrf.mxu0 }
 0x5b2   : > { %v1371_v28 = vpack.c.bf16 %v1361_v57, %v1361_v57 }
 0x5b4   : > { %v1685_v39 = vunpack.c.l.b16 %v1371_v28 }
 0x5b6   : > { %v1715_v55 = vpop.permute.xlu2 %1714  ;;  %v1689_v26 = vpack.c.b16 %v1685_v39, %v1684_v8 }
 0x5b7   : > { %v1728_v32 = vsel %vm1121_vm9, %v1688_v54, %v1715_v55 }
 0x5b8   : > { %1819 = vmatmul.bf16.gmra.mxu3 %v1728_v32 }
 0x5de   : > { %v1717_v45 = vpop.permute.xlu0 %1716 }
 0x5df   : > { %v1732_v46 = vsel %vm1121_vm9, %v1689_v26, %v1717_v45  ;;  %v3710_v45 = vld [vmem:[#allocation16 + $0xe0] sm:$0xf] }
 0x5e0   : > { %1824 = vmatmul.bf16.gmra.mxu3 %v1732_v46  ;;  %v3920_v46 = vld [vmem:[#allocation16 + $0xec] sm:$0xf0] }
 0x60d   : > { %v1810_v63 = vpop.f32.mrf.mxu3 }
 0x60e   : > { %v1811_v0 = vadd.f32 %v4126_v62, %v1810_v63  ;;  %v3711_v63 = vor.u32 %v3920_v46, %v3710_v45  ;;  %v3646_v45 = vld [vmem:[#allocation16 + $0x60] sm:$0xf]  ;;  %v3904_v46 = vld [vmem:[#allocation16 + $0x6c] sm:$0xf0] }
 0x610   : > { %v5368_v2 = vadd.f32 %v4310_v1, %v1811_v0  ;;  %v3712_v0 = vld [vmem:[#allocation16 + $0xf0] sm:$0xf0]  ;;  %v3718_v1 = vld [vmem:[#allocation16 + $0xe8] sm:$0xf]  ;;  %2225 = vmatpush.bf16.msra.mxu0 %v3711_v63  ;;  %v3647_v63 = vor.u32 %v3904_v46, %v3646_v45  ;;  %v3608_v45 = vld [vmem:[#allocation16 + $0x18] sm:$0xf0] }
 0x612   : > { %1838 = vadd.xlane.f32.xlu1 %v5368_v2 }
 0x615   : > { %v1812_v3 = vpop.f32.mrf.mxu3 }
 0x616   : > { %v1813_v34 = vadd.f32 %v4126_v62, %v1812_v3  ;;  %v3921_v3 = vld [vmem:[#allocation16 + $0xf4] sm:$0xf0] }
 0x618   : > { %v5372_v56 = vadd.f32 %v4311_v50, %v1813_v34  ;;  %v3719_v50 = vor.u32 %v3921_v3, %v3718_v1  ;;  %v3654_v1 = vld [vmem:[#allocation16 + $0x68] sm:$0xf]  ;;  %v3905_v3 = vld [vmem:[#allocation16 + $0x74] sm:$0xf0] }
 0x61a   : > { %1840 = vadd.xlane.f32.xlu0 %v5372_v56  ;;  %2283 = vmatpush.bf16.msra.mxu2 %v3719_v50  ;;  %v3655_v50 = vor.u32 %v3905_v3, %v3654_v1 }
 0x625   : > { %v1815_v4 = vpop.f32.mrf.mxu3 }
 0x626   : > { %v1816_v5 = vadd.f32 %v4126_v62, %v1815_v4  ;;  %v3919_v4 = vld [vmem:[#allocation16 + $0xec] sm:$0xf] }
 0x628   : > { %v5376_v7 = vadd.f32 %v4312_v6, %v1816_v5  ;;  %v3720_v5 = vld [vmem:[#allocation16 + $0xf8] sm:$0xf0] }
 0x629   : > { %v3723_v6 = vor.u32 %v3919_v4, %v3720_v5  ;;  %v3903_v4 = vld [vmem:[#allocation16 + $0x6c] sm:$0xf]  ;;  %v3656_v5 = vld [vmem:[#allocation16 + $0x78] sm:$0xf0] }
 0x62a   : > { %1842 = vadd.xlane.f32.xlu2 %v5376_v7 }
 0x62b   : > { %2312 = vmatpush.bf16.msra.mxu3 %v3723_v6  ;;  %v3659_v6 = vor.u32 %v3903_v4, %v3656_v5 }
 0x62d   : > { %v1817_v9 = vpop.f32.mrf.mxu3 }
 0x62e   : > { %v1818_v10 = vadd.f32 %v4126_v62, %v1817_v9  ;;  %v3694_v9 = vld [vmem:[#allocation16 + $0xc0] sm:$0xf] }
 0x630   : > { %v5380_v12 = vadd.f32 %v4313_v11, %v1818_v10  ;;  %v3916_v10 = vld [vmem:[#allocation16 + $0xcc] sm:$0xf0]  ;;  %v3914_v11 = vld [vmem:[#allocation16 + $0xc4] sm:$0xf] }
 0x632   : > { %1844 = vadd.xlane.f32.xlu1 %v5380_v12 }
 0x63b   : > { %v1820_v15 = vpop.f32.mrf.mxu3 }
 0x63c   : > { %v1821_v16 = vadd.f32 %v4126_v62, %v1820_v15  ;;  %v3695_v15 = vor.u32 %v3916_v10, %v3694_v9  ;;  %v3630_v9 = vld [vmem:[#allocation16 + $0x40] sm:$0xf]  ;;  %v3900_v10 = vld [vmem:[#allocation16 + $0x4c] sm:$0xf0] }
 0x63e   : > { %v5384_v61 = vadd.f32 %v4314_v20, %v1821_v16  ;;  %v3696_v16 = vld [vmem:[#allocation16 + $0xd0] sm:$0xf0]  ;;  %v3702_v20 = vld [vmem:[#allocation16 + $0xc8] sm:$0xf]  ;;  %2226 = vmatpush.bf16.msra.mxu0 %v3695_v15  ;;  %v3631_v15 = vor.u32 %v3900_v10, %v3630_v9 }
 0x640   : > { %1846 = vadd.xlane.f32.xlu0 %v5384_v61 }
 0x643   : > { %v1822_v36 = vpop.f32.mrf.mxu3 }
 0x644   : > { %v1823_v30 = vadd.f32 %v4126_v62, %v1822_v36  ;;  %v3917_v36 = vld [vmem:[#allocation16 + $0xd4] sm:$0xf0] }
 0x646   : > { %v5388_v23 = vadd.f32 %v4315_v21, %v1823_v30  ;;  %v3699_v30 = vor.u32 %v3914_v11, %v3696_v16  ;;  %v3703_v21 = vor.u32 %v3917_v36, %v3702_v20  ;;  %v3898_v11 = vld [vmem:[#allocation16 + $0x44] sm:$0xf]  ;;  %v3632_v16 = vld [vmem:[#allocation16 + $0x50] sm:$0xf0]  ;;  %v3638_v20 = vld [vmem:[#allocation16 + $0x48] sm:$0xf] }
 0x647   : > { %v3901_v36 = vld [vmem:[#allocation16 + $0x54] sm:$0xf0] }
 0x648   : > { %1848 = vadd.xlane.f32.xlu2 %v5388_v23  ;;  %2284 = vmatpush.bf16.msra.mxu2 %v3703_v21  ;;  %v3639_v21 = vor.u32 %v3901_v36, %v3638_v20 }
 0x663   : > { %v1825_v14 = vpop.f32.mrf.mxu3 }
 0x664   : > { %v1826_v33 = vadd.f32 %v4126_v62, %v1825_v14  ;;  %v3915_v14 = vld [vmem:[#allocation16 + $0xcc] sm:$0xf] }
 0x666   : > { %v5392_v60 = vadd.f32 %v4316_v27, %v1826_v33  ;;  %v3704_v33 = vld [vmem:[#allocation16 + $0xd8] sm:$0xf0] }
 0x667   : > { %v3707_v27 = vor.u32 %v3915_v14, %v3704_v33  ;;  %v3899_v14 = vld [vmem:[#allocation16 + $0x4c] sm:$0xf]  ;;  %v3640_v33 = vld [vmem:[#allocation16 + $0x58] sm:$0xf0] }
 0x668   : > { %1850 = vadd.xlane.f32.xlu2 %v5392_v60 }
 0x669   : > { %2313 = vmatpush.bf16.msra.mxu3 %v3707_v27  ;;  %v3643_v27 = vor.u32 %v3899_v14, %v3640_v33 }
 0x66b   : > { %v1827_v35 = vpop.f32.mrf.mxu3 }
 0x66c   : > { %v1828_v17 = vadd.f32 %v4126_v62, %v1827_v35  ;;  %v3918_v62 = vld [vmem:[#allocation16 + $0xe4] sm:$0xf] }
 0x66d   : > { %v3715_v34 = vor.u32 %v3918_v62, %v3712_v0  ;;  %v3902_v62 = vld [vmem:[#allocation16 + $0x64] sm:$0xf]  ;;  %v3648_v0 = vld [vmem:[#allocation16 + $0x70] sm:$0xf0] }
 0x66e   : > { %v5406_v24 = vadd.f32 %v4317_v40, %v1828_v17  ;;  %v3686_v17 = vld [vmem:[#allocation16 + $0xa8] sm:$0xf] }
 0x66f   : > { %2254 = vmatpush.bf16.msra.mxu1 %v3715_v34  ;;  %v3651_v34 = vor.u32 %v3902_v62, %v3648_v0 }
 0x673   : > { %2255 = vmatpush.bf16.msra.mxu1 %v3699_v30  ;;  %v3635_v30 = vor.u32 %v3898_v11, %v3632_v16 }
 0x685   : > { %v1839_v52 = vpop.xlane.xlu1 %1838 }
 0x686   : > { %v1854_v29 = vmul.f32 %v1839_v52, %v4989_v13  ;;  %v3678_v52 = vld [vmem:[#allocation16 + $0xa0] sm:$0xf] }
 0x688   : > { %v5397_v41 = vsub.f32 %v5368_v2, %v1854_v29  ;;  %v3912_v29 = vld [vmem:[#allocation16 + $0xac] sm:$0xf0] }
 0x689   : > { %v3679_v35 = vor.u32 %v3912_v29, %v3678_v52  ;;  %v3614_v52 = vld [vmem:[#allocation16 + $0x20] sm:$0xf]  ;;  %v3896_v29 = vld [vmem:[#allocation16 + $0x2c] sm:$0xf0] }
 0x68a   : > { %v1870_v25 = vmul.f32 %v5397_v41, %v5397_v41 }
 0x68b   : > { %2227 = vmatpush.bf16.msra.mxu0 %v3679_v35 }
 0x68c   : > { %1878 = vadd.xlane.f32.xlu1 %v1870_v25  ;;  %v3910_v25 = vld [vmem:[#allocation16 + $0xa4] sm:$0xf] }
 0x68d   : > { %v1841_v19 = vpop.xlane.xlu0 %1840 }
 0x68e   : > { %v1855_v37 = vmul.f32 %v1841_v19, %v4989_v13  ;;  %v3680_v19 = vld [vmem:[#allocation16 + $0xb0] sm:$0xf0] }
 0x68f   : > { %v3683_v40 = vor.u32 %v3910_v25, %v3680_v19  ;;  %v3894_v25 = vld [vmem:[#allocation16 + $0x24] sm:$0xf]  ;;  %v3615_v19 = vor.u32 %v3896_v29, %v3614_v52 }
 0x690   : > { %v5403_v38 = vsub.f32 %v5372_v56, %v1855_v37  ;;  %v3913_v37 = vld [vmem:[#allocation16 + $0xb4] sm:$0xf0] }
 0x691   : > { %2256 = vmatpush.bf16.msra.mxu1 %v3683_v40  ;;  %v3897_v40 = vld [vmem:[#allocation16 + $0x34] sm:$0xf0] }
 0x692   : > { %v1871_v42 = vmul.f32 %v5403_v38, %v5403_v38 }
 0x694   : > { %1852 = vadd.xlane.f32.xlu1 %v5406_v24  ;;  %1880 = vadd.xlane.f32.xlu0 %v1871_v42  ;;  %v3687_v42 = vor.u32 %v3913_v37, %v3686_v17  ;;  %v3616_v17 = vld [vmem:[#allocation16 + $0x30] sm:$0xf0]  ;;  %v3622_v37 = vld [vmem:[#allocation16 + $0x28] sm:$0xf] }
 0x696   : > { %2285 = vmatpush.bf16.msra.mxu2 %v3687_v42 }
 0x69d   : > { %v1843_v43 = vpop.xlane.xlu2 %1842 }
 0x69e   : > { %v1856_v31 = vmul.f32 %v1843_v43, %v4989_v13  ;;  %v3911_v43 = vld [vmem:[#allocation16 + $0xac] sm:$0xf] }
 0x6a0   : > { %v5413_v44 = vsub.f32 %v5376_v7, %v1856_v31  ;;  %v3688_v31 = vld [vmem:[#allocation16 + $0xb8] sm:$0xf0] }
 0x6a2   : > { %v1872_v47 = vmul.f32 %v5413_v44, %v5413_v44 }
 0x6a4   : > { %1882 = vadd.xlane.f32.xlu0 %v1872_v47  ;;  %v3691_v47 = vor.u32 %v3911_v43, %v3688_v31  ;;  %v3619_v43 = vor.u32 %v3894_v25, %v3616_v17  ;;  %v3623_v31 = vor.u32 %v3897_v40, %v3622_v37  ;;  %v5451_v25 = vld [vmem:[#allocation13] ss:$0 sm:$0xff]  ;;  %v5455_v40 = vld [vmem:[#allocation14] ss:$0 sm:$0xff] }
 0x6a5   : > { %v1845_v48 = vpop.xlane.xlu1 %1844 }
 0x6a6   : > { %v1857_v49 = vmul.f32 %v1845_v48, %v4989_v13  ;;  %v3662_v48 = vld [vmem:[#allocation16 + $0x80] sm:$0xf]  ;;  %2314 = vmatpush.bf16.msra.mxu3 %v3691_v47  ;;  %v3895_v47 = vld [vmem:[#allocation16 + $0x2c] sm:$0xf] }
 0x6a8   : > { %v5419_v51 = vsub.f32 %v5380_v12, %v1857_v49  ;;  %v3908_v49 = vld [vmem:[#allocation16 + $0x8c] sm:$0xf0] }
 0x6aa   : > { %v1873_v59 = vmul.f32 %v5419_v51, %v5419_v51 }
 0x6ac   : > { %1884 = vadd.xlane.f32.xlu2 %v1873_v59  ;;  %v3906_v59 = vld [vmem:[#allocation16 + $0x84] sm:$0xf] }
 0x6b3   : > { %v1847_v53 = vpop.xlane.xlu0 %1846 }
 0x6b4   : > { %v1858_v18 = vmul.f32 %v1847_v53, %v4989_v13  ;;  %v3663_v53 = vor.u32 %v3908_v49, %v3662_v48  ;;  %v3624_v48 = vld [vmem:[#allocation16 + $0x38] sm:$0xf0] }
 0x6b5   : > { %v3627_v49 = vor.u32 %v3895_v47, %v3624_v48 }
 0x6b6   : > { %v5425_v54 = vsub.f32 %v5384_v61, %v1858_v18  ;;  %v3664_v18 = vld [vmem:[#allocation16 + $0x90] sm:$0xf0]  ;;  %2228 = vmatpush.bf16.msra.mxu0 %v3663_v53  ;;  %v3598_v53 = vld [vmem:[#allocation16] sm:$0xf] }
 0x6b8   : > { %v1874_v55 = vmul.f32 %v5425_v54, %v5425_v54 }
 0x6ba   : > { %1886 = vadd.xlane.f32.xlu1 %v1874_v55  ;;  %v3670_v55 = vld [vmem:[#allocation16 + $0x88] sm:$0xf]  ;;  %2229 = vmatpush.bf16.msra.mxu0 %v3647_v63 }
 0x6bb   : > { %v1849_v32 = vpop.xlane.xlu2 %1848 }
 0x6bc   : > { %v1859_v22 = vmul.f32 %v1849_v32, %v4989_v13  ;;  %v3909_v32 = vld [vmem:[#allocation16 + $0x94] sm:$0xf0] }
 0x6be   : > { %v5431_v57 = vsub.f32 %v5388_v23, %v1859_v22  ;;  %v3667_v22 = vor.u32 %v3906_v59, %v3664_v18  ;;  %2230 = vmatpush.bf16.msra.mxu0 %v3631_v15  ;;  %v3892_v18 = vld [vmem:[#allocation16 + $0xc] sm:$0xf0] }
 0x6c0   : > { %v1875_v28 = vmul.f32 %v5431_v57, %v5431_v57  ;;  %2257 = vmatpush.bf16.msra.mxu1 %v3667_v22  ;;  %v3600_v22 = vld [vmem:[#allocation16 + $0x10] sm:$0xf0] }
 0x6c2   : > { %1888 = vadd.xlane.f32.xlu0 %v1875_v28  ;;  %v3671_v28 = vor.u32 %v3909_v32, %v3670_v55  ;;  %2231 = vmatpush.bf16.msra.mxu0 %v3615_v19  ;;  %v3599_v55 = vor.u32 %v3892_v18, %v3598_v53  ;;  %v3890_v32 = vld [vmem:[#allocation16 + $0x4] sm:$0xf] }
 0x6c4   : > { %2286 = vmatpush.bf16.msra.mxu2 %v3671_v28  ;;  %2258 = vmatpush.bf16.msra.mxu1 %v3651_v34  ;;  %v3606_v28 = vld [vmem:[#allocation16 + $0x8] sm:$0xf] }
 0x6c6   : > { %2232 = vmatpush.bf16.msra.mxu0 %v3599_v55 }
 0x6c8   : > { %2287 = vmatpush.bf16.msra.mxu2 %v3655_v50  ;;  %2259 = vmatpush.bf16.msra.mxu1 %v3635_v30 }
 0x6cc   : > { %2288 = vmatpush.bf16.msra.mxu2 %v3639_v21  ;;  %2260 = vmatpush.bf16.msra.mxu1 %v3619_v43 }
 0x6d0   : > { %2289 = vmatpush.bf16.msra.mxu2 %v3623_v31 }
 0x6db   : > { %v1851_v58 = vpop.xlane.xlu2 %1850 }
 0x6dc   : > { %v1860_v39 = vmul.f32 %v1851_v58, %v4989_v13  ;;  %v3907_v58 = vld [vmem:[#allocation16 + $0x8c] sm:$0xf] }
 0x6de   : > { %v5437_v8 = vsub.f32 %v5392_v60, %v1860_v39  ;;  %v3672_v39 = vld [vmem:[#allocation16 + $0x98] sm:$0xf0] }
 0x6e0   : > { %v1876_v26 = vmul.f32 %v5437_v8, %v5437_v8 }
 0x6e2   : > { %1890 = vadd.xlane.f32.xlu2 %v1876_v26  ;;  %v3675_v26 = vor.u32 %v3907_v58, %v3672_v39  ;;  %v3603_v58 = vor.u32 %v3890_v32, %v3600_v22  ;;  %v3893_v39 = vld [vmem:[#allocation16 + $0x14] sm:$0xf0] }
 0x6e3   : > { %v3607_v46 = vor.u32 %v3893_v39, %v3606_v28 }
 0x6e4   : > { %2315 = vmatpush.bf16.msra.mxu3 %v3675_v26  ;;  %v3891_v26 = vld [vmem:[#allocation16 + $0xc] sm:$0xf]  ;;  %2261 = vmatpush.bf16.msra.mxu1 %v3603_v58 }
 0x6e5   : > { %v3611_v62 = vor.u32 %v3891_v26, %v3608_v45  ;;  %2290 = vmatpush.bf16.msra.mxu2 %v3607_v46 }
 0x6e8   : > { %2316 = vmatpush.bf16.msra.mxu3 %v3659_v6 }
 0x6ec   : > { %2317 = vmatpush.bf16.msra.mxu3 %v3643_v27 }
 0x6f0   : > { %2318 = vmatpush.bf16.msra.mxu3 %v3627_v49 }
 0x6f4   : > { %2319 = vmatpush.bf16.msra.mxu3 %v3611_v62 }
 0x6ff   : > { %v1879_v35 = vpop.xlane.xlu1 %1878 }
 0x700   : > { %v1894_v42 = vmul.f32 %v1879_v35, %v4989_v13 }
 0x702   : > { %v1902_v59 = vadd.f32 1e-05, %v1894_v42 }
 0x704   : > { %4214 = vrsqrt.f32 %v1902_v59  ;;  %vm1916_vm11 = vweird.f32 %v1902_v59 }
 0x707   : > { %v1853_v63 = vpop.xlane.xlu1 %1852  ;;  %v1881_v0 = vpop.xlane.xlu0 %1880 }
 0x708   : > { %v1861_v1 = vmul.f32 %v1853_v63, %v4989_v13  ;;  %v1895_v3 = vmul.f32 %v1881_v0, %v4989_v13 }
 0x70a   : > { %v4215_v34 = vpop.eup %4214  ;;  %v5445_v50 = vsub.f32 %v5406_v24, %v1861_v1  ;;  %v1903_v4 = vadd.f32 1e-05, %v1895_v3 }
 0x70b   : > { %v1911_v5 = vmul.f32 %v4215_v34, %v1902_v59  ;;  %vm1917_vm10 = vweird.f32 %v4215_v34 }
 0x70c   : > { %4216 = vrsqrt.f32 %v1903_v4  ;;  %v1877_v6 = vmul.f32 %v5445_v50, %v5445_v50  ;;  %vm1918_vm12 = vmor %vm1916_vm11, %vm1917_vm10  ;;  %vm1926_vm14 = vweird.f32 %v1903_v4 }
 0x70d   : > { %v1912_v9 = vmul.f32 %v4215_v34, %v1911_v5 }
 0x70e   : > { %1892 = vadd.xlane.f32.xlu1 %v1877_v6 }
 0x70f   : > { %v1913_v10 = vmul.f32 0.5, %v1912_v9 }
 0x711   : > { %v1914_v11 = vsub.f32 1.5, %v1913_v10 }
 0x712   : > { %v4217_v15 = vpop.eup %4216 }
 0x713   : > { %v1915_v16 = vmul.f32 %v4215_v34, %v1914_v11  ;;  %v1921_v20 = vmul.f32 %v4217_v15, %v1903_v4  ;;  %vm1927_vm13 = vweird.f32 %v4217_v15 }
 0x714   : > { %vm1928_vm15 = vmor %vm1926_vm14, %vm1927_vm13 }
 0x715   : > { %v1922_v36 = vmul.f32 %v4217_v15, %v1921_v20  ;;  %v1919_v30 = vsel %vm1918_vm12, %v4215_v34, %v1915_v16 }
 0x716   : > { %v1990_v52 = vmul.f32 %v1919_v30, %v5397_v41 }
 0x717   : > { %v1923_v21 = vmul.f32 0.5, %v1922_v36  ;;  %v1883_v14 = vpop.xlane.xlu0 %1882 }
 0x718   : > { %v1896_v33 = vmul.f32 %v1883_v14, %v4989_v13  ;;  %v2001_v37 = vmul.f32 %v5451_v25, %v1990_v52 }
 0x719   : > { %v1924_v27 = vsub.f32 1.5, %v1923_v21 }
 0x71a   : > { %v1904_v29 = vadd.f32 1e-05, %v1896_v33  ;;  %v2012_v48 = vadd.f32 %v5455_v40, %v2001_v37 }
 0x71b   : > { %v1925_v35 = vmul.f32 %v4217_v15, %v1924_v27 }
 0x71c   : > { %4218 = vrsqrt.f32 %v1904_v29  ;;  %vm1936_vm1 = vweird.f32 %v1904_v29 }
 0x71d   : > { %v1929_v19 = vsel %vm1928_vm15, %v4217_v15, %v1925_v35 }
 0x71e   : > { %v1991_v17 = vmul.f32 %v1929_v19, %v5403_v38 }
 0x71f   : > { %v1885_v42 = vpop.xlane.xlu2 %1884 }
 0x720   : > { %v1897_v43 = vmul.f32 %v1885_v42, %v4989_v13  ;;  %v2002_v31 = vmul.f32 %v5451_v25, %v1991_v17 }
 0x722   : > { %v4219_v41 = vpop.eup %4218  ;;  %v1905_v47 = vadd.f32 1e-05, %v1897_v43  ;;  %v2013_v49 = vadd.f32 %v5455_v40, %v2002_v31 }
 0x723   : > { %v1931_v59 = vmul.f32 %v4219_v41, %v1904_v29  ;;  %vm1937_vm0 = vweird.f32 %v4219_v41 }
 0x724   : > { %4220 = vrsqrt.f32 %v1905_v47  ;;  %v2020_v53 = vpack.c.bf16 %v2013_v49, %v2012_v48  ;;  %vm1938_vm2 = vmor %vm1936_vm1, %vm1937_vm0  ;;  %vm1946_vm4 = vweird.f32 %v1905_v47 }
 0x725   : > { %v1932_v18 = vmul.f32 %v4219_v41, %v1931_v59 }
 0x726   : > { %2233 = vmatmul.bf16.vlgmr.msra.gmra.mxu0 %v2020_v53  ;;  %2262 = vmatmul.bf16.vlgmr.msra.gmra.mxu1 %v2020_v53 }
 0x727   : > { %v1933_v38 = vmul.f32 0.5, %v1932_v18  ;;  %2291 = vmatmul.bf16.vlgmr.msra.gmra.mxu2 %v2020_v53  ;;  %2320 = vmatmul.bf16.vlgmr.msra.gmra.mxu3 %v2020_v53 }
 0x729   : > { %v1934_v55 = vsub.f32 1.5, %v1933_v38 }
 0x72a   : > { %v4221_v32 = vpop.eup %4220 }
 0x72b   : > { %v1935_v22 = vmul.f32 %v4219_v41, %v1934_v55  ;;  %v1941_v28 = vmul.f32 %v4221_v32, %v1905_v47  ;;  %vm1947_vm3 = vweird.f32 %v4221_v32 }
 0x72c   : > { %vm1948_vm5 = vmor %vm1946_vm4, %vm1947_vm3 }
 0x72d   : > { %v1942_v58 = vmul.f32 %v4221_v32, %v1941_v28  ;;  %v1887_v39 = vpop.xlane.xlu1 %1886  ;;  %v1939_v45 = vsel %vm1938_vm2, %v4219_v41, %v1935_v22  ;;  %v3929_v28 = vld [vmem:[#allocation17 + $0x38] sm:$0xff] }
 0x72e   : > { %v1898_v26 = vmul.f32 %v1887_v39, %v4989_v13  ;;  %v1992_v0 = vmul.f32 %v1939_v45, %v5413_v44  ;;  %2904 = vmatpush.bf16.msrb.mxu0 %v3929_v28  ;;  %v3928_v45 = vld [vmem:[#allocation17 + $0x30] sm:$0xff] }
 0x72f   : > { %v1943_v46 = vmul.f32 0.5, %v1942_v58  ;;  %v3937_v58 = vld [vmem:[#allocation17 + $0x78] sm:$0xff] }
 0x730   : > { %v1906_v62 = vadd.f32 1e-05, %v1898_v26  ;;  %v2003_v6 = vmul.f32 %v5451_v25, %v1992_v0  ;;  %2933 = vmatpush.bf16.msrb.mxu1 %v3937_v58  ;;  %v3945_v0 = vld [vmem:[#allocation17 + $0xb8] sm:$0xff]  ;;  %v3939_v58 = vld [vmem:[#allocation17 + $0x88] sm:$0xff] }
 0x731   : > { %v1944_v63 = vsub.f32 1.5, %v1943_v46  ;;  %v3936_v46 = vld [vmem:[#allocation17 + $0x70] sm:$0xff]  ;;  %2962 = vmatpush.bf16.msrb.mxu2 %v3945_v0 }
 0x732   : > { %4222 = vrsqrt.f32 %v1906_v62  ;;  %v2014_v44 = vadd.f32 %v5455_v40, %v2003_v6  ;;  %vm1956_vm7 = vweird.f32 %v1906_v62  ;;  %2905 = vmatpush.bf16.msrb.mxu0 %v3928_v45 }
 0x733   : > { %v1945_v1 = vmul.f32 %v4221_v32, %v1944_v63 }
 0x734   : > { %2934 = vmatpush.bf16.msrb.mxu1 %v3936_v46 }
 0x735   : > { %v1949_v3 = vsel %vm1948_vm5, %v4221_v32, %v1945_v1  ;;  %v1889_v34 = vpop.xlane.xlu0 %1888  ;;  %v3953_v1 = vld [vmem:[#allocation17 + $0xf8] sm:$0xff] }
 0x736   : > { %v1993_v4 = vmul.f32 %v1949_v3, %v5419_v51  ;;  %v1899_v5 = vmul.f32 %v1889_v34, %v4989_v13  ;;  %2991 = vmatpush.bf16.msrb.mxu3 %v3953_v1  ;;  %v3927_v34 = vld [vmem:[#allocation17 + $0x28] sm:$0xff] }
 0x737   : > { %2906 = vmatpush.bf16.msrb.mxu0 %v3927_v34 }
 0x738   : > { %v4223_v9 = vpop.eup %4222  ;;  %v1907_v10 = vadd.f32 1e-05, %v1899_v5  ;;  %v2004_v11 = vmul.f32 %v5451_v25, %v1993_v4  ;;  %v3935_v4 = vld [vmem:[#allocation17 + $0x68] sm:$0xff] }
 0x739   : > { %v1951_v15 = vmul.f32 %v4223_v9, %v1906_v62  ;;  %vm1957_vm6 = vweird.f32 %v4223_v9  ;;  %2935 = vmatpush.bf16.msrb.mxu1 %v3935_v4 }
 0x73a   : > { %4224 = vrsqrt.f32 %v1907_v10  ;;  %v2015_v16 = vadd.f32 %v5455_v40, %v2004_v11  ;;  %vm1958_vm8 = vmor %vm1956_vm7, %vm1957_vm6  ;;  %vm1966_vm10 = vweird.f32 %v1907_v10 }
 0x73b   : > { %v1952_v20 = vmul.f32 %v4223_v9, %v1951_v15 }
 0x73c   : > { %v2021_v36 = vpack.c.bf16 %v2015_v16, %v2014_v44  ;;  %v3926_v44 = vld [vmem:[#allocation17 + $0x20] sm:$0xff] }
 0x73d   : > { %v1953_v30 = vmul.f32 0.5, %v1952_v20  ;;  %v3934_v16 = vld [vmem:[#allocation17 + $0x60] sm:$0xff]  ;;  %2907 = vmatpush.bf16.msrb.mxu0 %v3926_v44 }
 0x73e   : > { %2238 = vmatmul.bf16.gmra.mxu0 %v2021_v36  ;;  %2267 = vmatmul.bf16.gmra.mxu1 %v2021_v36 }
 0x73f   : > { %v1954_v51 = vsub.f32 1.5, %v1953_v30  ;;  %2296 = vmatmul.bf16.gmra.mxu2 %v2021_v36  ;;  %2325 = vmatmul.bf16.gmra.mxu3 %v2021_v36  ;;  %v3943_v36 = vld [vmem:[#allocation17 + $0xa8] sm:$0xff] }
 0x740   : > { %v4225_v21 = vpop.eup %4224  ;;  %2936 = vmatpush.bf16.msrb.mxu1 %v3934_v16  ;;  %v3951_v30 = vld [vmem:[#allocation17 + $0xe8] sm:$0xff] }
 0x741   : > { %v1955_v14 = vmul.f32 %v4223_v9, %v1954_v51  ;;  %v1961_v33 = vmul.f32 %v4225_v21, %v1907_v10  ;;  %vm1967_vm9 = vweird.f32 %v4225_v21  ;;  %v3952_v10 = vld [vmem:[#allocation17 + $0xf0] sm:$0xff] }
 0x742   : > { %vm1968_vm11 = vmor %vm1966_vm10, %vm1967_vm9  ;;  %2992 = vmatpush.bf16.msrb.mxu3 %v3952_v10 }
 0x743   : > { %v1962_v27 = vmul.f32 %v4225_v21, %v1961_v33  ;;  %v1959_v52 = vsel %vm1958_vm8, %v4223_v9, %v1955_v14  ;;  %v3944_v9 = vld [vmem:[#allocation17 + $0xb0] sm:$0xff]  ;;  %v3925_v33 = vld [vmem:[#allocation17 + $0x18] sm:$0xff] }
 0x744   : > { %v1994_v19 = vmul.f32 %v1959_v52, %v5425_v54  ;;  %2963 = vmatpush.bf16.msrb.mxu2 %v3944_v9  ;;  %2908 = vmatpush.bf16.msrb.mxu0 %v3925_v33  ;;  %v3942_v52 = vld [vmem:[#allocation17 + $0xa0] sm:$0xff] }
 0x745   : > { %v1963_v29 = vmul.f32 0.5, %v1962_v27 }
 0x746   : > { %v2005_v43 = vmul.f32 %v5451_v25, %v1994_v19  ;;  %2993 = vmatpush.bf16.msrb.mxu3 %v3951_v30 }
 0x747   : > { %v1964_v35 = vsub.f32 1.5, %v1963_v29  ;;  %v3950_v29 = vld [vmem:[#allocation17 + $0xe0] sm:$0xff] }
 0x748   : > { %v2016_v41 = vadd.f32 %v5455_v40, %v2005_v43  ;;  %2964 = vmatpush.bf16.msrb.mxu2 %v3943_v36  ;;  %v3949_v43 = vld [vmem:[#allocation17 + $0xd8] sm:$0xff] }
 0x749   : > { %v1965_v17 = vmul.f32 %v4225_v21, %v1964_v35 }
 0x74a   : > { %2994 = vmatpush.bf16.msrb.mxu3 %v3950_v29 }
 0x74b   : > { %v1969_v37 = vsel %vm1968_vm11, %v4225_v21, %v1965_v17  ;;  %v3924_v17 = vld [vmem:[#allocation17 + $0x10] sm:$0xff] }
 0x74c   : > { %v1995_v42 = vmul.f32 %v1969_v37, %v5431_v57  ;;  %2965 = vmatpush.bf16.msrb.mxu2 %v3942_v52  ;;  %v664_v37 = vld [vmem:[%s5934_s1] sm:$0xf]  ;;  %2909 = vmatpush.bf16.msrb.mxu0 %v3924_v17  ;;  %s3230_s1 = scalar_lea.hbm %s5938_s16, %s3954_s5 }
 0x74d   : > { %v5502_v28 = vperm.slane %v664_v37, 3  ;;  %s3233_s25 = sshll.u32 %s3230_s1, 4  ;;  %s3234_s25 = int_to_ptr.hbm [resolvable:$true] %s3233_s25 }
 0x74e   : > { %v2006_v31 = vmul.f32 %v5451_v25, %v1995_v42  ;;  %2995 = vmatpush.bf16.msrb.mxu3 %v3949_v43 }
 0x750   : > { %v2017_v47 = vadd.f32 %v5455_v40, %v2006_v31  ;;  %v5486_v31 = vperm.slane %v664_v37, 0 }
 0x752   : > { %v2022_v48 = vpack.c.bf16 %v2017_v47, %v2016_v41  ;;  %v5488_v41 = vperm.slane %v664_v37, 1  ;;  %v3931_v47 = vld [vmem:[#allocation17 + $0x48] sm:$0xff] }
 0x754   : > { %2243 = vmatmul.bf16.gmra.mxu0 %v2022_v48  ;;  %2272 = vmatmul.bf16.gmra.mxu1 %v2022_v48 }
 0x755   : > { %2301 = vmatmul.bf16.gmra.mxu2 %v2022_v48  ;;  %2330 = vmatmul.bf16.gmra.mxu3 %v2022_v48  ;;  %v1891_v54 = vpop.xlane.xlu2 %1890  ;;  %v3940_v48 = vld [vmem:[#allocation17 + $0x90] sm:$0xff] }
 0x756   : > { %v1900_v49 = vmul.f32 %v1891_v54, %v4989_v13  ;;  %v3948_v54 = vld [vmem:[#allocation17 + $0xd0] sm:$0xff] }
 0x757   : > { %2996 = vmatpush.bf16.msrb.mxu3 %v3948_v54 }
 0x758   : > { %v1908_v59 = vadd.f32 1e-05, %v1900_v49 }
 0x75a   : > { %4226 = vrsqrt.f32 %v1908_v59  ;;  %vm1976_vm13 = vweird.f32 %v1908_v59 }
 0x760   : > { %v4227_v53 = vpop.eup %4226 }
 0x761   : > { %v1971_v57 = vmul.f32 %v4227_v53, %v1908_v59  ;;  %vm1977_vm12 = vweird.f32 %v4227_v53 }
 0x762   : > { %vm1978_vm14 = vmor %vm1976_vm13, %vm1977_vm12 }
 0x763   : > { %v1972_v18 = vmul.f32 %v4227_v53, %v1971_v57 }
 0x765   : > { %v1973_v22 = vmul.f32 0.5, %v1972_v18  ;;  %v3922_v18 = vld [vmem:[#allocation17] sm:$0xff] }
 0x767   : > { %v1974_v39 = vsub.f32 1.5, %v1973_v22  ;;  %v5500_v22 = vperm.slane %v664_v37, 2 }
 0x769   : > { %v1975_v62 = vmul.f32 %v4227_v53, %v1974_v39  ;;  %v3947_v39 = vld [vmem:[#allocation17 + $0xc8] sm:$0xff] }
 0x76a   : > { %2997 = vmatpush.bf16.msrb.mxu3 %v3947_v39 }
 0x76b   : > { %v1979_v5 = vsel %vm1978_vm14, %v4227_v53, %v1975_v62 }
 0x76c   : > { %v1996_v15 = vmul.f32 %v1979_v5, %v5437_v8  ;;  %v3933_v8 = vld [vmem:[#allocation17 + $0x58] sm:$0xff]  ;;  %v3938_v5 = vld [vmem:[#allocation17 + $0x80] sm:$0xff] }
 0x76d   : > { %2937 = vmatpush.bf16.msrb.mxu1 %v3933_v8 }
 0x76e   : > { %v2007_v14 = vmul.f32 %v5451_v25, %v1996_v15 }
 0x770   : > { %v2018_v35 = vadd.f32 %v5455_v40, %v2007_v14 }
 0x781   : > { %v1893_v38 = vpop.xlane.xlu1 %1892 }
 0x782   : > { %v1901_v55 = vmul.f32 %v1893_v38, %v4989_v13  ;;  %v3930_v38 = vld [vmem:[#allocation17 + $0x40] sm:$0xff] }
 0x784   : > { %v1909_v32 = vadd.f32 1e-05, %v1901_v55 }
 0x786   : > { %4228 = vrsqrt.f32 %v1909_v32  ;;  %vm1986_vm0 = vweird.f32 %v1909_v32 }
 0x78c   : > { %v4229_v26 = vpop.eup %4228 }
 0x78d   : > { %v1981_v63 = vmul.f32 %v4229_v26, %v1909_v32  ;;  %vm1987_vm15 = vweird.f32 %v4229_v26 }
 0x78e   : > { %vm1988_vm1 = vmor %vm1986_vm0, %vm1987_vm15 }
 0x78f   : > { %v1982_v3 = vmul.f32 %v4229_v26, %v1981_v63 }
 0x791   : > { %v1983_v6 = vmul.f32 0.5, %v1982_v3 }
 0x793   : > { %v1984_v11 = vsub.f32 1.5, %v1983_v6  ;;  %v3946_v6 = vld [vmem:[#allocation17 + $0xc0] sm:$0xff] }
 0x794   : > { %2998 = vmatpush.bf16.msrb.mxu3 %v3946_v6 }
 0x795   : > { %v1985_v20 = vmul.f32 %v4229_v26, %v1984_v11 }
 0x797   : > { %v1989_v51 = vsel %vm1988_vm1, %v4229_v26, %v1985_v20 }
 0x798   : > { %v1997_v21 = vmul.f32 %v1989_v51, %v5445_v50  ;;  %v3932_v50 = vld [vmem:[#allocation17 + $0x50] sm:$0xff] }
 0x799   : > { %2938 = vmatpush.bf16.msrb.mxu1 %v3932_v50 }
 0x79a   : > { %v2008_v27 = vmul.f32 %v5451_v25, %v1997_v21  ;;  %v3941_v25 = vld [vmem:[#allocation17 + $0x98] sm:$0xff] }
 0x79b   : > { %2966 = vmatpush.bf16.msrb.mxu2 %v3941_v25 }
 0x79c   : > { %v2019_v19 = vadd.f32 %v5455_v40, %v2008_v27  ;;  %v3923_v40 = vld [vmem:[#allocation17 + $0x8] sm:$0xff] }
 0x79d   : > { %2910 = vmatpush.bf16.msrb.mxu0 %v3923_v40  ;;  %2939 = vmatpush.bf16.msrb.mxu1 %v3931_v47 }
 0x79e   : > { %v2023_v42 = vpack.c.bf16 %v2019_v19, %v2018_v35 }
 0x79f   : > { %2967 = vmatpush.bf16.msrb.mxu2 %v3940_v48 }
 0x7a0   : > { %2248 = vmatmul.bf16.gmra.mxu0 %v2023_v42  ;;  %2277 = vmatmul.bf16.gmra.mxu1 %v2023_v42 }
 0x7a1   : > { %2306 = vmatmul.bf16.gmra.mxu2 %v2023_v42  ;;  %2335 = vmatmul.bf16.gmra.mxu3 %v2023_v42 }
 0x7a2   : > { %2911 = vmatpush.bf16.msrb.mxu0 %v3922_v18  ;;  %2940 = vmatpush.bf16.msrb.mxu1 %v3930_v38 }
 0x7a3   : > { %v2234_v49 = vpop.f32.mrf.mxu0  ;;  %v2263_v59 = vpop.f32.mrf.mxu1  ;;  %2968 = vmatpush.bf16.msrb.mxu2 %v3939_v58 }
 0x7a4   : > { %v5491_v53 = vadd.f32 %v2234_v49, %v5486_v31  ;;  %v5494_v57 = vadd.f32 %v2263_v59, %v5488_v41 }
 0x7a6   : > { %v2341_v55 = vmul.f32 %v5491_v53, %v5491_v53  ;;  %v2342_v32 = vmul.f32 %v5494_v57, %v5494_v57 }
 0x7a7   : > { %2969 = vmatpush.bf16.msrb.mxu2 %v3938_v5 }
 0x7a8   : > { %v2373_v26 = vmul.f32 %v2341_v55, %v5491_v53  ;;  %v2374_v45 = vmul.f32 %v2342_v32, %v5494_v57 }
 0x7aa   : > { %v2405_v46 = vmul.f32 0.044715, %v2373_v26  ;;  %v2406_v62 = vmul.f32 0.044715, %v2374_v45  ;;  %v2292_v63 = vpop.f32.mrf.mxu2  ;;  %v2321_v0 = vpop.f32.mrf.mxu3 }
 0x7ab   : > { %v5507_v1 = vadd.f32 %v2292_v63, %v5500_v22  ;;  %v5510_v3 = vadd.f32 %v2321_v0, %v5502_v28  ;;  %v2236_v34 = vpop.f32.mrf.mxu0  ;;  %v2265_v4 = vpop.f32.mrf.mxu1 }
 0x7ac   : > { %v2437_v9 = vadd.f32 %v2405_v46, %v5491_v53  ;;  %v2438_v10 = vadd.f32 %v2406_v62, %v5494_v57  ;;  %v5515_v11 = vadd.f32 %v2236_v34, %v5486_v31  ;;  %v5518_v15 = vadd.f32 %v2265_v4, %v5488_v41 }
 0x7ad   : > { %v2343_v44 = vmul.f32 %v5507_v1, %v5507_v1  ;;  %v2344_v16 = vmul.f32 %v5510_v3, %v5510_v3 }
 0x7ae   : > { %v2469_v20 = vmul.f32 0.7978846, %v2437_v9  ;;  %v2470_v36 = vmul.f32 0.7978846, %v2438_v10  ;;  %v2345_v30 = vmul.f32 %v5515_v11, %v5515_v11  ;;  %v2346_v51 = vmul.f32 %v5518_v15, %v5518_v15 }
 0x7af   : > { %v2375_v21 = vmul.f32 %v2343_v44, %v5507_v1  ;;  %v2376_v14 = vmul.f32 %v2344_v16, %v5510_v3 }
 0x7b0   : > { %4230 = vtanh.f32 %v2469_v20  ;;  %v2377_v33 = vmul.f32 %v2345_v30, %v5515_v11  ;;  %v2378_v8 = vmul.f32 %v2346_v51, %v5518_v15 }
 0x7b1   : > { %4232 = vtanh.f32 %v2470_v36  ;;  %v2407_v27 = vmul.f32 0.044715, %v2375_v21  ;;  %v2408_v52 = vmul.f32 0.044715, %v2376_v14 }
 0x7b2   : > { %v2409_v29 = vmul.f32 0.044715, %v2377_v33  ;;  %v2410_v35 = vmul.f32 0.044715, %v2378_v8  ;;  %v2294_v19 = vpop.f32.mrf.mxu2  ;;  %v2323_v17 = vpop.f32.mrf.mxu3 }
 0x7b3   : > { %v2439_v50 = vadd.f32 %v2407_v27, %v5507_v1  ;;  %v2440_v37 = vadd.f32 %v2408_v52, %v5510_v3  ;;  %v5535_v42 = vadd.f32 %v2294_v19, %v5500_v22  ;;  %v5538_v25 = vadd.f32 %v2323_v17, %v5502_v28 }
 0x7b4   : > { %v2441_v43 = vadd.f32 %v2409_v29, %v5515_v11  ;;  %v2442_v40 = vadd.f32 %v2410_v35, %v5518_v15 }
 0x7b5   : > { %v2471_v47 = vmul.f32 0.7978846, %v2439_v50  ;;  %v2472_v48 = vmul.f32 0.7978846, %v2440_v37  ;;  %v2347_v54 = vmul.f32 %v5535_v42, %v5535_v42  ;;  %v2348_v49 = vmul.f32 %v5538_v25, %v5538_v25 }
 0x7b6   : > { %v4231_v59 = vpop.eup %4230  ;;  %v2473_v18 = vmul.f32 0.7978846, %v2441_v43  ;;  %v2474_v38 = vmul.f32 0.7978846, %v2442_v40 }
 0x7b7   : > { %v4233_v55 = vpop.eup %4232  ;;  %4234 = vtanh.f32 %v2471_v47  ;;  %v2379_v32 = vmul.f32 %v2347_v54, %v5535_v42  ;;  %v2380_v58 = vmul.f32 %v2348_v49, %v5538_v25  ;;  %v2533_v39 = vadd.f32 1.0, %v4231_v59 }
 0x7b8   : > { %4236 = vtanh.f32 %v2472_v48  ;;  %v2534_v46 = vadd.f32 1.0, %v4233_v55 }
 0x7b9   : > { %4238 = vtanh.f32 %v2473_v18  ;;  %v2411_v26 = vmul.f32 0.044715, %v2379_v32  ;;  %v2412_v45 = vmul.f32 0.044715, %v2380_v58  ;;  %v2565_v9 = vmul.f32 0.5, %v2533_v39 }
 0x7ba   : > { %4240 = vtanh.f32 %v2474_v38  ;;  %v2566_v20 = vmul.f32 0.5, %v2534_v46 }
 0x7bb   : > { %v2443_v62 = vadd.f32 %v2411_v26, %v5535_v42  ;;  %v2444_v63 = vadd.f32 %v2412_v45, %v5538_v25  ;;  %v2239_v0 = vpop.f32.mrf.mxu0  ;;  %v2268_v34 = vpop.f32.mrf.mxu1  ;;  %v2597_v29 = vmul.f32 %v2565_v9, %v5491_v53 }
 0x7bc   : > { %v5551_v4 = vadd.f32 %v2239_v0, %v5486_v31  ;;  %v5554_v5 = vadd.f32 %v2268_v34, %v5488_v41  ;;  %v2598_v17 = vmul.f32 %v2566_v20, %v5494_v57 }
 0x7bd   : > { %v4235_v6 = vpop.eup %4234  ;;  %v2475_v10 = vmul.f32 0.7978846, %v2443_v62  ;;  %v2476_v44 = vmul.f32 0.7978846, %v2444_v63 }
 0x7be   : > { %v4237_v16 = vpop.eup %4236  ;;  %v2535_v36 = vadd.f32 1.0, %v4235_v6  ;;  %v2349_v30 = vmul.f32 %v5551_v4, %v5551_v4  ;;  %v2350_v51 = vmul.f32 %v5554_v5, %v5554_v5 }
 0x7bf   : > { %v4239_v21 = vpop.eup %4238  ;;  %v2536_v14 = vadd.f32 1.0, %v4237_v16  ;;  %4242 = vtanh.f32 %v2475_v10 }
 0x7c0   : > { %v4241_v33 = vpop.eup %4240  ;;  %v2567_v8 = vmul.f32 0.5, %v2535_v36  ;;  %v2537_v27 = vadd.f32 1.0, %v4239_v21  ;;  %4244 = vtanh.f32 %v2476_v44  ;;  %v2381_v52 = vmul.f32 %v2349_v30, %v5551_v4 }
 0x7c1   : > { %v2538_v35 = vadd.f32 1.0, %v4241_v33  ;;  %v2382_v19 = vmul.f32 %v2350_v51, %v5554_v5  ;;  %v2568_v50 = vmul.f32 0.5, %v2536_v14 }
 0x7c2   : > { %v2569_v37 = vmul.f32 0.5, %v2537_v27  ;;  %v2413_v43 = vmul.f32 0.044715, %v2381_v52  ;;  %v2297_v40 = vpop.f32.mrf.mxu2  ;;  %v2326_v47 = vpop.f32.mrf.mxu3  ;;  %v2599_v48 = vmul.f32 %v2567_v8, %v5507_v1 }
 0x7c3   : > { %v2570_v54 = vmul.f32 0.5, %v2538_v35  ;;  %v2414_v49 = vmul.f32 0.044715, %v2382_v19  ;;  %v5566_v59 = vadd.f32 %v2297_v40, %v5500_v22  ;;  %v2241_v18 = vpop.f32.mrf.mxu0  ;;  %v2270_v38 = vpop.f32.mrf.mxu1  ;;  %v5571_v57 = vadd.f32 %v2326_v47, %v5502_v28 }
 0x7c4   : > { %v2601_v53 = vmul.f32 %v2569_v37, %v5515_v11  ;;  %v2445_v55 = vadd.f32 %v2413_v43, %v5551_v4  ;;  %v5574_v32 = vadd.f32 %v2241_v18, %v5486_v31  ;;  %v5581_v45 = vadd.f32 %v2270_v38, %v5488_v41 }
 0x7c5   : > { %v4243_v58 = vpop.eup %4242  ;;  %v2602_v1 = vmul.f32 %v2570_v54, %v5518_v15  ;;  %v2446_v39 = vadd.f32 %v2414_v49, %v5554_v5  ;;  %v2351_v26 = vmul.f32 %v5566_v59, %v5566_v59  ;;  %v2352_v0 = vmul.f32 %v5571_v57, %v5571_v57 }
 0x7c6   : > { %v4245_v11 = vpop.eup %4244  ;;  %v2629_v46 = vpack.c.bf16 %v2601_v53, %v2597_v29  ;;  %v2539_v62 = vadd.f32 1.0, %v4243_v58  ;;  %v2477_v63 = vmul.f32 0.7978846, %v2445_v55  ;;  %v2353_v16 = vmul.f32 %v5574_v32, %v5574_v32 }
 0x7c7   : > { %v2630_v34 = vpack.c.bf16 %v2602_v1, %v2598_v17  ;;  %v2540_v6 = vadd.f32 1.0, %v4245_v11  ;;  %v2478_v9 = vmul.f32 0.7978846, %v2446_v39  ;;  %v2383_v15 = vmul.f32 %v2351_v26, %v5566_v59 }
 0x7c8   : > { %v2571_v10 = vmul.f32 0.5, %v2539_v62  ;;  %4246 = vtanh.f32 %v2477_v63  ;;  %v2384_v44 = vmul.f32 %v2352_v0, %v5571_v57  ;;  %2912 = vmatmul.bf16.vlgmr.msrb.gmra.mxu0 %v2629_v46  ;;  %v2354_v30 = vmul.f32 %v5581_v45, %v5581_v45 }
 0x7c9   : > { %v2572_v20 = vmul.f32 0.5, %v2540_v6  ;;  %4248 = vtanh.f32 %v2478_v9  ;;  %v2415_v36 = vmul.f32 0.044715, %v2383_v15  ;;  %2941 = vmatmul.bf16.vlgmr.msrb.gmra.mxu1 %v2630_v34  ;;  %v2600_v51 = vmul.f32 %v2568_v50, %v5510_v3 }
 0x7ca   : > { %v2603_v21 = vmul.f32 %v2571_v10, %v5535_v42  ;;  %v2416_v14 = vmul.f32 0.044715, %v2384_v44  ;;  %v2385_v33 = vmul.f32 %v2353_v16, %v5574_v32  ;;  %v2299_v8 = vpop.f32.mrf.mxu2  ;;  %v2328_v27 = vpop.f32.mrf.mxu3  ;;  %v2386_v35 = vmul.f32 %v2354_v30, %v5581_v45 }
 0x7cb   : > { %v2604_v52 = vmul.f32 %v2572_v20, %v5538_v25  ;;  %v2447_v29 = vadd.f32 %v2415_v36, %v5566_v59  ;;  %v5598_v19 = vadd.f32 %v2299_v8, %v5500_v22  ;;  %v5602_v42 = vadd.f32 %v2328_v27, %v5502_v28 }
 0x7cc   : > { %v2631_v17 = vpack.c.bf16 %v2603_v21, %v2599_v48  ;;  %v2448_v37 = vadd.f32 %v2416_v14, %v5571_v57  ;;  %v2417_v3 = vmul.f32 0.044715, %v2385_v33  ;;  %v2418_v40 = vmul.f32 0.044715, %v2386_v35 }
 0x7cd   : > { %v2632_v50 = vpack.c.bf16 %v2604_v52, %v2600_v51  ;;  %v2479_v43 = vmul.f32 0.7978846, %v2447_v29  ;;  %v2355_v25 = vmul.f32 %v5598_v19, %v5598_v19  ;;  %v2356_v18 = vmul.f32 %v5602_v42, %v5602_v42 }
 0x7ce   : > { %v4247_v47 = vpop.eup %4246  ;;  %v2480_v54 = vmul.f32 0.7978846, %v2448_v37  ;;  %v2449_v49 = vadd.f32 %v2417_v3, %v5574_v32  ;;  %2970 = vmatmul.bf16.vlgmr.msrb.gmra.mxu2 %v2631_v17  ;;  %v2450_v38 = vadd.f32 %v2418_v40, %v5581_v45 }
 0x7cf   : > { %v4249_v48 = vpop.eup %4248  ;;  %4250 = vtanh.f32 %v2479_v43  ;;  %v2387_v53 = vmul.f32 %v2355_v25, %v5598_v19  ;;  %2999 = vmatmul.bf16.vlgmr.msrb.gmra.mxu3 %v2632_v50  ;;  %v2541_v55 = vadd.f32 1.0, %v4247_v47  ;;  %v2388_v1 = vmul.f32 %v2356_v18, %v5602_v42 }
 0x7d0   : > { %4252 = vtanh.f32 %v2480_v54  ;;  %v2481_v58 = vmul.f32 0.7978846, %v2449_v49  ;;  %v2542_v39 = vadd.f32 1.0, %v4249_v48  ;;  %v2482_v26 = vmul.f32 0.7978846, %v2450_v38 }
 0x7d1   : > { %v2419_v11 = vmul.f32 0.044715, %v2387_v53  ;;  %v2244_v46 = vpop.f32.mrf.mxu0  ;;  %v2273_v62 = vpop.f32.mrf.mxu1  ;;  %v2420_v63 = vmul.f32 0.044715, %v2388_v1  ;;  %v2573_v9 = vmul.f32 0.5, %v2541_v55 }
 0x7d2   : > { %4254 = vtanh.f32 %v2481_v58  ;;  %v5613_v0 = vadd.f32 %v2244_v46, %v5486_v31  ;;  %v5616_v34 = vadd.f32 %v2273_v62, %v5488_v41  ;;  %v2574_v15 = vmul.f32 0.5, %v2542_v39 }
 0x7d3   : > { %4256 = vtanh.f32 %v2482_v26  ;;  %v2451_v6 = vadd.f32 %v2419_v11, %v5598_v19  ;;  %v2452_v10 = vadd.f32 %v2420_v63, %v5602_v42  ;;  %v2605_v8 = vmul.f32 %v2573_v9, %v5551_v4 }
 0x7d4   : > { %v2357_v44 = vmul.f32 %v5613_v0, %v5613_v0  ;;  %v2358_v16 = vmul.f32 %v5616_v34, %v5616_v34  ;;  %v5628_v27 = vmul.f32 %v2574_v15, %v5554_v5 }
 0x7d5   : > { %v4251_v20 = vpop.eup %4250  ;;  %v2483_v36 = vmul.f32 0.7978846, %v2451_v6  ;;  %v2484_v51 = vmul.f32 0.7978846, %v2452_v10 }
 0x7d6   : > { %v4253_v30 = vpop.eup %4252  ;;  %v2389_v21 = vmul.f32 %v2357_v44, %v5613_v0  ;;  %v2390_v14 = vmul.f32 %v2358_v16, %v5616_v34  ;;  %v2543_v33 = vadd.f32 1.0, %v4251_v20 }
 0x7d7   : > { %4258 = vtanh.f32 %v2483_v36  ;;  %v2544_v52 = vadd.f32 1.0, %v4253_v30 }
 0x7d8   : > { %v4255_v29 = vpop.eup %4254  ;;  %4260 = vtanh.f32 %v2484_v51  ;;  %v2421_v35 = vmul.f32 0.044715, %v2389_v21  ;;  %v2422_v17 = vmul.f32 0.044715, %v2390_v14  ;;  %v2302_v37 = vpop.f32.mrf.mxu2  ;;  %v2575_v50 = vmul.f32 0.5, %v2543_v33 }
 0x7d9   : > { %v2331_v3 = vpop.f32.mrf.mxu3  ;;  %v4257_v43 = vpop.eup %4256  ;;  %v5631_v40 = vadd.f32 %v2302_v37, %v5500_v22  ;;  %v2545_v54 = vadd.f32 1.0, %v4255_v29  ;;  %v5636_v5 = vmul.f32 0.5, %v2544_v52 }
 0x7da   : > { %v5634_v25 = vadd.f32 %v2331_v3, %v5502_v28  ;;  %v2246_v47 = vpop.f32.mrf.mxu0  ;;  %v2275_v4 = vpop.f32.mrf.mxu1  ;;  %v2453_v49 = vadd.f32 %v2421_v35, %v5613_v0  ;;  %v2454_v18 = vadd.f32 %v2422_v17, %v5616_v34  ;;  %v2546_v1 = vadd.f32 1.0, %v4257_v43 }
 0x7db   : > { %v5641_v48 = vadd.f32 %v2246_v47, %v5486_v31  ;;  %v5644_v38 = vadd.f32 %v2275_v4, %v5488_v41  ;;  %v2359_v53 = vmul.f32 %v5631_v40, %v5631_v40  ;;  %v2577_v58 = vmul.f32 0.5, %v2545_v54 }
 0x7dc   : > { %v2360_v55 = vmul.f32 %v5634_v25, %v5634_v25  ;;  %v2485_v39 = vmul.f32 0.7978846, %v2453_v49  ;;  %v2486_v26 = vmul.f32 0.7978846, %v2454_v18  ;;  %v2578_v15 = vmul.f32 0.5, %v2546_v1 }
 0x7dd   : > { %v2361_v11 = vmul.f32 %v5641_v48, %v5641_v48  ;;  %v2362_v46 = vmul.f32 %v5644_v38, %v5644_v38  ;;  %v4259_v62 = vpop.eup %4258  ;;  %v2391_v63 = vmul.f32 %v2359_v53, %v5631_v40  ;;  %v2609_v9 = vmul.f32 %v2577_v58, %v5574_v32 }
 0x7de   : > { %v2392_v6 = vmul.f32 %v2360_v55, %v5634_v25  ;;  %v4261_v10 = vpop.eup %4260  ;;  %4262 = vtanh.f32 %v2485_v39  ;;  %v2547_v20 = vadd.f32 1.0, %v4259_v62  ;;  %v2610_v29 = vmul.f32 %v2578_v15, %v5581_v45 }
 0x7df   : > { %v2393_v44 = vmul.f32 %v2361_v11, %v5641_v48  ;;  %v2394_v16 = vmul.f32 %v2362_v46, %v5644_v38  ;;  %4264 = vtanh.f32 %v2486_v26  ;;  %v2423_v36 = vmul.f32 0.044715, %v2391_v63 }
 0x7e0   : > { %v2424_v30 = vmul.f32 0.044715, %v2392_v6  ;;  %v2633_v51 = vpack.c.bf16 %v2609_v9, %v2605_v8  ;;  %v2304_v33 = vpop.f32.mrf.mxu2  ;;  %v2579_v35 = vmul.f32 0.5, %v2547_v20  ;;  %v2634_v47 = vpack.c.bf16 %v2610_v29, %v5628_v27 }
 0x7e1   : > { %v2425_v21 = vmul.f32 0.044715, %v2393_v44  ;;  %v2426_v14 = vmul.f32 0.044715, %v2394_v16  ;;  %v2333_v52 = vpop.f32.mrf.mxu3  ;;  %v2455_v32 = vadd.f32 %v2423_v36, %v5631_v40  ;;  %v5663_v37 = vadd.f32 %v2304_v33, %v5500_v22 }
 0x7e2   : > { %v2456_v17 = vadd.f32 %v2424_v30, %v5634_v25  ;;  %v5666_v3 = vadd.f32 %v2333_v52, %v5502_v28  ;;  %2917 = vmatmul.bf16.gmra.mxu0 %v2633_v51  ;;  %v2607_v45 = vmul.f32 %v2575_v50, %v5566_v59  ;;  %2946 = vmatmul.bf16.gmra.mxu1 %v2634_v47  ;;  %v2548_v39 = vadd.f32 1.0, %v4261_v10 }
 0x7e3   : > { %v2457_v8 = vadd.f32 %v2425_v21, %v5641_v48  ;;  %v2458_v43 = vadd.f32 %v2426_v14, %v5644_v38  ;;  %v2487_v4 = vmul.f32 0.7978846, %v2455_v32  ;;  %v2363_v49 = vmul.f32 %v5663_v37, %v5663_v37 }
 0x7e4   : > { %v2488_v54 = vmul.f32 0.7978846, %v2456_v17  ;;  %v2364_v18 = vmul.f32 %v5666_v3, %v5666_v3  ;;  %v4263_v53 = vpop.eup %4262  ;;  %v2611_v1 = vmul.f32 %v2579_v35, %v5598_v19  ;;  %v2580_v11 = vmul.f32 0.5, %v2548_v39 }
 0x7e5   : > { %v2489_v55 = vmul.f32 0.7978846, %v2457_v8  ;;  %v2490_v58 = vmul.f32 0.7978846, %v2458_v43  ;;  %v4265_v26 = vpop.eup %4264  ;;  %4266 = vtanh.f32 %v2487_v4  ;;  %v2395_v27 = vmul.f32 %v2363_v49, %v5663_v37 }
 0x7e6   : > { %v2396_v59 = vmul.f32 %v2364_v18, %v5666_v3  ;;  %4268 = vtanh.f32 %v2488_v54  ;;  %v2635_v50 = vpack.c.bf16 %v2611_v1, %v2607_v45  ;;  %v2608_v63 = vmul.f32 %v5636_v5, %v5571_v57 }
 0x7e7   : > { %4270 = vtanh.f32 %v2489_v55  ;;  %v2427_v46 = vmul.f32 0.044715, %v2395_v27  ;;  %v2612_v19 = vmul.f32 %v2580_v11, %v5602_v42  ;;  %v2549_v10 = vadd.f32 1.0, %v4263_v53 }
 0x7e8   : > { %v2428_v62 = vmul.f32 0.044715, %v2396_v59  ;;  %4272 = vtanh.f32 %v2490_v58  ;;  %2975 = vmatmul.bf16.gmra.mxu2 %v2635_v50  ;;  %v2550_v36 = vadd.f32 1.0, %v4265_v26 }
 0x7e9   : > { %v2459_v6 = vadd.f32 %v2427_v46, %v5663_v37  ;;  %v2636_v15 = vpack.c.bf16 %v2612_v19, %v2608_v63  ;;  %v2581_v57 = vmul.f32 0.5, %v2549_v10 }
 0x7ea   : > { %v2460_v9 = vadd.f32 %v2428_v62, %v5666_v3  ;;  %v2582_v42 = vmul.f32 0.5, %v2550_v36 }
 0x7eb   : > { %v4267_v44 = vpop.eup %4266  ;;  %v2491_v16 = vmul.f32 0.7978846, %v2459_v6  ;;  %3004 = vmatmul.bf16.gmra.mxu3 %v2636_v15  ;;  %v2613_v32 = vmul.f32 %v2581_v57, %v5613_v0 }
 0x7ec   : > { %v2492_v20 = vmul.f32 0.7978846, %v2460_v9  ;;  %v4269_v30 = vpop.eup %4268  ;;  %v2551_v52 = vadd.f32 1.0, %v4267_v44  ;;  %v2614_v43 = vmul.f32 %v2582_v42, %v5616_v34 }
 0x7ed   : > { %v4271_v51 = vpop.eup %4270  ;;  %4274 = vtanh.f32 %v2491_v16  ;;  %v2552_v35 = vadd.f32 1.0, %v4269_v30 }
 0x7ee   : > { %v4273_v21 = vpop.eup %4272  ;;  %4276 = vtanh.f32 %v2492_v20  ;;  %v2553_v14 = vadd.f32 1.0, %v4271_v51  ;;  %v2583_v49 = vmul.f32 0.5, %v2551_v52 }
 0x7ef   : > { %v2554_v5 = vadd.f32 1.0, %v4273_v21  ;;  %v2584_v55 = vmul.f32 0.5, %v2552_v35 }
 0x7f0   : > { %v2585_v33 = vmul.f32 0.5, %v2553_v14  ;;  %v2615_v0 = vmul.f32 %v2583_v49, %v5631_v40 }
 0x7f1   : > { %v2586_v29 = vmul.f32 0.5, %v2554_v5  ;;  %v2616_v39 = vmul.f32 %v2584_v55, %v5634_v25 }
 0x7f2   : > { %v2617_v17 = vmul.f32 %v2585_v33, %v5641_v48 }
 0x7f3   : > { %v4275_v8 = vpop.eup %4274  ;;  %v2618_v47 = vmul.f32 %v2586_v29, %v5644_v38 }
 0x7f4   : > { %v4277_v45 = vpop.eup %4276  ;;  %v2637_v4 = vpack.c.bf16 %v2617_v17, %v2613_v32  ;;  %v2555_v54 = vadd.f32 1.0, %v4275_v8 }
 0x7f5   : > { %v2638_v18 = vpack.c.bf16 %v2618_v47, %v2614_v43  ;;  %v2556_v53 = vadd.f32 1.0, %v4277_v45 }
 0x7f6   : > { %2922 = vmatmul.bf16.gmra.mxu0 %v2637_v4  ;;  %v2587_v58 = vmul.f32 0.5, %v2555_v54 }
 0x7f7   : > { %2951 = vmatmul.bf16.gmra.mxu1 %v2638_v18  ;;  %v2588_v1 = vmul.f32 0.5, %v2556_v53 }
 0x7f8   : > { %v2619_v48 = vmul.f32 %v2587_v58, %v5663_v37 }
 0x7f9   : > { %v2620_v34 = vmul.f32 %v2588_v1, %v5666_v3 }
 0x7fa   : > { %v2639_v38 = vpack.c.bf16 %v2619_v48, %v2615_v0 }
 0x7fb   : > { %v2640_v26 = vpack.c.bf16 %v2620_v34, %v2616_v39 }
 0x7fc   : > { %2980 = vmatmul.bf16.gmra.mxu2 %v2639_v38 }
 0x7fd   : > { %3009 = vmatmul.bf16.gmra.mxu3 %v2640_v26 }
 0x81d   : > { %v2249_v27 = vpop.f32.mrf.mxu0  ;;  %v2278_v59 = vpop.f32.mrf.mxu1 }
 0x81e   : > { %v5693_v50 = vadd.f32 %v2249_v27, %v5486_v31  ;;  %v5696_v11 = vadd.f32 %v2278_v59, %v5488_v41 }
 0x820   : > { %v2365_v40 = vmul.f32 %v5693_v50, %v5693_v50  ;;  %v2366_v25 = vmul.f32 %v5696_v11, %v5696_v11 }
 0x822   : > { %v2397_v37 = vmul.f32 %v2365_v40, %v5693_v50  ;;  %v2398_v3 = vmul.f32 %v2366_v25, %v5696_v11 }
 0x824   : > { %v2429_v46 = vmul.f32 0.044715, %v2397_v37  ;;  %v2430_v62 = vmul.f32 0.044715, %v2398_v3  ;;  %v2307_v63 = vpop.f32.mrf.mxu2  ;;  %v2336_v19 = vpop.f32.mrf.mxu3 }
 0x825   : > { %v5705_v6 = vadd.f32 %v2307_v63, %v5500_v22  ;;  %v5708_v9 = vadd.f32 %v2336_v19, %v5502_v28  ;;  %v2251_v15 = vpop.f32.mrf.mxu0  ;;  %v2280_v10 = vpop.f32.mrf.mxu1 }
 0x826   : > { %v2461_v44 = vadd.f32 %v2429_v46, %v5693_v50  ;;  %v2462_v16 = vadd.f32 %v2430_v62, %v5696_v11  ;;  %v5713_v20 = vadd.f32 %v2251_v15, %v5486_v31  ;;  %v5716_v36 = vadd.f32 %v2280_v10, %v5488_v41 }
 0x827   : > { %v2367_v30 = vmul.f32 %v5705_v6, %v5705_v6  ;;  %v2368_v51 = vmul.f32 %v5708_v9, %v5708_v9 }
 0x828   : > { %v2493_v21 = vmul.f32 0.7978846, %v2461_v44  ;;  %v2369_v14 = vmul.f32 %v5713_v20, %v5713_v20  ;;  %v2370_v57 = vmul.f32 %v5716_v36, %v5716_v36  ;;  %v2494_v42 = vmul.f32 0.7978846, %v2462_v16 }
 0x829   : > { %v2399_v5 = vmul.f32 %v2367_v30, %v5705_v6  ;;  %v2400_v31 = vmul.f32 %v2368_v51, %v5708_v9 }
 0x82a   : > { %v2401_v41 = vmul.f32 %v2369_v14, %v5713_v20  ;;  %v2402_v33 = vmul.f32 %v2370_v57, %v5716_v36  ;;  %4278 = vtanh.f32 %v2493_v21 }
 0x82b   : > { %v2431_v52 = vmul.f32 0.044715, %v2399_v5  ;;  %v2432_v29 = vmul.f32 0.044715, %v2400_v31  ;;  %4280 = vtanh.f32 %v2494_v42 }
 0x82c   : > { %v2433_v35 = vmul.f32 0.044715, %v2401_v41  ;;  %v2434_v32 = vmul.f32 0.044715, %v2402_v33  ;;  %v2309_v17 = vpop.f32.mrf.mxu2  ;;  %v2338_v8 = vpop.f32.mrf.mxu3 }
 0x82d   : > { %v2463_v43 = vadd.f32 %v2431_v52, %v5705_v6  ;;  %v2464_v47 = vadd.f32 %v2432_v29, %v5708_v9  ;;  %v2310_v45 = vadd.f32 %v2309_v17, %v5500_v22  ;;  %v2339_v4 = vadd.f32 %v2338_v8, %v5502_v28 }
 0x82e   : > { %v2465_v54 = vadd.f32 %v2433_v35, %v5713_v20  ;;  %v2466_v49 = vadd.f32 %v2434_v32, %v5716_v36 }
 0x82f   : > { %v2495_v18 = vmul.f32 0.7978846, %v2463_v43  ;;  %v2496_v53 = vmul.f32 0.7978846, %v2464_v47  ;;  %v2371_v55 = vmul.f32 %v2310_v45, %v2310_v45  ;;  %v2372_v58 = vmul.f32 %v2339_v4, %v2339_v4 }
 0x830   : > { %v2497_v1 = vmul.f32 0.7978846, %v2465_v54  ;;  %v2498_v0 = vmul.f32 0.7978846, %v2466_v49  ;;  %v4279_v34 = vpop.eup %4278 }
 0x831   : > { %4282 = vtanh.f32 %v2495_v18  ;;  %v2403_v48 = vmul.f32 %v2371_v55, %v2310_v45  ;;  %v2404_v39 = vmul.f32 %v2372_v58, %v2339_v4  ;;  %v4281_v28 = vpop.eup %4280  ;;  %v2557_v59 = vadd.f32 1.0, %v4279_v34  ;;  %v5745_v18 = vld [vmem:[%s5935_s22] ss:$0 sm:$0xff]  ;;  %s4632_s22 = sshra.s32 %s3234_s25, 4  ;;  %s4633_s22 = int_to_ptr.hbm [resolvable:$true] %s4632_s22 }
 0x832   : > { %4284 = vtanh.f32 %v2496_v53  ;;  %v2558_v3 = vadd.f32 1.0, %v4281_v28  ;;  %s4634_s12 = scalar_lea.hbm %s4633_s22, 64  ;;  %p4639_p13 = scmp.lt.s32.totalorder %s4633_s22, %s5938_s16 }
 0x833   : > { %4286 = vtanh.f32 %v2497_v1  ;;  %v2435_v22 = vmul.f32 0.044715, %v2403_v48  ;;  %v2436_v38 = vmul.f32 0.044715, %v2404_v39  ;;  %v2589_v15 = vmul.f32 0.5, %v2557_v59  ;;  %p4635_p1 = scmp.ne.s32.totalorder %s4633_s22, %s4634_s12  ;;  %p4640_p7 = scmp.lt.s32.totalorder %s4638_s6, %s4634_s12 }
 0x834   : > { %4288 = vtanh.f32 %v2498_v0  ;;  %v2590_v44 = vmul.f32 0.5, %v2558_v3 }
 0x835   : > { %v2467_v26 = vadd.f32 %v2435_v22, %v2310_v45  ;;  %v2468_v27 = vadd.f32 %v2436_v38, %v2339_v4  ;;  %v2621_v14 = vmul.f32 %v2589_v15, %v5693_v50  ;;  %p4636_p3 = pnand %p4635_p1, %p4917_p0  ;;  %p4641_p8 = por %p4640_p7, %p4639_p13 }
 0x836   : > { %v2622_v31 = vmul.f32 %v2590_v44, %v5696_v11 }
 0x837   : > { %v4283_v40 = vpop.eup %4282  ;;  %v2499_v25 = vmul.f32 0.7978846, %v2467_v26  ;;  %v2500_v37 = vmul.f32 0.7978846, %v2468_v27  ;;  %p4637_p4 = pneg %p4636_p3 }
 0x838   : > { %v4285_v46 = vpop.eup %4284  ;;  %v2559_v30 = vadd.f32 1.0, %v4283_v40 }
 0x839   : > { %v4287_v62 = vpop.eup %4286  ;;  %4290 = vtanh.f32 %v2499_v25  ;;  %v2560_v21 = vadd.f32 1.0, %v4285_v46  ;;  %p4642_p9 = pnand %p4641_p8, %p4637_p4 }
 0x83a   : > { %v4289_v63 = vpop.eup %4288  ;;  %4292 = vtanh.f32 %v2500_v37  ;;  %v2561_v19 = vadd.f32 1.0, %v4287_v62  ;;  %v2591_v29 = vmul.f32 0.5, %v2559_v30 }
 0x83b   : > { %v2562_v10 = vadd.f32 1.0, %v4289_v63  ;;  %v2592_v17 = vmul.f32 0.5, %v2560_v21 }
 0x83c   : > { %v2593_v16 = vmul.f32 0.5, %v2561_v19  ;;  %v2623_v50 = vmul.f32 %v2591_v29, %v5705_v6 }
 0x83d   : > { %v2594_v51 = vmul.f32 0.5, %v2562_v10 }
 0x83e   : > { %v2625_v57 = vmul.f32 %v2593_v16, %v5713_v20  ;;  %v2624_v20 = vmul.f32 %v2592_v17, %v5708_v9 }
 0x83f   : > { %v4291_v5 = vpop.eup %4290  ;;  %v2626_v42 = vmul.f32 %v2594_v51, %v5716_v36 }
 0x840   : > { %v4293_v41 = vpop.eup %4292  ;;  %v2641_v33 = vpack.c.bf16 %v2625_v57, %v2621_v14  ;;  %v2563_v52 = vadd.f32 1.0, %v4291_v5 }
 0x841   : > { %v2642_v35 = vpack.c.bf16 %v2626_v42, %v2622_v31  ;;  %v2564_v32 = vadd.f32 1.0, %v4293_v41 }
 0x842   : > { %2927 = vmatmul.bf16.gmra.mxu0 %v2641_v33  ;;  %v2595_v8 = vmul.f32 0.5, %v2563_v52 }
 0x843   : > { %2956 = vmatmul.bf16.gmra.mxu1 %v2642_v35  ;;  %v2596_v43 = vmul.f32 0.5, %v2564_v32 }
 0x844   : > { %v2627_v47 = vmul.f32 %v2595_v8, %v2310_v45 }
 0x845   : > { %v2628_v54 = vmul.f32 %v2596_v43, %v2339_v4  ;;  %v2913_v49 = vpop.f32.mrf.mxu0 }
 0x846   : > { %v2643_v11 = vpack.c.bf16 %v2627_v47, %v2623_v50  ;;  %v2914_v53 = vadd.f32 %v5745_v18, %v2913_v49  ;;  %v2942_v55 = vpop.f32.mrf.mxu1 }
 0x847   : > { %v2644_v36 = vpack.c.bf16 %v2628_v54, %v2624_v20 }
 0x848   : > { %2985 = vmatmul.bf16.gmra.mxu2 %v2643_v11  ;;  %v2943_v58 = vadd.f32 %v2942_v55, %v2914_v53 }
 0x849   : > { %3014 = vmatmul.bf16.gmra.mxu3 %v2644_v36 }
 0x84d   : > { %v2915_v1 = vpop.f32.mrf.mxu0 }
 0x84e   : > { %v2916_v9 = vadd.f32 %v5745_v18, %v2915_v1  ;;  %v2944_v39 = vpop.f32.mrf.mxu1 }
 0x850   : > { %v2945_v34 = vadd.f32 %v2944_v39, %v2916_v9 }
 0x851   : > { %v2971_v6 = vpop.f32.mrf.mxu2 }
 0x852   : > { %v2972_v45 = vadd.f32 %v2971_v6, %v2943_v58  ;;  %v3000_v0 = vpop.f32.mrf.mxu3 }
 0x854   : > { %v3001_v4 = vadd.f32 %v3000_v0, %v2972_v45 }
 0x856   : > { %v3020_v48 = vadd.f32 %v3001_v4, %v5368_v2 }
 0x858   : > { %3028 = vadd.xlane.f32.xlu0 %v3020_v48 }
 0x859   : > { %v2973_v22 = vpop.f32.mrf.mxu2 }
 0x85a   : > { %v2974_v38 = vadd.f32 %v2973_v22, %v2945_v34  ;;  %v3002_v28 = vpop.f32.mrf.mxu3 }
 0x85c   : > { %v3003_v26 = vadd.f32 %v3002_v28, %v2974_v38 }
 0x85e   : > { %v5751_v27 = vadd.f32 %v3003_v26, %v5372_v56 }
 0x85f   : > { %v2918_v59 = vpop.f32.mrf.mxu0  ;;  %v2947_v25 = vpop.f32.mrf.mxu1 }
 0x860   : > { %3030 = vadd.xlane.f32.xlu2 %v5751_v27  ;;  %v2919_v40 = vadd.f32 %v5745_v18, %v2918_v59 }
 0x862   : > { %v2948_v37 = vadd.f32 %v2947_v25, %v2919_v40 }
 0x867   : > { %v2920_v3 = vpop.f32.mrf.mxu0  ;;  %v2949_v15 = vpop.f32.mrf.mxu1 }
 0x868   : > { %v2921_v62 = vadd.f32 %v5745_v18, %v2920_v3 }
 0x86a   : > { %v2950_v10 = vadd.f32 %v2949_v15, %v2921_v62 }
 0x86b   : > { %v2976_v46 = vpop.f32.mrf.mxu2 }
 0x86c   : > { %v2977_v2 = vadd.f32 %v2976_v46, %v2948_v37 }
 0x86e   : > { %v3005_v63 = vpop.f32.mrf.mxu3 }
 0x86f   : > { %v3006_v19 = vadd.f32 %v3005_v63, %v2977_v2 }
 0x871   : > { %v3022_v44 = vadd.f32 %v3006_v19, %v5376_v7 }
 0x873   : > { %v2978_v56 = vpop.f32.mrf.mxu2  ;;  %3032 = vadd.xlane.f32.xlu1 %v3022_v44  ;;  %v2923_v30 = vpop.f32.mrf.mxu0 }
 0x874   : > { %v2979_v16 = vadd.f32 %v2978_v56, %v2950_v10  ;;  %v2924_v14 = vadd.f32 %v5745_v18, %v2923_v30  ;;  %v2952_v5 = vpop.f32.mrf.mxu1 }
 0x876   : > { %v3007_v51 = vpop.f32.mrf.mxu3  ;;  %v2953_v31 = vadd.f32 %v2952_v5, %v2924_v14 }
 0x877   : > { %v3008_v21 = vadd.f32 %v3007_v51, %v2979_v16 }
 0x879   : > { %v3023_v57 = vadd.f32 %v3008_v21, %v5380_v12 }
 0x87b   : > { %3034 = vadd.xlane.f32.xlu0 %v3023_v57  ;;  %v2925_v42 = vpop.f32.mrf.mxu0 }
 0x87c   : > { %v2926_v29 = vadd.f32 %v5745_v18, %v2925_v42  ;;  %v2954_v32 = vpop.f32.mrf.mxu1 }
 0x87e   : > { %v2955_v17 = vadd.f32 %v2954_v32, %v2926_v29 }
 0x87f   : > { %v2981_v41 = vpop.f32.mrf.mxu2 }
 0x880   : > { %v2982_v33 = vadd.f32 %v2981_v41, %v2953_v31  ;;  %v3010_v52 = vpop.f32.mrf.mxu3 }
 0x882   : > { %v3011_v7 = vadd.f32 %v3010_v52, %v2982_v33 }
 0x884   : > { %v3024_v35 = vadd.f32 %v3011_v7, %v5384_v61 }
 0x886   : > { %3036 = vadd.xlane.f32.xlu2 %v3024_v35 }
 0x887   : > { %v2983_v8 = vpop.f32.mrf.mxu2 }
 0x888   : > { %v2984_v43 = vadd.f32 %v2983_v8, %v2955_v17  ;;  %v3012_v50 = vpop.f32.mrf.mxu3 }
 0x88a   : > { %v3013_v47 = vadd.f32 %v3012_v50, %v2984_v43 }
 0x88c   : > { %v3025_v12 = vadd.f32 %v3013_v47, %v5388_v23 }
 0x88e   : > { %3038 = vadd.xlane.f32.xlu1 %v3025_v12 }
 0x8bf   : > { %v2928_v20 = vpop.f32.mrf.mxu0 }
 0x8c0   : > { %v2929_v54 = vadd.f32 %v5745_v18, %v2928_v20  ;;  %v2957_v11 = vpop.f32.mrf.mxu1 }
 0x8c2   : > { %v2958_v49 = vadd.f32 %v2957_v11, %v2929_v54  ;;  %v5812_v54 = vld [vmem:[%s5936_s24] ss:$0 sm:$0xff] }
 0x8c7   : > { %v2930_v36 = vpop.f32.mrf.mxu0 }
 0x8c8   : > { %v2931_v6 = vadd.f32 %v5745_v18, %v2930_v36  ;;  %v2959_v4 = vpop.f32.mrf.mxu1  ;;  %v5817_v36 = vld [vmem:[%s5937_s2] ss:$0 sm:$0xff] }
 0x8ca   : > { %v2960_v39 = vadd.f32 %v2959_v4, %v2931_v6 }
 0x8cb   : > { %v2986_v53 = vpop.f32.mrf.mxu2  ;;  %v3029_v55 = vpop.xlane.xlu0 %3028 }
 0x8cc   : > { %v2987_v58 = vadd.f32 %v2986_v53, %v2958_v49  ;;  %v3015_v61 = vpop.f32.mrf.mxu3  ;;  %v3044_v1 = vmul.f32 %v3029_v55, %v4989_v13 }
 0x8ce   : > { %v3016_v45 = vadd.f32 %v3015_v61, %v2987_v58  ;;  %v5765_v0 = vsub.f32 %v3020_v48, %v3044_v1 }
 0x8d0   : > { %v3026_v23 = vadd.f32 %v3016_v45, %v5392_v60  ;;  %v3060_v9 = vmul.f32 %v5765_v0, %v5765_v0 }
 0x8d2   : > { %3040 = vadd.xlane.f32.xlu0 %v3026_v23  ;;  %3068 = vadd.xlane.f32.xlu1 %v3060_v9 }
 0x8d3   : > { %v2988_v34 = vpop.f32.mrf.mxu2  ;;  %v3031_v22 = vpop.xlane.xlu2 %3030 }
 0x8d4   : > { %v2989_v38 = vadd.f32 %v2988_v34, %v2960_v39  ;;  %v3045_v28 = vmul.f32 %v3031_v22, %v4989_v13  ;;  %v3017_v26 = vpop.f32.mrf.mxu3 }
 0x8d6   : > { %v3018_v59 = vadd.f32 %v3017_v26, %v2989_v38  ;;  %v5772_v18 = vsub.f32 %v5751_v27, %v3045_v28 }
 0x8d8   : > { %v3061_v60 = vmul.f32 %v5772_v18, %v5772_v18  ;;  %v3027_v48 = vadd.f32 %v3018_v59, %v5406_v24 }
 0x8da   : > { %3070 = vadd.xlane.f32.xlu0 %v3061_v60  ;;  %3042 = vadd.xlane.f32.xlu2 %v3027_v48 }
 0x8e6   : > { %v3033_v40 = vpop.xlane.xlu1 %3032 }
 0x8e7   : > { %v3046_v25 = vmul.f32 %v3033_v40, %v4989_v13 }
 0x8e9   : > { %v5778_v37 = vsub.f32 %v3022_v44, %v3046_v25 }
 0x8eb   : > { %v3062_v3 = vmul.f32 %v5778_v37, %v5778_v37 }
 0x8ed   : > { %3072 = vadd.xlane.f32.xlu2 %v3062_v3 }
 0x8ee   : > { %v3035_v46 = vpop.xlane.xlu0 %3034 }
 0x8ef   : > { %v3047_v27 = vmul.f32 %v3035_v46, %v4989_v13 }
 0x8f1   : > { %v5783_v2 = vsub.f32 %v3023_v57, %v3047_v27 }
 0x8f3   : > { %v3063_v62 = vmul.f32 %v5783_v2, %v5783_v2 }
 0x8f5   : > { %3074 = vadd.xlane.f32.xlu1 %v3063_v62 }
 0x8f9   : > { %v3037_v24 = vpop.xlane.xlu2 %3036 }
 0x8fa   : > { %v3048_v63 = vmul.f32 %v3037_v24, %v4989_v13 }
 0x8fc   : > { %v5788_v19 = vsub.f32 %v3024_v35, %v3048_v63 }
 0x8fe   : > { %v3064_v15 = vmul.f32 %v5788_v19, %v5788_v19 }
 0x900   : > { %3076 = vadd.xlane.f32.xlu0 %v3064_v15 }
 0x901   : > { %v3039_v10 = vpop.xlane.xlu1 %3038 }
 0x902   : > { %v3049_v44 = vmul.f32 %v3039_v10, %v4989_v13 }
 0x904   : > { %v5793_v56 = vsub.f32 %v3025_v12, %v3049_v44 }
 0x906   : > { %v3065_v16 = vmul.f32 %v5793_v56, %v5793_v56 }
 0x908   : > { %3078 = vadd.xlane.f32.xlu2 %v3065_v16 }
 0x945   : > { %v3041_v30 = vpop.xlane.xlu0 %3040  ;;  %v3069_v51 = vpop.xlane.xlu1 %3068 }
 0x946   : > { %v3050_v21 = vmul.f32 %v3041_v30, %v4989_v13  ;;  %v3084_v14 = vmul.f32 %v3069_v51, %v4989_v13 }
 0x948   : > { %v5799_v57 = vsub.f32 %v3026_v23, %v3050_v21  ;;  %v3092_v5 = vadd.f32 1e-05, %v3084_v14 }
 0x94a   : > { %4294 = vrsqrt.f32 %v3092_v5  ;;  %v3066_v31 = vmul.f32 %v5799_v57, %v5799_v57  ;;  %vm3106_vm3 = vweird.f32 %v3092_v5 }
 0x94c   : > { %3080 = vadd.xlane.f32.xlu1 %v3066_v31 }
 0x94d   : > { %v3071_v42 = vpop.xlane.xlu0 %3070  ;;  %v3043_v41 = vpop.xlane.xlu2 %3042 }
 0x94e   : > { %v3085_v33 = vmul.f32 %v3071_v42, %v4989_v13  ;;  %v3051_v52 = vmul.f32 %v3043_v41, %v4989_v13 }
 0x950   : > { %v4295_v29 = vpop.eup %4294  ;;  %v3093_v7 = vadd.f32 1e-05, %v3085_v33  ;;  %v5805_v35 = vsub.f32 %v3027_v48, %v3051_v52 }
 0x951   : > { %v3101_v32 = vmul.f32 %v4295_v29, %v3092_v5  ;;  %vm3107_vm2 = vweird.f32 %v4295_v29 }
 0x952   : > { %4296 = vrsqrt.f32 %v3093_v7  ;;  %v3067_v17 = vmul.f32 %v5805_v35, %v5805_v35  ;;  %vm3108_vm4 = vmor %vm3106_vm3, %vm3107_vm2  ;;  %vm3116_vm6 = vweird.f32 %v3093_v7 }
 0x953   : > { %v3102_v8 = vmul.f32 %v4295_v29, %v3101_v32 }
 0x954   : > { %3082 = vadd.xlane.f32.xlu0 %v3067_v17 }
 0x955   : > { %v3103_v43 = vmul.f32 0.5, %v3102_v8 }
 0x957   : > { %v3104_v50 = vsub.f32 1.5, %v3103_v43 }
 0x958   : > { %v4297_v47 = vpop.eup %4296 }
 0x959   : > { %v3105_v12 = vmul.f32 %v4295_v29, %v3104_v50  ;;  %v3111_v20 = vmul.f32 %v4297_v47, %v3093_v7  ;;  %vm3117_vm5 = vweird.f32 %v4297_v47 }
 0x95a   : > { %vm3118_vm7 = vmor %vm3116_vm6, %vm3117_vm5 }
 0x95b   : > { %v3109_v11 = vsel %vm3108_vm4, %v4295_v29, %v3105_v12  ;;  %v3112_v49 = vmul.f32 %v4297_v47, %v3111_v20 }
 0x95c   : > { %v3180_v53 = vmul.f32 %v3109_v11, %v5765_v0 }
 0x95d   : > { %v3113_v55 = vmul.f32 0.5, %v3112_v49 }
 0x95e   : > { %v3191_v58 = vmul.f32 %v5812_v54, %v3180_v53 }
 0x95f   : > { %v3114_v61 = vsub.f32 1.5, %v3113_v55 }
 0x960   : > { %v3202_v1 = vadd.f32 %v5817_v36, %v3191_v58  ;;  %v3073_v45 = vpop.xlane.xlu2 %3072 }
 0x961   : > { %v3115_v6 = vmul.f32 %v4297_v47, %v3114_v61  ;;  %v3086_v23 = vmul.f32 %v3073_v45, %v4989_v13 }
 0x962   : > { %3210 = vst [vmem:[%s5824_s26] sm:$0xff] %v3202_v1 }
 0x963   : > { %v3119_v0 = vsel %vm3118_vm7, %v4297_v47, %v3115_v6  ;;  %v3094_v4 = vadd.f32 1e-05, %v3086_v23 }
 0x964   : > { %v3181_v9 = vmul.f32 %v3119_v0, %v5772_v18 }
 0x965   : > { %4298 = vrsqrt.f32 %v3094_v4  ;;  %vm3126_vm9 = vweird.f32 %v3094_v4 }
 0x966   : > { %v3192_v39 = vmul.f32 %v5812_v54, %v3181_v9 }
 0x968   : > { %v3203_v34 = vadd.f32 %v5817_v36, %v3192_v39  ;;  %v3075_v22 = vpop.xlane.xlu1 %3074 }
 0x969   : > { %v3087_v38 = vmul.f32 %v3075_v22, %v4989_v13 }
 0x96a   : > { %3211 = vst [vmem:[%s5824_s26 + $0x8] sm:$0xff] %v3203_v34 }
 0x96b   : > { %v4299_v28 = vpop.eup %4298  ;;  %v3095_v26 = vadd.f32 1e-05, %v3087_v38 }
 0x96c   : > { %v3121_v59 = vmul.f32 %v4299_v28, %v3094_v4  ;;  %vm3127_vm8 = vweird.f32 %v4299_v28 }
 0x96d   : > { %4300 = vrsqrt.f32 %v3095_v26  ;;  %vm3128_vm10 = vmor %vm3126_vm9, %vm3127_vm8  ;;  %vm3136_vm12 = vweird.f32 %v3095_v26 }
 0x96e   : > { %v3122_v60 = vmul.f32 %v4299_v28, %v3121_v59 }
 0x970   : > { %v3123_v48 = vmul.f32 0.5, %v3122_v60 }
 0x972   : > { %v3124_v40 = vsub.f32 1.5, %v3123_v48 }
 0x973   : > { %v3077_v25 = vpop.xlane.xlu0 %3076  ;;  %v4301_v18 = vpop.eup %4300 }
 0x974   : > { %v3088_v3 = vmul.f32 %v3077_v25, %v4989_v13  ;;  %v3125_v46 = vmul.f32 %v4299_v28, %v3124_v40  ;;  %v3131_v27 = vmul.f32 %v4301_v18, %v3095_v26  ;;  %vm3137_vm11 = vweird.f32 %v4301_v18 }
 0x975   : > { %vm3138_vm13 = vmor %vm3136_vm12, %vm3137_vm11 }
 0x976   : > { %v3096_v62 = vadd.f32 1e-05, %v3088_v3  ;;  %v3129_v24 = vsel %vm3128_vm10, %v4299_v28, %v3125_v46  ;;  %v3132_v63 = vmul.f32 %v4301_v18, %v3131_v27 }
 0x977   : > { %v3182_v15 = vmul.f32 %v3129_v24, %v5778_v37 }
 0x978   : > { %4302 = vrsqrt.f32 %v3096_v62  ;;  %v3133_v10 = vmul.f32 0.5, %v3132_v63  ;;  %vm3146_vm15 = vweird.f32 %v3096_v62 }
 0x979   : > { %v3193_v44 = vmul.f32 %v5812_v54, %v3182_v15 }
 0x97a   : > { %v3134_v16 = vsub.f32 1.5, %v3133_v10 }
 0x97b   : > { %v3079_v30 = vpop.xlane.xlu2 %3078  ;;  %v3204_v51 = vadd.f32 %v5817_v36, %v3193_v44 }
 0x97c   : > { %v3089_v21 = vmul.f32 %v3079_v30, %v4989_v13  ;;  %v3135_v14 = vmul.f32 %v4301_v18, %v3134_v16 }
 0x97d   : > { %3212 = vst [vmem:[%s5824_s26 + $0x10] sm:$0xff] %v3204_v51 }
 0x97e   : > { %v4303_v5 = vpop.eup %4302  ;;  %v3097_v31 = vadd.f32 1e-05, %v3089_v21  ;;  %v3139_v42 = vsel %vm3138_vm13, %v4301_v18, %v3135_v14 }
 0x97f   : > { %v3141_v37 = vmul.f32 %v4303_v5, %v3096_v62  ;;  %v3183_v41 = vmul.f32 %v3139_v42, %v5783_v2  ;;  %vm3147_vm14 = vweird.f32 %v4303_v5 }
 0x980   : > { %4304 = vrsqrt.f32 %v3097_v31  ;;  %vm3148_vm0 = vmor %vm3146_vm15, %vm3147_vm14  ;;  %vm3156_vm2 = vweird.f32 %v3097_v31 }
 0x981   : > { %v3142_v33 = vmul.f32 %v4303_v5, %v3141_v37  ;;  %v3194_v52 = vmul.f32 %v5812_v54, %v3183_v41 }
 0x983   : > { %v3143_v29 = vmul.f32 0.5, %v3142_v33  ;;  %v3205_v7 = vadd.f32 %v5817_v36, %v3194_v52 }
 0x985   : > { %v3144_v32 = vsub.f32 1.5, %v3143_v29  ;;  %3213 = vst [vmem:[%s5824_s26 + $0x18] sm:$0xff] %v3205_v7 }
 0x986   : > { %v4305_v17 = vpop.eup %4304 }
 0x987   : > { %v3145_v8 = vmul.f32 %v4303_v5, %v3144_v32  ;;  %v3151_v43 = vmul.f32 %v4305_v17, %v3097_v31  ;;  %vm3157_vm1 = vweird.f32 %v4305_v17 }
 0x988   : > { %vm3158_vm3 = vmor %vm3156_vm2, %vm3157_vm1 }
 0x989   : > { %v3149_v50 = vsel %vm3148_vm0, %v4303_v5, %v3145_v8  ;;  %v3152_v47 = vmul.f32 %v4305_v17, %v3151_v43 }
 0x98a   : > { %v3184_v2 = vmul.f32 %v3149_v50, %v5788_v19 }
 0x98b   : > { %v3153_v12 = vmul.f32 0.5, %v3152_v47 }
 0x98c   : > { %v3195_v20 = vmul.f32 %v5812_v54, %v3184_v2 }
 0x98d   : > { %v3154_v11 = vsub.f32 1.5, %v3153_v12 }
 0x98e   : > { %v3206_v49 = vadd.f32 %v5817_v36, %v3195_v20 }
 0x98f   : > { %v3155_v53 = vmul.f32 %v4305_v17, %v3154_v11 }
 0x990   : > { %3214 = vst [vmem:[%s5824_s26 + $0x20] sm:$0xff] %v3206_v49 }
 0x991   : > { %v3159_v55 = vsel %vm3158_vm3, %v4305_v17, %v3155_v53 }
 0x992   : > { %v3185_v58 = vmul.f32 %v3159_v55, %v5793_v56 }
 0x994   : > { %v3196_v61 = vmul.f32 %v5812_v54, %v3185_v58 }
 0x996   : > { %v3207_v1 = vadd.f32 %v5817_v36, %v3196_v61 }
 0x998   : > { %3215 = vst [vmem:[%s5824_s26 + $0x28] sm:$0xff] %v3207_v1 }
 0x9bf   : > { %v3081_v19 = vpop.xlane.xlu1 %3080 }
 0x9c0   : > { %v3090_v6 = vmul.f32 %v3081_v19, %v4989_v13 }
 0x9c2   : > { %v3098_v45 = vadd.f32 1e-05, %v3090_v6 }
 0x9c4   : > { %4306 = vrsqrt.f32 %v3098_v45  ;;  %vm3166_vm5 = vweird.f32 %v3098_v45 }
 0x9c7   : > { %v3083_v23 = vpop.xlane.xlu0 %3082 }
 0x9c8   : > { %v3091_v0 = vmul.f32 %v3083_v23, %v4989_v13 }
 0x9ca   : > { %v4307_v9 = vpop.eup %4306  ;;  %v3099_v4 = vadd.f32 1e-05, %v3091_v0 }
 0x9cb   : > { %v3161_v39 = vmul.f32 %v4307_v9, %v3098_v45  ;;  %vm3167_vm4 = vweird.f32 %v4307_v9 }
 0x9cc   : > { %4308 = vrsqrt.f32 %v3099_v4  ;;  %vm3168_vm6 = vmor %vm3166_vm5, %vm3167_vm4  ;;  %vm3176_vm8 = vweird.f32 %v3099_v4 }
 0x9cd   : > { %v3162_v34 = vmul.f32 %v4307_v9, %v3161_v39 }
 0x9cf   : > { %v3163_v56 = vmul.f32 0.5, %v3162_v34 }
 0x9d1   : > { %v3164_v22 = vsub.f32 1.5, %v3163_v56 }
 0x9d2   : > { %v4309_v38 = vpop.eup %4308 }
 0x9d3   : > { %v3165_v28 = vmul.f32 %v4307_v9, %v3164_v22  ;;  %v3171_v26 = vmul.f32 %v4309_v38, %v3099_v4  ;;  %vm3177_vm7 = vweird.f32 %v4309_v38 }
 0x9d4   : > { %vm3178_vm9 = vmor %vm3176_vm8, %vm3177_vm7 }
 0x9d5   : > { %v3169_v59 = vsel %vm3168_vm6, %v4307_v9, %v3165_v28  ;;  %v3172_v60 = vmul.f32 %v4309_v38, %v3171_v26 }
 0x9d6   : > { %v3186_v13 = vmul.f32 %v3169_v59, %v5799_v57 }
 0x9d7   : > { %v3173_v48 = vmul.f32 0.5, %v3172_v60 }
 0x9d8   : > { %v3197_v40 = vmul.f32 %v5812_v54, %v3186_v13 }
 0x9d9   : > { %v3174_v25 = vsub.f32 1.5, %v3173_v48 }
 0x9da   : > { %v3208_v18 = vadd.f32 %v5817_v36, %v3197_v40 }
 0x9db   : > { %v3175_v3 = vmul.f32 %v4309_v38, %v3174_v25 }
 0x9dc   : > { %3216 = vst [vmem:[%s5824_s26 + $0x30] sm:$0xff] %v3208_v18 }
 0x9dd   : > { %v3179_v57 = vsel %vm3178_vm9, %v4309_v38, %v3175_v3 }
 0x9de   : > { %v3187_v46 = vmul.f32 %v3179_v57, %v5805_v35 }
 0x9e0   : > { %v3198_v27 = vmul.f32 %v5812_v54, %v3187_v46 }
 0x9e2   : > { %v3209_v62 = vadd.f32 %v5817_v36, %v3198_v27 }
 0x9e4   : > { %3217 = vst [vmem:[%s5824_s26 + $0x38] sm:$0xff] %v3209_v62 }
 0x9e5   : > { %4645 = shalt.err (!%p4642_p9)
}
 0x9e6   : > { %s4725_s23 = smov 128   ;;  %s4726_s26 = smov 8  }
 0x9e7   : > { %3993 = dma.vmem_to_hbm [thread:$0]  (%p4917_p0), %s3232_s3, 1024, %s3234_s25, %s3219_s30, %s4725_s23, %s4725_s23, %s4726_s26  }
 0x9e8 PF: > { %s3248_s5 = sand.u32 1, %s4692_s18   ;;  %p5939_p10 = scmp.ge.s32.totalorder %s4704_s21, 2 }
 0x9e9   : > { %s3249_s17 = scalar_lea.sflag [#allocation4], %s3248_s5 }
 0x9ea   : > { %p4028_p11 = pnand %p5939_p10, %p4923_p6 }
 0x9ec   : > { %p4029_p12 = pneg %p4028_p11 }
 0x9ee   : > { %4687 = dma.done.wait (%p4029_p12), %s3249_s17, 1024  }
 0x9ef   : > { %4689 = vsyncadd (%p4029_p12), %s3249_s17, 4294966272  ;;  %p33_p2 = scmp.ge.s32.totalorder %s4893_s15, 4   ;;  %s5940_s18 = smov %s4696_s19 }
 0x9f0   : > { %s5941_s19 = smov %s4700_s20  ;;  %s5942_s20 = smov %s4905_s27 }
 0x9f1   : > { %s5943_s21 = smov %s4893_s15  ;;  %35 = sbr.rel (!%p33_p2) target bundleno = 21 (0x15), region = 161 }
 0x9f6   :  { %3255 = vsyncpa [#allocation3], 1 }
 0x9f7   :  { %3257 = vsyncpa [#allocation3 + $0x1], 1 }
 0x9f8   :  { %3258 = vsyncpa [#allocation6], 1 }
 0x9f9   :  { %3259 = vsyncpa [#allocation9], 1 }
 0x9fa   :  { %3260 = vsyncpa [#allocation12], 1 }
 0x9fb   :  { %3261 = vsyncpa [#allocation15], 1 }
 0x9fc   :  { %3262 = vsyncpa [#allocation18], 1 }
 0x9fd   :  { %3263 = vsyncpa [#allocation4], 1 }
 0x9fe   :  { %3265 = vsyncpa [#allocation4 + $0x1], 1 }

// kernel: tpu_custom_call.1
= control target key start
LH: loop header
LB: loop body
LE: loop exit
PB: predicated region body
PF: predicated region fallthrough
CT: control target
= control target key end

     0   :  { %s5895_s0 = inlined_call_operand.hbm [shape: f32[128,128], index: 0, kind: input, shape index: {}]   ;;  %s5896_s1 = inlined_call_operand.hbm [shape: f32[1,128], index: 1, kind: input, shape index: {}]   ;;  %s5897_s2 = inlined_call_operand.hbm [shape: f32[1,128], index: 2, kind: input, shape index: {}]   ;;  %s5898_s3 = inlined_call_operand.hbm [shape: bf16[128,384], index: 3, kind: input, shape index: {}]   ;;  %s5899_s4 = inlined_call_operand.vmem [shape: f32[1,384], index: 4, kind: input, shape index: {}]   ;;  %s5900_s5 = inlined_call_operand.hbm [shape: bf16[128,128], index: 5, kind: input, shape index: {}]   ;;  %s5901_s6 = inlined_call_operand.hbm [shape: f32[1,128], index: 6, kind: input, shape index: {}]   ;;  %s5902_s7 = inlined_call_operand.hbm [shape: f32[1,128], index: 7, kind: input, shape index: {}]   ;;  %s5903_s8 = inlined_call_operand.hbm [shape: f32[1,128], index: 8, kind: input, shape index: {}]   ;;  %s5904_s9 = inlined_call_operand.hbm [shape: bf16[128,512], index: 9, kind: input, shape index: {}]   ;;  %s5905_s10 = inlined_call_operand.vmem [shape: f32[1,512], index: 10, kind: input, shape index: {}]   ;;  %s5906_s11 = inlined_call_operand.hbm [shape: bf16[512,128], index: 11, kind: input, shape index: {}]   ;;  %s5907_s12 = inlined_call_operand.vmem [shape: f32[1,128], index: 12, kind: input, shape index: {}]   ;;  %s5908_s13 = inlined_call_operand.vmem [shape: f32[1,128], index: 13, kind: input, shape index: {}]   ;;  %s5909_s14 = inlined_call_operand.vmem [shape: f32[1,128], index: 14, kind: input, shape index: {}]   ;;  %s5910_s15 = inlined_call_operand.hbm [shape: f32[128,128], index: 15, kind: output, shape index: {}]  }
   0x1   :  { %5912 = sst [smem:[#allocation27_spill]] %s5896_s1 }
   0x2   :  { %5913 = sst [smem:[#allocation28_spill]] %s5897_s2 }
   0x3   :  { %5914 = sst [smem:[#allocation29_spill]] %s5898_s3 }
   0x4   :  { %5915 = sst [smem:[#allocation30_spill]] %s5900_s5 }
   0x5   :  { %5916 = sst [smem:[#allocation31_spill]] %s5901_s6 }
   0x6   :  { %5917 = sst [smem:[#allocation32_spill]] %s5905_s10 }
   0x7   :  { %5918 = sst [smem:[#allocation33_spill]] %s5907_s12 }
   0x8   :  { %5919 = sst [smem:[#allocation34_spill]] %s5908_s13 }
   0x9   :  { %5920 = sst [smem:[#allocation35_spill]] %s5909_s14 }
   0xa   :  { %5921 = sst [smem:[#allocation36_spill]] %s5910_s15 }
   0xb   :  { %20 = vsyncpa [#allocation3], 0 }
   0xc   :  { %22 = vsyncpa [#allocation3 + $0x1], 0 }
   0xd   :  { %23 = vsyncpa [#allocation6], 0 }
   0xe   :  { %24 = vsyncpa [#allocation9], 0 }
   0xf   :  { %25 = vsyncpa [#allocation12], 0 }
  0x10   :  { %26 = vsyncpa [#allocation15], 0 }
  0x11   :  { %27 = vsyncpa [#allocation18], 0 }
  0x12   :  { %28 = vsyncpa [#allocation4], 0 }
  0x13   :  { %30 = vsyncpa [#allocation4 + $0x1], 0  ;;  %s4807_s18 = smov 0   ;;  %s4809_s19 = smov 0  }
  0x14   :  { %s4811_s20 = smov 0   ;;  %s4813_s21 = smov 0  }
  0x15 LB: > { %s5922_s1 = sld [smem:[#allocation27_spill]]  ;;  %s4831_s25 = sadd.s32 4294967295, %s4704_s21   ;;  %s4704_s21 = sphi %s4813_s21, %s5943_s21   ;;  %s4700_s20 = sphi %s4811_s20, %s5942_s20   ;;  %s4696_s19 = sphi %s4809_s19, %s5941_s19   ;;  %s4692_s18 = sphi %s4807_s18, %s5940_s18  }
  0x16   : > { %p3394_p0 = scmp.ge.s32.totalorder %s4704_s21, 1  ;;  %p57_p1 = scmp.eq.s32.totalorder %s4831_s25, 0 }
  0x17   : > { %p387_p2 = scmp.lt.s32.totalorder %s4704_s21, 3  ;;  %s4706_s27 = smov [#allocation5]  }
  0x18   : > { %s401_s28 = sshll.u32 %s4706_s27, 4  ;;  %s5924_s3 = sld [smem:[#allocation29_spill]]  ;;  %s402_s28 = int_to_ptr.vmem [resolvable:$true] %s401_s28 }
  0x19   : > { %p4836_p3 = pnand %p3394_p0, %p387_p2  ;;  %s4707_s22 = smov [#allocation8]  }
  0x1a   : > { %s424_s23 = sshll.u32 %s4707_s22, 4  ;;  %s4708_s27 = smov 192   ;;  %s425_s23 = int_to_ptr.vmem [resolvable:$true] %s424_s23 }
  0x1b   : > { %s399_s24 = sshll.u32 %s5922_s1, 4  ;;  %p3995_p5 = pneg %p4836_p3  ;;  %s400_s24 = int_to_ptr.hbm [resolvable:$true] %s399_s24 }
  0x1c   : > { %s4709_s1 = smov 12   ;;  %s5926_s6 = sld [smem:[#allocation31_spill]] }
  0x1d   : > { %p4848_p6 = pnand %p3995_p5, %p57_p1  ;;  %s4710_s15 = smov [#allocation11]  }
  0x1e   : > { %s422_s16 = sshll.u32 %s5924_s3, 4  ;;  %s456_s14 = sshll.u32 %s4710_s15, 4  ;;  %s423_s16 = int_to_ptr.hbm [resolvable:$true] %s422_s16  ;;  %s457_s14 = int_to_ptr.vmem [resolvable:$true] %s456_s14 }
  0x1f   : > { %3998 = dma.hbm_to_vmem [thread:$0]  (!%p4848_p6), %s400_s24, 16, %s402_s28, [#allocation6]  }
  0x20   : > { %4004 = dma.hbm_to_vmem [thread:$0]  (!%p4848_p6), %s423_s16, 3072, %s425_s23, [#allocation9], %s4708_s27, %s4708_s27, %s4709_s1  }
  0x21   : > { %s478_s22 = sshll.u32 %s5903_s8, 4  ;;  %s4711_s24 = smov [#allocation14]   ;;  %s479_s22 = int_to_ptr.hbm [resolvable:$true] %s478_s22 }
  0x22   : > { %s454_s3 = sshll.u32 %s5926_s6, 4  ;;  %s480_s28 = sshll.u32 %s4711_s24, 4  ;;  %s455_s3 = int_to_ptr.hbm [resolvable:$true] %s454_s3  ;;  %s481_s28 = int_to_ptr.vmem [resolvable:$true] %s480_s28 }
  0x23   : > { %4010 = dma.hbm_to_vmem [thread:$0]  (!%p4848_p6), %s455_s3, 16, %s457_s14, [#allocation12]  }
  0x24   : > { %s5927_s2 = sld [smem:[#allocation28_spill]]  ;;  %s4712_s12 = smov [#allocation7]  }
  0x25   : > { %4016 = dma.hbm_to_vmem [thread:$0]  (!%p4848_p6), %s479_s22, 16, %s481_s28, [#allocation15]  }
  0x26   : > { %s5928_s5 = sld [smem:[#allocation30_spill]]  ;;  %s413_s13 = sshll.u32 %s4712_s12, 4  ;;  %s414_s13 = int_to_ptr.vmem [resolvable:$true] %s413_s13 }
  0x27   : > { %s4713_s3 = smov [#allocation10]   ;;  %s4714_s10 = smov 64  }
  0x28   : > { %s441_s14 = sshll.u32 %s4713_s3, 4  ;;  %s4715_s29 = smov 4   ;;  %s442_s14 = int_to_ptr.vmem [resolvable:$true] %s441_s14 }
  0x29   : > { %s466_s24 = sshll.u32 %s5902_s7, 4  ;;  %s4716_s28 = smov [#allocation13]   ;;  %s467_s24 = int_to_ptr.hbm [resolvable:$true] %s466_s24 }
  0x2a   : > { %s411_s16 = sshll.u32 %s5927_s2, 4  ;;  %s468_s1 = sshll.u32 %s4716_s28, 4  ;;  %s412_s16 = int_to_ptr.hbm [resolvable:$true] %s411_s16  ;;  %s469_s1 = int_to_ptr.vmem [resolvable:$true] %s468_s1 }
  0x2b   : > { %4001 = dma.hbm_to_vmem [thread:$0]  (!%p4848_p6), %s412_s16, 16, %s414_s13, [#allocation6]  }
  0x2c   : > { %s439_s27 = sshll.u32 %s5928_s5, 4  ;;  %s489_s16 = sshll.u32 %s5904_s9, 4  ;;  %s440_s27 = int_to_ptr.hbm [resolvable:$true] %s439_s27  ;;  %s490_s16 = int_to_ptr.hbm [resolvable:$true] %s489_s16 }
  0x2d   : > { %4007 = dma.hbm_to_vmem [thread:$0]  (!%p4848_p6), %s440_s27, 1024, %s442_s14, [#allocation9], %s4714_s10, %s4714_s10, %s4715_s29  }
  0x2e   : > { %4013 = dma.hbm_to_vmem [thread:$0]  (!%p4848_p6), %s467_s24, 16, %s469_s1, [#allocation12]  }
  0x2f   : > { %s4717_s27 = smov [#allocation16]   ;;  %s4718_s13 = smov 256  }
  0x30   : > { %s491_s12 = sshll.u32 %s4717_s27, 4  ;;  %s4719_s3 = smov 16   ;;  %s492_s12 = int_to_ptr.vmem [resolvable:$true] %s491_s12 }
  0x31   : > { %4019 = dma.hbm_to_vmem [thread:$0]  (!%p4848_p6), %s490_s16, 4096, %s492_s12, [#allocation15], %s4718_s13, %s4718_s13, %s4719_s3  }
  0x32   : > { %s506_s22 = sshll.u32 %s5906_s11, 4  ;;  %s4720_s24 = smov [#allocation17]   ;;  %s507_s22 = int_to_ptr.hbm [resolvable:$true] %s506_s22 }
  0x33   : > { %s508_s28 = sshll.u32 %s4720_s24, 4  ;;  %s3393_s1 = sadd.s32 4294967294, %s4704_s21   ;;  %s509_s28 = int_to_ptr.vmem [resolvable:$true] %s508_s28 }
  0x34   : > { %4022 = dma.hbm_to_vmem [thread:$0]  (!%p4848_p6), %s507_s22, 4096, %s509_s28, [#allocation18], %s4714_s10, %s4714_s10, %s4715_s29  }
  0x35   : > { %s4893_s15 = sadd.s32 1, %s4704_s21   ;;  %s43_s23 = sadd.s32 1, %s4700_s20 }
  0x36   : > { %s40_s16 = ssub.s32 %s4704_s21, %s4893_s15  ;;  %p50_p7 = scmp.ne.s32.totalorder %s4700_s20, %s4696_s19 }
  0x37   : > { %p41_p8 = scmp.eq.s32.totalorder %s40_s16, 0  ;;  %p51_p9 = scmp.eq.s32.totalorder %s4704_s21, 0 }
  0x38   : > { %p56_p10 = scmp.ne.s32.totalorder %s4696_s19, %s4692_s18  ;;  %p374_p11 = scmp.eq.s32.totalorder %s4831_s25, 1 }
  0x39   : > { %s4905_s27 = scalar_select %p41_p8, %s4700_s20, %s43_s23  }
  0x3a   : > { %p4907_p12 = por %p51_p9, %p50_p7  ;;  %p4913_p13 = por %p57_p1, %p56_p10 }
  0x3b   : > { %p4917_p0 = por %p374_p11, %p50_p7  ;;  %p380_p2 = scmp.eq.s32.totalorder %s3393_s1, 1 }
  0x3c   : > { %p4040_p5 = scmp.lt.s32.totalorder %s4704_s21, 2  ;;  %s531_s29 = sand.u32 1, %s4700_s20  }
  0x3d   : > { %p4923_p6 = por %p380_p2, %p56_p10  ;;  %s3405_s3 = sshll.u32 %s531_s29, 6 }
  0x3e   : > { %s3857_s14 = sshll.u32 %s4704_s21, 6  ;;  %s535_s23 = scalar_lea.vmem [#allocation2], %s3405_s3 }
  0x3f   : > { %s540_s24 = scalar_lea.hbm %s5895_s0, %s3857_s14  ;;  %s543_s16 = sshll.u32 %s535_s23, 4  ;;  %s544_s16 = int_to_ptr.vmem [resolvable:$true] %s543_s16 }
  0x40   : > { %s541_s28 = sshll.u32 %s540_s24, 4  ;;  %p4933_p7 = pnand %p4040_p5, %p4907_p12  ;;  %s542_s28 = int_to_ptr.hbm [resolvable:$true] %s541_s28 }
  0x41   : > { %s532_s2 = scalar_lea.sflag [#allocation3], %s531_s29  ;;  %s4588_s5 = sshra.s32 %s542_s28, 4  ;;  %s4589_s5 = int_to_ptr.hbm [resolvable:$true] %s4588_s5 }
  0x42   : > { %s4590_s6 = scalar_lea.hbm %s4589_s5, 64  ;;  %p4592_p9 = pneg %p4933_p7 }
  0x43   : > { %p4591_p8 = scmp.ne.s32.totalorder %s4589_s5, %s4590_s6  ;;  %s4595_s30 = scalar_lea.hbm %s5895_s0, 128 }
  0x44   : > { %p4596_p12 = scmp.lt.s32.totalorder %s4589_s5, %s5895_s0  ;;  %p4597_p2 = scmp.lt.s32.totalorder %s4595_s30, %s4590_s6 }
  0x45   : > { %p4593_p10 = pnand %p4592_p9, %p4591_p8 }
  0x46   : > { %p4598_p5 = por %p4597_p2, %p4596_p12 }
  0x47   : > { %p4594_p11 = pneg %p4593_p10 }
  0x49   : > { %p4599_p4 = pnand %p4598_p5, %p4594_p11 }
  0x4b   : > { %4602 = shalt.err (!%p4599_p4)
}
  0x4c   : > { %s4721_s29 = smov 128   ;;  %s4722_s24 = smov 8  }
  0x4d   : > { %4026 = dma.hbm_to_vmem [thread:$0]  (!%p4933_p7), %s542_s28, 1024, %s544_s16, %s532_s2, %s4721_s29, %s4721_s29, %s4722_s24  }
  0x4e   : > { %555 = sbr.rel (%p4836_p3) target bundleno = 2536 (0x9e8), region = 80  ;;  %s4950_s23 = sand.u32 (!%p4836_p3), 1, %s4696_s19  }
  0x4f   : > { %s3409_s5 = sshll.u32 (!%p4836_p3), %s4950_s23, 6  ;;  %s558_s6 = scalar_lea.sflag (!%p4836_p3), [#allocation3], %s4950_s23 }
  0x50   : > { %s4956_s14 = scalar_lea.vmem (!%p4836_p3), [#allocation2], %s3409_s5 }
  0x53   : > { %4663 = dma.done.wait (%p4913_p13), %s558_s6, 1024  }
  0x54   : > { %4665 = vsyncadd (%p4913_p13), %s558_s6, 4294966272 }
  0x55   : > { %4667 = dma.done.wait (%p57_p1), [#allocation6], 32  }
  0x56   : > { %4669 = vsyncadd (%p57_p1), [#allocation6], 4294967264 }
  0x57   : > { %4671 = dma.done.wait (%p57_p1), [#allocation9], 4096  }
  0x58   : > { %4673 = vsyncadd (%p57_p1), [#allocation9], 4294963200 }
  0x59   : > { %4675 = dma.done.wait (%p57_p1), [#allocation12], 32  }
  0x5a   : > { %4677 = vsyncadd (%p57_p1), [#allocation12], 4294967264 }
  0x5b   : > { %4679 = dma.done.wait (%p57_p1), [#allocation15], 4112  }
  0x5c   : > { %4681 = vsyncadd (%p57_p1), [#allocation15], 4294963184 }
  0x5d   : > { %4683 = dma.done.wait (%p57_p1), [#allocation18], 4096  }
  0x5e   : > { %4685 = vsyncadd (%p57_p1), [#allocation18], 4294963200  ;;  %v670_v0 = vld [vmem:[%s4956_s14 + $0x20] sm:$0xff]  ;;  %v668_v1 = vld [vmem:[%s4956_s14 + $0x10] sm:$0xff]  ;;  %v4723_v7 = vmov 128.0   ;;  %s4724_s17 = smov 64  }
  0x5f   : > { %v666_v2 = vld [vmem:[%s4956_s14] sm:$0xff]  ;;  %682 = vadd.xlane.f32.xlu2 %v670_v0  ;;  %678 = vadd.xlane.f32.xlu1 %v668_v1  ;;  %v671_v3 = vld [vmem:[%s4956_s14 + $0x28] sm:$0xff]  ;;  %v669_v4 = vld [vmem:[%s4956_s14 + $0x18] sm:$0xff]  ;;  %4132 = vrcp.f32 %v4723_v7  ;;  %s5934_s1 = sld [smem:[#allocation32_spill]]  ;;  %s5824_s26 = scalar_lea.vmem [#allocation19], %s3409_s5 }
  0x60   : > { %674 = vadd.xlane.f32.xlu0 %v666_v2  ;;  %v667_v5 = vld [vmem:[%s4956_s14 + $0x8] sm:$0xff]  ;;  %v672_v6 = vld [vmem:[%s4956_s14 + $0x30] sm:$0xff]  ;;  %v5007_v30 = vld [vmem:[%s4956_s14 + $0x38] sm:$0xff]  ;;  %s5935_s22 = sld [smem:[#allocation33_spill]]  ;;  %s3954_s5 = sshll.u32 %s4831_s25, 6 }
  0x61   : > { %v3506_v43 = vld [vmem:[#allocation8 + $0xa8] sm:$0xf]  ;;  %v3880_v44 = vld [vmem:[#allocation8 + $0xb0] sm:$0xf0]  ;;  %v3879_v45 = vld [vmem:[#allocation8 + $0xac] sm:$0xf] }
  0x62   : > { %v3507_v46 = vor.u32 %v3880_v44, %v3506_v43  ;;  %v3508_v47 = vld [vmem:[#allocation8 + $0xb4] sm:$0xf0]  ;;  %v3514_v48 = vld [vmem:[#allocation8 + $0xb0] sm:$0xf]  ;;  %v3881_v49 = vld [vmem:[#allocation8 + $0xb8] sm:$0xf0] }
  0x63   : > { %v3511_v50 = vor.u32 %v3879_v45, %v3508_v47  ;;  %v3515_v51 = vor.u32 %v3881_v49, %v3514_v48  ;;  %v3494_v52 = vld [vmem:[#allocation8 + $0x90] sm:$0xf]  ;;  %v3877_v53 = vld [vmem:[#allocation8 + $0x98] sm:$0xf0]  ;;  %v3876_v54 = vld [vmem:[#allocation8 + $0x94] sm:$0xf] }
  0x64   : > { %1034 = vmatpush.bf16.msra.mxu0 %v3507_v46  ;;  %v3495_v55 = vor.u32 %v3877_v53, %v3494_v52  ;;  %v3496_v56 = vld [vmem:[#allocation8 + $0x9c] sm:$0xf0]  ;;  %v3502_v57 = vld [vmem:[#allocation8 + $0x98] sm:$0xf]  ;;  %v3878_v58 = vld [vmem:[#allocation8 + $0xa0] sm:$0xf0] }
  0x65   : > { %v4133_v8 = vpop.eup %4132  ;;  %1063 = vmatpush.bf16.msra.mxu1 %v3511_v50  ;;  %1092 = vmatpush.bf16.msra.mxu2 %v3515_v51  ;;  %v3499_v59 = vor.u32 %v3876_v54, %v3496_v56  ;;  %v3503_v60 = vor.u32 %v3878_v58, %v3502_v57  ;;  %v3482_v61 = vld [vmem:[#allocation8 + $0x78] sm:$0xf]  ;;  %v3874_v62 = vld [vmem:[#allocation8 + $0x80] sm:$0xf0]  ;;  %v3873_v63 = vld [vmem:[#allocation8 + $0x7c] sm:$0xf] }
  0x66   : > { %v691_v9 = vmul.f32 128.0, %v4133_v8  ;;  %vm695_vm0 = vweird.f32 %v4133_v8  ;;  %v3871_v7 = vld [vmem:[#allocation8 + $0x68] sm:$0xf0]  ;;  %v3862_v43 = vld [vmem:[#allocation8 + $0x20] sm:$0xf0]  ;;  %s5936_s24 = sld [smem:[#allocation34_spill]] }
  0x67   : > { %684 = vadd.xlane.f32.xlu2 %v671_v3  ;;  %680 = vadd.xlane.f32.xlu1 %v669_v4  ;;  %v3861_v44 = vld [vmem:[#allocation8 + $0x1c] sm:$0xf]  ;;  %v3436_v46 = vld [vmem:[#allocation8 + $0x24] sm:$0xf0]  ;;  %v3442_v47 = vld [vmem:[#allocation8 + $0x20] sm:$0xf] }
  0x68   : > { %676 = vadd.xlane.f32.xlu0 %v667_v5  ;;  %v692_v10 = vsub.f32 1.0, %v691_v9  ;;  %1035 = vmatpush.bf16.msra.mxu0 %v3495_v55  ;;  %v3863_v48 = vld [vmem:[#allocation8 + $0x28] sm:$0xf0]  ;;  %v3439_v50 = vor.u32 %v3861_v44, %v3436_v46  ;;  %v3422_v53 = vld [vmem:[#allocation8] sm:$0xf]  ;;  %s5937_s2 = sld [smem:[#allocation35_spill]] }
  0x69   : > { %1064 = vmatpush.bf16.msra.mxu1 %v3499_v59  ;;  %1093 = vmatpush.bf16.msra.mxu2 %v3503_v60  ;;  %v3443_v51 = vor.u32 %v3863_v48, %v3442_v47  ;;  %v3859_v54 = vld [vmem:[#allocation8 + $0x8] sm:$0xf0]  ;;  %v3858_v55 = vld [vmem:[#allocation8 + $0x4] sm:$0xf]  ;;  %v3424_v58 = vld [vmem:[#allocation8 + $0xc] sm:$0xf0] }
  0x6a   : > { %v693_v11 = vmul.f32 %v4133_v8, %v692_v10  ;;  %v3472_v10 = vld [vmem:[#allocation8 + $0x6c] sm:$0xf0]  ;;  %v3423_v57 = vor.u32 %v3859_v54, %v3422_v53  ;;  %v3430_v59 = vld [vmem:[#allocation8 + $0x8] sm:$0xf]  ;;  %v3427_v60 = vor.u32 %v3858_v55, %v3424_v58  ;;  %s5938_s16 = sld [smem:[#allocation36_spill]]  ;;  %s3231_s3 = sshll.u32 %s5824_s26, 4  ;;  %s3232_s3 = int_to_ptr.vmem [resolvable:$true] %s3231_s3 }
  0x6b   : > { %s3219_s30 = scalar_lea.sflag [#allocation4], %s4950_s23 }
  0x6c   : > { %v694_v12 = vadd.f32 %v4133_v8, %v693_v11  ;;  %v3478_v11 = vld [vmem:[#allocation8 + $0x68] sm:$0xf] }
  0x6e   : > { %v4989_v13 = vsel %vm695_vm0, %v4133_v8, %v694_v12  ;;  %v3870_v8 = vld [vmem:[#allocation8 + $0x64] sm:$0xf]  ;;  %v3872_v12 = vld [vmem:[#allocation8 + $0x70] sm:$0xf0] }
  0x6f   : > { %686 = vadd.xlane.f32.xlu2 %v672_v6 }
  0x70   : > { %s4638_s6 = scalar_lea.hbm %s5938_s16, 128 }
  0xd2   : > { %v683_v14 = vpop.xlane.xlu2 %682  ;;  %v679_v15 = vpop.xlane.xlu1 %678 }
  0xd3   : > { %v675_v16 = vpop.xlane.xlu0 %674  ;;  %v701_v26 = vmul.f32 %v4989_v13, %v683_v14  ;;  %v699_v27 = vmul.f32 %v4989_v13, %v679_v15  ;;  %v3475_v14 = vor.u32 %v3870_v8, %v3472_v10  ;;  %v3479_v15 = vor.u32 %v3872_v12, %v3478_v11 }
  0xd4   : > { %v697_v17 = vmul.f32 %v4989_v13, %v675_v16  ;;  %v3458_v16 = vld [vmem:[#allocation8 + $0x48] sm:$0xf] }
  0xd5   : > { %v5011_v32 = vsub.f32 %v670_v0, %v701_v26  ;;  %v5013_v33 = vsub.f32 %v668_v1, %v699_v27  ;;  %v3483_v0 = vor.u32 %v3874_v62, %v3482_v61  ;;  %v3484_v1 = vld [vmem:[#allocation8 + $0x84] sm:$0xf0]  ;;  %v3446_v27 = vld [vmem:[#allocation8 + $0x30] sm:$0xf]  ;;  %v3860_v61 = vld [vmem:[#allocation8 + $0x10] sm:$0xf0] }
  0xd6   : > { %v4992_v18 = vsub.f32 %v666_v2, %v697_v17  ;;  %v3490_v2 = vld [vmem:[#allocation8 + $0x80] sm:$0xf]  ;;  %v3868_v17 = vld [vmem:[#allocation8 + $0x50] sm:$0xf0]  ;;  %v3431_v62 = vor.u32 %v3860_v61, %v3430_v59 }
  0xd7   : > { %v717_v38 = vmul.f32 %v5011_v32, %v5011_v32  ;;  %v715_v39 = vmul.f32 %v5013_v33, %v5013_v33  ;;  %1036 = vmatpush.bf16.msra.mxu0 %v3483_v0 }
  0xd8   : > { %v713_v19 = vmul.f32 %v4992_v18, %v4992_v18 }
  0xda   : > { %721 = vadd.xlane.f32.xlu0 %v713_v19  ;;  %v685_v20 = vpop.xlane.xlu2 %684  ;;  %v681_v21 = vpop.xlane.xlu1 %680  ;;  %v3867_v19 = vld [vmem:[#allocation8 + $0x4c] sm:$0xf] }
  0xdb   : > { %v700_v22 = vmul.f32 %v4989_v13, %v681_v21  ;;  %v677_v23 = vpop.xlane.xlu0 %676  ;;  %v702_v37 = vmul.f32 %v4989_v13, %v685_v20  ;;  %v3459_v20 = vor.u32 %v3868_v17, %v3458_v16  ;;  %v3460_v21 = vld [vmem:[#allocation8 + $0x54] sm:$0xf0] }
  0xdc   : > { %v698_v24 = vmul.f32 %v4989_v13, %v677_v23  ;;  %v3869_v23 = vld [vmem:[#allocation8 + $0x58] sm:$0xf0] }
  0xdd   : > { %v4998_v25 = vsub.f32 %v669_v4, %v700_v22  ;;  %v5026_v41 = vsub.f32 %v671_v3, %v702_v37  ;;  %v3875_v3 = vld [vmem:[#allocation8 + $0x88] sm:$0xf0]  ;;  %v3487_v4 = vor.u32 %v3873_v63, %v3484_v1  ;;  %v3466_v22 = vld [vmem:[#allocation8 + $0x50] sm:$0xf]  ;;  %v3454_v37 = vld [vmem:[#allocation8 + $0x38] sm:$0xf] }
  0xde   : > { %v5002_v28 = vsub.f32 %v667_v5, %v698_v24  ;;  %v3491_v5 = vor.u32 %v3875_v3, %v3490_v2  ;;  %v3463_v24 = vor.u32 %v3867_v19, %v3460_v21  ;;  %v3467_v26 = vor.u32 %v3869_v23, %v3466_v22 }
  0xdf   : > { %v716_v29 = vmul.f32 %v4998_v25, %v4998_v25  ;;  %v718_v42 = vmul.f32 %v5026_v41, %v5026_v41  ;;  %1065 = vmatpush.bf16.msra.mxu1 %v3487_v4 }
  0xe0   : > { %v714_v31 = vmul.f32 %v5002_v28, %v5002_v28  ;;  %1094 = vmatpush.bf16.msra.mxu2 %v3491_v5 }
  0xe1   : > { %727 = vadd.xlane.f32.xlu2 %v716_v29  ;;  %v3865_v29 = vld [vmem:[#allocation8 + $0x38] sm:$0xf0] }
  0xe2   : > { %688 = vadd.xlane.f32.xlu0 %v5007_v30  ;;  %723 = vadd.xlane.f32.xlu1 %v714_v31  ;;  %v687_v34 = vpop.xlane.xlu2 %686  ;;  %v3864_v31 = vld [vmem:[#allocation8 + $0x34] sm:$0xf] }
  0xe3   : > { %v703_v35 = vmul.f32 %v4989_v13, %v687_v34  ;;  %1066 = vmatpush.bf16.msra.mxu1 %v3475_v14  ;;  %v3447_v34 = vor.u32 %v3865_v29, %v3446_v27 }
  0xe4   : > { %1095 = vmatpush.bf16.msra.mxu2 %v3479_v15 }
  0xe5   : > { %v5017_v36 = vsub.f32 %v672_v6, %v703_v35  ;;  %v3470_v6 = vld [vmem:[#allocation8 + $0x60] sm:$0xf] }
  0xe6   : > { %v3471_v9 = vor.u32 %v3871_v7, %v3470_v6  ;;  %v3448_v35 = vld [vmem:[#allocation8 + $0x3c] sm:$0xf0] }
  0xe7   : > { %v719_v40 = vmul.f32 %v5017_v36, %v5017_v36  ;;  %1067 = vmatpush.bf16.msra.mxu1 %v3463_v24 }
  0xe8   : > { %1037 = vmatpush.bf16.msra.mxu0 %v3471_v9  ;;  %1096 = vmatpush.bf16.msra.mxu2 %v3467_v26 }
  0xe9   : > { %733 = vadd.xlane.f32.xlu2 %v719_v40 }
  0xea   : > { %729 = vadd.xlane.f32.xlu0 %v717_v38  ;;  %725 = vadd.xlane.f32.xlu1 %v715_v39  ;;  %v3866_v38 = vld [vmem:[#allocation8 + $0x40] sm:$0xf0]  ;;  %v3451_v39 = vor.u32 %v3864_v31, %v3448_v35 }
  0xeb   : > { %v3455_v40 = vor.u32 %v3866_v38, %v3454_v37 }
  0xec   : > { %1038 = vmatpush.bf16.msra.mxu0 %v3459_v20  ;;  %1068 = vmatpush.bf16.msra.mxu1 %v3451_v39 }
  0xed   : > { %1097 = vmatpush.bf16.msra.mxu2 %v3455_v40 }
  0xf0   : > { %1039 = vmatpush.bf16.msra.mxu0 %v3447_v34  ;;  %1069 = vmatpush.bf16.msra.mxu1 %v3439_v50 }
  0xf1   : > { %1098 = vmatpush.bf16.msra.mxu2 %v3443_v51 }
  0xf2   : > { %731 = vadd.xlane.f32.xlu1 %v718_v42  ;;  %v3434_v42 = vld [vmem:[#allocation8 + $0x18] sm:$0xf] }
  0xf3   : > { %v3435_v45 = vor.u32 %v3862_v43, %v3434_v42 }
  0xf4   : > { %1070 = vmatpush.bf16.msra.mxu1 %v3427_v60 }
  0xf5   : > { %1040 = vmatpush.bf16.msra.mxu0 %v3435_v45  ;;  %1099 = vmatpush.bf16.msra.mxu2 %v3431_v62  ;;  %v5054_v45 = vld [vmem:[#allocation5] ss:$0 sm:$0xff] }
  0xf9   : > { %1041 = vmatpush.bf16.msra.mxu0 %v3423_v57 }
 0x14d   : > { %v722_v49 = vpop.xlane.xlu0 %721 }
 0x14e   : > { %v737_v52 = vmul.f32 %v722_v49, %v4989_v13 }
 0x150   : > { %v745_v56 = vadd.f32 1e-05, %v737_v52  ;;  %v5058_v52 = vld [vmem:[#allocation7] ss:$0 sm:$0xff] }
 0x152   : > { %4134 = vrsqrt.f32 %v745_v56  ;;  %vm759_vm2 = vweird.f32 %v745_v56 }
 0x154   : > { %v728_v63 = vpop.xlane.xlu2 %727 }
 0x155   : > { %v740_v0 = vmul.f32 %v728_v63, %v4989_v13  ;;  %v724_v1 = vpop.xlane.xlu1 %723  ;;  %v689_v2 = vpop.xlane.xlu0 %688 }
 0x156   : > { %v738_v3 = vmul.f32 %v724_v1, %v4989_v13  ;;  %v704_v4 = vmul.f32 %v4989_v13, %v689_v2 }
 0x157   : > { %v5034_v5 = vadd.f32 1e-05, %v740_v0 }
 0x158   : > { %v4135_v6 = vpop.eup %4134  ;;  %v746_v7 = vadd.f32 1e-05, %v738_v3  ;;  %v5037_v8 = vsub.f32 %v5007_v30, %v704_v4 }
 0x159   : > { %v754_v9 = vmul.f32 %v4135_v6, %v745_v56  ;;  %4136 = vrsqrt.f32 %v5034_v5  ;;  %vm760_vm1 = vweird.f32 %v4135_v6  ;;  %vm789_vm9 = vweird.f32 %v5034_v5 }
 0x15a   : > { %4138 = vrsqrt.f32 %v746_v7  ;;  %v720_v10 = vmul.f32 %v5037_v8, %v5037_v8  ;;  %vm761_vm3 = vmor %vm759_vm2, %vm760_vm1  ;;  %vm769_vm4 = vweird.f32 %v746_v7 }
 0x15b   : > { %v755_v11 = vmul.f32 %v4135_v6, %v754_v9 }
 0x15c   : > { %735 = vadd.xlane.f32.xlu0 %v720_v10 }
 0x15d   : > { %v756_v12 = vmul.f32 0.5, %v755_v11  ;;  %v726_v14 = vpop.xlane.xlu1 %725  ;;  %v730_v16 = vpop.xlane.xlu0 %729 }
 0x15e   : > { %v739_v15 = vmul.f32 %v726_v14, %v4989_v13  ;;  %v741_v22 = vmul.f32 %v730_v16, %v4989_v13 }
 0x15f   : > { %v5043_v17 = vpop.eup %4136  ;;  %v757_v19 = vsub.f32 1.5, %v756_v12 }
 0x160   : > { %v4139_v20 = vpop.eup %4138  ;;  %v747_v30 = vadd.f32 1e-05, %v739_v15  ;;  %v784_v24 = vmul.f32 %v5043_v17, %v5034_v5  ;;  %v5048_v29 = vadd.f32 1e-05, %v741_v22  ;;  %vm790_vm10 = vweird.f32 %v5043_v17 }
 0x161   : > { %v764_v21 = vmul.f32 %v4139_v20, %v746_v7  ;;  %v758_v23 = vmul.f32 %v4135_v6, %v757_v19  ;;  %vm770_vm5 = vweird.f32 %v4139_v20  ;;  %vm791_vm12 = vmor %vm789_vm9, %vm790_vm10  ;;  %vm1121_vm9 = vcmask 523264  }
 0x162   : > { %4140 = vrsqrt.f32 %v747_v30  ;;  %v785_v35 = vmul.f32 %v5043_v17, %v784_v24  ;;  %vm771_vm6 = vmor %vm769_vm4, %vm770_vm5  ;;  %vm779_vm7 = vweird.f32 %v747_v30  ;;  %vm799_vm15 = vweird.f32 %v5048_v29 }
 0x163   : > { %v765_v26 = vmul.f32 %v4139_v20, %v764_v21  ;;  %v762_v34 = vsel %vm761_vm3, %v4135_v6, %v758_v23  ;;  %4142 = vrsqrt.f32 %v5048_v29 }
 0x164   : > { %v833_v42 = vmul.f32 %v762_v34, %v4992_v18  ;;  %v786_v46 = vmul.f32 0.5, %v785_v35 }
 0x165   : > { %v766_v27 = vmul.f32 0.5, %v765_v26  ;;  %v732_v31 = vpop.xlane.xlu1 %731  ;;  %v734_v26 = vpop.xlane.xlu2 %733 }
 0x166   : > { %v742_v37 = vmul.f32 %v732_v31, %v4989_v13  ;;  %v844_v51 = vmul.f32 %v5054_v45, %v833_v42  ;;  %v787_v53 = vsub.f32 1.5, %v786_v46 }
 0x167   : > { %v767_v38 = vsub.f32 1.5, %v766_v27  ;;  %v743_v27 = vmul.f32 %v734_v26, %v4989_v13 }
 0x168   : > { %v4141_v39 = vpop.eup %4140  ;;  %v750_v40 = vadd.f32 1e-05, %v742_v37  ;;  %v855_v58 = vadd.f32 %v5058_v52, %v844_v51  ;;  %v788_v59 = vmul.f32 %v5043_v17, %v787_v53 }
 0x169   : > { %v768_v43 = vmul.f32 %v4139_v20, %v767_v38  ;;  %v774_v44 = vmul.f32 %v4141_v39, %v747_v30  ;;  %vm780_vm8 = vweird.f32 %v4141_v39  ;;  %v4143_v54 = vpop.eup %4142 }
 0x16a   : > { %4144 = vrsqrt.f32 %v750_v40  ;;  %vm781_vm11 = vmor %vm779_vm7, %vm780_vm8  ;;  %v794_v60 = vmul.f32 %v4143_v54, %v5048_v29  ;;  %v792_v1 = vsel %vm791_vm12, %v5043_v17, %v788_v59  ;;  %vm809_vm13 = vweird.f32 %v750_v40 }
 0x16b   : > { %v772_v47 = vsel %vm771_vm6, %v4139_v20, %v768_v43  ;;  %v775_v48 = vmul.f32 %v4141_v39, %v774_v44  ;;  %v836_v5 = vmul.f32 %v792_v1, %v4998_v25  ;;  %vm800_vm0 = vweird.f32 %v4143_v54 }
 0x16c   : > { %v834_v49 = vmul.f32 %v772_v47, %v5002_v28  ;;  %v795_v2 = vmul.f32 %v4143_v54, %v794_v60  ;;  %vm801_vm2 = vmor %vm799_vm15, %vm800_vm0  ;;  %v751_v29 = vadd.f32 1e-05, %v743_v27 }
 0x16d   : > { %v776_v50 = vmul.f32 0.5, %v775_v48  ;;  %v847_v10 = vmul.f32 %v5054_v45, %v836_v5 }
 0x16e   : > { %v845_v18 = vmul.f32 %v5054_v45, %v834_v49  ;;  %v796_v6 = vmul.f32 0.5, %v795_v2  ;;  %4146 = vrsqrt.f32 %v751_v29  ;;  %vm819_vm3 = vweird.f32 %v751_v29 }
 0x16f   : > { %v777_v55 = vsub.f32 1.5, %v776_v50 }
 0x170   : > { %v856_v56 = vadd.f32 %v5058_v52, %v845_v18  ;;  %v4145_v57 = vpop.eup %4144  ;;  %v797_v11 = vsub.f32 1.5, %v796_v6 }
 0x171   : > { %v778_v28 = vmul.f32 %v4141_v39, %v777_v55  ;;  %v804_v61 = vmul.f32 %v4145_v57, %v750_v40  ;;  %vm810_vm14 = vweird.f32 %v4145_v57 }
 0x172   : > { %v863_v62 = vpack.c.bf16 %v856_v56, %v855_v58  ;;  %vm811_vm1 = vmor %vm809_vm13, %vm810_vm14  ;;  %v798_v15 = vmul.f32 %v4143_v54, %v797_v11 }
 0x173   : > { %v782_v63 = vsel %vm781_vm11, %v4141_v39, %v778_v28  ;;  %v805_v0 = vmul.f32 %v4145_v57, %v804_v61 }
 0x174   : > { %1042 = vmatmul.bf16.vlgmr.msra.gmra.mxu0 %v863_v62  ;;  %1071 = vmatmul.bf16.vlgmr.msra.gmra.mxu1 %v863_v62  ;;  %v835_v3 = vmul.f32 %v782_v63, %v5013_v33  ;;  %v858_v33 = vadd.f32 %v5058_v52, %v847_v10  ;;  %v802_v17 = vsel %vm801_vm2, %v4143_v54, %v798_v15 }
 0x175   : > { %1100 = vmatmul.bf16.vlgmr.msra.gmra.mxu2 %v863_v62  ;;  %v806_v4 = vmul.f32 0.5, %v805_v0  ;;  %v837_v20 = vmul.f32 %v802_v17, %v5011_v32 }
 0x176   : > { %v846_v7 = vmul.f32 %v5054_v45, %v835_v3 }
 0x177   : > { %v807_v9 = vsub.f32 1.5, %v806_v4  ;;  %v848_v21 = vmul.f32 %v5054_v45, %v837_v20 }
 0x178   : > { %v857_v12 = vadd.f32 %v5058_v52, %v846_v7 }
 0x179   : > { %v808_v14 = vmul.f32 %v4145_v57, %v807_v9  ;;  %v859_v23 = vadd.f32 %v5058_v52, %v848_v21 }
 0x17a   : > { %v864_v25 = vpack.c.bf16 %v858_v33, %v857_v12 }
 0x17b   : > { %v812_v16 = vsel %vm811_vm1, %v4145_v57, %v808_v14 }
 0x17c   : > { %v838_v19 = vmul.f32 %v812_v16, %v5026_v41  ;;  %v4147_v41 = vpop.eup %4146 }
 0x17d   : > { %v814_v31 = vmul.f32 %v4147_v41, %v751_v29  ;;  %vm820_vm4 = vweird.f32 %v4147_v41 }
 0x17e   : > { %v849_v30 = vmul.f32 %v5054_v45, %v838_v19  ;;  %vm821_vm5 = vmor %vm819_vm3, %vm820_vm4 }
 0x17f   : > { %v815_v32 = vmul.f32 %v4147_v41, %v814_v31 }
 0x180   : > { %v860_v22 = vadd.f32 %v5058_v52, %v849_v30 }
 0x181   : > { %v816_v38 = vmul.f32 0.5, %v815_v32 }
 0x182   : > { %v865_v24 = vpack.c.bf16 %v860_v22, %v859_v23 }
 0x183   : > { %v817_v39 = vsub.f32 1.5, %v816_v38 }
 0x184   : > { %1047 = vmatmul.bf16.gmra.mxu0 %v864_v25  ;;  %1076 = vmatmul.bf16.gmra.mxu1 %v864_v25 }
 0x185   : > { %1105 = vmatmul.bf16.gmra.mxu2 %v864_v25  ;;  %v818_v42 = vmul.f32 %v4147_v41, %v817_v39 }
 0x187   : > { %v822_v46 = vsel %vm821_vm5, %v4147_v41, %v818_v42 }
 0x188   : > { %v839_v49 = vmul.f32 %v822_v46, %v5017_v36  ;;  %v662_v36 = vld [vmem:[%s5899_s4] sm:$0x7] }
 0x189   : > { %v5094_v58 = vperm.slane %v662_v36, 2  ;;  %v901_v63 = vperm.slane %v662_v36, 1  ;;  %v5101_v5 = vperm.slane %v662_v36, 0 }
 0x18a   : > { %v850_v18 = vmul.f32 %v5054_v45, %v839_v49 }
 0x18c   : > { %v861_v55 = vadd.f32 %v5058_v52, %v850_v18 }
 0x194   : > { %1052 = vmatmul.bf16.gmra.mxu0 %v865_v24  ;;  %1081 = vmatmul.bf16.gmra.mxu1 %v865_v24 }
 0x195   : > { %1110 = vmatmul.bf16.gmra.mxu2 %v865_v24 }
 0x1cf   : > { %v736_v34 = vpop.xlane.xlu0 %735 }
 0x1d0   : > { %v744_v35 = vmul.f32 %v736_v34, %v4989_v13 }
 0x1d2   : > { %v752_v37 = vadd.f32 1e-05, %v744_v35 }
 0x1d4   : > { %4148 = vrsqrt.f32 %v752_v37  ;;  %vm829_vm7 = vweird.f32 %v752_v37 }
 0x1da   : > { %v4149_v40 = vpop.eup %4148 }
 0x1db   : > { %v824_v43 = vmul.f32 %v4149_v40, %v752_v37  ;;  %vm830_vm6 = vweird.f32 %v4149_v40 }
 0x1dc   : > { %vm831_vm8 = vmor %vm829_vm7, %vm830_vm6 }
 0x1dd   : > { %v825_v44 = vmul.f32 %v4149_v40, %v824_v43 }
 0x1df   : > { %v826_v47 = vmul.f32 0.5, %v825_v44 }
 0x1e1   : > { %v827_v48 = vsub.f32 1.5, %v826_v47 }
 0x1e3   : > { %v828_v50 = vmul.f32 %v4149_v40, %v827_v48 }
 0x1e5   : > { %v832_v51 = vsel %vm831_vm8, %v4149_v40, %v828_v50 }
 0x1e6   : > { %v840_v53 = vmul.f32 %v832_v51, %v5037_v8 }
 0x1e8   : > { %v851_v54 = vmul.f32 %v5054_v45, %v840_v53 }
 0x1ea   : > { %v862_v56 = vadd.f32 %v5058_v52, %v851_v54 }
 0x1ec   : > { %v866_v57 = vpack.c.bf16 %v862_v56, %v861_v55 }
 0x1ee   : > { %1057 = vmatmul.bf16.gmra.mxu0 %v866_v57  ;;  %1086 = vmatmul.bf16.gmra.mxu1 %v866_v57 }
 0x1ef   : > { %1115 = vmatmul.bf16.gmra.mxu2 %v866_v57 }
 0x1f1   : > { %v5089_v28 = vpop.f32.mrf.mxu1  ;;  %v1043_v52 = vpop.f32.mrf.mxu0 }
 0x1f2   : > { %v5104_v6 = vadd.f32 %v1043_v52, %v5101_v5  ;;  %v1073_v37 = vadd.f32 %v5089_v28, %v901_v63 }
 0x1f8   : > { %v1101_v8 = vpop.f32.mrf.mxu2 }
 0x1f9   : > { %v5097_v59 = vadd.f32 %v1101_v8, %v5094_v58  ;;  %v1074_v45 = vpop.f32.mrf.mxu1  ;;  %v1045_v2 = vpop.f32.mrf.mxu0 }
 0x1fa   : > { %v1075_v41 = vadd.f32 %v1074_v45, %v901_v63  ;;  %v1046_v38 = vadd.f32 %v1045_v2, %v5101_v5 }
 0x200   : > { %v1103_v10 = vpop.f32.mrf.mxu2 }
 0x201   : > { %v1077_v60 = vpop.f32.mrf.mxu1  ;;  %v1048_v4 = vpop.f32.mrf.mxu0  ;;  %v5149_v40 = vadd.f32 %v1103_v10, %v5094_v58 }
 0x202   : > { %v1078_v3 = vadd.f32 %v1077_v60, %v901_v63  ;;  %v1049_v42 = vadd.f32 %v1048_v4, %v5101_v5 }
 0x208   : > { %v1106_v11 = vpop.f32.mrf.mxu2 }
 0x209   : > { %v1079_v61 = vpop.f32.mrf.mxu1  ;;  %v1050_v7 = vpop.f32.mrf.mxu0  ;;  %v5141_v39 = vadd.f32 %v1106_v11, %v5094_v58 }
 0x20a   : > { %v5109_v9 = vadd.f32 %v1050_v7, %v5101_v5  ;;  %v1080_v29 = vadd.f32 %v1079_v61, %v901_v63 }
 0x210   : > { %v1108_v12 = vpop.f32.mrf.mxu2 }
 0x211   : > { %v1082_v62 = vpop.f32.mrf.mxu1  ;;  %v1053_v14 = vpop.f32.mrf.mxu0  ;;  %v5136_v35 = vadd.f32 %v1108_v12, %v5094_v58 }
 0x212   : > { %v1083_v23 = vadd.f32 %v1082_v62, %v901_v63  ;;  %v1054_v43 = vadd.f32 %v1053_v14, %v5101_v5 }
 0x213   : > { %v4114_v12 = vpack.i.bf16 %v5141_v39, %v5136_v35 }
 0x218   : > { %v1111_v33 = vpop.f32.mrf.mxu2 }
 0x219   : > { %v1084_v0 = vpop.f32.mrf.mxu1  ;;  %v1055_v15 = vpop.f32.mrf.mxu0  ;;  %v5130_v34 = vadd.f32 %v1111_v33, %v5094_v58 }
 0x21a   : > { %v1085_v1 = vadd.f32 %v1084_v0, %v901_v63  ;;  %v1056_v46 = vadd.f32 %v1055_v15, %v5101_v5 }
 0x21c   : > { %1398 = vrot.lane.b32.xlu0 %v1085_v1, %s4724_s17 }
 0x220   : > { %v1113_v25 = vpop.f32.mrf.mxu2 }
 0x221   : > { %v5126_v32 = vadd.f32 %v1113_v25, %v5094_v58 }
 0x224   : > { %1392 = vrot.lane.b32.xlu0 %v1078_v3, %s4724_s17 }
 0x22c   : > { %1372 = vrot.lane.b32.xlu0 %v5104_v6, %s4724_s17 }
 0x234   : > { %1378 = vrot.lane.b32.xlu0 %v5109_v9, %s4724_s17 }
 0x26b   : > { %v1058_v16 = vpop.f32.mrf.mxu0  ;;  %v1087_v17 = vpop.f32.mrf.mxu1 }
 0x26c   : > { %v1059_v19 = vadd.f32 %v1058_v16, %v5101_v5  ;;  %v1088_v20 = vadd.f32 %v1087_v17, %v901_v63  ;;  %v4109_v16 = vpack.i.bf16 %v5130_v34, %v5126_v32 }
 0x26e   : > { %1400 = vrot.lane.b32.xlu2 %v1088_v20, %s4724_s17  ;;  %1384 = vrot.lane.b32.xlu0 %v1059_v19, %s4724_s17 }
 0x272   : > { %v1116_v30 = vpop.f32.mrf.mxu2 }
 0x273   : > { %v1089_v21 = vpop.f32.mrf.mxu1  ;;  %v1117_v26 = vadd.f32 %v1116_v30, %v5094_v58  ;;  %v1060_v44 = vpop.f32.mrf.mxu0 }
 0x274   : > { %v1090_v22 = vadd.f32 %v1089_v21, %v901_v63  ;;  %v1061_v47 = vadd.f32 %v1060_v44, %v5101_v5  ;;  %v4119_v21 = vpack.i.bf16 %v5097_v59, %v5149_v40 }
 0x276   : > { %1402 = vrot.lane.b32.xlu1 %v1090_v22, %s4724_s17  ;;  %3516 = vmatpush.xpose.msk.msra.mxu3 %vm1121_vm9, %v1090_v22 }
 0x277   : > { %1396 = vrot.lane.b32.xlu2 %v1083_v23, %s4724_s17 }
 0x27a   : > { %v1118_v24 = vpop.f32.mrf.mxu2  ;;  %3517 = vmatpush.xpose.msk.msra.mxu3 %vm1121_vm9, %v1088_v20 }
 0x27b   : > { %v1119_v27 = vadd.f32 %v1118_v24, %v5094_v58 }
 0x27d   : > { %1331 = vmatpush.msrb.mxu0 %v1119_v27  ;;  %v4104_v31 = vpack.i.bf16 %v1117_v26, %v1119_v27 }
 0x27e   : > { %3518 = vmatpush.xpose.msk.msra.mxu3 %vm1121_vm9, %v1085_v1  ;;  %1394 = vrot.lane.b32.xlu1 %v1080_v29, %s4724_s17 }
 0x27f   : > { %1332 = vmatpush.msrb.mxu0 %v1117_v26  ;;  %1390 = vrot.lane.b32.xlu2 %v1075_v41, %s4724_s17 }
 0x280   : > { %4105 = vrot.lane.b32.xlu0 %v4104_v31, %s4724_s17 }
 0x281   : > { %1333 = vmatpush.msrb.mxu0 %v5126_v32 }
 0x282   : > { %3519 = vmatpush.xpose.msk.msra.mxu3 %vm1121_vm9, %v1083_v23 }
 0x283   : > { %1334 = vmatpush.msrb.mxu0 %v5130_v34 }
 0x285   : > { %1335 = vmatpush.msrb.mxu0 %v5136_v35 }
 0x286   : > { %3520 = vmatpush.xpose.msk.msra.mxu3 %vm1121_vm9, %v1080_v29  ;;  %1388 = vrot.lane.b32.xlu1 %v1073_v37, %s4724_s17 }
 0x287   : > { %1336 = vmatpush.msrb.mxu0 %v5141_v39  ;;  %1374 = vrot.lane.b32.xlu2 %v1046_v38, %s4724_s17 }
 0x289   : > { %1337 = vmatpush.msrb.mxu0 %v5149_v40 }
 0x28a   : > { %3521 = vmatpush.xpose.msk.msra.mxu3 %vm1121_vm9, %v1078_v3 }
 0x28b   : > { %1338 = vmatpush.msrb.mxu0 %v5097_v59 }
 0x28e   : > { %3522 = vmatpush.xpose.msk.msra.mxu3 %vm1121_vm9, %v1075_v41  ;;  %1376 = vrot.lane.b32.xlu1 %v1049_v42, %s4724_s17  ;;  %v1399_v48 = vpop.permute.xlu0 %1398 }
 0x28f   : > { %1380 = vrot.lane.b32.xlu2 %v1054_v43, %s4724_s17 }
 0x292   : > { %3523 = vmatpush.xpose.msk.msra.mxu3 %vm1121_vm9, %v1073_v37 }
 0x295   : > { %3524 = vmatmul.msk.f32.vlgmr.msra.gmra.mxu3 %vm1121_vm9, %v5104_v6 }
 0x296   : > { %1382 = vrot.lane.b32.xlu1 %v1056_v46, %s4724_s17  ;;  %v1393_v49 = vpop.permute.xlu0 %1392 }
 0x297   : > { %1386 = vrot.lane.b32.xlu2 %v1061_v47, %s4724_s17 }
 0x29d   : > { %3525 = vmatmul.msk.f32.gmra.mxu3 %vm1121_vm9, %v1046_v38 }
 0x29e   : > { %v1373_v50 = vpop.permute.xlu0 %1372 }
 0x2a5   : > { %3526 = vmatmul.msk.f32.gmra.mxu3 %vm1121_vm9, %v1049_v42 }
 0x2a6   : > { %v1379_v51 = vpop.permute.xlu0 %1378 }
 0x2ad   : > { %3527 = vmatmul.msk.f32.gmra.mxu3 %vm1121_vm9, %v5109_v9 }
 0x2b5   : > { %3528 = vmatmul.msk.f32.gmra.mxu3 %vm1121_vm9, %v1054_v43 }
 0x2bd   : > { %3529 = vmatmul.msk.f32.gmra.mxu3 %vm1121_vm9, %v1056_v46 }
 0x2c5   : > { %3530 = vmatmul.msk.f32.gmra.mxu3 %vm1121_vm9, %v1059_v19 }
 0x2c8   : > { %v1401_v18 = vpop.permute.xlu2 %1400 }
 0x2cd   : > { %3531 = vmatmul.msk.f32.gmra.mxu3 %vm1121_vm9, %v1061_v47 }
 0x2d1   : > { %v1397_v57 = vpop.permute.xlu2 %1396 }
 0x2d9   : > { %v1391_v58 = vpop.permute.xlu2 %1390 }
 0x2e0   : > { %v1385_v54 = vpop.permute.xlu0 %1384 }
 0x2e1   : > { %v1375_v45 = vpop.permute.xlu2 %1374 }
 0x2e8   : > { %v1403_v53 = vpop.permute.xlu1 %1402 }
 0x2e9   : > { %3540 = vmatpush.xpose.msk.msrb.mxu1 %vm1121_vm9, %v1403_v53  ;;  %v1381_v62 = vpop.permute.xlu2 %1380 }
 0x2ed   : > { %3541 = vmatpush.xpose.msk.msrb.mxu1 %vm1121_vm9, %v1401_v18 }
 0x2f0   : > { %v1395_v36 = vpop.permute.xlu1 %1394 }
 0x2f1   : > { %3542 = vmatpush.xpose.msk.msrb.mxu1 %vm1121_vm9, %v1399_v48  ;;  %v1387_v0 = vpop.permute.xlu2 %1386 }
 0x2f2   : > { %v4106_v55 = vpop.permute.xlu0 %4105 }
 0x2f3   : > { %v4107_v56 = vunpack.i.l.bf16 %v4106_v55  ;;  %v4108_v28 = vunpack.i.h.bf16 %v4106_v55 }
 0x2f5   : > { %1629 = vmatpush.msrb.mxu2 %v4107_v56  ;;  %3543 = vmatpush.xpose.msk.msrb.mxu1 %vm1121_vm9, %v1397_v57 }
 0x2f7   : > { %1630 = vmatpush.msrb.mxu2 %v4108_v28 }
 0x2f8   : > { %v1389_v8 = vpop.permute.xlu1 %1388 }
 0x2f9   : > { %3544 = vmatpush.xpose.msk.msrb.mxu1 %vm1121_vm9, %v1395_v36 }
 0x2fd   : > { %3545 = vmatpush.xpose.msk.msrb.mxu1 %vm1121_vm9, %v1393_v49 }
 0x300   : > { %v1377_v60 = vpop.permute.xlu1 %1376 }
 0x301   : > { %3546 = vmatpush.xpose.msk.msrb.mxu1 %vm1121_vm9, %v1391_v58 }
 0x305   : > { %3547 = vmatpush.xpose.msk.msrb.mxu1 %vm1121_vm9, %v1389_v8 }
 0x308   : > { %3548 = vmatmul.msk.f32.vlgmr.msrb.gmra.mxu1 %vm1121_vm9, %v1373_v50  ;;  %v1383_v63 = vpop.permute.xlu1 %1382 }
 0x310   : > { %3549 = vmatmul.msk.f32.gmra.mxu1 %vm1121_vm9, %v1375_v45 }
 0x318   : > { %v5184_v61 = vpop.f32.mrf.mxu3  ;;  %3550 = vmatmul.msk.f32.gmra.mxu1 %vm1121_vm9, %v1377_v60 }
 0x319   : > { %v1211_v52 = vsel %vm1121_vm9, %v5184_v61, -inf }
 0x31a   : > { %1212 = vmax.xlane.f32.xlu1 %v1211_v52 }
 0x320   : > { %3551 = vmatmul.msk.f32.gmra.mxu1 %vm1121_vm9, %v1379_v51  ;;  %v5197_v7 = vpop.f32.mrf.mxu3 }
 0x321   : > { %v1214_v11 = vsel %vm1121_vm9, %v5197_v7, -inf }
 0x328   : > { %3552 = vmatmul.msk.f32.gmra.mxu1 %vm1121_vm9, %v1381_v62  ;;  %v5230_v22 = vpop.f32.mrf.mxu3 }
 0x329   : > { %v1217_v44 = vsel %vm1121_vm9, %v5230_v22, -inf }
 0x330   : > { %3553 = vmatmul.msk.f32.gmra.mxu1 %vm1121_vm9, %v1383_v63  ;;  %v5232_v26 = vpop.f32.mrf.mxu3 }
 0x338   : > { %3554 = vmatmul.msk.f32.gmra.mxu1 %vm1121_vm9, %v1385_v54  ;;  %v5236_v34 = vpop.f32.mrf.mxu3  ;;  %v1220_v54 = vsel %vm1121_vm9, %v5232_v26, -inf }
 0x339   : > { %v1223_v58 = vsel %vm1121_vm9, %v5236_v34, -inf }
 0x340   : > { %3555 = vmatmul.msk.f32.gmra.mxu1 %vm1121_vm9, %v1387_v0  ;;  %v5247_v46 = vpop.f32.mrf.mxu3 }
 0x341   : > { %v1226_v55 = vsel %vm1121_vm9, %v5247_v46, -inf }
 0x348   : > { %v5259_v56 = vpop.f32.mrf.mxu3 }
 0x349   : > { %v1229_v8 = vsel %vm1121_vm9, %v5259_v56, -inf }
 0x385   : > { %v1453_v1 = vpop.f32.mrf.mxu1 }
 0x386   : > { %v1477_v2 = vsel %vm1121_vm9, %v1453_v1, -inf }
 0x387   : > { %1478 = vmax.xlane.f32.xlu1 %v1477_v2 }
 0x38d   : > { %v1456_v3 = vpop.f32.mrf.mxu1  ;;  %v1213_v23 = vpop.xlane.xlu1 %1212 }
 0x38e   : > { %v1480_v4 = vsel %vm1121_vm9, %v1456_v3, -inf  ;;  %v1235_v42 = vsub.f32 %v5184_v61, %v1213_v23  ;;  %v5271_v61 = vpop.f32.mrf.mxu3 }
 0x38f   : > { %1481 = vmax.xlane.f32.xlu0 %v1480_v4  ;;  %v1232_v63 = vsel %vm1121_vm9, %v5271_v61, -inf }
 0x390   : > { %v1243_v47 = vmul.f32 1.442695, %v1235_v42 }
 0x395   : > { %v1459_v5 = vpop.f32.mrf.mxu1 }
 0x396   : > { %v1483_v6 = vsel %vm1121_vm9, %v1459_v5, -inf }
 0x397   : > { %1484 = vmax.xlane.f32.xlu2 %v1483_v6 }
 0x39d   : > { %v5199_v9 = vpop.f32.mrf.mxu1 }
 0x39e   : > { %v1486_v10 = vsel %vm1121_vm9, %v5199_v9, -inf }
 0x39f   : > { %1487 = vmax.xlane.f32.xlu1 %v1486_v10  ;;  %1215 = vmax.xlane.f32.xlu2 %v1214_v11 }
 0x3a3   : > { %4115 = vrot.lane.b32.xlu0 %v4114_v12, %s4724_s17 }
 0x3a5   : > { %v5208_v14 = vpop.f32.mrf.mxu1 }
 0x3a6   : > { %v1489_v30 = vsel %vm1121_vm9, %v5208_v14, -inf }
 0x3ad   : > { %v5210_v33 = vpop.f32.mrf.mxu1 }
 0x3ae   : > { %v1492_v15 = vsel %vm1121_vm9, %v5210_v33, -inf }
 0x3af   : > { %1493 = vmax.xlane.f32.xlu2 %v1492_v15 }
 0x3b5   : > { %v5214_v25 = vpop.f32.mrf.mxu1 }
 0x3b6   : > { %v1495_v17 = vsel %vm1121_vm9, %v5214_v25, -inf }
 0x3b7   : > { %1496 = vmax.xlane.f32.xlu2 %v1495_v17 }
 0x3b8   : > { %4110 = vrot.lane.b32.xlu1 %v4109_v16, %s4724_s17 }
 0x3bd   : > { %v5221_v19 = vpop.f32.mrf.mxu1 }
 0x3be   : > { %v1498_v20 = vsel %vm1121_vm9, %v5221_v19, -inf }
 0x3bf   : > { %1499 = vmax.xlane.f32.xlu2 %v1498_v20 }
 0x3cd   : > { %1490 = vmax.xlane.f32.xlu0 %v1489_v30 }
 0x3e1   : > { %4120 = vrot.lane.b32.xlu0 %v4119_v21, %s4724_s17 }
 0x3fa   : > { %v1479_v24 = vpop.xlane.xlu1 %1478 }
 0x3fb   : > { %v1501_v27 = vsub.f32 %v1453_v1, %v1479_v24 }
 0x3fd   : > { %v1509_v29 = vmul.f32 1.442695, %v1501_v27 }
 0x3ff   : > { %4150 = vpow2.f32 %v1509_v29 }
 0x402   : > { %v1482_v41 = vpop.xlane.xlu0 %1481 }
 0x403   : > { %v1502_v31 = vsub.f32 %v1456_v3, %v1482_v41 }
 0x405   : > { %v5234_v32 = vpop.eup %4150  ;;  %v1511_v35 = vmul.f32 1.442695, %v1502_v31 }
 0x406   : > { %v1525_v59 = vsel %vm1121_vm9, %v5234_v32, 0.0 }
 0x407   : > { %4152 = vpow2.f32 %v1511_v35  ;;  %1526 = vadd.xlane.f32.xlu2 %v1525_v59 }
 0x40a   : > { %v1485_v37 = vpop.xlane.xlu2 %1484 }
 0x40b   : > { %v1503_v38 = vsub.f32 %v1459_v5, %v1485_v37 }
 0x40d   : > { %v5240_v39 = vpop.eup %4152  ;;  %v1513_v40 = vmul.f32 1.442695, %v1503_v38 }
 0x40e   : > { %v1528_v43 = vsel %vm1121_vm9, %v5240_v39, 0.0 }
 0x40f   : > { %4154 = vpow2.f32 %v1513_v40  ;;  %1529 = vadd.xlane.f32.xlu1 %v1528_v43  ;;  %1218 = vmax.xlane.f32.xlu2 %v1217_v44 }
 0x410   : > { %4156 = vpow2.f32 %v1243_v47 }
 0x412   : > { %v1488_v48 = vpop.xlane.xlu1 %1487  ;;  %v1216_v49 = vpop.xlane.xlu2 %1215 }
 0x413   : > { %v1504_v51 = vsub.f32 %v5199_v9, %v1488_v48  ;;  %v1236_v53 = vsub.f32 %v5197_v7, %v1216_v49 }
 0x415   : > { %v5249_v50 = vpop.eup %4154  ;;  %v1515_v57 = vmul.f32 1.442695, %v1504_v51  ;;  %v1245_v28 = vmul.f32 1.442695, %v1236_v53  ;;  %v4116_v3 = vpop.permute.xlu0 %4115 }
 0x416   : > { %v1531_v18 = vsel %vm1121_vm9, %v5249_v50, 0.0  ;;  %v5261_v36 = vpop.eup %4156  ;;  %v4117_v5 = vunpack.i.l.bf16 %v4116_v3  ;;  %v4118_v6 = vunpack.i.h.bf16 %v4116_v3 }
 0x417   : > { %1532 = vadd.xlane.f32.xlu0 %v1531_v18  ;;  %1221 = vmax.xlane.f32.xlu2 %v1220_v54  ;;  %4158 = vpow2.f32 %v1515_v57  ;;  %v1259_v45 = vsel %vm1121_vm9, %v5261_v36, 0.0 }
 0x418   : > { %1227 = vmax.xlane.f32.xlu1 %v1226_v55  ;;  %4160 = vpow2.f32 %v1245_v28 }
 0x41d   : > { %v5269_v60 = vpop.eup %4158 }
 0x41e   : > { %v5273_v52 = vpop.eup %4160  ;;  %v1534_v62 = vsel %vm1121_vm9, %v5269_v60, 0.0 }
 0x41f   : > { %1224 = vmax.xlane.f32.xlu2 %v1223_v58  ;;  %1230 = vmax.xlane.f32.xlu0 %v1229_v8  ;;  %v1262_v0 = vsel %vm1121_vm9, %v5273_v52, 0.0 }
 0x420   : > { %1260 = vadd.xlane.f32.xlu1 %v1259_v45 }
 0x422   : > { %v1494_v7 = vpop.xlane.xlu2 %1493 }
 0x423   : > { %v1506_v11 = vsub.f32 %v5210_v33, %v1494_v7 }
 0x425   : > { %v1519_v16 = vmul.f32 1.442695, %v1506_v11 }
 0x427   : > { %1535 = vadd.xlane.f32.xlu2 %v1534_v62  ;;  %1233 = vmax.xlane.f32.xlu0 %v1232_v63 }
 0x428   : > { %1263 = vadd.xlane.f32.xlu1 %v1262_v0 }
 0x42a   : > { %v4111_v1 = vpop.permute.xlu1 %4110  ;;  %v1497_v15 = vpop.xlane.xlu2 %1496 }
 0x42b   : > { %v4112_v2 = vunpack.i.l.bf16 %v4111_v1  ;;  %v4113_v4 = vunpack.i.h.bf16 %v4111_v1  ;;  %v1507_v20 = vsub.f32 %v5214_v25, %v1497_v15 }
 0x42d   : > { %1631 = vmatpush.msrb.mxu2 %v4112_v2  ;;  %v1521_v21 = vmul.f32 1.442695, %v1507_v20 }
 0x42f   : > { %1632 = vmatpush.msrb.mxu2 %v4113_v4 }
 0x431   : > { %1633 = vmatpush.msrb.mxu2 %v4117_v5 }
 0x432   : > { %v1500_v23 = vpop.xlane.xlu2 %1499 }
 0x433   : > { %1634 = vmatpush.msrb.mxu2 %v4118_v6 }
 0x440   : > { %v1491_v9 = vpop.xlane.xlu0 %1490 }
 0x441   : > { %v1505_v10 = vsub.f32 %v5208_v14, %v1491_v9  ;;  %v1508_v14 = vsub.f32 %v5221_v19, %v1500_v23 }
 0x443   : > { %v1517_v12 = vmul.f32 1.442695, %v1505_v10  ;;  %v1523_v25 = vmul.f32 1.442695, %v1508_v14 }
 0x445   : > { %4162 = vpow2.f32 %v1517_v12 }
 0x446   : > { %4164 = vpow2.f32 %v1519_v16 }
 0x447   : > { %4166 = vpow2.f32 %v1521_v21 }
 0x448   : > { %4168 = vpow2.f32 %v1523_v25 }
 0x44b   : > { %v5283_v17 = vpop.eup %4162 }
 0x44c   : > { %v1537_v30 = vsel %vm1121_vm9, %v5283_v17, 0.0  ;;  %v5288_v24 = vpop.eup %4164 }
 0x44d   : > { %1538 = vadd.xlane.f32.xlu2 %v1537_v30  ;;  %v1540_v27 = vsel %vm1121_vm9, %v5288_v24, 0.0  ;;  %v5293_v31 = vpop.eup %4166 }
 0x44e   : > { %v1543_v35 = vsel %vm1121_vm9, %v5293_v31, 0.0  ;;  %v5297_v59 = vpop.eup %4168 }
 0x44f   : > { %v1546_v19 = vsel %vm1121_vm9, %v5297_v59, 0.0 }
 0x453   : > { %v4121_v33 = vpop.permute.xlu0 %4120 }
 0x454   : > { %v4122_v29 = vunpack.i.l.bf16 %v4121_v33  ;;  %v4123_v41 = vunpack.i.h.bf16 %v4121_v33 }
 0x455   : > { %1541 = vadd.xlane.f32.xlu2 %v1540_v27 }
 0x456   : > { %1635 = vmatpush.msrb.mxu2 %v4122_v29 }
 0x458   : > { %1636 = vmatpush.msrb.mxu2 %v4123_v41 }
 0x45d   : > { %1544 = vadd.xlane.f32.xlu2 %v1543_v35 }
 0x465   : > { %1547 = vadd.xlane.f32.xlu2 %v1546_v19 }
 0x47a   : > { %v1527_v37 = vpop.xlane.xlu2 %1526 }
 0x47b   : > { %4170 = vrcp.f32 %v1527_v37 }
 0x481   : > { %v4171_v38 = vpop.eup %4170 }
 0x482   : > { %v1530_v40 = vpop.xlane.xlu1 %1529  ;;  %v1219_v42 = vpop.xlane.xlu2 %1218  ;;  %v1557_v43 = vmul.f32 %v4171_v38, %v5234_v32 }
 0x483   : > { %4172 = vrcp.f32 %v1530_v40  ;;  %v1237_v44 = vsub.f32 %v5230_v22, %v1219_v42 }
 0x484   : > { %3556 = vmatmul.msk.f32.vlgmr.msrb.gmra.mxu2 %vm1121_vm9, %v1557_v43 }
 0x485   : > { %v1247_v47 = vmul.f32 1.442695, %v1237_v44 }
 0x487   : > { %4174 = vpow2.f32 %v1247_v47 }
 0x489   : > { %v4173_v48 = vpop.eup %4172 }
 0x48a   : > { %v1533_v49 = vpop.xlane.xlu0 %1532  ;;  %v1222_v51 = vpop.xlane.xlu2 %1221  ;;  %v1558_v53 = vmul.f32 %v4173_v48, %v5240_v39 }
 0x48b   : > { %4176 = vrcp.f32 %v1533_v49  ;;  %v1238_v18 = vsub.f32 %v5232_v26, %v1222_v51  ;;  %v1228_v54 = vpop.xlane.xlu1 %1227 }
 0x48c   : > { %v1240_v55 = vsub.f32 %v5247_v46, %v1228_v54  ;;  %3557 = vmatmul.msk.f32.gmra.mxu2 %vm1121_vm9, %v1558_v53 }
 0x48d   : > { %v5308_v32 = vpop.eup %4174  ;;  %v1249_v22 = vmul.f32 1.442695, %v1238_v18 }
 0x48e   : > { %v1253_v57 = vmul.f32 1.442695, %v1240_v55  ;;  %v1265_v28 = vsel %vm1121_vm9, %v5308_v32, 0.0 }
 0x48f   : > { %4178 = vpow2.f32 %v1249_v22  ;;  %1266 = vadd.xlane.f32.xlu0 %v1265_v28 }
 0x490   : > { %4180 = vpow2.f32 %v1253_v57 }
 0x491   : > { %v4177_v58 = vpop.eup %4176 }
 0x492   : > { %v1225_v39 = vpop.xlane.xlu2 %1224  ;;  %v1231_v8 = vpop.xlane.xlu0 %1230  ;;  %v1559_v26 = vmul.f32 %v4177_v58, %v5249_v50 }
 0x493   : > { %v1239_v45 = vsub.f32 %v5236_v34, %v1225_v39  ;;  %v1261_v46 = vpop.xlane.xlu1 %1260  ;;  %v1241_v62 = vsub.f32 %v5259_v56, %v1231_v8 }
 0x494   : > { %4182 = vrcp.f32 %v1261_v46  ;;  %3558 = vmatmul.msk.f32.gmra.mxu2 %vm1121_vm9, %v1559_v26 }
 0x495   : > { %v5316_v63 = vpop.eup %4178  ;;  %v1251_v0 = vmul.f32 1.442695, %v1239_v45  ;;  %v1255_v1 = vmul.f32 1.442695, %v1241_v62 }
 0x496   : > { %v5318_v2 = vpop.eup %4180  ;;  %v1268_v3 = vsel %vm1121_vm9, %v5316_v63, 0.0 }
 0x497   : > { %4184 = vpow2.f32 %v1251_v0  ;;  %1269 = vadd.xlane.f32.xlu1 %v1268_v3  ;;  %v1274_v34 = vsel %vm1121_vm9, %v5318_v2, 0.0  ;;  %v3889_v3 = vld [vmem:[#allocation10 + $0x38] sm:$0xff] }
 0x498   : > { %4186 = vpow2.f32 %v1255_v1  ;;  %1275 = vadd.xlane.f32.xlu0 %v1274_v34  ;;  %1801 = vmatpush.bf16.msrb.mxu3 %v3889_v3  ;;  %v3888_v34 = vld [vmem:[#allocation10 + $0x30] sm:$0xff] }
 0x49a   : > { %v4183_v50 = vpop.eup %4182  ;;  %v1536_v56 = vpop.xlane.xlu2 %1535 }
 0x49b   : > { %v1234_v4 = vpop.xlane.xlu0 %1233  ;;  %4188 = vrcp.f32 %v1536_v56  ;;  %v1264_v5 = vpop.xlane.xlu1 %1263  ;;  %v1291_v7 = vmul.f32 %v4183_v50, %v5261_v36  ;;  %v3887_v56 = vld [vmem:[#allocation10 + $0x28] sm:$0xff] }
 0x49c   : > { %v1242_v6 = vsub.f32 %v5271_v61, %v1234_v4  ;;  %4190 = vrcp.f32 %v1264_v5  ;;  %1802 = vmatpush.bf16.msrb.mxu3 %v3888_v34  ;;  %v3886_v5 = vld [vmem:[#allocation10 + $0x20] sm:$0xff] }
 0x49d   : > { %v4185_v9 = vpop.eup %4184  ;;  %3532 = vmatmul.msk.f32.vlgmr.msrb.gmra.mxu0 %vm1121_vm9, %v1291_v7 }
 0x49e   : > { %v1257_v10 = vmul.f32 1.442695, %v1242_v6  ;;  %v5327_v11 = vpop.eup %4186  ;;  %v1271_v12 = vsel %vm1121_vm9, %v4185_v9, 0.0 }
 0x49f   : > { %1272 = vadd.xlane.f32.xlu2 %v1271_v12  ;;  %v1277_v15 = vsel %vm1121_vm9, %v5327_v11, 0.0 }
 0x4a0   : > { %4192 = vpow2.f32 %v1257_v10  ;;  %1278 = vadd.xlane.f32.xlu1 %v1277_v15  ;;  %1803 = vmatpush.bf16.msrb.mxu3 %v3887_v56  ;;  %v3884_v15 = vld [vmem:[#allocation10 + $0x10] sm:$0xff] }
 0x4a1   : > { %v4189_v16 = vpop.eup %4188 }
 0x4a2   : > { %v4191_v20 = vpop.eup %4190  ;;  %v1560_v61 = vmul.f32 %v4189_v16, %v5269_v60 }
 0x4a3   : > { %v1292_v36 = vmul.f32 %v4191_v20, %v5273_v52  ;;  %v3883_v20 = vld [vmem:[#allocation10 + $0x8] sm:$0xff] }
 0x4a4   : > { %3559 = vmatmul.msk.f32.gmra.mxu2 %vm1121_vm9, %v1560_v61  ;;  %1804 = vmatpush.bf16.msrb.mxu3 %v3886_v5 }
 0x4a5   : > { %3533 = vmatmul.msk.f32.gmra.mxu0 %vm1121_vm9, %v1292_v36  ;;  %v3882_v36 = vld [vmem:[#allocation10] sm:$0xff] }
 0x4a6   : > { %v5335_v30 = vpop.eup %4192 }
 0x4a7   : > { %v1280_v21 = vsel %vm1121_vm9, %v5335_v30, 0.0 }
 0x4a8   : > { %1281 = vadd.xlane.f32.xlu2 %v1280_v21 }
 0x4c0   : > { %v1539_v23 = vpop.xlane.xlu2 %1538 }
 0x4c1   : > { %4194 = vrcp.f32 %v1539_v23 }
 0x4c7   : > { %v4195_v14 = vpop.eup %4194 }
 0x4c8   : > { %v1542_v33 = vpop.xlane.xlu2 %1541  ;;  %v1561_v27 = vmul.f32 %v4195_v14, %v5283_v17 }
 0x4c9   : > { %4196 = vrcp.f32 %v1542_v33 }
 0x4ca   : > { %3560 = vmatmul.msk.f32.gmra.mxu2 %vm1121_vm9, %v1561_v27 }
 0x4cf   : > { %v4197_v60 = vpop.eup %4196 }
 0x4d0   : > { %v1545_v52 = vpop.xlane.xlu2 %1544  ;;  %v1562_v29 = vmul.f32 %v4197_v60, %v5288_v24 }
 0x4d1   : > { %4198 = vrcp.f32 %v1545_v52 }
 0x4d2   : > { %3561 = vmatmul.msk.f32.gmra.mxu2 %vm1121_vm9, %v1562_v29 }
 0x4d7   : > { %v4199_v41 = vpop.eup %4198 }
 0x4d8   : > { %v1548_v25 = vpop.xlane.xlu2 %1547  ;;  %v1563_v35 = vmul.f32 %v4199_v41, %v5293_v31 }
 0x4d9   : > { %4200 = vrcp.f32 %v1548_v25 }
 0x4da   : > { %3562 = vmatmul.msk.f32.gmra.mxu2 %vm1121_vm9, %v1563_v35 }
 0x4df   : > { %v4201_v19 = vpop.eup %4200 }
 0x4e0   : > { %v1564_v17 = vmul.f32 %v4201_v19, %v5297_v59 }
 0x4e2   : > { %3563 = vmatmul.msk.f32.gmra.mxu2 %vm1121_vm9, %v1564_v17 }
 0x502   : > { %v1267_v37 = vpop.xlane.xlu0 %1266 }
 0x503   : > { %4202 = vrcp.f32 %v1267_v37 }
 0x507   : > { %v1638_v38 = vpop.f32.mrf.mxu2 }
 0x508   : > { %v1662_v43 = vpack.c.bf16 %v1638_v38, %v1638_v38 }
 0x509   : > { %v4203_v40 = vpop.eup %4202 }
 0x50a   : > { %v1270_v24 = vpop.xlane.xlu1 %1269  ;;  %v1293_v42 = vmul.f32 %v4203_v40, %v5308_v32  ;;  %v1698_v48 = vunpack.c.l.b16 %v1662_v43 }
 0x50b   : > { %4204 = vrcp.f32 %v1270_v24  ;;  %v1276_v18 = vpop.xlane.xlu0 %1275 }
 0x50c   : > { %3534 = vmatmul.msk.f32.gmra.mxu0 %vm1121_vm9, %v1293_v42 }
 0x50f   : > { %v1641_v31 = vpop.f32.mrf.mxu2 }
 0x510   : > { %v1663_v44 = vpack.c.bf16 %v1641_v31, %v1641_v31 }
 0x511   : > { %v4205_v47 = vpop.eup %4204 }
 0x512   : > { %v1699_v49 = vunpack.c.l.b16 %v1663_v44  ;;  %v1273_v51 = vpop.xlane.xlu2 %1272  ;;  %v1294_v59 = vmul.f32 %v4205_v47, %v5316_v63 }
 0x513   : > { %4206 = vrcp.f32 %v1273_v51  ;;  %v1279_v32 = vpop.xlane.xlu1 %1278 }
 0x514   : > { %v1706_v53 = vpack.c.b16 %v1699_v49, %v1698_v48  ;;  %3535 = vmatmul.msk.f32.gmra.mxu0 %vm1121_vm9, %v1294_v59  ;;  %4208 = vrcp.f32 %v1276_v18 }
 0x515   : > { %4210 = vrcp.f32 %v1279_v32 }
 0x516   : > { %1710 = vrot.lane.b32.xlu0 %v1706_v53, %s4724_s17 }
 0x517   : > { %v1644_v57 = vpop.f32.mrf.mxu2 }
 0x518   : > { %v1664_v58 = vpack.c.bf16 %v1644_v57, %v1644_v57 }
 0x519   : > { %v4207_v54 = vpop.eup %4206 }
 0x51a   : > { %v1295_v55 = vmul.f32 %v4207_v54, %v4185_v9  ;;  %v4209_v22 = vpop.eup %4208  ;;  %v1700_v46 = vunpack.c.l.b16 %v1664_v58  ;;  %v1340_v27 = vpop.f32.mrf.mxu0 }
 0x51b   : > { %v1296_v28 = vmul.f32 %v4209_v22, %v5318_v2  ;;  %v1282_v39 = vpop.xlane.xlu2 %1281  ;;  %v4211_v8 = vpop.eup %4210  ;;  %v1364_v29 = vpack.c.bf16 %v1340_v27, %v1340_v27  ;;  %v4316_v27 = vld [vmem:[%s4956_s14 + $0x30] sm:$0xff] }
 0x51c   : > { %3536 = vmatmul.msk.f32.gmra.mxu0 %vm1121_vm9, %v1295_v55  ;;  %4212 = vrcp.f32 %v1282_v39  ;;  %v1297_v63 = vmul.f32 %v4211_v8, %v5327_v11  ;;  %v3885_v11 = vld [vmem:[#allocation10 + $0x18] sm:$0xff] }
 0x51d   : > { %1805 = vmatpush.bf16.msrb.mxu3 %v3885_v11  ;;  %v1678_v25 = vunpack.c.l.b16 %v1364_v29  ;;  %v4313_v11 = vld [vmem:[%s4956_s14 + $0x18] sm:$0xff] }
 0x521   : > { %1806 = vmatpush.bf16.msrb.mxu3 %v3884_v15 }
 0x522   : > { %v4213_v1 = vpop.eup %4212  ;;  %v1343_v60 = vpop.f32.mrf.mxu0 }
 0x523   : > { %v1298_v2 = vmul.f32 %v4213_v1, %v5335_v30  ;;  %v1365_v52 = vpack.c.bf16 %v1343_v60, %v1343_v60  ;;  %v4310_v1 = vld [vmem:[%s4956_s14] sm:$0xff] }
 0x524   : > { %3537 = vmatmul.msk.f32.gmra.mxu0 %vm1121_vm9, %v1296_v28 }
 0x525   : > { %1807 = vmatpush.bf16.msrb.mxu3 %v3883_v20  ;;  %v1679_v41 = vunpack.c.l.b16 %v1365_v52  ;;  %v4314_v20 = vld [vmem:[%s4956_s14 + $0x20] sm:$0xff] }
 0x527   : > { %v1647_v26 = vpop.f32.mrf.mxu2  ;;  %v1686_v35 = vpack.c.b16 %v1679_v41, %v1678_v25 }
 0x528   : > { %v1665_v45 = vpack.c.bf16 %v1647_v26, %v1647_v26 }
 0x529   : > { %1808 = vmatpush.bf16.msrb.mxu3 %v3882_v36 }
 0x52a   : > { %v1701_v62 = vunpack.c.l.b16 %v1665_v45 }
 0x52c   : > { %v1707_v0 = vpack.c.b16 %v1701_v62, %v1700_v46  ;;  %3538 = vmatmul.msk.f32.gmra.mxu0 %vm1121_vm9, %v1297_v63  ;;  %v4126_v62 = vld [vmem:[#allocation11] ss:$0 sm:$0xff] }
 0x52e   : > { %1712 = vrot.lane.b32.xlu1 %v1707_v0, %s4724_s17 }
 0x534   : > { %3539 = vmatmul.msk.f32.gmra.mxu0 %vm1121_vm9, %v1298_v2 }
 0x54d   : > { %v1650_v50 = vpop.f32.mrf.mxu2 }
 0x54e   : > { %v1666_v4 = vpack.c.bf16 %v1650_v50, %v1650_v50  ;;  %v4311_v50 = vld [vmem:[%s4956_s14 + $0x8] sm:$0xff] }
 0x550   : > { %v1702_v9 = vunpack.c.l.b16 %v1666_v4 }
 0x555   : > { %v1653_v6 = vpop.f32.mrf.mxu2 }
 0x556   : > { %v1667_v7 = vpack.c.bf16 %v1653_v6, %v1653_v6  ;;  %v4312_v6 = vld [vmem:[%s4956_s14 + $0x10] sm:$0xff] }
 0x558   : > { %v1703_v10 = vunpack.c.l.b16 %v1667_v7 }
 0x55a   : > { %v1708_v12 = vpack.c.b16 %v1703_v10, %v1702_v9 }
 0x55c   : > { %1714 = vrot.lane.b32.xlu2 %v1708_v12, %s4724_s17 }
 0x55d   : > { %v1656_v16 = vpop.f32.mrf.mxu2 }
 0x55e   : > { %v1668_v61 = vpack.c.bf16 %v1656_v16, %v1656_v16 }
 0x560   : > { %v1704_v23 = vunpack.c.l.b16 %v1668_v61 }
 0x565   : > { %v1659_v30 = vpop.f32.mrf.mxu2 }
 0x566   : > { %v1669_v21 = vpack.c.bf16 %v1659_v30, %v1659_v30 }
 0x568   : > { %v1705_v14 = vunpack.c.l.b16 %v1669_v21  ;;  %v4315_v21 = vld [vmem:[%s4956_s14 + $0x28] sm:$0xff] }
 0x56a   : > { %v1709_v33 = vpack.c.b16 %v1705_v14, %v1704_v23 }
 0x56c   : > { %1716 = vrot.lane.b32.xlu0 %v1709_v33, %s4724_s17 }
 0x588   : > { %v1711_v19 = vpop.permute.xlu0 %1710 }
 0x589   : > { %v1720_v17 = vsel %vm1121_vm9, %v1686_v35, %v1711_v19  ;;  %v1346_v37 = vpop.f32.mrf.mxu0 }
 0x58a   : > { %1809 = vmatmul.bf16.vlgmr.msrb.gmra.mxu3 %v1720_v17  ;;  %v1366_v24 = vpack.c.bf16 %v1346_v37, %v1346_v37 }
 0x58c   : > { %v1680_v43 = vunpack.c.l.b16 %v1366_v24 }
 0x591   : > { %v1349_v38 = vpop.f32.mrf.mxu0 }
 0x592   : > { %v1367_v40 = vpack.c.bf16 %v1349_v38, %v1349_v38 }
 0x594   : > { %v1681_v42 = vunpack.c.l.b16 %v1367_v40  ;;  %v4317_v40 = vld [vmem:[%s4956_s14 + $0x38] sm:$0xff] }
 0x596   : > { %v1687_v31 = vpack.c.b16 %v1681_v42, %v1680_v43 }
 0x599   : > { %v1352_v44 = vpop.f32.mrf.mxu0 }
 0x59a   : > { %v1368_v59 = vpack.c.bf16 %v1352_v44, %v1352_v44 }
 0x59c   : > { %v1682_v18 = vunpack.c.l.b16 %v1368_v59 }
 0x5a0   : > { %v1713_v47 = vpop.permute.xlu1 %1712 }
 0x5a1   : > { %v1724_v48 = vsel %vm1121_vm9, %v1687_v31, %v1713_v47  ;;  %v1355_v49 = vpop.f32.mrf.mxu0 }
 0x5a2   : > { %1814 = vmatmul.bf16.gmra.mxu3 %v1724_v48  ;;  %v1369_v51 = vpack.c.bf16 %v1355_v49, %v1355_v49 }
 0x5a4   : > { %v1683_v53 = vunpack.c.l.b16 %v1369_v51 }
 0x5a6   : > { %v1688_v54 = vpack.c.b16 %v1683_v53, %v1682_v18 }
 0x5a9   : > { %v1358_v22 = vpop.f32.mrf.mxu0 }
 0x5aa   : > { %v1370_v58 = vpack.c.bf16 %v1358_v22, %v1358_v22 }
 0x5ac   : > { %v1684_v8 = vunpack.c.l.b16 %v1370_v58 }
 0x5b1   : > { %v1361_v57 = vpop.f32.mrf.mxu0 }
 0x5b2   : > { %v1371_v28 = vpack.c.bf16 %v1361_v57, %v1361_v57 }
 0x5b4   : > { %v1685_v39 = vunpack.c.l.b16 %v1371_v28 }
 0x5b6   : > { %v1715_v55 = vpop.permute.xlu2 %1714  ;;  %v1689_v26 = vpack.c.b16 %v1685_v39, %v1684_v8 }
 0x5b7   : > { %v1728_v32 = vsel %vm1121_vm9, %v1688_v54, %v1715_v55 }
 0x5b8   : > { %1819 = vmatmul.bf16.gmra.mxu3 %v1728_v32 }
 0x5de   : > { %v1717_v45 = vpop.permute.xlu0 %1716 }
 0x5df   : > { %v1732_v46 = vsel %vm1121_vm9, %v1689_v26, %v1717_v45  ;;  %v3710_v45 = vld [vmem:[#allocation16 + $0xe0] sm:$0xf] }
 0x5e0   : > { %1824 = vmatmul.bf16.gmra.mxu3 %v1732_v46  ;;  %v3920_v46 = vld [vmem:[#allocation16 + $0xec] sm:$0xf0] }
 0x60d   : > { %v1810_v63 = vpop.f32.mrf.mxu3 }
 0x60e   : > { %v1811_v0 = vadd.f32 %v4126_v62, %v1810_v63  ;;  %v3711_v63 = vor.u32 %v3920_v46, %v3710_v45  ;;  %v3646_v45 = vld [vmem:[#allocation16 + $0x60] sm:$0xf]  ;;  %v3904_v46 = vld [vmem:[#allocation16 + $0x6c] sm:$0xf0] }
 0x610   : > { %v5368_v2 = vadd.f32 %v4310_v1, %v1811_v0  ;;  %v3712_v0 = vld [vmem:[#allocation16 + $0xf0] sm:$0xf0]  ;;  %v3718_v1 = vld [vmem:[#allocation16 + $0xe8] sm:$0xf]  ;;  %2225 = vmatpush.bf16.msra.mxu0 %v3711_v63  ;;  %v3647_v63 = vor.u32 %v3904_v46, %v3646_v45  ;;  %v3608_v45 = vld [vmem:[#allocation16 + $0x18] sm:$0xf0] }
 0x612   : > { %1838 = vadd.xlane.f32.xlu1 %v5368_v2 }
 0x615   : > { %v1812_v3 = vpop.f32.mrf.mxu3 }
 0x616   : > { %v1813_v34 = vadd.f32 %v4126_v62, %v1812_v3  ;;  %v3921_v3 = vld [vmem:[#allocation16 + $0xf4] sm:$0xf0] }
 0x618   : > { %v5372_v56 = vadd.f32 %v4311_v50, %v1813_v34  ;;  %v3719_v50 = vor.u32 %v3921_v3, %v3718_v1  ;;  %v3654_v1 = vld [vmem:[#allocation16 + $0x68] sm:$0xf]  ;;  %v3905_v3 = vld [vmem:[#allocation16 + $0x74] sm:$0xf0] }
 0x61a   : > { %1840 = vadd.xlane.f32.xlu0 %v5372_v56  ;;  %2283 = vmatpush.bf16.msra.mxu2 %v3719_v50  ;;  %v3655_v50 = vor.u32 %v3905_v3, %v3654_v1 }
 0x625   : > { %v1815_v4 = vpop.f32.mrf.mxu3 }
 0x626   : > { %v1816_v5 = vadd.f32 %v4126_v62, %v1815_v4  ;;  %v3919_v4 = vld [vmem:[#allocation16 + $0xec] sm:$0xf] }
 0x628   : > { %v5376_v7 = vadd.f32 %v4312_v6, %v1816_v5  ;;  %v3720_v5 = vld [vmem:[#allocation16 + $0xf8] sm:$0xf0] }
 0x629   : > { %v3723_v6 = vor.u32 %v3919_v4, %v3720_v5  ;;  %v3903_v4 = vld [vmem:[#allocation16 + $0x6c] sm:$0xf]  ;;  %v3656_v5 = vld [vmem:[#allocation16 + $0x78] sm:$0xf0] }
 0x62a   : > { %1842 = vadd.xlane.f32.xlu2 %v5376_v7 }
 0x62b   : > { %2312 = vmatpush.bf16.msra.mxu3 %v3723_v6  ;;  %v3659_v6 = vor.u32 %v3903_v4, %v3656_v5 }
 0x62d   : > { %v1817_v9 = vpop.f32.mrf.mxu3 }
 0x62e   : > { %v1818_v10 = vadd.f32 %v4126_v62, %v1817_v9  ;;  %v3694_v9 = vld [vmem:[#allocation16 + $0xc0] sm:$0xf] }
 0x630   : > { %v5380_v12 = vadd.f32 %v4313_v11, %v1818_v10  ;;  %v3916_v10 = vld [vmem:[#allocation16 + $0xcc] sm:$0xf0]  ;;  %v3914_v11 = vld [vmem:[#allocation16 + $0xc4] sm:$0xf] }
 0x632   : > { %1844 = vadd.xlane.f32.xlu1 %v5380_v12 }
 0x63b   : > { %v1820_v15 = vpop.f32.mrf.mxu3 }
 0x63c   : > { %v1821_v16 = vadd.f32 %v4126_v62, %v1820_v15  ;;  %v3695_v15 = vor.u32 %v3916_v10, %v3694_v9  ;;  %v3630_v9 = vld [vmem:[#allocation16 + $0x40] sm:$0xf]  ;;  %v3900_v10 = vld [vmem:[#allocation16 + $0x4c] sm:$0xf0] }
 0x63e   : > { %v5384_v61 = vadd.f32 %v4314_v20, %v1821_v16  ;;  %v3696_v16 = vld [vmem:[#allocation16 + $0xd0] sm:$0xf0]  ;;  %v3702_v20 = vld [vmem:[#allocation16 + $0xc8] sm:$0xf]  ;;  %2226 = vmatpush.bf16.msra.mxu0 %v3695_v15  ;;  %v3631_v15 = vor.u32 %v3900_v10, %v3630_v9 }
 0x640   : > { %1846 = vadd.xlane.f32.xlu0 %v5384_v61 }
 0x643   : > { %v1822_v36 = vpop.f32.mrf.mxu3 }
 0x644   : > { %v1823_v30 = vadd.f32 %v4126_v62, %v1822_v36  ;;  %v3917_v36 = vld [vmem:[#allocation16 + $0xd4] sm:$0xf0] }
 0x646   : > { %v5388_v23 = vadd.f32 %v4315_v21, %v1823_v30  ;;  %v3699_v30 = vor.u32 %v3914_v11, %v3696_v16  ;;  %v3703_v21 = vor.u32 %v3917_v36, %v3702_v20  ;;  %v3898_v11 = vld [vmem:[#allocation16 + $0x44] sm:$0xf]  ;;  %v3632_v16 = vld [vmem:[#allocation16 + $0x50] sm:$0xf0]  ;;  %v3638_v20 = vld [vmem:[#allocation16 + $0x48] sm:$0xf] }
 0x647   : > { %v3901_v36 = vld [vmem:[#allocation16 + $0x54] sm:$0xf0] }
 0x648   : > { %1848 = vadd.xlane.f32.xlu2 %v5388_v23  ;;  %2284 = vmatpush.bf16.msra.mxu2 %v3703_v21  ;;  %v3639_v21 = vor.u32 %v3901_v36, %v3638_v20 }
 0x663   : > { %v1825_v14 = vpop.f32.mrf.mxu3 }
 0x664   : > { %v1826_v33 = vadd.f32 %v4126_v62, %v1825_v14  ;;  %v3915_v14 = vld [vmem:[#allocation16 + $0xcc] sm:$0xf] }
 0x666   : > { %v5392_v60 = vadd.f32 %v4316_v27, %v1826_v33  ;;  %v3704_v33 = vld [vmem:[#allocation16 + $0xd8] sm:$0xf0] }
 0x667   : > { %v3707_v27 = vor.u32 %v3915_v14, %v3704_v33  ;;  %v3899_v14 = vld [vmem:[#allocation16 + $0x4c] sm:$0xf]  ;;  %v3640_v33 = vld [vmem:[#allocation16 + $0x58] sm:$0xf0] }
 0x668   : > { %1850 = vadd.xlane.f32.xlu2 %v5392_v60 }
 0x669   : > { %2313 = vmatpush.bf16.msra.mxu3 %v3707_v27  ;;  %v3643_v27 = vor.u32 %v3899_v14, %v3640_v33 }
 0x66b   : > { %v1827_v35 = vpop.f32.mrf.mxu3 }
 0x66c   : > { %v1828_v17 = vadd.f32 %v4126_v62, %v1827_v35  ;;  %v3918_v62 = vld [vmem:[#allocation16 + $0xe4] sm:$0xf] }
 0x66d   : > { %v3715_v34 = vor.u32 %v3918_v62, %v3712_v0  ;;  %v3902_v62 = vld [vmem:[#allocation16 + $0x64] sm:$0xf]  ;;  %v3648_v0 = vld [vmem:[#allocation16 + $0x70] sm:$0xf0] }
 0x66e   : > { %v5406_v24 = vadd.f32 %v4317_v40, %v1828_v17  ;;  %v3686_v17 = vld [vmem:[#allocation16 + $0xa8] sm:$0xf] }
 0x66f   : > { %2254 = vmatpush.bf16.msra.mxu1 %v3715_v34  ;;  %v3651_v34 = vor.u32 %v3902_v62, %v3648_v0 }
 0x673   : > { %2255 = vmatpush.bf16.msra.mxu1 %v3699_v30  ;;  %v3635_v30 = vor.u32 %v3898_v11, %v3632_v16 }
 0x685   : > { %v1839_v52 = vpop.xlane.xlu1 %1838 }
 0x686   : > { %v1854_v29 = vmul.f32 %v1839_v52, %v4989_v13  ;;  %v3678_v52 = vld [vmem:[#allocation16 + $0xa0] sm:$0xf] }
 0x688   : > { %v5397_v41 = vsub.f32 %v5368_v2, %v1854_v29  ;;  %v3912_v29 = vld [vmem:[#allocation16 + $0xac] sm:$0xf0] }
 0x689   : > { %v3679_v35 = vor.u32 %v3912_v29, %v3678_v52  ;;  %v3614_v52 = vld [vmem:[#allocation16 + $0x20] sm:$0xf]  ;;  %v3896_v29 = vld [vmem:[#allocation16 + $0x2c] sm:$0xf0] }
 0x68a   : > { %v1870_v25 = vmul.f32 %v5397_v41, %v5397_v41 }
 0x68b   : > { %2227 = vmatpush.bf16.msra.mxu0 %v3679_v35 }
 0x68c   : > { %1878 = vadd.xlane.f32.xlu1 %v1870_v25  ;;  %v3910_v25 = vld [vmem:[#allocation16 + $0xa4] sm:$0xf] }
 0x68d   : > { %v1841_v19 = vpop.xlane.xlu0 %1840 }
 0x68e   : > { %v1855_v37 = vmul.f32 %v1841_v19, %v4989_v13  ;;  %v3680_v19 = vld [vmem:[#allocation16 + $0xb0] sm:$0xf0] }
 0x68f   : > { %v3683_v40 = vor.u32 %v3910_v25, %v3680_v19  ;;  %v3894_v25 = vld [vmem:[#allocation16 + $0x24] sm:$0xf]  ;;  %v3615_v19 = vor.u32 %v3896_v29, %v3614_v52 }
 0x690   : > { %v5403_v38 = vsub.f32 %v5372_v56, %v1855_v37  ;;  %v3913_v37 = vld [vmem:[#allocation16 + $0xb4] sm:$0xf0] }
 0x691   : > { %2256 = vmatpush.bf16.msra.mxu1 %v3683_v40  ;;  %v3897_v40 = vld [vmem:[#allocation16 + $0x34] sm:$0xf0] }
 0x692   : > { %v1871_v42 = vmul.f32 %v5403_v38, %v5403_v38 }
 0x694   : > { %1852 = vadd.xlane.f32.xlu1 %v5406_v24  ;;  %1880 = vadd.xlane.f32.xlu0 %v1871_v42  ;;  %v3687_v42 = vor.u32 %v3913_v37, %v3686_v17  ;;  %v3616_v17 = vld [vmem:[#allocation16 + $0x30] sm:$0xf0]  ;;  %v3622_v37 = vld [vmem:[#allocation16 + $0x28] sm:$0xf] }
 0x696   : > { %2285 = vmatpush.bf16.msra.mxu2 %v3687_v42 }
 0x69d   : > { %v1843_v43 = vpop.xlane.xlu2 %1842 }
 0x69e   : > { %v1856_v31 = vmul.f32 %v1843_v43, %v4989_v13  ;;  %v3911_v43 = vld [vmem:[#allocation16 + $0xac] sm:$0xf] }
 0x6a0   : > { %v5413_v44 = vsub.f32 %v5376_v7, %v1856_v31  ;;  %v3688_v31 = vld [vmem:[#allocation16 + $0xb8] sm:$0xf0] }
 0x6a2   : > { %v1872_v47 = vmul.f32 %v5413_v44, %v5413_v44 }
 0x6a4   : > { %1882 = vadd.xlane.f32.xlu0 %v1872_v47  ;;  %v3691_v47 = vor.u32 %v3911_v43, %v3688_v31  ;;  %v3619_v43 = vor.u32 %v3894_v25, %v3616_v17  ;;  %v3623_v31 = vor.u32 %v3897_v40, %v3622_v37  ;;  %v5451_v25 = vld [vmem:[#allocation13] ss:$0 sm:$0xff]  ;;  %v5455_v40 = vld [vmem:[#allocation14] ss:$0 sm:$0xff] }
 0x6a5   : > { %v1845_v48 = vpop.xlane.xlu1 %1844 }
 0x6a6   : > { %v1857_v49 = vmul.f32 %v1845_v48, %v4989_v13  ;;  %v3662_v48 = vld [vmem:[#allocation16 + $0x80] sm:$0xf]  ;;  %2314 = vmatpush.bf16.msra.mxu3 %v3691_v47  ;;  %v3895_v47 = vld [vmem:[#allocation16 + $0x2c] sm:$0xf] }
 0x6a8   : > { %v5419_v51 = vsub.f32 %v5380_v12, %v1857_v49  ;;  %v3908_v49 = vld [vmem:[#allocation16 + $0x8c] sm:$0xf0] }
 0x6aa   : > { %v1873_v59 = vmul.f32 %v5419_v51, %v5419_v51 }
 0x6ac   : > { %1884 = vadd.xlane.f32.xlu2 %v1873_v59  ;;  %v3906_v59 = vld [vmem:[#allocation16 + $0x84] sm:$0xf] }
 0x6b3   : > { %v1847_v53 = vpop.xlane.xlu0 %1846 }
 0x6b4   : > { %v1858_v18 = vmul.f32 %v1847_v53, %v4989_v13  ;;  %v3663_v53 = vor.u32 %v3908_v49, %v3662_v48  ;;  %v3624_v48 = vld [vmem:[#allocation16 + $0x38] sm:$0xf0] }
 0x6b5   : > { %v3627_v49 = vor.u32 %v3895_v47, %v3624_v48 }
 0x6b6   : > { %v5425_v54 = vsub.f32 %v5384_v61, %v1858_v18  ;;  %v3664_v18 = vld [vmem:[#allocation16 + $0x90] sm:$0xf0]  ;;  %2228 = vmatpush.bf16.msra.mxu0 %v3663_v53  ;;  %v3598_v53 = vld [vmem:[#allocation16] sm:$0xf] }
 0x6b8   : > { %v1874_v55 = vmul.f32 %v5425_v54, %v5425_v54 }
 0x6ba   : > { %1886 = vadd.xlane.f32.xlu1 %v1874_v55  ;;  %v3670_v55 = vld [vmem:[#allocation16 + $0x88] sm:$0xf]  ;;  %2229 = vmatpush.bf16.msra.mxu0 %v3647_v63 }
 0x6bb   : > { %v1849_v32 = vpop.xlane.xlu2 %1848 }
 0x6bc   : > { %v1859_v22 = vmul.f32 %v1849_v32, %v4989_v13  ;;  %v3909_v32 = vld [vmem:[#allocation16 + $0x94] sm:$0xf0] }
 0x6be   : > { %v5431_v57 = vsub.f32 %v5388_v23, %v1859_v22  ;;  %v3667_v22 = vor.u32 %v3906_v59, %v3664_v18  ;;  %2230 = vmatpush.bf16.msra.mxu0 %v3631_v15  ;;  %v3892_v18 = vld [vmem:[#allocation16 + $0xc] sm:$0xf0] }
 0x6c0   : > { %v1875_v28 = vmul.f32 %v5431_v57, %v5431_v57  ;;  %2257 = vmatpush.bf16.msra.mxu1 %v3667_v22  ;;  %v3600_v22 = vld [vmem:[#allocation16 + $0x10] sm:$0xf0] }
 0x6c2   : > { %1888 = vadd.xlane.f32.xlu0 %v1875_v28  ;;  %v3671_v28 = vor.u32 %v3909_v32, %v3670_v55  ;;  %2231 = vmatpush.bf16.msra.mxu0 %v3615_v19  ;;  %v3599_v55 = vor.u32 %v3892_v18, %v3598_v53  ;;  %v3890_v32 = vld [vmem:[#allocation16 + $0x4] sm:$0xf] }
 0x6c4   : > { %2286 = vmatpush.bf16.msra.mxu2 %v3671_v28  ;;  %2258 = vmatpush.bf16.msra.mxu1 %v3651_v34  ;;  %v3606_v28 = vld [vmem:[#allocation16 + $0x8] sm:$0xf] }
 0x6c6   : > { %2232 = vmatpush.bf16.msra.mxu0 %v3599_v55 }
 0x6c8   : > { %2287 = vmatpush.bf16.msra.mxu2 %v3655_v50  ;;  %2259 = vmatpush.bf16.msra.mxu1 %v3635_v30 }
 0x6cc   : > { %2288 = vmatpush.bf16.msra.mxu2 %v3639_v21  ;;  %2260 = vmatpush.bf16.msra.mxu1 %v3619_v43 }
 0x6d0   : > { %2289 = vmatpush.bf16.msra.mxu2 %v3623_v31 }
 0x6db   : > { %v1851_v58 = vpop.xlane.xlu2 %1850 }
 0x6dc   : > { %v1860_v39 = vmul.f32 %v1851_v58, %v4989_v13  ;;  %v3907_v58 = vld [vmem:[#allocation16 + $0x8c] sm:$0xf] }
 0x6de   : > { %v5437_v8 = vsub.f32 %v5392_v60, %v1860_v39  ;;  %v3672_v39 = vld [vmem:[#allocation16 + $0x98] sm:$0xf0] }
 0x6e0   : > { %v1876_v26 = vmul.f32 %v5437_v8, %v5437_v8 }
 0x6e2   : > { %1890 = vadd.xlane.f32.xlu2 %v1876_v26  ;;  %v3675_v26 = vor.u32 %v3907_v58, %v3672_v39  ;;  %v3603_v58 = vor.u32 %v3890_v32, %v3600_v22  ;;  %v3893_v39 = vld [vmem:[#allocation16 + $0x14] sm:$0xf0] }
 0x6e3   : > { %v3607_v46 = vor.u32 %v3893_v39, %v3606_v28 }
 0x6e4   : > { %2315 = vmatpush.bf16.msra.mxu3 %v3675_v26  ;;  %v3891_v26 = vld [vmem:[#allocation16 + $0xc] sm:$0xf]  ;;  %2261 = vmatpush.bf16.msra.mxu1 %v3603_v58 }
 0x6e5   : > { %v3611_v62 = vor.u32 %v3891_v26, %v3608_v45  ;;  %2290 = vmatpush.bf16.msra.mxu2 %v3607_v46 }
 0x6e8   : > { %2316 = vmatpush.bf16.msra.mxu3 %v3659_v6 }
 0x6ec   : > { %2317 = vmatpush.bf16.msra.mxu3 %v3643_v27 }
 0x6f0   : > { %2318 = vmatpush.bf16.msra.mxu3 %v3627_v49 }
 0x6f4   : > { %2319 = vmatpush.bf16.msra.mxu3 %v3611_v62 }
 0x6ff   : > { %v1879_v35 = vpop.xlane.xlu1 %1878 }
 0x700   : > { %v1894_v42 = vmul.f32 %v1879_v35, %v4989_v13 }
 0x702   : > { %v1902_v59 = vadd.f32 1e-05, %v1894_v42 }
 0x704   : > { %4214 = vrsqrt.f32 %v1902_v59  ;;  %vm1916_vm11 = vweird.f32 %v1902_v59 }
 0x707   : > { %v1853_v63 = vpop.xlane.xlu1 %1852  ;;  %v1881_v0 = vpop.xlane.xlu0 %1880 }
 0x708   : > { %v1861_v1 = vmul.f32 %v1853_v63, %v4989_v13  ;;  %v1895_v3 = vmul.f32 %v1881_v0, %v4989_v13 }
 0x70a   : > { %v4215_v34 = vpop.eup %4214  ;;  %v5445_v50 = vsub.f32 %v5406_v24, %v1861_v1  ;;  %v1903_v4 = vadd.f32 1e-05, %v1895_v3 }
 0x70b   : > { %v1911_v5 = vmul.f32 %v4215_v34, %v1902_v59  ;;  %vm1917_vm10 = vweird.f32 %v4215_v34 }
 0x70c   : > { %4216 = vrsqrt.f32 %v1903_v4  ;;  %v1877_v6 = vmul.f32 %v5445_v50, %v5445_v50  ;;  %vm1918_vm12 = vmor %vm1916_vm11, %vm1917_vm10  ;;  %vm1926_vm14 = vweird.f32 %v1903_v4 }
 0x70d   : > { %v1912_v9 = vmul.f32 %v4215_v34, %v1911_v5 }
 0x70e   : > { %1892 = vadd.xlane.f32.xlu1 %v1877_v6 }
 0x70f   : > { %v1913_v10 = vmul.f32 0.5, %v1912_v9 }
 0x711   : > { %v1914_v11 = vsub.f32 1.5, %v1913_v10 }
 0x712   : > { %v4217_v15 = vpop.eup %4216 }
 0x713   : > { %v1915_v16 = vmul.f32 %v4215_v34, %v1914_v11  ;;  %v1921_v20 = vmul.f32 %v4217_v15, %v1903_v4  ;;  %vm1927_vm13 = vweird.f32 %v4217_v15 }
 0x714   : > { %vm1928_vm15 = vmor %vm1926_vm14, %vm1927_vm13 }
 0x715   : > { %v1922_v36 = vmul.f32 %v4217_v15, %v1921_v20  ;;  %v1919_v30 = vsel %vm1918_vm12, %v4215_v34, %v1915_v16 }
 0x716   : > { %v1990_v52 = vmul.f32 %v1919_v30, %v5397_v41 }
 0x717   : > { %v1923_v21 = vmul.f32 0.5, %v1922_v36  ;;  %v1883_v14 = vpop.xlane.xlu0 %1882 }
 0x718   : > { %v1896_v33 = vmul.f32 %v1883_v14, %v4989_v13  ;;  %v2001_v37 = vmul.f32 %v5451_v25, %v1990_v52 }
 0x719   : > { %v1924_v27 = vsub.f32 1.5, %v1923_v21 }
 0x71a   : > { %v1904_v29 = vadd.f32 1e-05, %v1896_v33  ;;  %v2012_v48 = vadd.f32 %v5455_v40, %v2001_v37 }
 0x71b   : > { %v1925_v35 = vmul.f32 %v4217_v15, %v1924_v27 }
 0x71c   : > { %4218 = vrsqrt.f32 %v1904_v29  ;;  %vm1936_vm1 = vweird.f32 %v1904_v29 }
 0x71d   : > { %v1929_v19 = vsel %vm1928_vm15, %v4217_v15, %v1925_v35 }
 0x71e   : > { %v1991_v17 = vmul.f32 %v1929_v19, %v5403_v38 }
 0x71f   : > { %v1885_v42 = vpop.xlane.xlu2 %1884 }
 0x720   : > { %v1897_v43 = vmul.f32 %v1885_v42, %v4989_v13  ;;  %v2002_v31 = vmul.f32 %v5451_v25, %v1991_v17 }
 0x722   : > { %v4219_v41 = vpop.eup %4218  ;;  %v1905_v47 = vadd.f32 1e-05, %v1897_v43  ;;  %v2013_v49 = vadd.f32 %v5455_v40, %v2002_v31 }
 0x723   : > { %v1931_v59 = vmul.f32 %v4219_v41, %v1904_v29  ;;  %vm1937_vm0 = vweird.f32 %v4219_v41 }
 0x724   : > { %4220 = vrsqrt.f32 %v1905_v47  ;;  %v2020_v53 = vpack.c.bf16 %v2013_v49, %v2012_v48  ;;  %vm1938_vm2 = vmor %vm1936_vm1, %vm1937_vm0  ;;  %vm1946_vm4 = vweird.f32 %v1905_v47 }
 0x725   : > { %v1932_v18 = vmul.f32 %v4219_v41, %v1931_v59 }
 0x726   : > { %2233 = vmatmul.bf16.vlgmr.msra.gmra.mxu0 %v2020_v53  ;;  %2262 = vmatmul.bf16.vlgmr.msra.gmra.mxu1 %v2020_v53 }
 0x727   : > { %v1933_v38 = vmul.f32 0.5, %v1932_v18  ;;  %2291 = vmatmul.bf16.vlgmr.msra.gmra.mxu2 %v2020_v53  ;;  %2320 = vmatmul.bf16.vlgmr.msra.gmra.mxu3 %v2020_v53 }
 0x729   : > { %v1934_v55 = vsub.f32 1.5, %v1933_v38 }
 0x72a   : > { %v4221_v32 = vpop.eup %4220 }
 0x72b   : > { %v1935_v22 = vmul.f32 %v4219_v41, %v1934_v55  ;;  %v1941_v28 = vmul.f32 %v4221_v32, %v1905_v47  ;;  %vm1947_vm3 = vweird.f32 %v4221_v32 }
 0x72c   : > { %vm1948_vm5 = vmor %vm1946_vm4, %vm1947_vm3 }
 0x72d   : > { %v1942_v58 = vmul.f32 %v4221_v32, %v1941_v28  ;;  %v1887_v39 = vpop.xlane.xlu1 %1886  ;;  %v1939_v45 = vsel %vm1938_vm2, %v4219_v41, %v1935_v22  ;;  %v3929_v28 = vld [vmem:[#allocation17 + $0x38] sm:$0xff] }
 0x72e   : > { %v1898_v26 = vmul.f32 %v1887_v39, %v4989_v13  ;;  %v1992_v0 = vmul.f32 %v1939_v45, %v5413_v44  ;;  %2904 = vmatpush.bf16.msrb.mxu0 %v3929_v28  ;;  %v3928_v45 = vld [vmem:[#allocation17 + $0x30] sm:$0xff] }
 0x72f   : > { %v1943_v46 = vmul.f32 0.5, %v1942_v58  ;;  %v3937_v58 = vld [vmem:[#allocation17 + $0x78] sm:$0xff] }
 0x730   : > { %v1906_v62 = vadd.f32 1e-05, %v1898_v26  ;;  %v2003_v6 = vmul.f32 %v5451_v25, %v1992_v0  ;;  %2933 = vmatpush.bf16.msrb.mxu1 %v3937_v58  ;;  %v3945_v0 = vld [vmem:[#allocation17 + $0xb8] sm:$0xff]  ;;  %v3939_v58 = vld [vmem:[#allocation17 + $0x88] sm:$0xff] }
 0x731   : > { %v1944_v63 = vsub.f32 1.5, %v1943_v46  ;;  %v3936_v46 = vld [vmem:[#allocation17 + $0x70] sm:$0xff]  ;;  %2962 = vmatpush.bf16.msrb.mxu2 %v3945_v0 }
 0x732   : > { %4222 = vrsqrt.f32 %v1906_v62  ;;  %v2014_v44 = vadd.f32 %v5455_v40, %v2003_v6  ;;  %vm1956_vm7 = vweird.f32 %v1906_v62  ;;  %2905 = vmatpush.bf16.msrb.mxu0 %v3928_v45 }
 0x733   : > { %v1945_v1 = vmul.f32 %v4221_v32, %v1944_v63 }
 0x734   : > { %2934 = vmatpush.bf16.msrb.mxu1 %v3936_v46 }
 0x735   : > { %v1949_v3 = vsel %vm1948_vm5, %v4221_v32, %v1945_v1  ;;  %v1889_v34 = vpop.xlane.xlu0 %1888  ;;  %v3953_v1 = vld [vmem:[#allocation17 + $0xf8] sm:$0xff] }
 0x736   : > { %v1993_v4 = vmul.f32 %v1949_v3, %v5419_v51  ;;  %v1899_v5 = vmul.f32 %v1889_v34, %v4989_v13  ;;  %2991 = vmatpush.bf16.msrb.mxu3 %v3953_v1  ;;  %v3927_v34 = vld [vmem:[#allocation17 + $0x28] sm:$0xff] }
 0x737   : > { %2906 = vmatpush.bf16.msrb.mxu0 %v3927_v34 }
 0x738   : > { %v4223_v9 = vpop.eup %4222  ;;  %v1907_v10 = vadd.f32 1e-05, %v1899_v5  ;;  %v2004_v11 = vmul.f32 %v5451_v25, %v1993_v4  ;;  %v3935_v4 = vld [vmem:[#allocation17 + $0x68] sm:$0xff] }
 0x739   : > { %v1951_v15 = vmul.f32 %v4223_v9, %v1906_v62  ;;  %vm1957_vm6 = vweird.f32 %v4223_v9  ;;  %2935 = vmatpush.bf16.msrb.mxu1 %v3935_v4 }
 0x73a   : > { %4224 = vrsqrt.f32 %v1907_v10  ;;  %v2015_v16 = vadd.f32 %v5455_v40, %v2004_v11  ;;  %vm1958_vm8 = vmor %vm1956_vm7, %vm1957_vm6  ;;  %vm1966_vm10 = vweird.f32 %v1907_v10 }
 0x73b   : > { %v1952_v20 = vmul.f32 %v4223_v9, %v1951_v15 }
 0x73c   : > { %v2021_v36 = vpack.c.bf16 %v2015_v16, %v2014_v44  ;;  %v3926_v44 = vld [vmem:[#allocation17 + $0x20] sm:$0xff] }
 0x73d   : > { %v1953_v30 = vmul.f32 0.5, %v1952_v20  ;;  %v3934_v16 = vld [vmem:[#allocation17 + $0x60] sm:$0xff]  ;;  %2907 = vmatpush.bf16.msrb.mxu0 %v3926_v44 }
 0x73e   : > { %2238 = vmatmul.bf16.gmra.mxu0 %v2021_v36  ;;  %2267 = vmatmul.bf16.gmra.mxu1 %v2021_v36 }
 0x73f   : > { %v1954_v51 = vsub.f32 1.5, %v1953_v30  ;;  %2296 = vmatmul.bf16.gmra.mxu2 %v2021_v36  ;;  %2325 = vmatmul.bf16.gmra.mxu3 %v2021_v36  ;;  %v3943_v36 = vld [vmem:[#allocation17 + $0xa8] sm:$0xff] }
 0x740   : > { %v4225_v21 = vpop.eup %4224  ;;  %2936 = vmatpush.bf16.msrb.mxu1 %v3934_v16  ;;  %v3951_v30 = vld [vmem:[#allocation17 + $0xe8] sm:$0xff] }
 0x741   : > { %v1955_v14 = vmul.f32 %v4223_v9, %v1954_v51  ;;  %v1961_v33 = vmul.f32 %v4225_v21, %v1907_v10  ;;  %vm1967_vm9 = vweird.f32 %v4225_v21  ;;  %v3952_v10 = vld [vmem:[#allocation17 + $0xf0] sm:$0xff] }
 0x742   : > { %vm1968_vm11 = vmor %vm1966_vm10, %vm1967_vm9  ;;  %2992 = vmatpush.bf16.msrb.mxu3 %v3952_v10 }
 0x743   : > { %v1962_v27 = vmul.f32 %v4225_v21, %v1961_v33  ;;  %v1959_v52 = vsel %vm1958_vm8, %v4223_v9, %v1955_v14  ;;  %v3944_v9 = vld [vmem:[#allocation17 + $0xb0] sm:$0xff]  ;;  %v3925_v33 = vld [vmem:[#allocation17 + $0x18] sm:$0xff] }
 0x744   : > { %v1994_v19 = vmul.f32 %v1959_v52, %v5425_v54  ;;  %2963 = vmatpush.bf16.msrb.mxu2 %v3944_v9  ;;  %2908 = vmatpush.bf16.msrb.mxu0 %v3925_v33  ;;  %v3942_v52 = vld [vmem:[#allocation17 + $0xa0] sm:$0xff] }
 0x745   : > { %v1963_v29 = vmul.f32 0.5, %v1962_v27 }
 0x746   : > { %v2005_v43 = vmul.f32 %v5451_v25, %v1994_v19  ;;  %2993 = vmatpush.bf16.msrb.mxu3 %v3951_v30 }
 0x747   : > { %v1964_v35 = vsub.f32 1.5, %v1963_v29  ;;  %v3950_v29 = vld [vmem:[#allocation17 + $0xe0] sm:$0xff] }
 0x748   : > { %v2016_v41 = vadd.f32 %v5455_v40, %v2005_v43  ;;  %2964 = vmatpush.bf16.msrb.mxu2 %v3943_v36  ;;  %v3949_v43 = vld [vmem:[#allocation17 + $0xd8] sm:$0xff] }
 0x749   : > { %v1965_v17 = vmul.f32 %v4225_v21, %v1964_v35 }
 0x74a   : > { %2994 = vmatpush.bf16.msrb.mxu3 %v3950_v29 }
 0x74b   : > { %v1969_v37 = vsel %vm1968_vm11, %v4225_v21, %v1965_v17  ;;  %v3924_v17 = vld [vmem:[#allocation17 + $0x10] sm:$0xff] }
 0x74c   : > { %v1995_v42 = vmul.f32 %v1969_v37, %v5431_v57  ;;  %2965 = vmatpush.bf16.msrb.mxu2 %v3942_v52  ;;  %v664_v37 = vld [vmem:[%s5934_s1] sm:$0xf]  ;;  %2909 = vmatpush.bf16.msrb.mxu0 %v3924_v17  ;;  %s3230_s1 = scalar_lea.hbm %s5938_s16, %s3954_s5 }
 0x74d   : > { %v5502_v28 = vperm.slane %v664_v37, 3  ;;  %s3233_s25 = sshll.u32 %s3230_s1, 4  ;;  %s3234_s25 = int_to_ptr.hbm [resolvable:$true] %s3233_s25 }
 0x74e   : > { %v2006_v31 = vmul.f32 %v5451_v25, %v1995_v42  ;;  %2995 = vmatpush.bf16.msrb.mxu3 %v3949_v43 }
 0x750   : > { %v2017_v47 = vadd.f32 %v5455_v40, %v2006_v31  ;;  %v5486_v31 = vperm.slane %v664_v37, 0 }
 0x752   : > { %v2022_v48 = vpack.c.bf16 %v2017_v47, %v2016_v41  ;;  %v5488_v41 = vperm.slane %v664_v37, 1  ;;  %v3931_v47 = vld [vmem:[#allocation17 + $0x48] sm:$0xff] }
 0x754   : > { %2243 = vmatmul.bf16.gmra.mxu0 %v2022_v48  ;;  %2272 = vmatmul.bf16.gmra.mxu1 %v2022_v48 }
 0x755   : > { %2301 = vmatmul.bf16.gmra.mxu2 %v2022_v48  ;;  %2330 = vmatmul.bf16.gmra.mxu3 %v2022_v48  ;;  %v1891_v54 = vpop.xlane.xlu2 %1890  ;;  %v3940_v48 = vld [vmem:[#allocation17 + $0x90] sm:$0xff] }
 0x756   : > { %v1900_v49 = vmul.f32 %v1891_v54, %v4989_v13  ;;  %v3948_v54 = vld [vmem:[#allocation17 + $0xd0] sm:$0xff] }
 0x757   : > { %2996 = vmatpush.bf16.msrb.mxu3 %v3948_v54 }
 0x758   : > { %v1908_v59 = vadd.f32 1e-05, %v1900_v49 }
 0x75a   : > { %4226 = vrsqrt.f32 %v1908_v59  ;;  %vm1976_vm13 = vweird.f32 %v1908_v59 }
 0x760   : > { %v4227_v53 = vpop.eup %4226 }
 0x761   : > { %v1971_v57 = vmul.f32 %v4227_v53, %v1908_v59  ;;  %vm1977_vm12 = vweird.f32 %v4227_v53 }
 0x762   : > { %vm1978_vm14 = vmor %vm1976_vm13, %vm1977_vm12 }
 0x763   : > { %v1972_v18 = vmul.f32 %v4227_v53, %v1971_v57 }
 0x765   : > { %v1973_v22 = vmul.f32 0.5, %v1972_v18  ;;  %v3922_v18 = vld [vmem:[#allocation17] sm:$0xff] }
 0x767   : > { %v1974_v39 = vsub.f32 1.5, %v1973_v22  ;;  %v5500_v22 = vperm.slane %v664_v37, 2 }
 0x769   : > { %v1975_v62 = vmul.f32 %v4227_v53, %v1974_v39  ;;  %v3947_v39 = vld [vmem:[#allocation17 + $0xc8] sm:$0xff] }
 0x76a   : > { %2997 = vmatpush.bf16.msrb.mxu3 %v3947_v39 }
 0x76b   : > { %v1979_v5 = vsel %vm1978_vm14, %v4227_v53, %v1975_v62 }
 0x76c   : > { %v1996_v15 = vmul.f32 %v1979_v5, %v5437_v8  ;;  %v3933_v8 = vld [vmem:[#allocation17 + $0x58] sm:$0xff]  ;;  %v3938_v5 = vld [vmem:[#allocation17 + $0x80] sm:$0xff] }
 0x76d   : > { %2937 = vmatpush.bf16.msrb.mxu1 %v3933_v8 }
 0x76e   : > { %v2007_v14 = vmul.f32 %v5451_v25, %v1996_v15 }
 0x770   : > { %v2018_v35 = vadd.f32 %v5455_v40, %v2007_v14 }
 0x781   : > { %v1893_v38 = vpop.xlane.xlu1 %1892 }
 0x782   : > { %v1901_v55 = vmul.f32 %v1893_v38, %v4989_v13  ;;  %v3930_v38 = vld [vmem:[#allocation17 + $0x40] sm:$0xff] }
 0x784   : > { %v1909_v32 = vadd.f32 1e-05, %v1901_v55 }
 0x786   : > { %4228 = vrsqrt.f32 %v1909_v32  ;;  %vm1986_vm0 = vweird.f32 %v1909_v32 }
 0x78c   : > { %v4229_v26 = vpop.eup %4228 }
 0x78d   : > { %v1981_v63 = vmul.f32 %v4229_v26, %v1909_v32  ;;  %vm1987_vm15 = vweird.f32 %v4229_v26 }
 0x78e   : > { %vm1988_vm1 = vmor %vm1986_vm0, %vm1987_vm15 }
 0x78f   : > { %v1982_v3 = vmul.f32 %v4229_v26, %v1981_v63 }
 0x791   : > { %v1983_v6 = vmul.f32 0.5, %v1982_v3 }
 0x793   : > { %v1984_v11 = vsub.f32 1.5, %v1983_v6  ;;  %v3946_v6 = vld [vmem:[#allocation17 + $0xc0] sm:$0xff] }
 0x794   : > { %2998 = vmatpush.bf16.msrb.mxu3 %v3946_v6 }
 0x795   : > { %v1985_v20 = vmul.f32 %v4229_v26, %v1984_v11 }
 0x797   : > { %v1989_v51 = vsel %vm1988_vm1, %v4229_v26, %v1985_v20 }
 0x798   : > { %v1997_v21 = vmul.f32 %v1989_v51, %v5445_v50  ;;  %v3932_v50 = vld [vmem:[#allocation17 + $0x50] sm:$0xff] }
 0x799   : > { %2938 = vmatpush.bf16.msrb.mxu1 %v3932_v50 }
 0x79a   : > { %v2008_v27 = vmul.f32 %v5451_v25, %v1997_v21  ;;  %v3941_v25 = vld [vmem:[#allocation17 + $0x98] sm:$0xff] }
 0x79b   : > { %2966 = vmatpush.bf16.msrb.mxu2 %v3941_v25 }
 0x79c   : > { %v2019_v19 = vadd.f32 %v5455_v40, %v2008_v27  ;;  %v3923_v40 = vld [vmem:[#allocation17 + $0x8] sm:$0xff] }
 0x79d   : > { %2910 = vmatpush.bf16.msrb.mxu0 %v3923_v40  ;;  %2939 = vmatpush.bf16.msrb.mxu1 %v3931_v47 }
 0x79e   : > { %v2023_v42 = vpack.c.bf16 %v2019_v19, %v2018_v35 }
 0x79f   : > { %2967 = vmatpush.bf16.msrb.mxu2 %v3940_v48 }
 0x7a0   : > { %2248 = vmatmul.bf16.gmra.mxu0 %v2023_v42  ;;  %2277 = vmatmul.bf16.gmra.mxu1 %v2023_v42 }
 0x7a1   : > { %2306 = vmatmul.bf16.gmra.mxu2 %v2023_v42  ;;  %2335 = vmatmul.bf16.gmra.mxu3 %v2023_v42 }
 0x7a2   : > { %2911 = vmatpush.bf16.msrb.mxu0 %v3922_v18  ;;  %2940 = vmatpush.bf16.msrb.mxu1 %v3930_v38 }
 0x7a3   : > { %v2234_v49 = vpop.f32.mrf.mxu0  ;;  %v2263_v59 = vpop.f32.mrf.mxu1  ;;  %2968 = vmatpush.bf16.msrb.mxu2 %v3939_v58 }
 0x7a4   : > { %v5491_v53 = vadd.f32 %v2234_v49, %v5486_v31  ;;  %v5494_v57 = vadd.f32 %v2263_v59, %v5488_v41 }
 0x7a6   : > { %v2341_v55 = vmul.f32 %v5491_v53, %v5491_v53  ;;  %v2342_v32 = vmul.f32 %v5494_v57, %v5494_v57 }
 0x7a7   : > { %2969 = vmatpush.bf16.msrb.mxu2 %v3938_v5 }
 0x7a8   : > { %v2373_v26 = vmul.f32 %v2341_v55, %v5491_v53  ;;  %v2374_v45 = vmul.f32 %v2342_v32, %v5494_v57 }
 0x7aa   : > { %v2405_v46 = vmul.f32 0.044715, %v2373_v26  ;;  %v2406_v62 = vmul.f32 0.044715, %v2374_v45  ;;  %v2292_v63 = vpop.f32.mrf.mxu2  ;;  %v2321_v0 = vpop.f32.mrf.mxu3 }
 0x7ab   : > { %v5507_v1 = vadd.f32 %v2292_v63, %v5500_v22  ;;  %v5510_v3 = vadd.f32 %v2321_v0, %v5502_v28  ;;  %v2236_v34 = vpop.f32.mrf.mxu0  ;;  %v2265_v4 = vpop.f32.mrf.mxu1 }
 0x7ac   : > { %v2437_v9 = vadd.f32 %v2405_v46, %v5491_v53  ;;  %v2438_v10 = vadd.f32 %v2406_v62, %v5494_v57  ;;  %v5515_v11 = vadd.f32 %v2236_v34, %v5486_v31  ;;  %v5518_v15 = vadd.f32 %v2265_v4, %v5488_v41 }
 0x7ad   : > { %v2343_v44 = vmul.f32 %v5507_v1, %v5507_v1  ;;  %v2344_v16 = vmul.f32 %v5510_v3, %v5510_v3 }
 0x7ae   : > { %v2469_v20 = vmul.f32 0.7978846, %v2437_v9  ;;  %v2470_v36 = vmul.f32 0.7978846, %v2438_v10  ;;  %v2345_v30 = vmul.f32 %v5515_v11, %v5515_v11  ;;  %v2346_v51 = vmul.f32 %v5518_v15, %v5518_v15 }
 0x7af   : > { %v2375_v21 = vmul.f32 %v2343_v44, %v5507_v1  ;;  %v2376_v14 = vmul.f32 %v2344_v16, %v5510_v3 }
 0x7b0   : > { %4230 = vtanh.f32 %v2469_v20  ;;  %v2377_v33 = vmul.f32 %v2345_v30, %v5515_v11  ;;  %v2378_v8 = vmul.f32 %v2346_v51, %v5518_v15 }
 0x7b1   : > { %4232 = vtanh.f32 %v2470_v36  ;;  %v2407_v27 = vmul.f32 0.044715, %v2375_v21  ;;  %v2408_v52 = vmul.f32 0.044715, %v2376_v14 }
 0x7b2   : > { %v2409_v29 = vmul.f32 0.044715, %v2377_v33  ;;  %v2410_v35 = vmul.f32 0.044715, %v2378_v8  ;;  %v2294_v19 = vpop.f32.mrf.mxu2  ;;  %v2323_v17 = vpop.f32.mrf.mxu3 }
 0x7b3   : > { %v2439_v50 = vadd.f32 %v2407_v27, %v5507_v1  ;;  %v2440_v37 = vadd.f32 %v2408_v52, %v5510_v3  ;;  %v5535_v42 = vadd.f32 %v2294_v19, %v5500_v22  ;;  %v5538_v25 = vadd.f32 %v2323_v17, %v5502_v28 }
 0x7b4   : > { %v2441_v43 = vadd.f32 %v2409_v29, %v5515_v11  ;;  %v2442_v40 = vadd.f32 %v2410_v35, %v5518_v15 }
 0x7b5   : > { %v2471_v47 = vmul.f32 0.7978846, %v2439_v50  ;;  %v2472_v48 = vmul.f32 0.7978846, %v2440_v37  ;;  %v2347_v54 = vmul.f32 %v5535_v42, %v5535_v42  ;;  %v2348_v49 = vmul.f32 %v5538_v25, %v5538_v25 }
 0x7b6   : > { %v4231_v59 = vpop.eup %4230  ;;  %v2473_v18 = vmul.f32 0.7978846, %v2441_v43  ;;  %v2474_v38 = vmul.f32 0.7978846, %v2442_v40 }
 0x7b7   : > { %v4233_v55 = vpop.eup %4232  ;;  %4234 = vtanh.f32 %v2471_v47  ;;  %v2379_v32 = vmul.f32 %v2347_v54, %v5535_v42  ;;  %v2380_v58 = vmul.f32 %v2348_v49, %v5538_v25  ;;  %v2533_v39 = vadd.f32 1.0, %v4231_v59 }
 0x7b8   : > { %4236 = vtanh.f32 %v2472_v48  ;;  %v2534_v46 = vadd.f32 1.0, %v4233_v55 }
 0x7b9   : > { %4238 = vtanh.f32 %v2473_v18  ;;  %v2411_v26 = vmul.f32 0.044715, %v2379_v32  ;;  %v2412_v45 = vmul.f32 0.044715, %v2380_v58  ;;  %v2565_v9 = vmul.f32 0.5, %v2533_v39 }
 0x7ba   : > { %4240 = vtanh.f32 %v2474_v38  ;;  %v2566_v20 = vmul.f32 0.5, %v2534_v46 }
 0x7bb   : > { %v2443_v62 = vadd.f32 %v2411_v26, %v5535_v42  ;;  %v2444_v63 = vadd.f32 %v2412_v45, %v5538_v25  ;;  %v2239_v0 = vpop.f32.mrf.mxu0  ;;  %v2268_v34 = vpop.f32.mrf.mxu1  ;;  %v2597_v29 = vmul.f32 %v2565_v9, %v5491_v53 }
 0x7bc   : > { %v5551_v4 = vadd.f32 %v2239_v0, %v5486_v31  ;;  %v5554_v5 = vadd.f32 %v2268_v34, %v5488_v41  ;;  %v2598_v17 = vmul.f32 %v2566_v20, %v5494_v57 }
 0x7bd   : > { %v4235_v6 = vpop.eup %4234  ;;  %v2475_v10 = vmul.f32 0.7978846, %v2443_v62  ;;  %v2476_v44 = vmul.f32 0.7978846, %v2444_v63 }
 0x7be   : > { %v4237_v16 = vpop.eup %4236  ;;  %v2535_v36 = vadd.f32 1.0, %v4235_v6  ;;  %v2349_v30 = vmul.f32 %v5551_v4, %v5551_v4  ;;  %v2350_v51 = vmul.f32 %v5554_v5, %v5554_v5 }
 0x7bf   : > { %v4239_v21 = vpop.eup %4238  ;;  %v2536_v14 = vadd.f32 1.0, %v4237_v16  ;;  %4242 = vtanh.f32 %v2475_v10 }
 0x7c0   : > { %v4241_v33 = vpop.eup %4240  ;;  %v2567_v8 = vmul.f32 0.5, %v2535_v36  ;;  %v2537_v27 = vadd.f32 1.0, %v4239_v21  ;;  %4244 = vtanh.f32 %v2476_v44  ;;  %v2381_v52 = vmul.f32 %v2349_v30, %v5551_v4 }
 0x7c1   : > { %v2538_v35 = vadd.f32 1.0, %v4241_v33  ;;  %v2382_v19 = vmul.f32 %v2350_v51, %v5554_v5  ;;  %v2568_v50 = vmul.f32 0.5, %v2536_v14 }
 0x7c2   : > { %v2569_v37 = vmul.f32 0.5, %v2537_v27  ;;  %v2413_v43 = vmul.f32 0.044715, %v2381_v52  ;;  %v2297_v40 = vpop.f32.mrf.mxu2  ;;  %v2326_v47 = vpop.f32.mrf.mxu3  ;;  %v2599_v48 = vmul.f32 %v2567_v8, %v5507_v1 }
 0x7c3   : > { %v2570_v54 = vmul.f32 0.5, %v2538_v35  ;;  %v2414_v49 = vmul.f32 0.044715, %v2382_v19  ;;  %v5566_v59 = vadd.f32 %v2297_v40, %v5500_v22  ;;  %v2241_v18 = vpop.f32.mrf.mxu0  ;;  %v2270_v38 = vpop.f32.mrf.mxu1  ;;  %v5571_v57 = vadd.f32 %v2326_v47, %v5502_v28 }
 0x7c4   : > { %v2601_v53 = vmul.f32 %v2569_v37, %v5515_v11  ;;  %v2445_v55 = vadd.f32 %v2413_v43, %v5551_v4  ;;  %v5574_v32 = vadd.f32 %v2241_v18, %v5486_v31  ;;  %v5581_v45 = vadd.f32 %v2270_v38, %v5488_v41 }
 0x7c5   : > { %v4243_v58 = vpop.eup %4242  ;;  %v2602_v1 = vmul.f32 %v2570_v54, %v5518_v15  ;;  %v2446_v39 = vadd.f32 %v2414_v49, %v5554_v5  ;;  %v2351_v26 = vmul.f32 %v5566_v59, %v5566_v59  ;;  %v2352_v0 = vmul.f32 %v5571_v57, %v5571_v57 }
 0x7c6   : > { %v4245_v11 = vpop.eup %4244  ;;  %v2629_v46 = vpack.c.bf16 %v2601_v53, %v2597_v29  ;;  %v2539_v62 = vadd.f32 1.0, %v4243_v58  ;;  %v2477_v63 = vmul.f32 0.7978846, %v2445_v55  ;;  %v2353_v16 = vmul.f32 %v5574_v32, %v5574_v32 }
 0x7c7   : > { %v2630_v34 = vpack.c.bf16 %v2602_v1, %v2598_v17  ;;  %v2540_v6 = vadd.f32 1.0, %v4245_v11  ;;  %v2478_v9 = vmul.f32 0.7978846, %v2446_v39  ;;  %v2383_v15 = vmul.f32 %v2351_v26, %v5566_v59 }
 0x7c8   : > { %v2571_v10 = vmul.f32 0.5, %v2539_v62  ;;  %4246 = vtanh.f32 %v2477_v63  ;;  %v2384_v44 = vmul.f32 %v2352_v0, %v5571_v57  ;;  %2912 = vmatmul.bf16.vlgmr.msrb.gmra.mxu0 %v2629_v46  ;;  %v2354_v30 = vmul.f32 %v5581_v45, %v5581_v45 }
 0x7c9   : > { %v2572_v20 = vmul.f32 0.5, %v2540_v6  ;;  %4248 = vtanh.f32 %v2478_v9  ;;  %v2415_v36 = vmul.f32 0.044715, %v2383_v15  ;;  %2941 = vmatmul.bf16.vlgmr.msrb.gmra.mxu1 %v2630_v34  ;;  %v2600_v51 = vmul.f32 %v2568_v50, %v5510_v3 }
 0x7ca   : > { %v2603_v21 = vmul.f32 %v2571_v10, %v5535_v42  ;;  %v2416_v14 = vmul.f32 0.044715, %v2384_v44  ;;  %v2385_v33 = vmul.f32 %v2353_v16, %v5574_v32  ;;  %v2299_v8 = vpop.f32.mrf.mxu2  ;;  %v2328_v27 = vpop.f32.mrf.mxu3  ;;  %v2386_v35 = vmul.f32 %v2354_v30, %v5581_v45 }
 0x7cb   : > { %v2604_v52 = vmul.f32 %v2572_v20, %v5538_v25  ;;  %v2447_v29 = vadd.f32 %v2415_v36, %v5566_v59  ;;  %v5598_v19 = vadd.f32 %v2299_v8, %v5500_v22  ;;  %v5602_v42 = vadd.f32 %v2328_v27, %v5502_v28 }
 0x7cc   : > { %v2631_v17 = vpack.c.bf16 %v2603_v21, %v2599_v48  ;;  %v2448_v37 = vadd.f32 %v2416_v14, %v5571_v57  ;;  %v2417_v3 = vmul.f32 0.044715, %v2385_v33  ;;  %v2418_v40 = vmul.f32 0.044715, %v2386_v35 }
 0x7cd   : > { %v2632_v50 = vpack.c.bf16 %v2604_v52, %v2600_v51  ;;  %v2479_v43 = vmul.f32 0.7978846, %v2447_v29  ;;  %v2355_v25 = vmul.f32 %v5598_v19, %v5598_v19  ;;  %v2356_v18 = vmul.f32 %v5602_v42, %v5602_v42 }
 0x7ce   : > { %v4247_v47 = vpop.eup %4246  ;;  %v2480_v54 = vmul.f32 0.7978846, %v2448_v37  ;;  %v2449_v49 = vadd.f32 %v2417_v3, %v5574_v32  ;;  %2970 = vmatmul.bf16.vlgmr.msrb.gmra.mxu2 %v2631_v17  ;;  %v2450_v38 = vadd.f32 %v2418_v40, %v5581_v45 }
 0x7cf   : > { %v4249_v48 = vpop.eup %4248  ;;  %4250 = vtanh.f32 %v2479_v43  ;;  %v2387_v53 = vmul.f32 %v2355_v25, %v5598_v19  ;;  %2999 = vmatmul.bf16.vlgmr.msrb.gmra.mxu3 %v2632_v50  ;;  %v2541_v55 = vadd.f32 1.0, %v4247_v47  ;;  %v2388_v1 = vmul.f32 %v2356_v18, %v5602_v42 }
 0x7d0   : > { %4252 = vtanh.f32 %v2480_v54  ;;  %v2481_v58 = vmul.f32 0.7978846, %v2449_v49  ;;  %v2542_v39 = vadd.f32 1.0, %v4249_v48  ;;  %v2482_v26 = vmul.f32 0.7978846, %v2450_v38 }
 0x7d1   : > { %v2419_v11 = vmul.f32 0.044715, %v2387_v53  ;;  %v2244_v46 = vpop.f32.mrf.mxu0  ;;  %v2273_v62 = vpop.f32.mrf.mxu1  ;;  %v2420_v63 = vmul.f32 0.044715, %v2388_v1  ;;  %v2573_v9 = vmul.f32 0.5, %v2541_v55 }
 0x7d2   : > { %4254 = vtanh.f32 %v2481_v58  ;;  %v5613_v0 = vadd.f32 %v2244_v46, %v5486_v31  ;;  %v5616_v34 = vadd.f32 %v2273_v62, %v5488_v41  ;;  %v2574_v15 = vmul.f32 0.5, %v2542_v39 }
 0x7d3   : > { %4256 = vtanh.f32 %v2482_v26  ;;  %v2451_v6 = vadd.f32 %v2419_v11, %v5598_v19  ;;  %v2452_v10 = vadd.f32 %v2420_v63, %v5602_v42  ;;  %v2605_v8 = vmul.f32 %v2573_v9, %v5551_v4 }
 0x7d4   : > { %v2357_v44 = vmul.f32 %v5613_v0, %v5613_v0  ;;  %v2358_v16 = vmul.f32 %v5616_v34, %v5616_v34  ;;  %v5628_v27 = vmul.f32 %v2574_v15, %v5554_v5 }
 0x7d5   : > { %v4251_v20 = vpop.eup %4250  ;;  %v2483_v36 = vmul.f32 0.7978846, %v2451_v6  ;;  %v2484_v51 = vmul.f32 0.7978846, %v2452_v10 }
 0x7d6   : > { %v4253_v30 = vpop.eup %4252  ;;  %v2389_v21 = vmul.f32 %v2357_v44, %v5613_v0  ;;  %v2390_v14 = vmul.f32 %v2358_v16, %v5616_v34  ;;  %v2543_v33 = vadd.f32 1.0, %v4251_v20 }
 0x7d7   : > { %4258 = vtanh.f32 %v2483_v36  ;;  %v2544_v52 = vadd.f32 1.0, %v4253_v30 }
 0x7d8   : > { %v4255_v29 = vpop.eup %4254  ;;  %4260 = vtanh.f32 %v2484_v51  ;;  %v2421_v35 = vmul.f32 0.044715, %v2389_v21  ;;  %v2422_v17 = vmul.f32 0.044715, %v2390_v14  ;;  %v2302_v37 = vpop.f32.mrf.mxu2  ;;  %v2575_v50 = vmul.f32 0.5, %v2543_v33 }
 0x7d9   : > { %v2331_v3 = vpop.f32.mrf.mxu3  ;;  %v4257_v43 = vpop.eup %4256  ;;  %v5631_v40 = vadd.f32 %v2302_v37, %v5500_v22  ;;  %v2545_v54 = vadd.f32 1.0, %v4255_v29  ;;  %v5636_v5 = vmul.f32 0.5, %v2544_v52 }
 0x7da   : > { %v5634_v25 = vadd.f32 %v2331_v3, %v5502_v28  ;;  %v2246_v47 = vpop.f32.mrf.mxu0  ;;  %v2275_v4 = vpop.f32.mrf.mxu1  ;;  %v2453_v49 = vadd.f32 %v2421_v35, %v5613_v0  ;;  %v2454_v18 = vadd.f32 %v2422_v17, %v5616_v34  ;;  %v2546_v1 = vadd.f32 1.0, %v4257_v43 }
 0x7db   : > { %v5641_v48 = vadd.f32 %v2246_v47, %v5486_v31  ;;  %v5644_v38 = vadd.f32 %v2275_v4, %v5488_v41  ;;  %v2359_v53 = vmul.f32 %v5631_v40, %v5631_v40  ;;  %v2577_v58 = vmul.f32 0.5, %v2545_v54 }
 0x7dc   : > { %v2360_v55 = vmul.f32 %v5634_v25, %v5634_v25  ;;  %v2485_v39 = vmul.f32 0.7978846, %v2453_v49  ;;  %v2486_v26 = vmul.f32 0.7978846, %v2454_v18  ;;  %v2578_v15 = vmul.f32 0.5, %v2546_v1 }
 0x7dd   : > { %v2361_v11 = vmul.f32 %v5641_v48, %v5641_v48  ;;  %v2362_v46 = vmul.f32 %v5644_v38, %v5644_v38  ;;  %v4259_v62 = vpop.eup %4258  ;;  %v2391_v63 = vmul.f32 %v2359_v53, %v5631_v40  ;;  %v2609_v9 = vmul.f32 %v2577_v58, %v5574_v32 }
 0x7de   : > { %v2392_v6 = vmul.f32 %v2360_v55, %v5634_v25  ;;  %v4261_v10 = vpop.eup %4260  ;;  %4262 = vtanh.f32 %v2485_v39  ;;  %v2547_v20 = vadd.f32 1.0, %v4259_v62  ;;  %v2610_v29 = vmul.f32 %v2578_v15, %v5581_v45 }
 0x7df   : > { %v2393_v44 = vmul.f32 %v2361_v11, %v5641_v48  ;;  %v2394_v16 = vmul.f32 %v2362_v46, %v5644_v38  ;;  %4264 = vtanh.f32 %v2486_v26  ;;  %v2423_v36 = vmul.f32 0.044715, %v2391_v63 }
 0x7e0   : > { %v2424_v30 = vmul.f32 0.044715, %v2392_v6  ;;  %v2633_v51 = vpack.c.bf16 %v2609_v9, %v2605_v8  ;;  %v2304_v33 = vpop.f32.mrf.mxu2  ;;  %v2579_v35 = vmul.f32 0.5, %v2547_v20  ;;  %v2634_v47 = vpack.c.bf16 %v2610_v29, %v5628_v27 }
 0x7e1   : > { %v2425_v21 = vmul.f32 0.044715, %v2393_v44  ;;  %v2426_v14 = vmul.f32 0.044715, %v2394_v16  ;;  %v2333_v52 = vpop.f32.mrf.mxu3  ;;  %v2455_v32 = vadd.f32 %v2423_v36, %v5631_v40  ;;  %v5663_v37 = vadd.f32 %v2304_v33, %v5500_v22 }
 0x7e2   : > { %v2456_v17 = vadd.f32 %v2424_v30, %v5634_v25  ;;  %v5666_v3 = vadd.f32 %v2333_v52, %v5502_v28  ;;  %2917 = vmatmul.bf16.gmra.mxu0 %v2633_v51  ;;  %v2607_v45 = vmul.f32 %v2575_v50, %v5566_v59  ;;  %2946 = vmatmul.bf16.gmra.mxu1 %v2634_v47  ;;  %v2548_v39 = vadd.f32 1.0, %v4261_v10 }
 0x7e3   : > { %v2457_v8 = vadd.f32 %v2425_v21, %v5641_v48  ;;  %v2458_v43 = vadd.f32 %v2426_v14, %v5644_v38  ;;  %v2487_v4 = vmul.f32 0.7978846, %v2455_v32  ;;  %v2363_v49 = vmul.f32 %v5663_v37, %v5663_v37 }
 0x7e4   : > { %v2488_v54 = vmul.f32 0.7978846, %v2456_v17  ;;  %v2364_v18 = vmul.f32 %v5666_v3, %v5666_v3  ;;  %v4263_v53 = vpop.eup %4262  ;;  %v2611_v1 = vmul.f32 %v2579_v35, %v5598_v19  ;;  %v2580_v11 = vmul.f32 0.5, %v2548_v39 }
 0x7e5   : > { %v2489_v55 = vmul.f32 0.7978846, %v2457_v8  ;;  %v2490_v58 = vmul.f32 0.7978846, %v2458_v43  ;;  %v4265_v26 = vpop.eup %4264  ;;  %4266 = vtanh.f32 %v2487_v4  ;;  %v2395_v27 = vmul.f32 %v2363_v49, %v5663_v37 }
 0x7e6   : > { %v2396_v59 = vmul.f32 %v2364_v18, %v5666_v3  ;;  %4268 = vtanh.f32 %v2488_v54  ;;  %v2635_v50 = vpack.c.bf16 %v2611_v1, %v2607_v45  ;;  %v2608_v63 = vmul.f32 %v5636_v5, %v5571_v57 }
 0x7e7   : > { %4270 = vtanh.f32 %v2489_v55  ;;  %v2427_v46 = vmul.f32 0.044715, %v2395_v27  ;;  %v2612_v19 = vmul.f32 %v2580_v11, %v5602_v42  ;;  %v2549_v10 = vadd.f32 1.0, %v4263_v53 }
 0x7e8   : > { %v2428_v62 = vmul.f32 0.044715, %v2396_v59  ;;  %4272 = vtanh.f32 %v2490_v58  ;;  %2975 = vmatmul.bf16.gmra.mxu2 %v2635_v50  ;;  %v2550_v36 = vadd.f32 1.0, %v4265_v26 }
 0x7e9   : > { %v2459_v6 = vadd.f32 %v2427_v46, %v5663_v37  ;;  %v2636_v15 = vpack.c.bf16 %v2612_v19, %v2608_v63  ;;  %v2581_v57 = vmul.f32 0.5, %v2549_v10 }
 0x7ea   : > { %v2460_v9 = vadd.f32 %v2428_v62, %v5666_v3  ;;  %v2582_v42 = vmul.f32 0.5, %v2550_v36 }
 0x7eb   : > { %v4267_v44 = vpop.eup %4266  ;;  %v2491_v16 = vmul.f32 0.7978846, %v2459_v6  ;;  %3004 = vmatmul.bf16.gmra.mxu3 %v2636_v15  ;;  %v2613_v32 = vmul.f32 %v2581_v57, %v5613_v0 }
 0x7ec   : > { %v2492_v20 = vmul.f32 0.7978846, %v2460_v9  ;;  %v4269_v30 = vpop.eup %4268  ;;  %v2551_v52 = vadd.f32 1.0, %v4267_v44  ;;  %v2614_v43 = vmul.f32 %v2582_v42, %v5616_v34 }
 0x7ed   : > { %v4271_v51 = vpop.eup %4270  ;;  %4274 = vtanh.f32 %v2491_v16  ;;  %v2552_v35 = vadd.f32 1.0, %v4269_v30 }
 0x7ee   : > { %v4273_v21 = vpop.eup %4272  ;;  %4276 = vtanh.f32 %v2492_v20  ;;  %v2553_v14 = vadd.f32 1.0, %v4271_v51  ;;  %v2583_v49 = vmul.f32 0.5, %v2551_v52 }
 0x7ef   : > { %v2554_v5 = vadd.f32 1.0, %v4273_v21  ;;  %v2584_v55 = vmul.f32 0.5, %v2552_v35 }
 0x7f0   : > { %v2585_v33 = vmul.f32 0.5, %v2553_v14  ;;  %v2615_v0 = vmul.f32 %v2583_v49, %v5631_v40 }
 0x7f1   : > { %v2586_v29 = vmul.f32 0.5, %v2554_v5  ;;  %v2616_v39 = vmul.f32 %v2584_v55, %v5634_v25 }
 0x7f2   : > { %v2617_v17 = vmul.f32 %v2585_v33, %v5641_v48 }
 0x7f3   : > { %v4275_v8 = vpop.eup %4274  ;;  %v2618_v47 = vmul.f32 %v2586_v29, %v5644_v38 }
 0x7f4   : > { %v4277_v45 = vpop.eup %4276  ;;  %v2637_v4 = vpack.c.bf16 %v2617_v17, %v2613_v32  ;;  %v2555_v54 = vadd.f32 1.0, %v4275_v8 }
 0x7f5   : > { %v2638_v18 = vpack.c.bf16 %v2618_v47, %v2614_v43  ;;  %v2556_v53 = vadd.f32 1.0, %v4277_v45 }
 0x7f6   : > { %2922 = vmatmul.bf16.gmra.mxu0 %v2637_v4  ;;  %v2587_v58 = vmul.f32 0.5, %v2555_v54 }
 0x7f7   : > { %2951 = vmatmul.bf16.gmra.mxu1 %v2638_v18  ;;  %v2588_v1 = vmul.f32 0.5, %v2556_v53 }
 0x7f8   : > { %v2619_v48 = vmul.f32 %v2587_v58, %v5663_v37 }
 0x7f9   : > { %v2620_v34 = vmul.f32 %v2588_v1, %v5666_v3 }
 0x7fa   : > { %v2639_v38 = vpack.c.bf16 %v2619_v48, %v2615_v0 }
 0x7fb   : > { %v2640_v26 = vpack.c.bf16 %v2620_v34, %v2616_v39 }
 0x7fc   : > { %2980 = vmatmul.bf16.gmra.mxu2 %v2639_v38 }
 0x7fd   : > { %3009 = vmatmul.bf16.gmra.mxu3 %v2640_v26 }
 0x81d   : > { %v2249_v27 = vpop.f32.mrf.mxu0  ;;  %v2278_v59 = vpop.f32.mrf.mxu1 }
 0x81e   : > { %v5693_v50 = vadd.f32 %v2249_v27, %v5486_v31  ;;  %v5696_v11 = vadd.f32 %v2278_v59, %v5488_v41 }
 0x820   : > { %v2365_v40 = vmul.f32 %v5693_v50, %v5693_v50  ;;  %v2366_v25 = vmul.f32 %v5696_v11, %v5696_v11 }
 0x822   : > { %v2397_v37 = vmul.f32 %v2365_v40, %v5693_v50  ;;  %v2398_v3 = vmul.f32 %v2366_v25, %v5696_v11 }
 0x824   : > { %v2429_v46 = vmul.f32 0.044715, %v2397_v37  ;;  %v2430_v62 = vmul.f32 0.044715, %v2398_v3  ;;  %v2307_v63 = vpop.f32.mrf.mxu2  ;;  %v2336_v19 = vpop.f32.mrf.mxu3 }
 0x825   : > { %v5705_v6 = vadd.f32 %v2307_v63, %v5500_v22  ;;  %v5708_v9 = vadd.f32 %v2336_v19, %v5502_v28  ;;  %v2251_v15 = vpop.f32.mrf.mxu0  ;;  %v2280_v10 = vpop.f32.mrf.mxu1 }
 0x826   : > { %v2461_v44 = vadd.f32 %v2429_v46, %v5693_v50  ;;  %v2462_v16 = vadd.f32 %v2430_v62, %v5696_v11  ;;  %v5713_v20 = vadd.f32 %v2251_v15, %v5486_v31  ;;  %v5716_v36 = vadd.f32 %v2280_v10, %v5488_v41 }
 0x827   : > { %v2367_v30 = vmul.f32 %v5705_v6, %v5705_v6  ;;  %v2368_v51 = vmul.f32 %v5708_v9, %v5708_v9 }
 0x828   : > { %v2493_v21 = vmul.f32 0.7978846, %v2461_v44  ;;  %v2369_v14 = vmul.f32 %v5713_v20, %v5713_v20  ;;  %v2370_v57 = vmul.f32 %v5716_v36, %v5716_v36  ;;  %v2494_v42 = vmul.f32 0.7978846, %v2462_v16 }
 0x829   : > { %v2399_v5 = vmul.f32 %v2367_v30, %v5705_v6  ;;  %v2400_v31 = vmul.f32 %v2368_v51, %v5708_v9 }
 0x82a   : > { %v2401_v41 = vmul.f32 %v2369_v14, %v5713_v20  ;;  %v2402_v33 = vmul.f32 %v2370_v57, %v5716_v36  ;;  %4278 = vtanh.f32 %v2493_v21 }
 0x82b   : > { %v2431_v52 = vmul.f32 0.044715, %v2399_v5  ;;  %v2432_v29 = vmul.f32 0.044715, %v2400_v31  ;;  %4280 = vtanh.f32 %v2494_v42 }
 0x82c   : > { %v2433_v35 = vmul.f32 0.044715, %v2401_v41  ;;  %v2434_v32 = vmul.f32 0.044715, %v2402_v33  ;;  %v2309_v17 = vpop.f32.mrf.mxu2  ;;  %v2338_v8 = vpop.f32.mrf.mxu3 }
 0x82d   : > { %v2463_v43 = vadd.f32 %v2431_v52, %v5705_v6  ;;  %v2464_v47 = vadd.f32 %v2432_v29, %v5708_v9  ;;  %v2310_v45 = vadd.f32 %v2309_v17, %v5500_v22  ;;  %v2339_v4 = vadd.f32 %v2338_v8, %v5502_v28 }
 0x82e   : > { %v2465_v54 = vadd.f32 %v2433_v35, %v5713_v20  ;;  %v2466_v49 = vadd.f32 %v2434_v32, %v5716_v36 }
 0x82f   : > { %v2495_v18 = vmul.f32 0.7978846, %v2463_v43  ;;  %v2496_v53 = vmul.f32 0.7978846, %v2464_v47  ;;  %v2371_v55 = vmul.f32 %v2310_v45, %v2310_v45  ;;  %v2372_v58 = vmul.f32 %v2339_v4, %v2339_v4 }
 0x830   : > { %v2497_v1 = vmul.f32 0.7978846, %v2465_v54  ;;  %v2498_v0 = vmul.f32 0.7978846, %v2466_v49  ;;  %v4279_v34 = vpop.eup %4278 }
 0x831   : > { %4282 = vtanh.f32 %v2495_v18  ;;  %v2403_v48 = vmul.f32 %v2371_v55, %v2310_v45  ;;  %v2404_v39 = vmul.f32 %v2372_v58, %v2339_v4  ;;  %v4281_v28 = vpop.eup %4280  ;;  %v2557_v59 = vadd.f32 1.0, %v4279_v34  ;;  %v5745_v18 = vld [vmem:[%s5935_s22] ss:$0 sm:$0xff]  ;;  %s4632_s22 = sshra.s32 %s3234_s25, 4  ;;  %s4633_s22 = int_to_ptr.hbm [resolvable:$true] %s4632_s22 }
 0x832   : > { %4284 = vtanh.f32 %v2496_v53  ;;  %v2558_v3 = vadd.f32 1.0, %v4281_v28  ;;  %s4634_s12 = scalar_lea.hbm %s4633_s22, 64  ;;  %p4639_p13 = scmp.lt.s32.totalorder %s4633_s22, %s5938_s16 }
 0x833   : > { %4286 = vtanh.f32 %v2497_v1  ;;  %v2435_v22 = vmul.f32 0.044715, %v2403_v48  ;;  %v2436_v38 = vmul.f32 0.044715, %v2404_v39  ;;  %v2589_v15 = vmul.f32 0.5, %v2557_v59  ;;  %p4635_p1 = scmp.ne.s32.totalorder %s4633_s22, %s4634_s12  ;;  %p4640_p7 = scmp.lt.s32.totalorder %s4638_s6, %s4634_s12 }
 0x834   : > { %4288 = vtanh.f32 %v2498_v0  ;;  %v2590_v44 = vmul.f32 0.5, %v2558_v3 }
 0x835   : > { %v2467_v26 = vadd.f32 %v2435_v22, %v2310_v45  ;;  %v2468_v27 = vadd.f32 %v2436_v38, %v2339_v4  ;;  %v2621_v14 = vmul.f32 %v2589_v15, %v5693_v50  ;;  %p4636_p3 = pnand %p4635_p1, %p4917_p0  ;;  %p4641_p8 = por %p4640_p7, %p4639_p13 }
 0x836   : > { %v2622_v31 = vmul.f32 %v2590_v44, %v5696_v11 }
 0x837   : > { %v4283_v40 = vpop.eup %4282  ;;  %v2499_v25 = vmul.f32 0.7978846, %v2467_v26  ;;  %v2500_v37 = vmul.f32 0.7978846, %v2468_v27  ;;  %p4637_p4 = pneg %p4636_p3 }
 0x838   : > { %v4285_v46 = vpop.eup %4284  ;;  %v2559_v30 = vadd.f32 1.0, %v4283_v40 }
 0x839   : > { %v4287_v62 = vpop.eup %4286  ;;  %4290 = vtanh.f32 %v2499_v25  ;;  %v2560_v21 = vadd.f32 1.0, %v4285_v46  ;;  %p4642_p9 = pnand %p4641_p8, %p4637_p4 }
 0x83a   : > { %v4289_v63 = vpop.eup %4288  ;;  %4292 = vtanh.f32 %v2500_v37  ;;  %v2561_v19 = vadd.f32 1.0, %v4287_v62  ;;  %v2591_v29 = vmul.f32 0.5, %v2559_v30 }
 0x83b   : > { %v2562_v10 = vadd.f32 1.0, %v4289_v63  ;;  %v2592_v17 = vmul.f32 0.5, %v2560_v21 }
 0x83c   : > { %v2593_v16 = vmul.f32 0.5, %v2561_v19  ;;  %v2623_v50 = vmul.f32 %v2591_v29, %v5705_v6 }
 0x83d   : > { %v2594_v51 = vmul.f32 0.5, %v2562_v10 }
 0x83e   : > { %v2625_v57 = vmul.f32 %v2593_v16, %v5713_v20  ;;  %v2624_v20 = vmul.f32 %v2592_v17, %v5708_v9 }
 0x83f   : > { %v4291_v5 = vpop.eup %4290  ;;  %v2626_v42 = vmul.f32 %v2594_v51, %v5716_v36 }
 0x840   : > { %v4293_v41 = vpop.eup %4292  ;;  %v2641_v33 = vpack.c.bf16 %v2625_v57, %v2621_v14  ;;  %v2563_v52 = vadd.f32 1.0, %v4291_v5 }
 0x841   : > { %v2642_v35 = vpack.c.bf16 %v2626_v42, %v2622_v31  ;;  %v2564_v32 = vadd.f32 1.0, %v4293_v41 }
 0x842   : > { %2927 = vmatmul.bf16.gmra.mxu0 %v2641_v33  ;;  %v2595_v8 = vmul.f32 0.5, %v2563_v52 }
 0x843   : > { %2956 = vmatmul.bf16.gmra.mxu1 %v2642_v35  ;;  %v2596_v43 = vmul.f32 0.5, %v2564_v32 }
 0x844   : > { %v2627_v47 = vmul.f32 %v2595_v8, %v2310_v45 }
 0x845   : > { %v2628_v54 = vmul.f32 %v2596_v43, %v2339_v4  ;;  %v2913_v49 = vpop.f32.mrf.mxu0 }
 0x846   : > { %v2643_v11 = vpack.c.bf16 %v2627_v47, %v2623_v50  ;;  %v2914_v53 = vadd.f32 %v5745_v18, %v2913_v49  ;;  %v2942_v55 = vpop.f32.mrf.mxu1 }
 0x847   : > { %v2644_v36 = vpack.c.bf16 %v2628_v54, %v2624_v20 }
 0x848   : > { %2985 = vmatmul.bf16.gmra.mxu2 %v2643_v11  ;;  %v2943_v58 = vadd.f32 %v2942_v55, %v2914_v53 }
 0x849   : > { %3014 = vmatmul.bf16.gmra.mxu3 %v2644_v36 }
 0x84d   : > { %v2915_v1 = vpop.f32.mrf.mxu0 }
 0x84e   : > { %v2916_v9 = vadd.f32 %v5745_v18, %v2915_v1  ;;  %v2944_v39 = vpop.f32.mrf.mxu1 }
 0x850   : > { %v2945_v34 = vadd.f32 %v2944_v39, %v2916_v9 }
 0x851   : > { %v2971_v6 = vpop.f32.mrf.mxu2 }
 0x852   : > { %v2972_v45 = vadd.f32 %v2971_v6, %v2943_v58  ;;  %v3000_v0 = vpop.f32.mrf.mxu3 }
 0x854   : > { %v3001_v4 = vadd.f32 %v3000_v0, %v2972_v45 }
 0x856   : > { %v3020_v48 = vadd.f32 %v3001_v4, %v5368_v2 }
 0x858   : > { %3028 = vadd.xlane.f32.xlu0 %v3020_v48 }
 0x859   : > { %v2973_v22 = vpop.f32.mrf.mxu2 }
 0x85a   : > { %v2974_v38 = vadd.f32 %v2973_v22, %v2945_v34  ;;  %v3002_v28 = vpop.f32.mrf.mxu3 }
 0x85c   : > { %v3003_v26 = vadd.f32 %v3002_v28, %v2974_v38 }
 0x85e   : > { %v5751_v27 = vadd.f32 %v3003_v26, %v5372_v56 }
 0x85f   : > { %v2918_v59 = vpop.f32.mrf.mxu0  ;;  %v2947_v25 = vpop.f32.mrf.mxu1 }
 0x860   : > { %3030 = vadd.xlane.f32.xlu2 %v5751_v27  ;;  %v2919_v40 = vadd.f32 %v5745_v18, %v2918_v59 }
 0x862   : > { %v2948_v37 = vadd.f32 %v2947_v25, %v2919_v40 }
 0x867   : > { %v2920_v3 = vpop.f32.mrf.mxu0  ;;  %v2949_v15 = vpop.f32.mrf.mxu1 }
 0x868   : > { %v2921_v62 = vadd.f32 %v5745_v18, %v2920_v3 }
 0x86a   : > { %v2950_v10 = vadd.f32 %v2949_v15, %v2921_v62 }
 0x86b   : > { %v2976_v46 = vpop.f32.mrf.mxu2 }
 0x86c   : > { %v2977_v2 = vadd.f32 %v2976_v46, %v2948_v37 }
 0x86e   : > { %v3005_v63 = vpop.f32.mrf.mxu3 }
 0x86f   : > { %v3006_v19 = vadd.f32 %v3005_v63, %v2977_v2 }
 0x871   : > { %v3022_v44 = vadd.f32 %v3006_v19, %v5376_v7 }
 0x873   : > { %v2978_v56 = vpop.f32.mrf.mxu2  ;;  %3032 = vadd.xlane.f32.xlu1 %v3022_v44  ;;  %v2923_v30 = vpop.f32.mrf.mxu0 }
 0x874   : > { %v2979_v16 = vadd.f32 %v2978_v56, %v2950_v10  ;;  %v2924_v14 = vadd.f32 %v5745_v18, %v2923_v30  ;;  %v2952_v5 = vpop.f32.mrf.mxu1 }
 0x876   : > { %v3007_v51 = vpop.f32.mrf.mxu3  ;;  %v2953_v31 = vadd.f32 %v2952_v5, %v2924_v14 }
 0x877   : > { %v3008_v21 = vadd.f32 %v3007_v51, %v2979_v16 }
 0x879   : > { %v3023_v57 = vadd.f32 %v3008_v21, %v5380_v12 }
 0x87b   : > { %3034 = vadd.xlane.f32.xlu0 %v3023_v57  ;;  %v2925_v42 = vpop.f32.mrf.mxu0 }
 0x87c   : > { %v2926_v29 = vadd.f32 %v5745_v18, %v2925_v42  ;;  %v2954_v32 = vpop.f32.mrf.mxu1 }
 0x87e   : > { %v2955_v17 = vadd.f32 %v2954_v32, %v2926_v29 }
 0x87f   : > { %v2981_v41 = vpop.f32.mrf.mxu2 }
 0x880   : > { %v2982_v33 = vadd.f32 %v2981_v41, %v2953_v31  ;;  %v3010_v52 = vpop.f32.mrf.mxu3 }
 0x882   : > { %v3011_v7 = vadd.f32 %v3010_v52, %v2982_v33 }
 0x884   : > { %v3024_v35 = vadd.f32 %v3011_v7, %v5384_v61 }
 0x886   : > { %3036 = vadd.xlane.f32.xlu2 %v3024_v35 }
 0x887   : > { %v2983_v8 = vpop.f32.mrf.mxu2 }
 0x888   : > { %v2984_v43 = vadd.f32 %v2983_v8, %v2955_v17  ;;  %v3012_v50 = vpop.f32.mrf.mxu3 }
 0x88a   : > { %v3013_v47 = vadd.f32 %v3012_v50, %v2984_v43 }
 0x88c   : > { %v3025_v12 = vadd.f32 %v3013_v47, %v5388_v23 }
 0x88e   : > { %3038 = vadd.xlane.f32.xlu1 %v3025_v12 }
 0x8bf   : > { %v2928_v20 = vpop.f32.mrf.mxu0 }
 0x8c0   : > { %v2929_v54 = vadd.f32 %v5745_v18, %v2928_v20  ;;  %v2957_v11 = vpop.f32.mrf.mxu1 }
 0x8c2   : > { %v2958_v49 = vadd.f32 %v2957_v11, %v2929_v54  ;;  %v5812_v54 = vld [vmem:[%s5936_s24] ss:$0 sm:$0xff] }
 0x8c7   : > { %v2930_v36 = vpop.f32.mrf.mxu0 }
 0x8c8   : > { %v2931_v6 = vadd.f32 %v5745_v18, %v2930_v36  ;;  %v2959_v4 = vpop.f32.mrf.mxu1  ;;  %v5817_v36 = vld [vmem:[%s5937_s2] ss:$0 sm:$0xff] }
 0x8ca   : > { %v2960_v39 = vadd.f32 %v2959_v4, %v2931_v6 }
 0x8cb   : > { %v2986_v53 = vpop.f32.mrf.mxu2  ;;  %v3029_v55 = vpop.xlane.xlu0 %3028 }
 0x8cc   : > { %v2987_v58 = vadd.f32 %v2986_v53, %v2958_v49  ;;  %v3015_v61 = vpop.f32.mrf.mxu3  ;;  %v3044_v1 = vmul.f32 %v3029_v55, %v4989_v13 }
 0x8ce   : > { %v3016_v45 = vadd.f32 %v3015_v61, %v2987_v58  ;;  %v5765_v0 = vsub.f32 %v3020_v48, %v3044_v1 }
 0x8d0   : > { %v3026_v23 = vadd.f32 %v3016_v45, %v5392_v60  ;;  %v3060_v9 = vmul.f32 %v5765_v0, %v5765_v0 }
 0x8d2   : > { %3040 = vadd.xlane.f32.xlu0 %v3026_v23  ;;  %3068 = vadd.xlane.f32.xlu1 %v3060_v9 }
 0x8d3   : > { %v2988_v34 = vpop.f32.mrf.mxu2  ;;  %v3031_v22 = vpop.xlane.xlu2 %3030 }
 0x8d4   : > { %v2989_v38 = vadd.f32 %v2988_v34, %v2960_v39  ;;  %v3045_v28 = vmul.f32 %v3031_v22, %v4989_v13  ;;  %v3017_v26 = vpop.f32.mrf.mxu3 }
 0x8d6   : > { %v3018_v59 = vadd.f32 %v3017_v26, %v2989_v38  ;;  %v5772_v18 = vsub.f32 %v5751_v27, %v3045_v28 }
 0x8d8   : > { %v3061_v60 = vmul.f32 %v5772_v18, %v5772_v18  ;;  %v3027_v48 = vadd.f32 %v3018_v59, %v5406_v24 }
 0x8da   : > { %3070 = vadd.xlane.f32.xlu0 %v3061_v60  ;;  %3042 = vadd.xlane.f32.xlu2 %v3027_v48 }
 0x8e6   : > { %v3033_v40 = vpop.xlane.xlu1 %3032 }
 0x8e7   : > { %v3046_v25 = vmul.f32 %v3033_v40, %v4989_v13 }
 0x8e9   : > { %v5778_v37 = vsub.f32 %v3022_v44, %v3046_v25 }
 0x8eb   : > { %v3062_v3 = vmul.f32 %v5778_v37, %v5778_v37 }
 0x8ed   : > { %3072 = vadd.xlane.f32.xlu2 %v3062_v3 }
 0x8ee   : > { %v3035_v46 = vpop.xlane.xlu0 %3034 }
 0x8ef   : > { %v3047_v27 = vmul.f32 %v3035_v46, %v4989_v13 }
 0x8f1   : > { %v5783_v2 = vsub.f32 %v3023_v57, %v3047_v27 }
 0x8f3   : > { %v3063_v62 = vmul.f32 %v5783_v2, %v5783_v2 }
 0x8f5   : > { %3074 = vadd.xlane.f32.xlu1 %v3063_v62 }
 0x8f9   : > { %v3037_v24 = vpop.xlane.xlu2 %3036 }
 0x8fa   : > { %v3048_v63 = vmul.f32 %v3037_v24, %v4989_v13 }
 0x8fc   : > { %v5788_v19 = vsub.f32 %v3024_v35, %v3048_v63 }
 0x8fe   : > { %v3064_v15 = vmul.f32 %v5788_v19, %v5788_v19 }
 0x900   : > { %3076 = vadd.xlane.f32.xlu0 %v3064_v15 }
 0x901   : > { %v3039_v10 = vpop.xlane.xlu1 %3038 }
 0x902   : > { %v3049_v44 = vmul.f32 %v3039_v10, %v4989_v13 }
 0x904   : > { %v5793_v56 = vsub.f32 %v3025_v12, %v3049_v44 }
 0x906   : > { %v3065_v16 = vmul.f32 %v5793_v56, %v5793_v56 }
 0x908   : > { %3078 = vadd.xlane.f32.xlu2 %v3065_v16 }
 0x945   : > { %v3041_v30 = vpop.xlane.xlu0 %3040  ;;  %v3069_v51 = vpop.xlane.xlu1 %3068 }
 0x946   : > { %v3050_v21 = vmul.f32 %v3041_v30, %v4989_v13  ;;  %v3084_v14 = vmul.f32 %v3069_v51, %v4989_v13 }
 0x948   : > { %v5799_v57 = vsub.f32 %v3026_v23, %v3050_v21  ;;  %v3092_v5 = vadd.f32 1e-05, %v3084_v14 }
 0x94a   : > { %4294 = vrsqrt.f32 %v3092_v5  ;;  %v3066_v31 = vmul.f32 %v5799_v57, %v5799_v57  ;;  %vm3106_vm3 = vweird.f32 %v3092_v5 }
 0x94c   : > { %3080 = vadd.xlane.f32.xlu1 %v3066_v31 }
 0x94d   : > { %v3071_v42 = vpop.xlane.xlu0 %3070  ;;  %v3043_v41 = vpop.xlane.xlu2 %3042 }
 0x94e   : > { %v3085_v33 = vmul.f32 %v3071_v42, %v4989_v13  ;;  %v3051_v52 = vmul.f32 %v3043_v41, %v4989_v13 }
 0x950   : > { %v4295_v29 = vpop.eup %4294  ;;  %v3093_v7 = vadd.f32 1e-05, %v3085_v33  ;;  %v5805_v35 = vsub.f32 %v3027_v48, %v3051_v52 }
 0x951   : > { %v3101_v32 = vmul.f32 %v4295_v29, %v3092_v5  ;;  %vm3107_vm2 = vweird.f32 %v4295_v29 }
 0x952   : > { %4296 = vrsqrt.f32 %v3093_v7  ;;  %v3067_v17 = vmul.f32 %v5805_v35, %v5805_v35  ;;  %vm3108_vm4 = vmor %vm3106_vm3, %vm3107_vm2  ;;  %vm3116_vm6 = vweird.f32 %v3093_v7 }
 0x953   : > { %v3102_v8 = vmul.f32 %v4295_v29, %v3101_v32 }
 0x954   : > { %3082 = vadd.xlane.f32.xlu0 %v3067_v17 }
 0x955   : > { %v3103_v43 = vmul.f32 0.5, %v3102_v8 }
 0x957   : > { %v3104_v50 = vsub.f32 1.5, %v3103_v43 }
 0x958   : > { %v4297_v47 = vpop.eup %4296 }
 0x959   : > { %v3105_v12 = vmul.f32 %v4295_v29, %v3104_v50  ;;  %v3111_v20 = vmul.f32 %v4297_v47, %v3093_v7  ;;  %vm3117_vm5 = vweird.f32 %v4297_v47 }
 0x95a   : > { %vm3118_vm7 = vmor %vm3116_vm6, %vm3117_vm5 }
 0x95b   : > { %v3109_v11 = vsel %vm3108_vm4, %v4295_v29, %v3105_v12  ;;  %v3112_v49 = vmul.f32 %v4297_v47, %v3111_v20 }
 0x95c   : > { %v3180_v53 = vmul.f32 %v3109_v11, %v5765_v0 }
 0x95d   : > { %v3113_v55 = vmul.f32 0.5, %v3112_v49 }
 0x95e   : > { %v3191_v58 = vmul.f32 %v5812_v54, %v3180_v53 }
 0x95f   : > { %v3114_v61 = vsub.f32 1.5, %v3113_v55 }
 0x960   : > { %v3202_v1 = vadd.f32 %v5817_v36, %v3191_v58  ;;  %v3073_v45 = vpop.xlane.xlu2 %3072 }
 0x961   : > { %v3115_v6 = vmul.f32 %v4297_v47, %v3114_v61  ;;  %v3086_v23 = vmul.f32 %v3073_v45, %v4989_v13 }
 0x962   : > { %3210 = vst [vmem:[%s5824_s26] sm:$0xff] %v3202_v1 }
 0x963   : > { %v3119_v0 = vsel %vm3118_vm7, %v4297_v47, %v3115_v6  ;;  %v3094_v4 = vadd.f32 1e-05, %v3086_v23 }
 0x964   : > { %v3181_v9 = vmul.f32 %v3119_v0, %v5772_v18 }
 0x965   : > { %4298 = vrsqrt.f32 %v3094_v4  ;;  %vm3126_vm9 = vweird.f32 %v3094_v4 }
 0x966   : > { %v3192_v39 = vmul.f32 %v5812_v54, %v3181_v9 }
 0x968   : > { %v3203_v34 = vadd.f32 %v5817_v36, %v3192_v39  ;;  %v3075_v22 = vpop.xlane.xlu1 %3074 }
 0x969   : > { %v3087_v38 = vmul.f32 %v3075_v22, %v4989_v13 }
 0x96a   : > { %3211 = vst [vmem:[%s5824_s26 + $0x8] sm:$0xff] %v3203_v34 }
 0x96b   : > { %v4299_v28 = vpop.eup %4298  ;;  %v3095_v26 = vadd.f32 1e-05, %v3087_v38 }
 0x96c   : > { %v3121_v59 = vmul.f32 %v4299_v28, %v3094_v4  ;;  %vm3127_vm8 = vweird.f32 %v4299_v28 }
 0x96d   : > { %4300 = vrsqrt.f32 %v3095_v26  ;;  %vm3128_vm10 = vmor %vm3126_vm9, %vm3127_vm8  ;;  %vm3136_vm12 = vweird.f32 %v3095_v26 }
 0x96e   : > { %v3122_v60 = vmul.f32 %v4299_v28, %v3121_v59 }
 0x970   : > { %v3123_v48 = vmul.f32 0.5, %v3122_v60 }
 0x972   : > { %v3124_v40 = vsub.f32 1.5, %v3123_v48 }
 0x973   : > { %v3077_v25 = vpop.xlane.xlu0 %3076  ;;  %v4301_v18 = vpop.eup %4300 }
 0x974   : > { %v3088_v3 = vmul.f32 %v3077_v25, %v4989_v13  ;;  %v3125_v46 = vmul.f32 %v4299_v28, %v3124_v40  ;;  %v3131_v27 = vmul.f32 %v4301_v18, %v3095_v26  ;;  %vm3137_vm11 = vweird.f32 %v4301_v18 }
 0x975   : > { %vm3138_vm13 = vmor %vm3136_vm12, %vm3137_vm11 }
 0x976   : > { %v3096_v62 = vadd.f32 1e-05, %v3088_v3  ;;  %v3129_v24 = vsel %vm3128_vm10, %v4299_v28, %v3125_v46  ;;  %v3132_v63 = vmul.f32 %v4301_v18, %v3131_v27 }
 0x977   : > { %v3182_v15 = vmul.f32 %v3129_v24, %v5778_v37 }
 0x978   : > { %4302 = vrsqrt.f32 %v3096_v62  ;;  %v3133_v10 = vmul.f32 0.5, %v3132_v63  ;;  %vm3146_vm15 = vweird.f32 %v3096_v62 }
 0x979   : > { %v3193_v44 = vmul.f32 %v5812_v54, %v3182_v15 }
 0x97a   : > { %v3134_v16 = vsub.f32 1.5, %v3133_v10 }
 0x97b   : > { %v3079_v30 = vpop.xlane.xlu2 %3078  ;;  %v3204_v51 = vadd.f32 %v5817_v36, %v3193_v44 }
 0x97c   : > { %v3089_v21 = vmul.f32 %v3079_v30, %v4989_v13  ;;  %v3135_v14 = vmul.f32 %v4301_v18, %v3134_v16 }
 0x97d   : > { %3212 = vst [vmem:[%s5824_s26 + $0x10] sm:$0xff] %v3204_v51 }
 0x97e   : > { %v4303_v5 = vpop.eup %4302  ;;  %v3097_v31 = vadd.f32 1e-05, %v3089_v21  ;;  %v3139_v42 = vsel %vm3138_vm13, %v4301_v18, %v3135_v14 }
 0x97f   : > { %v3141_v37 = vmul.f32 %v4303_v5, %v3096_v62  ;;  %v3183_v41 = vmul.f32 %v3139_v42, %v5783_v2  ;;  %vm3147_vm14 = vweird.f32 %v4303_v5 }
 0x980   : > { %4304 = vrsqrt.f32 %v3097_v31  ;;  %vm3148_vm0 = vmor %vm3146_vm15, %vm3147_vm14  ;;  %vm3156_vm2 = vweird.f32 %v3097_v31 }
 0x981   : > { %v3142_v33 = vmul.f32 %v4303_v5, %v3141_v37  ;;  %v3194_v52 = vmul.f32 %v5812_v54, %v3183_v41 }
 0x983   : > { %v3143_v29 = vmul.f32 0.5, %v3142_v33  ;;  %v3205_v7 = vadd.f32 %v5817_v36, %v3194_v52 }
 0x985   : > { %v3144_v32 = vsub.f32 1.5, %v3143_v29  ;;  %3213 = vst [vmem:[%s5824_s26 + $0x18] sm:$0xff] %v3205_v7 }
 0x986   : > { %v4305_v17 = vpop.eup %4304 }
 0x987   : > { %v3145_v8 = vmul.f32 %v4303_v5, %v3144_v32  ;;  %v3151_v43 = vmul.f32 %v4305_v17, %v3097_v31  ;;  %vm3157_vm1 = vweird.f32 %v4305_v17 }
 0x988   : > { %vm3158_vm3 = vmor %vm3156_vm2, %vm3157_vm1 }
 0x989   : > { %v3149_v50 = vsel %vm3148_vm0, %v4303_v5, %v3145_v8  ;;  %v3152_v47 = vmul.f32 %v4305_v17, %v3151_v43 }
 0x98a   : > { %v3184_v2 = vmul.f32 %v3149_v50, %v5788_v19 }
 0x98b   : > { %v3153_v12 = vmul.f32 0.5, %v3152_v47 }
 0x98c   : > { %v3195_v20 = vmul.f32 %v5812_v54, %v3184_v2 }
 0x98d   : > { %v3154_v11 = vsub.f32 1.5, %v3153_v12 }
 0x98e   : > { %v3206_v49 = vadd.f32 %v5817_v36, %v3195_v20 }
 0x98f   : > { %v3155_v53 = vmul.f32 %v4305_v17, %v3154_v11 }
 0x990   : > { %3214 = vst [vmem:[%s5824_s26 + $0x20] sm:$0xff] %v3206_v49 }
 0x991   : > { %v3159_v55 = vsel %vm3158_vm3, %v4305_v17, %v3155_v53 }
 0x992   : > { %v3185_v58 = vmul.f32 %v3159_v55, %v5793_v56 }
 0x994   : > { %v3196_v61 = vmul.f32 %v5812_v54, %v3185_v58 }
 0x996   : > { %v3207_v1 = vadd.f32 %v5817_v36, %v3196_v61 }
 0x998   : > { %3215 = vst [vmem:[%s5824_s26 + $0x28] sm:$0xff] %v3207_v1 }
 0x9bf   : > { %v3081_v19 = vpop.xlane.xlu1 %3080 }
 0x9c0   : > { %v3090_v6 = vmul.f32 %v3081_v19, %v4989_v13 }
 0x9c2   : > { %v3098_v45 = vadd.f32 1e-05, %v3090_v6 }
 0x9c4   : > { %4306 = vrsqrt.f32 %v3098_v45  ;;  %vm3166_vm5 = vweird.f32 %v3098_v45 }
 0x9c7   : > { %v3083_v23 = vpop.xlane.xlu0 %3082 }
 0x9c8   : > { %v3091_v0 = vmul.f32 %v3083_v23, %v4989_v13 }
 0x9ca   : > { %v4307_v9 = vpop.eup %4306  ;;  %v3099_v4 = vadd.f32 1e-05, %v3091_v0 }
 0x9cb   : > { %v3161_v39 = vmul.f32 %v4307_v9, %v3098_v45  ;;  %vm3167_vm4 = vweird.f32 %v4307_v9 }
 0x9cc   : > { %4308 = vrsqrt.f32 %v3099_v4  ;;  %vm3168_vm6 = vmor %vm3166_vm5, %vm3167_vm4  ;;  %vm3176_vm8 = vweird.f32 %v3099_v4 }
 0x9cd   : > { %v3162_v34 = vmul.f32 %v4307_v9, %v3161_v39 }
 0x9cf   : > { %v3163_v56 = vmul.f32 0.5, %v3162_v34 }
 0x9d1   : > { %v3164_v22 = vsub.f32 1.5, %v3163_v56 }
 0x9d2   : > { %v4309_v38 = vpop.eup %4308 }
 0x9d3   : > { %v3165_v28 = vmul.f32 %v4307_v9, %v3164_v22  ;;  %v3171_v26 = vmul.f32 %v4309_v38, %v3099_v4  ;;  %vm3177_vm7 = vweird.f32 %v4309_v38 }
 0x9d4   : > { %vm3178_vm9 = vmor %vm3176_vm8, %vm3177_vm7 }
 0x9d5   : > { %v3169_v59 = vsel %vm3168_vm6, %v4307_v9, %v3165_v28  ;;  %v3172_v60 = vmul.f32 %v4309_v38, %v3171_v26 }
 0x9d6   : > { %v3186_v13 = vmul.f32 %v3169_v59, %v5799_v57 }
 0x9d7   : > { %v3173_v48 = vmul.f32 0.5, %v3172_v60 }
 0x9d8   : > { %v3197_v40 = vmul.f32 %v5812_v54, %v3186_v13 }
 0x9d9   : > { %v3174_v25 = vsub.f32 1.5, %v3173_v48 }
 0x9da   : > { %v3208_v18 = vadd.f32 %v5817_v36, %v3197_v40 }
 0x9db   : > { %v3175_v3 = vmul.f32 %v4309_v38, %v3174_v25 }
 0x9dc   : > { %3216 = vst [vmem:[%s5824_s26 + $0x30] sm:$0xff] %v3208_v18 }
 0x9dd   : > { %v3179_v57 = vsel %vm3178_vm9, %v4309_v38, %v3175_v3 }
 0x9de   : > { %v3187_v46 = vmul.f32 %v3179_v57, %v5805_v35 }
 0x9e0   : > { %v3198_v27 = vmul.f32 %v5812_v54, %v3187_v46 }
 0x9e2   : > { %v3209_v62 = vadd.f32 %v5817_v36, %v3198_v27 }
 0x9e4   : > { %3217 = vst [vmem:[%s5824_s26 + $0x38] sm:$0xff] %v3209_v62 }
 0x9e5   : > { %4645 = shalt.err (!%p4642_p9)
}
 0x9e6   : > { %s4725_s23 = smov 128   ;;  %s4726_s26 = smov 8  }
 0x9e7   : > { %3993 = dma.vmem_to_hbm [thread:$0]  (%p4917_p0), %s3232_s3, 1024, %s3234_s25, %s3219_s30, %s4725_s23, %s4725_s23, %s4726_s26  }
 0x9e8 PF: > { %s3248_s5 = sand.u32 1, %s4692_s18   ;;  %p5939_p10 = scmp.ge.s32.totalorder %s4704_s21, 2 }
 0x9e9   : > { %s3249_s17 = scalar_lea.sflag [#allocation4], %s3248_s5 }
 0x9ea   : > { %p4028_p11 = pnand %p5939_p10, %p4923_p6 }
 0x9ec   : > { %p4029_p12 = pneg %p4028_p11 }
 0x9ee   : > { %4687 = dma.done.wait (%p4029_p12), %s3249_s17, 1024  }
 0x9ef   : > { %4689 = vsyncadd (%p4029_p12), %s3249_s17, 4294966272  ;;  %p33_p2 = scmp.ge.s32.totalorder %s4893_s15, 4   ;;  %s5940_s18 = smov %s4696_s19 }
 0x9f0   : > { %s5941_s19 = smov %s4700_s20  ;;  %s5942_s20 = smov %s4905_s27 }
 0x9f1   : > { %s5943_s21 = smov %s4893_s15  ;;  %35 = sbr.rel (!%p33_p2) target bundleno = 21 (0x15), region = 161 }
 0x9f6   :  { %3255 = vsyncpa [#allocation3], 1 }
 0x9f7   :  { %3257 = vsyncpa [#allocation3 + $0x1], 1 }
 0x9f8   :  { %3258 = vsyncpa [#allocation6], 1 }
 0x9f9   :  { %3259 = vsyncpa [#allocation9], 1 }
 0x9fa   :  { %3260 = vsyncpa [#allocation12], 1 }
 0x9fb   :  { %3261 = vsyncpa [#allocation15], 1 }
 0x9fc   :  { %3262 = vsyncpa [#allocation18], 1 }
 0x9fd   :  { %3263 = vsyncpa [#allocation4], 1 }
 0x9fe   :  { %3265 = vsyncpa [#allocation4 + $0x1], 1 }

</bundles_post_ra>
